<compile_context>
chip_gen: v6e
topology: v6e:2x2x1
jax: 0.10.0
libtpu: 0.0.40
codegen_flags: <defaults>
</compile_context>

<pallas_src>
import functools

import jax
import jax.numpy as jnp
from jax.experimental import pallas as pl
from jax.experimental.pallas import tpu as pltpu

COUT_PAD = 128  # output-channel (N-side) padding only: lane-dense stores


def _round_up(x, m):
    return (x + m - 1) // m * m


# ----------------------------------------------------------------------------
# Pallas kernel: `bm` whole images of one BasicBlock per grid step
# ----------------------------------------------------------------------------
def _basic_block_kernel(*refs, stride, bm, Ho, Wo, cin_p, planes_p, has_proj):
    s = stride
    xph_ref, w1_ref, b1_ref, w2_ref, b2_ref = refs[:5]
    idx = 5
    if has_proj:
        scw_ref, scb_ref = refs[idx], refs[idx + 1]
        idx += 2
    out_ref = refs[idx]
    hp_ref = refs[idx + 1]                    # (bm, Ho+2, Wo+2, planes_p) halo scratch

    cout = out_ref.shape[-1]
    cin_blk = xph_ref.shape[-1]               # storage width of the input block
    M = bm * Ho * Wo

    def tap(kh, kw, cw):
        # x_pad[b, s*i + kh, s*j + kw, :cw] for every (b, i, j) of this step.
        p = (kh % s) * s + (kw % s)
        a0, b0 = kh // s, kw // s
        t = xph_ref[p, :, a0:a0 + Ho, b0:b0 + Wo, :cw]       # (bm, Ho, Wo, cw)
        return t.reshape(M, cw)           # layout-preserving when Wo % 8 == 0

    # ---- conv1 (3x3, stride s) + folded BN1 + ReLU -------------------------
    # K = cin_p (real input width, multiple of 8) instead of 128.
    acc = jnp.zeros((M, cout), jnp.float32)
    for kh in range(3):
        for kw in range(3):
            acc += jnp.dot(tap(kh, kw, cin_p), w1_ref[kh, kw],
                           preferred_element_type=jnp.float32)
    h = jnp.maximum(acc + b1_ref[...], 0.0)

    # ---- stash intermediate in the halo scratch (only the border is zeroed) -
    hp_ref[:, 0:1, :, :] = jnp.zeros((bm, 1, Wo + 2, planes_p), hp_ref.dtype)
    hp_ref[:, Ho + 1:Ho + 2, :, :] = jnp.zeros((bm, 1, Wo + 2, planes_p), hp_ref.dtype)
    hp_ref[:, 1:Ho + 1, 0:1, :] = jnp.zeros((bm, Ho, 1, planes_p), hp_ref.dtype)
    hp_ref[:, 1:Ho + 1, Wo + 1:Wo + 2, :] = jnp.zeros((bm, Ho, 1, planes_p), hp_ref.dtype)
    hp_ref[:, 1:Ho + 1, 1:Wo + 1, :] = (
        h[:, :planes_p].reshape(bm, Ho, Wo, planes_p).astype(hp_ref.dtype))

    # ---- conv2 (3x3, stride 1) + folded BN2 --------------------------------
    acc2 = jnp.zeros((M, cout), jnp.float32)
    for kh in range(3):
        for kw in range(3):
            t = hp_ref[:, kh:kh + Ho, kw:kw + Wo, :].reshape(M, planes_p)
            acc2 += jnp.dot(t, w2_ref[kh, kw], preferred_element_type=jnp.float32)
    y = acc2 + b2_ref[...]

    # ---- shortcut: 1x1 projection conv + folded BN, or identity ------------
    if has_proj:
        sc = jnp.dot(tap(1, 1, cin_p), scw_ref[...],
                     preferred_element_type=jnp.float32) + scb_ref[...]
    else:
        sc = tap(1, 1, cin_blk).astype(jnp.float32)
        if cin_blk < cout:      # identity-first-block edge case (not hit in demo)
            sc = jnp.concatenate(
                [sc, jnp.zeros((M, cout - cin_blk), jnp.float32)], axis=-1)

    out = jnp.maximum(y + sc, 0.0)
    out_ref[...] = out.reshape(bm, Ho, Wo, cout).astype(out_ref.dtype)


# ----------------------------------------------------------------------------
# Wrapper: BN folding, N-side-only padding, phase split, pallas_call
# ----------------------------------------------------------------------------
def _bn_fold(bn, eps=1e-5):
    gamma, beta, mean, var = bn
    scale = gamma / jnp.sqrt(var + eps)
    return scale, beta - mean * scale


def _pad_to(a, axis, size):
    if a.shape[axis] == size:
        return a
    assert a.shape[axis] < size, (a.shape, axis, size)
    pads = [(0, 0)] * a.ndim
    pads[axis] = (0, size - a.shape[axis])
    return jnp.pad(a, pads)


def _pick_bm(B, Ho, Wo, target_m=256):
    """Largest per-step batch fold with >=2 grid steps (when B allows) and M >= target."""
    bm = 1
    for cand in range(1, B + 1):
        if B % cand:
            continue
        if B >= 2 and B // cand < 2:
            break            # keep >=2 'parallel' steps so both v7x cores get work
        bm = cand
        if cand * Ho * Wo >= target_m:
            break
    return bm


def basic_block_forward(x_nhwc, in_planes, planes, params, stride):
    """relu( bn2(conv2( relu(bn1(conv1(x))) )) + shortcut(x) )   (NHWC).

    x_nhwc:  (B, H, W, Cx) with Cx >= in_planes; channels beyond in_planes must
             be zero (this is exactly the padded bf16 layout returned here, so
             chained blocks feed each other with no slice / re-pad round trip).
    returns: (B, Ho, Wo, 128) bfloat16, channels [:planes] real, rest zero.
    """
    assert in_planes <= COUT_PAD and planes <= COUT_PAD, \
        "kernel supports <=128 channels per block"   # TODO(synk): tile C > 128
    B, H, W, Cx = x_nhwc.shape
    s = stride
    Ho, Wo = (H - 1) // s + 1, (W - 1) // s + 1
    cin_p = _round_up(in_planes, 8)
    planes_p = _round_up(planes, 8)
    cout = COUT_PAD
    has_proj = 'sc_w' in params

    # fold BN into weights/bias; pad ONLY the N (output) side to 128
    g1, bias1 = _bn_fold(params['bn1'])
    g2, bias2 = _bn_fold(params['bn2'])
    w1 = _pad_to(_pad_to(params['w1'] * g1, 3, cout), 2, cin_p).astype(jnp.bfloat16)
    w2 = _pad_to(_pad_to(params['w2'] * g2, 3, cout), 2, planes_p).astype(jnp.bfloat16)
    b1 = _pad_to(bias1.reshape(1, -1), 1, cout).astype(jnp.float32)
    b2 = _pad_to(bias2.reshape(1, -1), 1, cout).astype(jnp.float32)

    # input prep: bf16, channel pad only to cin_p (not 128), spatial pad,
    # stride-phase split so every in-kernel tap is a contiguous slice.
    cin_blk = max(Cx, cin_p)
    xc = _pad_to(x_nhwc, 3, cin_blk).astype(jnp.bfloat16)
    Hq, Wq = Ho + (2 // s), Wo + (2 // s)
    xp = jnp.pad(xc, ((0, 0), (1, s * Hq - H - 1), (1, s * Wq - W - 1), (0, 0)))
    if s == 1:
        xph = xp[None]
    else:
        xph = jnp.stack([xp[:, p::s, q::s, :] for p in range(s) for q in range(s)])
    # xph: (s*s, B, Hq, Wq, cin_blk)
    # TODO(synk): the stride-phase repack could be folded into the kernel via
    #             strided DMA / index_map to drop this one extra input pass.

    bm = _pick_bm(B, Ho, Wo)
    grid = (B // bm,)

    in_specs = [
        pl.BlockSpec((s * s, bm, Hq, Wq, cin_blk), lambda g: (0, g, 0, 0, 0)),
        pl.BlockSpec((3, 3, cin_p, cout), lambda g: (0, 0, 0, 0)),
        pl.BlockSpec((1, cout), lambda g: (0, 0)),
        pl.BlockSpec((3, 3, planes_p, cout), lambda g: (0, 0, 0, 0)),
        pl.BlockSpec((1, cout), lambda g: (0, 0)),
    ]
    args = [xph, w1, b1, w2, b2]
    if has_proj:
        gs, bs = _bn_fold(params['sc_bn'])
        scw = _pad_to(_pad_to(params['sc_w'] * gs, 1, cout), 0, cin_p).astype(jnp.bfloat16)
        scb = _pad_to(bs.reshape(1, -1), 1, cout).astype(jnp.float32)
        in_specs += [pl.BlockSpec((cin_p, cout), lambda g: (0, 0)),
                     pl.BlockSpec((1, cout), lambda g: (0, 0))]
        args += [scw, scb]

    kernel = functools.partial(
        _basic_block_kernel, stride=s, bm=bm, Ho=Ho, Wo=Wo,
        cin_p=cin_p, planes_p=planes_p, has_proj=has_proj)

    out = pl.pallas_call(
        kernel,
        out_shape=jax.ShapeDtypeStruct((B, Ho, Wo, cout), jnp.bfloat16),
        grid=grid,
        in_specs=in_specs,
        out_specs=pl.BlockSpec((bm, Ho, Wo, cout), lambda g: (g, 0, 0, 0)),
        scratch_shapes=[pltpu.VMEM((bm, Ho + 2, Wo + 2, planes_p), jnp.bfloat16)],
        compiler_params=pltpu.CompilerParams(
            dimension_semantics=("parallel",),
            vmem_limit_bytes=32 * 1024 * 1024),   # fits v7x's 64 MiB with headroom
    )(*args)
    return out


# ----------------------------------------------------------------------------
# Pure-JAX f32 reference of the PyTorch BasicBlock (eval-mode BN)
# ----------------------------------------------------------------------------
def _ref_basic_block(x, params, stride, eps=1e-5):
    def conv(x, w, s, pad):
        return jax.lax.conv_general_dilated(
            x, w, (s, s), ((pad, pad), (pad, pad)),
            dimension_numbers=('NHWC', 'HWIO', 'NHWC'))

    def bn(x, p):
        g, b, m, v = p
        return (x - m) / jnp.sqrt(v + eps) * g + b

    out = jax.nn.relu(bn(conv(x, params['w1'], stride, 1), params['bn1']))
    out = bn(conv(out, params['w2'], 1, 1), params['bn2'])
    if 'sc_w' in params:
        shortcut = bn(conv(x, params['sc_w'][None, None], stride, 0), params['sc_bn'])
    else:
        shortcut = x
    return jax.nn.relu(out + shortcut)


# ----------------------------------------------------------------------------
# Deterministic parameter construction (synthetic, no checkpoint load)
# ----------------------------------------------------------------------------
def make_block_params(key, in_planes, planes, stride):
    ks = jax.random.split(key, 6)

    def conv_w(k, kh, kw, cin, cout):
        return jax.random.normal(k, (kh, kw, cin, cout), jnp.float32) / ((kh * kw * cin) ** 0.5)

    def bn_p(k, c):
        k1, k2, k3, k4 = jax.random.split(k, 4)
        return (jax.random.uniform(k1, (c,), jnp.float32, 0.5, 1.5),
                jax.random.normal(k2, (c,), jnp.float32) * 0.1,
                jax.random.normal(k3, (c,), jnp.float32) * 0.1,
                jax.random.uniform(k4, (c,), jnp.float32, 0.5, 1.5))

    p = {'w1': conv_w(ks[0], 3, 3, in_planes, planes), 'bn1': bn_p(ks[1], planes),
         'w2': conv_w(ks[2], 3, 3, planes, planes),    'bn2': bn_p(ks[3], planes)}
    if stride != 1 or in_planes != planes:   # projection shortcut (1x1 conv + BN)
        p['sc_w'] = conv_w(ks[4], 1, 1, in_planes, planes).reshape(in_planes, planes)
        p['sc_bn'] = bn_p(ks[5], planes)
    return p


if __name__ == "__main__":
    key = jax.random.PRNGKey(0)
    kx, kA, kB = jax.random.split(key, 3)

    # B=8 -> 4 images folded per grid step (M=256) and 2 'parallel' grid steps.
    B, Cin, H, W = 8, 16, 16, 16
    planes = 32

    x_nchw = jax.random.normal(kx, (B, Cin, H, W), jnp.float32)   # PyTorch NCHW input
    x = jnp.transpose(x_nchw, (0, 2, 3, 1))                       # -> NHWC for the kernel

    blkA = make_block_params(kA, Cin, planes, stride=2)     # projection shortcut path
    blkB = make_block_params(kB, planes, planes, stride=1)  # identity shortcut path

    outA = basic_block_forward(x, Cin, planes, blkA, stride=2)        # (B,8,8,128) bf16
    outB = basic_block_forward(outA, planes, planes, blkB, stride=1)  # chained, no re-pad
    jax.block_until_ready(outB)
    assert outA.shape == (B, 8, 8, 128) and outB.shape == (B, 8, 8, 128)
    assert outB.dtype == jnp.bfloat16

    # correctness vs a pure-JAX f32 reference (bf16 operands/activations => loose tol)
    refB = _ref_basic_block(_ref_basic_block(x, blkA, 2), blkB, 1)
    err = float(jnp.max(jnp.abs(outB[..., :planes].astype(jnp.float32) - refB)))
    assert err < 0.35, f"max abs err vs reference: {err}"
    print("KERNEL_OK")
</pallas_src>

<mosaic_0001>
module attributes {stable_mosaic.version = 11 : i64} {
  func.func @_basic_block_kernel(%arg0: i32, %arg1: memref<4x4x9x9x16xbf16, #tpu.memory_space<vmem>>, %arg2: memref<3x3x16x128xbf16, #tpu.memory_space<vmem>>, %arg3: memref<1x128xf32, #tpu.memory_space<vmem>>, %arg4: memref<3x3x32x128xbf16, #tpu.memory_space<vmem>>, %arg5: memref<1x128xf32, #tpu.memory_space<vmem>>, %arg6: memref<16x128xbf16, #tpu.memory_space<vmem>>, %arg7: memref<1x128xf32, #tpu.memory_space<vmem>>, %arg8: memref<4x8x8x128xbf16, #tpu.memory_space<vmem>>, %arg9: memref<4x10x10x32xbf16, #tpu.memory_space<vmem>>) attributes {dimension_semantics = [#tpu.dimension_semantics<parallel>], iteration_bounds = array<i64: 2>, scalar_prefetch = 0 : i64, scratch_operands = 1 : i64, tpu.core_type = #tpu.core_type<tc>, window_params = [{transform_indices = @transform_0, window_bounds = array<i64: 4, 4, 9, 9, 16>}, {pipeline_mode = #tpu.pipeline_mode<synchronous>, transform_indices = @transform_1, window_bounds = array<i64: 3, 3, 16, 128>}, {pipeline_mode = #tpu.pipeline_mode<synchronous>, transform_indices = @transform_2, window_bounds = array<i64: 1, 128>}, {pipeline_mode = #tpu.pipeline_mode<synchronous>, transform_indices = @transform_3, window_bounds = array<i64: 3, 3, 32, 128>}, {pipeline_mode = #tpu.pipeline_mode<synchronous>, transform_indices = @transform_4, window_bounds = array<i64: 1, 128>}, {pipeline_mode = #tpu.pipeline_mode<synchronous>, transform_indices = @transform_5, window_bounds = array<i64: 16, 128>}, {pipeline_mode = #tpu.pipeline_mode<synchronous>, transform_indices = @transform_6, window_bounds = array<i64: 1, 128>}, {transform_indices = @transform_7, window_bounds = array<i64: 4, 8, 8, 128>}]} {
    %cst = arith.constant 0.000000e+00 : f32
    %0 = vector.broadcast %cst : f32 to vector<256x128xf32>
    %c0 = arith.constant 0 : index
    %c0_0 = arith.constant 0 : index
    %c0_1 = arith.constant 0 : index
    %c0_2 = arith.constant 0 : index
    %c0_3 = arith.constant 0 : index
    %1 = vector.load %arg1[%c0, %c0_0, %c0_1, %c0_2, %c0_3] : memref<4x4x9x9x16xbf16, #tpu.memory_space<vmem>>, vector<1x4x8x8x16xbf16>
    %2 = vector.shape_cast %1 : vector<1x4x8x8x16xbf16> to vector<4x8x8x16xbf16>
    %3 = vector.shape_cast %2 : vector<4x8x8x16xbf16> to vector<256x16xbf16>
    %c0_4 = arith.constant 0 : index
    %c0_5 = arith.constant 0 : index
    %c0_6 = arith.constant 0 : index
    %c0_7 = arith.constant 0 : index
    %4 = vector.load %arg2[%c0_4, %c0_5, %c0_6, %c0_7] : memref<3x3x16x128xbf16, #tpu.memory_space<vmem>>, vector<1x1x16x128xbf16>
    %5 = vector.shape_cast %4 : vector<1x1x16x128xbf16> to vector<16x128xbf16>
    %cst_8 = arith.constant dense<0.000000e+00> : vector<256x128xf32>
    %6 = tpu.matmul %3, %5, %cst_8 {dimension_numbers = #tpu.dot_dimension_numbers<[1], [0], [0], [1], [0, 0, 1, 1], [], []>} : vector<256x16xbf16>, vector<16x128xbf16>, vector<256x128xf32> -> vector<256x128xf32>
    %7 = arith.addf %0, %6 : vector<256x128xf32>
    %c1 = arith.constant 1 : index
    %c0_9 = arith.constant 0 : index
    %c0_10 = arith.constant 0 : index
    %c0_11 = arith.constant 0 : index
    %c0_12 = arith.constant 0 : index
    %8 = vector.load %arg1[%c1, %c0_9, %c0_10, %c0_11, %c0_12] : memref<4x4x9x9x16xbf16, #tpu.memory_space<vmem>>, vector<1x4x8x8x16xbf16>
    %9 = vector.shape_cast %8 : vector<1x4x8x8x16xbf16> to vector<4x8x8x16xbf16>
    %10 = vector.shape_cast %9 : vector<4x8x8x16xbf16> to vector<256x16xbf16>
    %c0_13 = arith.constant 0 : index
    %c1_14 = arith.constant 1 : index
    %c0_15 = arith.constant 0 : index
    %c0_16 = arith.constant 0 : index
    %11 = vector.load %arg2[%c0_13, %c1_14, %c0_15, %c0_16] : memref<3x3x16x128xbf16, #tpu.memory_space<vmem>>, vector<1x1x16x128xbf16>
    %12 = vector.shape_cast %11 : vector<1x1x16x128xbf16> to vector<16x128xbf16>
    %cst_17 = arith.constant dense<0.000000e+00> : vector<256x128xf32>
    %13 = tpu.matmul %10, %12, %cst_17 {dimension_numbers = #tpu.dot_dimension_numbers<[1], [0], [0], [1], [0, 0, 1, 1], [], []>} : vector<256x16xbf16>, vector<16x128xbf16>, vector<256x128xf32> -> vector<256x128xf32>
    %14 = arith.addf %7, %13 : vector<256x128xf32>
    %c0_18 = arith.constant 0 : index
    %c0_19 = arith.constant 0 : index
    %c0_20 = arith.constant 0 : index
    %c1_21 = arith.constant 1 : index
    %c0_22 = arith.constant 0 : index
    %15 = vector.load %arg1[%c0_18, %c0_19, %c0_20, %c1_21, %c0_22] : memref<4x4x9x9x16xbf16, #tpu.memory_space<vmem>>, vector<1x4x8x8x16xbf16>
    %16 = vector.shape_cast %15 : vector<1x4x8x8x16xbf16> to vector<4x8x8x16xbf16>
    %17 = vector.shape_cast %16 : vector<4x8x8x16xbf16> to vector<256x16xbf16>
    %c0_23 = arith.constant 0 : index
    %c2 = arith.constant 2 : index
    %c0_24 = arith.constant 0 : index
    %c0_25 = arith.constant 0 : index
    %18 = vector.load %arg2[%c0_23, %c2, %c0_24, %c0_25] : memref<3x3x16x128xbf16, #tpu.memory_space<vmem>>, vector<1x1x16x128xbf16>
    %19 = vector.shape_cast %18 : vector<1x1x16x128xbf16> to vector<16x128xbf16>
    %cst_26 = arith.constant dense<0.000000e+00> : vector<256x128xf32>
    %20 = tpu.matmul %17, %19, %cst_26 {dimension_numbers = #tpu.dot_dimension_numbers<[1], [0], [0], [1], [0, 0, 1, 1], [], []>} : vector<256x16xbf16>, vector<16x128xbf16>, vector<256x128xf32> -> vector<256x128xf32>
    %21 = arith.addf %14, %20 : vector<256x128xf32>
    %c2_27 = arith.constant 2 : index
    %c0_28 = arith.constant 0 : index
    %c0_29 = arith.constant 0 : index
    %c0_30 = arith.constant 0 : index
    %c0_31 = arith.constant 0 : index
    %22 = vector.load %arg1[%c2_27, %c0_28, %c0_29, %c0_30, %c0_31] : memref<4x4x9x9x16xbf16, #tpu.memory_space<vmem>>, vector<1x4x8x8x16xbf16>
    %23 = vector.shape_cast %22 : vector<1x4x8x8x16xbf16> to vector<4x8x8x16xbf16>
    %24 = vector.shape_cast %23 : vector<4x8x8x16xbf16> to vector<256x16xbf16>
    %c1_32 = arith.constant 1 : index
    %c0_33 = arith.constant 0 : index
    %c0_34 = arith.constant 0 : index
    %c0_35 = arith.constant 0 : index
    %25 = vector.load %arg2[%c1_32, %c0_33, %c0_34, %c0_35] : memref<3x3x16x128xbf16, #tpu.memory_space<vmem>>, vector<1x1x16x128xbf16>
    %26 = vector.shape_cast %25 : vector<1x1x16x128xbf16> to vector<16x128xbf16>
    %cst_36 = arith.constant dense<0.000000e+00> : vector<256x128xf32>
    %27 = tpu.matmul %24, %26, %cst_36 {dimension_numbers = #tpu.dot_dimension_numbers<[1], [0], [0], [1], [0, 0, 1, 1], [], []>} : vector<256x16xbf16>, vector<16x128xbf16>, vector<256x128xf32> -> vector<256x128xf32>
    %28 = arith.addf %21, %27 : vector<256x128xf32>
    %c3 = arith.constant 3 : index
    %c0_37 = arith.constant 0 : index
    %c0_38 = arith.constant 0 : index
    %c0_39 = arith.constant 0 : index
    %c0_40 = arith.constant 0 : index
    %29 = vector.load %arg1[%c3, %c0_37, %c0_38, %c0_39, %c0_40] : memref<4x4x9x9x16xbf16, #tpu.memory_space<vmem>>, vector<1x4x8x8x16xbf16>
    %30 = vector.shape_cast %29 : vector<1x4x8x8x16xbf16> to vector<4x8x8x16xbf16>
    %31 = vector.shape_cast %30 : vector<4x8x8x16xbf16> to vector<256x16xbf16>
    %c1_41 = arith.constant 1 : index
    %c1_42 = arith.constant 1 : index
    %c0_43 = arith.constant 0 : index
    %c0_44 = arith.constant 0 : index
    %32 = vector.load %arg2[%c1_41, %c1_42, %c0_43, %c0_44] : memref<3x3x16x128xbf16, #tpu.memory_space<vmem>>, vector<1x1x16x128xbf16>
    %33 = vector.shape_cast %32 : vector<1x1x16x128xbf16> to vector<16x128xbf16>
    %cst_45 = arith.constant dense<0.000000e+00> : vector<256x128xf32>
    %34 = tpu.matmul %31, %33, %cst_45 {dimension_numbers = #tpu.dot_dimension_numbers<[1], [0], [0], [1], [0, 0, 1, 1], [], []>} : vector<256x16xbf16>, vector<16x128xbf16>, vector<256x128xf32> -> vector<256x128xf32>
    %35 = arith.addf %28, %34 : vector<256x128xf32>
    %c2_46 = arith.constant 2 : index
    %c0_47 = arith.constant 0 : index
    %c0_48 = arith.constant 0 : index
    %c1_49 = arith.constant 1 : index
    %c0_50 = arith.constant 0 : index
    %36 = vector.load %arg1[%c2_46, %c0_47, %c0_48, %c1_49, %c0_50] : memref<4x4x9x9x16xbf16, #tpu.memory_space<vmem>>, vector<1x4x8x8x16xbf16>
    %37 = vector.shape_cast %36 : vector<1x4x8x8x16xbf16> to vector<4x8x8x16xbf16>
    %38 = vector.shape_cast %37 : vector<4x8x8x16xbf16> to vector<256x16xbf16>
    %c1_51 = arith.constant 1 : index
    %c2_52 = arith.constant 2 : index
    %c0_53 = arith.constant 0 : index
    %c0_54 = arith.constant 0 : index
    %39 = vector.load %arg2[%c1_51, %c2_52, %c0_53, %c0_54] : memref<3x3x16x128xbf16, #tpu.memory_space<vmem>>, vector<1x1x16x128xbf16>
    %40 = vector.shape_cast %39 : vector<1x1x16x128xbf16> to vector<16x128xbf16>
    %cst_55 = arith.constant dense<0.000000e+00> : vector<256x128xf32>
    %41 = tpu.matmul %38, %40, %cst_55 {dimension_numbers = #tpu.dot_dimension_numbers<[1], [0], [0], [1], [0, 0, 1, 1], [], []>} : vector<256x16xbf16>, vector<16x128xbf16>, vector<256x128xf32> -> vector<256x128xf32>
    %42 = arith.addf %35, %41 : vector<256x128xf32>
    %c0_56 = arith.constant 0 : index
    %c0_57 = arith.constant 0 : index
    %c1_58 = arith.constant 1 : index
    %c0_59 = arith.constant 0 : index
    %c0_60 = arith.constant 0 : index
    %43 = vector.load %arg1[%c0_56, %c0_57, %c1_58, %c0_59, %c0_60] : memref<4x4x9x9x16xbf16, #tpu.memory_space<vmem>>, vector<1x4x8x8x16xbf16>
    %44 = vector.shape_cast %43 : vector<1x4x8x8x16xbf16> to vector<4x8x8x16xbf16>
    %45 = vector.shape_cast %44 : vector<4x8x8x16xbf16> to vector<256x16xbf16>
    %c2_61 = arith.constant 2 : index
    %c0_62 = arith.constant 0 : index
    %c0_63 = arith.constant 0 : index
    %c0_64 = arith.constant 0 : index
    %46 = vector.load %arg2[%c2_61, %c0_62, %c0_63, %c0_64] : memref<3x3x16x128xbf16, #tpu.memory_space<vmem>>, vector<1x1x16x128xbf16>
    %47 = vector.shape_cast %46 : vector<1x1x16x128xbf16> to vector<16x128xbf16>
    %cst_65 = arith.constant dense<0.000000e+00> : vector<256x128xf32>
    %48 = tpu.matmul %45, %47, %cst_65 {dimension_numbers = #tpu.dot_dimension_numbers<[1], [0], [0], [1], [0, 0, 1, 1], [], []>} : vector<256x16xbf16>, vector<16x128xbf16>, vector<256x128xf32> -> vector<256x128xf32>
    %49 = arith.addf %42, %48 : vector<256x128xf32>
    %c1_66 = arith.constant 1 : index
    %c0_67 = arith.constant 0 : index
    %c1_68 = arith.constant 1 : index
    %c0_69 = arith.constant 0 : index
    %c0_70 = arith.constant 0 : index
    %50 = vector.load %arg1[%c1_66, %c0_67, %c1_68, %c0_69, %c0_70] : memref<4x4x9x9x16xbf16, #tpu.memory_space<vmem>>, vector<1x4x8x8x16xbf16>
    %51 = vector.shape_cast %50 : vector<1x4x8x8x16xbf16> to vector<4x8x8x16xbf16>
    %52 = vector.shape_cast %51 : vector<4x8x8x16xbf16> to vector<256x16xbf16>
    %c2_71 = arith.constant 2 : index
    %c1_72 = arith.constant 1 : index
    %c0_73 = arith.constant 0 : index
    %c0_74 = arith.constant 0 : index
    %53 = vector.load %arg2[%c2_71, %c1_72, %c0_73, %c0_74] : memref<3x3x16x128xbf16, #tpu.memory_space<vmem>>, vector<1x1x16x128xbf16>
    %54 = vector.shape_cast %53 : vector<1x1x16x128xbf16> to vector<16x128xbf16>
    %cst_75 = arith.constant dense<0.000000e+00> : vector<256x128xf32>
    %55 = tpu.matmul %52, %54, %cst_75 {dimension_numbers = #tpu.dot_dimension_numbers<[1], [0], [0], [1], [0, 0, 1, 1], [], []>} : vector<256x16xbf16>, vector<16x128xbf16>, vector<256x128xf32> -> vector<256x128xf32>
    %56 = arith.addf %49, %55 : vector<256x128xf32>
    %c0_76 = arith.constant 0 : index
    %c0_77 = arith.constant 0 : index
    %c1_78 = arith.constant 1 : index
    %c1_79 = arith.constant 1 : index
    %c0_80 = arith.constant 0 : index
    %57 = vector.load %arg1[%c0_76, %c0_77, %c1_78, %c1_79, %c0_80] : memref<4x4x9x9x16xbf16, #tpu.memory_space<vmem>>, vector<1x4x8x8x16xbf16>
    %58 = vector.shape_cast %57 : vector<1x4x8x8x16xbf16> to vector<4x8x8x16xbf16>
    %59 = vector.shape_cast %58 : vector<4x8x8x16xbf16> to vector<256x16xbf16>
    %c2_81 = arith.constant 2 : index
    %c2_82 = arith.constant 2 : index
    %c0_83 = arith.constant 0 : index
    %c0_84 = arith.constant 0 : index
    %60 = vector.load %arg2[%c2_81, %c2_82, %c0_83, %c0_84] : memref<3x3x16x128xbf16, #tpu.memory_space<vmem>>, vector<1x1x16x128xbf16>
    %61 = vector.shape_cast %60 : vector<1x1x16x128xbf16> to vector<16x128xbf16>
    %cst_85 = arith.constant dense<0.000000e+00> : vector<256x128xf32>
    %62 = tpu.matmul %59, %61, %cst_85 {dimension_numbers = #tpu.dot_dimension_numbers<[1], [0], [0], [1], [0, 0, 1, 1], [], []>} : vector<256x16xbf16>, vector<16x128xbf16>, vector<256x128xf32> -> vector<256x128xf32>
    %63 = arith.addf %56, %62 : vector<256x128xf32>
    %c0_86 = arith.constant 0 : index
    %c0_87 = arith.constant 0 : index
    %64 = vector.load %arg3[%c0_86, %c0_87] : memref<1x128xf32, #tpu.memory_space<vmem>>, vector<1x128xf32>
    %65 = vector.broadcast %64 : vector<1x128xf32> to vector<256x128xf32>
    %66 = arith.addf %63, %65 : vector<256x128xf32>
    %cst_88 = arith.constant 0.000000e+00 : f32
    %67 = vector.broadcast %cst_88 : f32 to vector<256x128xf32>
    %68 = arith.maximumf %66, %67 : vector<256x128xf32>
    %cst_89 = arith.constant 0.000000e+00 : bf16
    %69 = vector.broadcast %cst_89 : bf16 to vector<4x1x10x32xbf16>
    %c0_90 = arith.constant 0 : index
    %c0_91 = arith.constant 0 : index
    %c0_92 = arith.constant 0 : index
    %c0_93 = arith.constant 0 : index
    %70 = vector.load %arg9[%c0_90, %c0_91, %c0_92, %c0_93] : memref<4x10x10x32xbf16, #tpu.memory_space<vmem>>, vector<4x1x10x32xbf16>
    tpu.vector_store %arg9[%c0_90, %c0_91, %c0_92, %c0_93], %69 {strides = array<i32>} : memref<4x10x10x32xbf16, #tpu.memory_space<vmem>>, vector<4x1x10x32xbf16>,
    %cst_94 = arith.constant 0.000000e+00 : bf16
    %71 = vector.broadcast %cst_94 : bf16 to vector<4x1x10x32xbf16>
    %c0_95 = arith.constant 0 : index
    %c9 = arith.constant 9 : index
    %c0_96 = arith.constant 0 : index
    %c0_97 = arith.constant 0 : index
    %72 = vector.load %arg9[%c0_95, %c9, %c0_96, %c0_97] : memref<4x10x10x32xbf16, #tpu.memory_space<vmem>>, vector<4x1x10x32xbf16>
    tpu.vector_store %arg9[%c0_95, %c9, %c0_96, %c0_97], %71 {strides = array<i32>} : memref<4x10x10x32xbf16, #tpu.memory_space<vmem>>, vector<4x1x10x32xbf16>,
    %cst_98 = arith.constant 0.000000e+00 : bf16
    %73 = vector.broadcast %cst_98 : bf16 to vector<4x8x1x32xbf16>
    %c0_99 = arith.constant 0 : index
    %c1_100 = arith.constant 1 : index
    %c0_101 = arith.constant 0 : index
    %c0_102 = arith.constant 0 : index
    %74 = vector.load %arg9[%c0_99, %c1_100, %c0_101, %c0_102] : memref<4x10x10x32xbf16, #tpu.memory_space<vmem>>, vector<4x8x1x32xbf16>
    tpu.vector_store %arg9[%c0_99, %c1_100, %c0_101, %c0_102], %73 {strides = array<i32>} : memref<4x10x10x32xbf16, #tpu.memory_space<vmem>>, vector<4x8x1x32xbf16>,
    %cst_103 = arith.constant 0.000000e+00 : bf16
    %75 = vector.broadcast %cst_103 : bf16 to vector<4x8x1x32xbf16>
    %c0_104 = arith.constant 0 : index
    %c1_105 = arith.constant 1 : index
    %c9_106 = arith.constant 9 : index
    %c0_107 = arith.constant 0 : index
    %76 = vector.load %arg9[%c0_104, %c1_105, %c9_106, %c0_107] : memref<4x10x10x32xbf16, #tpu.memory_space<vmem>>, vector<4x8x1x32xbf16>
    tpu.vector_store %arg9[%c0_104, %c1_105, %c9_106, %c0_107], %75 {strides = array<i32>} : memref<4x10x10x32xbf16, #tpu.memory_space<vmem>>, vector<4x8x1x32xbf16>,
    %77 = vector.extract_strided_slice %68 {offsets = [0, 0], sizes = [256, 32], strides = [1, 1]} : vector<256x128xf32> to vector<256x32xf32>
    %78 = vector.shape_cast %77 : vector<256x32xf32> to vector<4x8x8x32xf32>
    %79 = arith.truncf %78 : vector<4x8x8x32xf32> to vector<4x8x8x32xbf16>
    %c0_108 = arith.constant 0 : index
    %c1_109 = arith.constant 1 : index
    %c1_110 = arith.constant 1 : index
    %c0_111 = arith.constant 0 : index
    %80 = vector.load %arg9[%c0_108, %c1_109, %c1_110, %c0_111] : memref<4x10x10x32xbf16, #tpu.memory_space<vmem>>, vector<4x8x8x32xbf16>
    tpu.vector_store %arg9[%c0_108, %c1_109, %c1_110, %c0_111], %79 {strides = array<i32>} : memref<4x10x10x32xbf16, #tpu.memory_space<vmem>>, vector<4x8x8x32xbf16>,
    %cst_112 = arith.constant 0.000000e+00 : f32
    %81 = vector.broadcast %cst_112 : f32 to vector<256x128xf32>
    %c0_113 = arith.constant 0 : index
    %c0_114 = arith.constant 0 : index
    %c0_115 = arith.constant 0 : index
    %c0_116 = arith.constant 0 : index
    %82 = vector.load %arg9[%c0_113, %c0_114, %c0_115, %c0_116] : memref<4x10x10x32xbf16, #tpu.memory_space<vmem>>, vector<4x8x8x32xbf16>
    %83 = vector.shape_cast %82 : vector<4x8x8x32xbf16> to vector<256x32xbf16>
    %c0_117 = arith.constant 0 : index
    %c0_118 = arith.constant 0 : index
    %c0_119 = arith.constant 0 : index
    %c0_120 = arith.constant 0 : index
    %84 = vector.load %arg4[%c0_117, %c0_118, %c0_119, %c0_120] : memref<3x3x32x128xbf16, #tpu.memory_space<vmem>>, vector<1x1x32x128xbf16>
    %85 = vector.shape_cast %84 : vector<1x1x32x128xbf16> to vector<32x128xbf16>
    %cst_121 = arith.constant dense<0.000000e+00> : vector<256x128xf32>
    %86 = tpu.matmul %83, %85, %cst_121 {dimension_numbers = #tpu.dot_dimension_numbers<[1], [0], [0], [1], [0, 0, 1, 1], [], []>} : vector<256x32xbf16>, vector<32x128xbf16>, vector<256x128xf32> -> vector<256x128xf32>
    %87 = arith.addf %81, %86 : vector<256x128xf32>
    %c0_122 = arith.constant 0 : index
    %c0_123 = arith.constant 0 : index
    %c1_124 = arith.constant 1 : index
    %c0_125 = arith.constant 0 : index
    %88 = vector.load %arg9[%c0_122, %c0_123, %c1_124, %c0_125] : memref<4x10x10x32xbf16, #tpu.memory_space<vmem>>, vector<4x8x8x32xbf16>
    %89 = vector.shape_cast %88 : vector<4x8x8x32xbf16> to vector<256x32xbf16>
    %c0_126 = arith.constant 0 : index
    %c1_127 = arith.constant 1 : index
    %c0_128 = arith.constant 0 : index
    %c0_129 = arith.constant 0 : index
    %90 = vector.load %arg4[%c0_126, %c1_127, %c0_128, %c0_129] : memref<3x3x32x128xbf16, #tpu.memory_space<vmem>>, vector<1x1x32x128xbf16>
    %91 = vector.shape_cast %90 : vector<1x1x32x128xbf16> to vector<32x128xbf16>
    %cst_130 = arith.constant dense<0.000000e+00> : vector<256x128xf32>
    %92 = tpu.matmul %89, %91, %cst_130 {dimension_numbers = #tpu.dot_dimension_numbers<[1], [0], [0], [1], [0, 0, 1, 1], [], []>} : vector<256x32xbf16>, vector<32x128xbf16>, vector<256x128xf32> -> vector<256x128xf32>
    %93 = arith.addf %87, %92 : vector<256x128xf32>
    %c0_131 = arith.constant 0 : index
    %c0_132 = arith.constant 0 : index
    %c2_133 = arith.constant 2 : index
    %c0_134 = arith.constant 0 : index
    %94 = vector.load %arg9[%c0_131, %c0_132, %c2_133, %c0_134] : memref<4x10x10x32xbf16, #tpu.memory_space<vmem>>, vector<4x8x8x32xbf16>
    %95 = vector.shape_cast %94 : vector<4x8x8x32xbf16> to vector<256x32xbf16>
    %c0_135 = arith.constant 0 : index
    %c2_136 = arith.constant 2 : index
    %c0_137 = arith.constant 0 : index
    %c0_138 = arith.constant 0 : index
    %96 = vector.load %arg4[%c0_135, %c2_136, %c0_137, %c0_138] : memref<3x3x32x128xbf16, #tpu.memory_space<vmem>>, vector<1x1x32x128xbf16>
    %97 = vector.shape_cast %96 : vector<1x1x32x128xbf16> to vector<32x128xbf16>
    %cst_139 = arith.constant dense<0.000000e+00> : vector<256x128xf32>
    %98 = tpu.matmul %95, %97, %cst_139 {dimension_numbers = #tpu.dot_dimension_numbers<[1], [0], [0], [1], [0, 0, 1, 1], [], []>} : vector<256x32xbf16>, vector<32x128xbf16>, vector<256x128xf32> -> vector<256x128xf32>
    %99 = arith.addf %93, %98 : vector<256x128xf32>
    %c0_140 = arith.constant 0 : index
    %c1_141 = arith.constant 1 : index
    %c0_142 = arith.constant 0 : index
    %c0_143 = arith.constant 0 : index
    %100 = vector.load %arg9[%c0_140, %c1_141, %c0_142, %c0_143] : memref<4x10x10x32xbf16, #tpu.memory_space<vmem>>, vector<4x8x8x32xbf16>
    %101 = vector.shape_cast %100 : vector<4x8x8x32xbf16> to vector<256x32xbf16>
    %c1_144 = arith.constant 1 : index
    %c0_145 = arith.constant 0 : index
    %c0_146 = arith.constant 0 : index
    %c0_147 = arith.constant 0 : index
    %102 = vector.load %arg4[%c1_144, %c0_145, %c0_146, %c0_147] : memref<3x3x32x128xbf16, #tpu.memory_space<vmem>>, vector<1x1x32x128xbf16>
    %103 = vector.shape_cast %102 : vector<1x1x32x128xbf16> to vector<32x128xbf16>
    %cst_148 = arith.constant dense<0.000000e+00> : vector<256x128xf32>
    %104 = tpu.matmul %101, %103, %cst_148 {dimension_numbers = #tpu.dot_dimension_numbers<[1], [0], [0], [1], [0, 0, 1, 1], [], []>} : vector<256x32xbf16>, vector<32x128xbf16>, vector<256x128xf32> -> vector<256x128xf32>
    %105 = arith.addf %99, %104 : vector<256x128xf32>
    %c0_149 = arith.constant 0 : index
    %c1_150 = arith.constant 1 : index
    %c1_151 = arith.constant 1 : index
    %c0_152 = arith.constant 0 : index
    %106 = vector.load %arg9[%c0_149, %c1_150, %c1_151, %c0_152] : memref<4x10x10x32xbf16, #tpu.memory_space<vmem>>, vector<4x8x8x32xbf16>
    %107 = vector.shape_cast %106 : vector<4x8x8x32xbf16> to vector<256x32xbf16>
    %c1_153 = arith.constant 1 : index
    %c1_154 = arith.constant 1 : index
    %c0_155 = arith.constant 0 : index
    %c0_156 = arith.constant 0 : index
    %108 = vector.load %arg4[%c1_153, %c1_154, %c0_155, %c0_156] : memref<3x3x32x128xbf16, #tpu.memory_space<vmem>>, vector<1x1x32x128xbf16>
    %109 = vector.shape_cast %108 : vector<1x1x32x128xbf16> to vector<32x128xbf16>
    %cst_157 = arith.constant dense<0.000000e+00> : vector<256x128xf32>
    %110 = tpu.matmul %107, %109, %cst_157 {dimension_numbers = #tpu.dot_dimension_numbers<[1], [0], [0], [1], [0, 0, 1, 1], [], []>} : vector<256x32xbf16>, vector<32x128xbf16>, vector<256x128xf32> -> vector<256x128xf32>
    %111 = arith.addf %105, %110 : vector<256x128xf32>
    %c0_158 = arith.constant 0 : index
    %c1_159 = arith.constant 1 : index
    %c2_160 = arith.constant 2 : index
    %c0_161 = arith.constant 0 : index
    %112 = vector.load %arg9[%c0_158, %c1_159, %c2_160, %c0_161] : memref<4x10x10x32xbf16, #tpu.memory_space<vmem>>, vector<4x8x8x32xbf16>
    %113 = vector.shape_cast %112 : vector<4x8x8x32xbf16> to vector<256x32xbf16>
    %c1_162 = arith.constant 1 : index
    %c2_163 = arith.constant 2 : index
    %c0_164 = arith.constant 0 : index
    %c0_165 = arith.constant 0 : index
    %114 = vector.load %arg4[%c1_162, %c2_163, %c0_164, %c0_165] : memref<3x3x32x128xbf16, #tpu.memory_space<vmem>>, vector<1x1x32x128xbf16>
    %115 = vector.shape_cast %114 : vector<1x1x32x128xbf16> to vector<32x128xbf16>
    %cst_166 = arith.constant dense<0.000000e+00> : vector<256x128xf32>
    %116 = tpu.matmul %113, %115, %cst_166 {dimension_numbers = #tpu.dot_dimension_numbers<[1], [0], [0], [1], [0, 0, 1, 1], [], []>} : vector<256x32xbf16>, vector<32x128xbf16>, vector<256x128xf32> -> vector<256x128xf32>
    %117 = arith.addf %111, %116 : vector<256x128xf32>
    %c0_167 = arith.constant 0 : index
    %c2_168 = arith.constant 2 : index
    %c0_169 = arith.constant 0 : index
    %c0_170 = arith.constant 0 : index
    %118 = vector.load %arg9[%c0_167, %c2_168, %c0_169, %c0_170] : memref<4x10x10x32xbf16, #tpu.memory_space<vmem>>, vector<4x8x8x32xbf16>
    %119 = vector.shape_cast %118 : vector<4x8x8x32xbf16> to vector<256x32xbf16>
    %c2_171 = arith.constant 2 : index
    %c0_172 = arith.constant 0 : index
    %c0_173 = arith.constant 0 : index
    %c0_174 = arith.constant 0 : index
    %120 = vector.load %arg4[%c2_171, %c0_172, %c0_173, %c0_174] : memref<3x3x32x128xbf16, #tpu.memory_space<vmem>>, vector<1x1x32x128xbf16>
    %121 = vector.shape_cast %120 : vector<1x1x32x128xbf16> to vector<32x128xbf16>
    %cst_175 = arith.constant dense<0.000000e+00> : vector<256x128xf32>
    %122 = tpu.matmul %119, %121, %cst_175 {dimension_numbers = #tpu.dot_dimension_numbers<[1], [0], [0], [1], [0, 0, 1, 1], [], []>} : vector<256x32xbf16>, vector<32x128xbf16>, vector<256x128xf32> -> vector<256x128xf32>
    %123 = arith.addf %117, %122 : vector<256x128xf32>
    %c0_176 = arith.constant 0 : index
    %c2_177 = arith.constant 2 : index
    %c1_178 = arith.constant 1 : index
    %c0_179 = arith.constant 0 : index
    %124 = vector.load %arg9[%c0_176, %c2_177, %c1_178, %c0_179] : memref<4x10x10x32xbf16, #tpu.memory_space<vmem>>, vector<4x8x8x32xbf16>
    %125 = vector.shape_cast %124 : vector<4x8x8x32xbf16> to vector<256x32xbf16>
    %c2_180 = arith.constant 2 : index
    %c1_181 = arith.constant 1 : index
    %c0_182 = arith.constant 0 : index
    %c0_183 = arith.constant 0 : index
    %126 = vector.load %arg4[%c2_180, %c1_181, %c0_182, %c0_183] : memref<3x3x32x128xbf16, #tpu.memory_space<vmem>>, vector<1x1x32x128xbf16>
    %127 = vector.shape_cast %126 : vector<1x1x32x128xbf16> to vector<32x128xbf16>
    %cst_184 = arith.constant dense<0.000000e+00> : vector<256x128xf32>
    %128 = tpu.matmul %125, %127, %cst_184 {dimension_numbers = #tpu.dot_dimension_numbers<[1], [0], [0], [1], [0, 0, 1, 1], [], []>} : vector<256x32xbf16>, vector<32x128xbf16>, vector<256x128xf32> -> vector<256x128xf32>
    %129 = arith.addf %123, %128 : vector<256x128xf32>
    %c0_185 = arith.constant 0 : index
    %c2_186 = arith.constant 2 : index
    %c2_187 = arith.constant 2 : index
    %c0_188 = arith.constant 0 : index
    %130 = vector.load %arg9[%c0_185, %c2_186, %c2_187, %c0_188] : memref<4x10x10x32xbf16, #tpu.memory_space<vmem>>, vector<4x8x8x32xbf16>
    %131 = vector.shape_cast %130 : vector<4x8x8x32xbf16> to vector<256x32xbf16>
    %c2_189 = arith.constant 2 : index
    %c2_190 = arith.constant 2 : index
    %c0_191 = arith.constant 0 : index
    %c0_192 = arith.constant 0 : index
    %132 = vector.load %arg4[%c2_189, %c2_190, %c0_191, %c0_192] : memref<3x3x32x128xbf16, #tpu.memory_space<vmem>>, vector<1x1x32x128xbf16>
    %133 = vector.shape_cast %132 : vector<1x1x32x128xbf16> to vector<32x128xbf16>
    %cst_193 = arith.constant dense<0.000000e+00> : vector<256x128xf32>
    %134 = tpu.matmul %131, %133, %cst_193 {dimension_numbers = #tpu.dot_dimension_numbers<[1], [0], [0], [1], [0, 0, 1, 1], [], []>} : vector<256x32xbf16>, vector<32x128xbf16>, vector<256x128xf32> -> vector<256x128xf32>
    %135 = arith.addf %129, %134 : vector<256x128xf32>
    %c0_194 = arith.constant 0 : index
    %c0_195 = arith.constant 0 : index
    %136 = vector.load %arg5[%c0_194, %c0_195] : memref<1x128xf32, #tpu.memory_space<vmem>>, vector<1x128xf32>
    %137 = vector.broadcast %136 : vector<1x128xf32> to vector<256x128xf32>
    %138 = arith.addf %135, %137 : vector<256x128xf32>
    %c3_196 = arith.constant 3 : index
    %c0_197 = arith.constant 0 : index
    %c0_198 = arith.constant 0 : index
    %c0_199 = arith.constant 0 : index
    %c0_200 = arith.constant 0 : index
    %139 = vector.load %arg1[%c3_196, %c0_197, %c0_198, %c0_199, %c0_200] : memref<4x4x9x9x16xbf16, #tpu.memory_space<vmem>>, vector<1x4x8x8x16xbf16>
    %140 = vector.shape_cast %139 : vector<1x4x8x8x16xbf16> to vector<4x8x8x16xbf16>
    %141 = vector.shape_cast %140 : vector<4x8x8x16xbf16> to vector<256x16xbf16>
    %c0_201 = arith.constant 0 : index
    %c0_202 = arith.constant 0 : index
    %142 = vector.load %arg6[%c0_201, %c0_202] : memref<16x128xbf16, #tpu.memory_space<vmem>>, vector<16x128xbf16>
    %cst_203 = arith.constant dense<0.000000e+00> : vector<256x128xf32>
    %143 = tpu.matmul %141, %142, %cst_203 {dimension_numbers = #tpu.dot_dimension_numbers<[1], [0], [0], [1], [0, 0, 1, 1], [], []>} : vector<256x16xbf16>, vector<16x128xbf16>, vector<256x128xf32> -> vector<256x128xf32>
    %c0_204 = arith.constant 0 : index
    %c0_205 = arith.constant 0 : index
    %144 = vector.load %arg7[%c0_204, %c0_205] : memref<1x128xf32, #tpu.memory_space<vmem>>, vector<1x128xf32>
    %145 = vector.broadcast %144 : vector<1x128xf32> to vector<256x128xf32>
    %146 = arith.addf %143, %145 : vector<256x128xf32>
    %147 = arith.addf %138, %146 : vector<256x128xf32>
    %cst_206 = arith.constant 0.000000e+00 : f32
    %148 = vector.broadcast %cst_206 : f32 to vector<256x128xf32>
    %149 = arith.maximumf %147, %148 : vector<256x128xf32>
    %150 = vector.shape_cast %149 : vector<256x128xf32> to vector<4x8x8x128xf32>
    %151 = arith.truncf %150 : vector<4x8x8x128xf32> to vector<4x8x8x128xbf16>
    %c0_207 = arith.constant 0 : index
    %c0_208 = arith.constant 0 : index
    %c0_209 = arith.constant 0 : index
    %c0_210 = arith.constant 0 : index
    %152 = vector.load %arg8[%c0_207, %c0_208, %c0_209, %c0_210] : memref<4x8x8x128xbf16, #tpu.memory_space<vmem>>, vector<4x8x8x128xbf16>
    tpu.vector_store %arg8[%c0_207, %c0_208, %c0_209, %c0_210], %151 {strides = array<i32>} : memref<4x8x8x128xbf16, #tpu.memory_space<vmem>>, vector<4x8x8x128xbf16>,
    return
  }
  func.func @transform_0(%arg0: i32) -> (i32, i32, i32, i32, i32) {
    %c0_i32 = arith.constant 0 : i32
    %c0_i32_0 = arith.constant 0 : i32
    %c0_i32_1 = arith.constant 0 : i32
    %c0_i32_2 = arith.constant 0 : i32
    %c0_i32_3 = arith.constant 0 : i32
    return %c0_i32, %arg0, %c0_i32_0, %c0_i32_1, %c0_i32_2 : i32, i32, i32, i32, i32
  }
  func.func @transform_1(%arg0: i32) -> (i32, i32, i32, i32) {
    %c0_i32 = arith.constant 0 : i32
    %c0_i32_0 = arith.constant 0 : i32
    %c0_i32_1 = arith.constant 0 : i32
    %c0_i32_2 = arith.constant 0 : i32
    %c0_i32_3 = arith.constant 0 : i32
    return %c0_i32, %c0_i32_0, %c0_i32_1, %c0_i32_2 : i32, i32, i32, i32
  }
  func.func @transform_2(%arg0: i32) -> (i32, i32) {
    %c0_i32 = arith.constant 0 : i32
    %c0_i32_0 = arith.constant 0 : i32
    %c0_i32_1 = arith.constant 0 : i32
    return %c0_i32, %c0_i32_0 : i32, i32
  }
  func.func @transform_3(%arg0: i32) -> (i32, i32, i32, i32) {
    %c0_i32 = arith.constant 0 : i32
    %c0_i32_0 = arith.constant 0 : i32
    %c0_i32_1 = arith.constant 0 : i32
    %c0_i32_2 = arith.constant 0 : i32
    %c0_i32_3 = arith.constant 0 : i32
    return %c0_i32, %c0_i32_0, %c0_i32_1, %c0_i32_2 : i32, i32, i32, i32
  }
  func.func @transform_4(%arg0: i32) -> (i32, i32) {
    %c0_i32 = arith.constant 0 : i32
    %c0_i32_0 = arith.constant 0 : i32
    %c0_i32_1 = arith.constant 0 : i32
    return %c0_i32, %c0_i32_0 : i32, i32
  }
  func.func @transform_5(%arg0: i32) -> (i32, i32) {
    %c0_i32 = arith.constant 0 : i32
    %c0_i32_0 = arith.constant 0 : i32
    %c0_i32_1 = arith.constant 0 : i32
    return %c0_i32, %c0_i32_0 : i32, i32
  }
  func.func @transform_6(%arg0: i32) -> (i32, i32) {
    %c0_i32 = arith.constant 0 : i32
    %c0_i32_0 = arith.constant 0 : i32
    %c0_i32_1 = arith.constant 0 : i32
    return %c0_i32, %c0_i32_0 : i32, i32
  }
  func.func @transform_7(%arg0: i32) -> (i32, i32, i32, i32) {
    %c0_i32 = arith.constant 0 : i32
    %c0_i32_0 = arith.constant 0 : i32
    %c0_i32_1 = arith.constant 0 : i32
    %c0_i32_2 = arith.constant 0 : i32
    return %arg0, %c0_i32, %c0_i32_0, %c0_i32_1 : i32, i32, i32, i32
  }
}

</mosaic_0001>

<bundles_post_ra>
// kernel: tpu_custom_call.1
= control target key start
LH: loop header
LB: loop body
LE: loop exit
PB: predicated region body
PF: predicated region fallthrough
CT: control target
= control target key end

     0   :  { %12 = vsyncpa [#allocation5], 0  ;;  %s19623_s0 = inlined_call_operand.vmem [shape: bf16[4,8,9,9,16], index: 0, kind: input, shape index: {}]   ;;  %s19624_s1 = inlined_call_operand.vmem [shape: bf16[3,3,16,128], index: 1, kind: input, shape index: {}]   ;;  %s19625_s2 = inlined_call_operand.vmem [shape: f32[1,128], index: 2, kind: input, shape index: {}]   ;;  %s19626_s3 = inlined_call_operand.vmem [shape: bf16[3,3,32,128], index: 3, kind: input, shape index: {}]   ;;  %s19627_s4 = inlined_call_operand.vmem [shape: f32[1,128], index: 4, kind: input, shape index: {}]   ;;  %s19628_s5 = inlined_call_operand.vmem [shape: bf16[16,128], index: 5, kind: input, shape index: {}]   ;;  %s19629_s6 = inlined_call_operand.vmem [shape: f32[1,128], index: 6, kind: input, shape index: {}]   ;;  %s19630_s7 = inlined_call_operand.hbm [shape: bf16[8,8,8,128], index: 7, kind: output, shape index: {}]  }
   0x1   :  { %14 = vsyncpa [#allocation5 + $0x1], 0  ;;  %s15229_s24 = smov 0   ;;  %s15231_s25 = smov 0  }
   0x2   :  { %s15233_s26 = smov 0   ;;  %s15235_s27 = smov 0  }
   0x3 LB: > { %s12596_s28 = sadd.s32 4294967295, %s15183_s27   ;;  %s12597_s29 = sadd.s32 4294967294, %s15183_s27   ;;  %s15183_s27 = sphi %s15235_s27, %s19903_s27   ;;  %s15179_s26 = sphi %s15233_s26, %s19902_s26   ;;  %s15175_s25 = sphi %s15231_s25, %s19901_s25   ;;  %s15171_s24 = sphi %s15229_s24, %s19900_s24  }
   0x4   : > { %s15252_s30 = sadd.s32 1, %s15183_s27   ;;  %s27_s8 = sadd.s32 1, %s15179_s26 }
   0x5   : > { %s24_s9 = ssub.s32 %s15183_s27, %s15252_s30  ;;  %p34_p0 = scmp.ne.s32.totalorder %s15179_s26, %s15175_s25 }
   0x6   : > { %p25_p1 = scmp.eq.s32.totalorder %s24_s9, 0  ;;  %p35_p2 = scmp.eq.s32.totalorder %s15183_s27, 0 }
   0x7   : > { %p190_p3 = scmp.eq.s32.totalorder %s12596_s28, 1  ;;  %p195_p4 = scmp.ne.s32.totalorder %s15175_s25, %s15171_s24 }
   0x8   : > { %s15265_s10 = scalar_select %p25_p1, %s15179_s26, %s27_s8  }
   0x9   : > { %p36_p5 = por %p35_p2, %p34_p0  ;;  %p15267_p6 = por %p190_p3, %p34_p0 }
   0xa   : > { %p196_p7 = scmp.eq.s32.totalorder %s12597_s29, 1  ;;  %p12599_p9 = scmp.ge.s32.totalorder %s15183_s27, 2 }
   0xc   : > { %p15271_p8 = por %p196_p7, %p195_p4  ;;  %230 = sbr.rel (%p12599_p9) target bundleno = 94 (0x5e), region = 40 }
  0x11   : > { %233 = sbr.rel (!%p36_p5) target bundleno = 94 (0x5e), region = 44  ;;  %s235_s13 = sand.u32 (%p36_p5), 1, %s15179_s26  }
  0x12   : > { %s14874_s14 = smul.u32 (%p36_p5), 288, %s15183_s27 }
  0x13   : > { %s14873_s15 = smul.u32 (%p36_p5), 1152, %s235_s13 }
  0x14   : > { %s15283_s18 = scalar_lea.vmem (%p36_p5), %s19623_s0, %s14874_s14 }
  0x15   : > { %v258_v0 = vld [vmem:[%s15283_s18] sm:$0xff] (%p36_p5)   ;;  %v262_v1 = vld [vmem:[%s15283_s18 + $0x8] sm:$0xff] (%p36_p5)   ;;  %v266_v2 = vld [vmem:[%s15283_s18 + $0x10] sm:$0xff] (%p36_p5)   ;;  %s15288_s19 = scalar_lea.vmem (%p36_p5), [#allocation3], %s14873_s15 }
  0x16   : > { %259 = vst [vmem:[%s15288_s19] sm:$0xff] %v258_v0   ;;  %263 = vst [vmem:[%s15288_s19 + $0x8] sm:$0xff] %v262_v1   ;;  %v270_v3 = vld [vmem:[%s15283_s18 + $0x18] sm:$0xff]   ;;  %v274_v4 = vld [vmem:[%s15283_s18 + $0x20] sm:$0xff]  }
  0x17   : > { %267 = vst [vmem:[%s15288_s19 + $0x10] sm:$0xff] %v266_v2   ;;  %v278_v5 = vld [vmem:[%s15283_s18 + $0x28] sm:$0xff]   ;;  %271 = vst [vmem:[%s15288_s19 + $0x18] sm:$0xff] %v270_v3   ;;  %v282_v6 = vld [vmem:[%s15283_s18 + $0x30] sm:$0xff]  }
  0x18   : > { %275 = vst [vmem:[%s15288_s19 + $0x20] sm:$0xff] %v274_v4   ;;  %279 = vst [vmem:[%s15288_s19 + $0x28] sm:$0xff] %v278_v5   ;;  %v286_v7 = vld [vmem:[%s15283_s18 + $0x38] sm:$0xff]   ;;  %v290_v8 = vld [vmem:[%s15283_s18 + $0x40] sm:$0xff]  }
  0x19   : > { %283 = vst [vmem:[%s15288_s19 + $0x30] sm:$0xff] %v282_v6   ;;  %287 = vst [vmem:[%s15288_s19 + $0x38] sm:$0xff] %v286_v7   ;;  %v294_v9 = vld [vmem:[%s15283_s18 + $0x48] sm:$0xff]   ;;  %v298_v10 = vld [vmem:[%s15283_s18 + $0x50] sm:$0xff]  }
  0x1a   : > { %291 = vst [vmem:[%s15288_s19 + $0x40] sm:$0xff] %v290_v8   ;;  %v302_v11 = vld [vmem:[%s15283_s18 + $0x58] sm:$0xff]   ;;  %295 = vst [vmem:[%s15288_s19 + $0x48] sm:$0xff] %v294_v9   ;;  %v306_v12 = vld [vmem:[%s15283_s18 + $0x60] sm:$0xff]  }
  0x1b   : > { %299 = vst [vmem:[%s15288_s19 + $0x50] sm:$0xff] %v298_v10   ;;  %303 = vst [vmem:[%s15288_s19 + $0x58] sm:$0xff] %v302_v11   ;;  %v310_v13 = vld [vmem:[%s15283_s18 + $0x68] sm:$0xff]   ;;  %v314_v14 = vld [vmem:[%s15283_s18 + $0x70] sm:$0xff]  }
  0x1c   : > { %307 = vst [vmem:[%s15288_s19 + $0x60] sm:$0xff] %v306_v12   ;;  %311 = vst [vmem:[%s15288_s19 + $0x68] sm:$0xff] %v310_v13   ;;  %v318_v15 = vld [vmem:[%s15283_s18 + $0x78] sm:$0xff]   ;;  %v322_v16 = vld [vmem:[%s15283_s18 + $0x80] sm:$0xff]  }
  0x1d   : > { %315 = vst [vmem:[%s15288_s19 + $0x70] sm:$0xff] %v314_v14   ;;  %v326_v17 = vld [vmem:[%s15283_s18 + $0x88] sm:$0xff]   ;;  %319 = vst [vmem:[%s15288_s19 + $0x78] sm:$0xff] %v318_v15   ;;  %v330_v18 = vld [vmem:[%s15283_s18 + $0x90] sm:$0xff]  }
  0x1e   : > { %323 = vst [vmem:[%s15288_s19 + $0x80] sm:$0xff] %v322_v16   ;;  %327 = vst [vmem:[%s15288_s19 + $0x88] sm:$0xff] %v326_v17   ;;  %v334_v19 = vld [vmem:[%s15283_s18 + $0x98] sm:$0xff]   ;;  %v338_v20 = vld [vmem:[%s15283_s18 + $0xa0] sm:$0xff]  }
  0x1f   : > { %331 = vst [vmem:[%s15288_s19 + $0x90] sm:$0xff] %v330_v18   ;;  %335 = vst [vmem:[%s15288_s19 + $0x98] sm:$0xff] %v334_v19   ;;  %v342_v21 = vld [vmem:[%s15283_s18 + $0xa8] sm:$0xff]   ;;  %v346_v22 = vld [vmem:[%s15283_s18 + $0xb0] sm:$0xff]  }
  0x20   : > { %339 = vst [vmem:[%s15288_s19 + $0xa0] sm:$0xff] %v338_v20   ;;  %v350_v23 = vld [vmem:[%s15283_s18 + $0xb8] sm:$0xff]   ;;  %343 = vst [vmem:[%s15288_s19 + $0xa8] sm:$0xff] %v342_v21   ;;  %v354_v24 = vld [vmem:[%s15283_s18 + $0xc0] sm:$0xff]  }
  0x21   : > { %347 = vst [vmem:[%s15288_s19 + $0xb0] sm:$0xff] %v346_v22   ;;  %351 = vst [vmem:[%s15288_s19 + $0xb8] sm:$0xff] %v350_v23   ;;  %v358_v25 = vld [vmem:[%s15283_s18 + $0xc8] sm:$0xff]   ;;  %v362_v26 = vld [vmem:[%s15283_s18 + $0xd0] sm:$0xff]  }
  0x22   : > { %355 = vst [vmem:[%s15288_s19 + $0xc0] sm:$0xff] %v354_v24   ;;  %359 = vst [vmem:[%s15288_s19 + $0xc8] sm:$0xff] %v358_v25   ;;  %v366_v27 = vld [vmem:[%s15283_s18 + $0xd8] sm:$0xff]   ;;  %v370_v28 = vld [vmem:[%s15283_s18 + $0xe0] sm:$0xff]  }
  0x23   : > { %363 = vst [vmem:[%s15288_s19 + $0xd0] sm:$0xff] %v362_v26   ;;  %v374_v29 = vld [vmem:[%s15283_s18 + $0xe8] sm:$0xff]   ;;  %367 = vst [vmem:[%s15288_s19 + $0xd8] sm:$0xff] %v366_v27   ;;  %v378_v30 = vld [vmem:[%s15283_s18 + $0xf0] sm:$0xff]  }
  0x24   : > { %371 = vst [vmem:[%s15288_s19 + $0xe0] sm:$0xff] %v370_v28   ;;  %375 = vst [vmem:[%s15288_s19 + $0xe8] sm:$0xff] %v374_v29   ;;  %v382_v31 = vld [vmem:[%s15283_s18 + $0xf8] sm:$0xff]   ;;  %v386_v32 = vld [vmem:[%s15283_s18 + $0x100] sm:$0xff]  }
  0x25   : > { %379 = vst [vmem:[%s15288_s19 + $0xf0] sm:$0xff] %v378_v30   ;;  %383 = vst [vmem:[%s15288_s19 + $0xf8] sm:$0xff] %v382_v31   ;;  %v390_v33 = vld [vmem:[%s15283_s18 + $0x108] sm:$0xff]   ;;  %v394_v34 = vld [vmem:[%s15283_s18 + $0x110] sm:$0xff]  }
  0x26   : > { %387 = vst [vmem:[%s15288_s19 + $0x100] sm:$0xff] %v386_v32   ;;  %v398_v35 = vld [vmem:[%s15283_s18 + $0x118] sm:$0xff]   ;;  %391 = vst [vmem:[%s15288_s19 + $0x108] sm:$0xff] %v390_v33   ;;  %v402_v36 = vld [vmem:[%s15283_s18 + $0x240] sm:$0xff]  }
  0x27   : > { %395 = vst [vmem:[%s15288_s19 + $0x110] sm:$0xff] %v394_v34   ;;  %399 = vst [vmem:[%s15288_s19 + $0x118] sm:$0xff] %v398_v35   ;;  %v406_v37 = vld [vmem:[%s15283_s18 + $0x248] sm:$0xff]   ;;  %v410_v38 = vld [vmem:[%s15283_s18 + $0x250] sm:$0xff]  }
  0x28   : > { %403 = vst [vmem:[%s15288_s19 + $0x120] sm:$0xff] %v402_v36   ;;  %407 = vst [vmem:[%s15288_s19 + $0x128] sm:$0xff] %v406_v37   ;;  %v414_v39 = vld [vmem:[%s15283_s18 + $0x258] sm:$0xff]   ;;  %v418_v40 = vld [vmem:[%s15283_s18 + $0x260] sm:$0xff]  }
  0x29   : > { %411 = vst [vmem:[%s15288_s19 + $0x130] sm:$0xff] %v410_v38   ;;  %v422_v41 = vld [vmem:[%s15283_s18 + $0x268] sm:$0xff]   ;;  %415 = vst [vmem:[%s15288_s19 + $0x138] sm:$0xff] %v414_v39   ;;  %v426_v42 = vld [vmem:[%s15283_s18 + $0x270] sm:$0xff]  }
  0x2a   : > { %419 = vst [vmem:[%s15288_s19 + $0x140] sm:$0xff] %v418_v40   ;;  %423 = vst [vmem:[%s15288_s19 + $0x148] sm:$0xff] %v422_v41   ;;  %v430_v43 = vld [vmem:[%s15283_s18 + $0x278] sm:$0xff]   ;;  %v434_v44 = vld [vmem:[%s15283_s18 + $0x280] sm:$0xff]  }
  0x2b   : > { %427 = vst [vmem:[%s15288_s19 + $0x150] sm:$0xff] %v426_v42   ;;  %431 = vst [vmem:[%s15288_s19 + $0x158] sm:$0xff] %v430_v43   ;;  %v438_v45 = vld [vmem:[%s15283_s18 + $0x288] sm:$0xff]   ;;  %v442_v46 = vld [vmem:[%s15283_s18 + $0x290] sm:$0xff]  }
  0x2c   : > { %435 = vst [vmem:[%s15288_s19 + $0x160] sm:$0xff] %v434_v44   ;;  %v446_v47 = vld [vmem:[%s15283_s18 + $0x298] sm:$0xff]   ;;  %439 = vst [vmem:[%s15288_s19 + $0x168] sm:$0xff] %v438_v45   ;;  %v450_v48 = vld [vmem:[%s15283_s18 + $0x2a0] sm:$0xff]  }
  0x2d   : > { %443 = vst [vmem:[%s15288_s19 + $0x170] sm:$0xff] %v442_v46   ;;  %447 = vst [vmem:[%s15288_s19 + $0x178] sm:$0xff] %v446_v47   ;;  %v454_v49 = vld [vmem:[%s15283_s18 + $0x2a8] sm:$0xff]   ;;  %v458_v50 = vld [vmem:[%s15283_s18 + $0x2b0] sm:$0xff]  }
  0x2e   : > { %451 = vst [vmem:[%s15288_s19 + $0x180] sm:$0xff] %v450_v48   ;;  %455 = vst [vmem:[%s15288_s19 + $0x188] sm:$0xff] %v454_v49   ;;  %v462_v51 = vld [vmem:[%s15283_s18 + $0x2b8] sm:$0xff]   ;;  %v466_v52 = vld [vmem:[%s15283_s18 + $0x2c0] sm:$0xff]  }
  0x2f   : > { %459 = vst [vmem:[%s15288_s19 + $0x190] sm:$0xff] %v458_v50   ;;  %v470_v53 = vld [vmem:[%s15283_s18 + $0x2c8] sm:$0xff]   ;;  %463 = vst [vmem:[%s15288_s19 + $0x198] sm:$0xff] %v462_v51   ;;  %v474_v54 = vld [vmem:[%s15283_s18 + $0x2d0] sm:$0xff]  }
  0x30   : > { %467 = vst [vmem:[%s15288_s19 + $0x1a0] sm:$0xff] %v466_v52   ;;  %471 = vst [vmem:[%s15288_s19 + $0x1a8] sm:$0xff] %v470_v53   ;;  %v478_v55 = vld [vmem:[%s15283_s18 + $0x2d8] sm:$0xff]   ;;  %v482_v56 = vld [vmem:[%s15283_s18 + $0x2e0] sm:$0xff]  }
  0x31   : > { %475 = vst [vmem:[%s15288_s19 + $0x1b0] sm:$0xff] %v474_v54   ;;  %479 = vst [vmem:[%s15288_s19 + $0x1b8] sm:$0xff] %v478_v55   ;;  %v486_v57 = vld [vmem:[%s15283_s18 + $0x2e8] sm:$0xff]   ;;  %v490_v58 = vld [vmem:[%s15283_s18 + $0x2f0] sm:$0xff]  }
  0x32   : > { %483 = vst [vmem:[%s15288_s19 + $0x1c0] sm:$0xff] %v482_v56   ;;  %v494_v59 = vld [vmem:[%s15283_s18 + $0x2f8] sm:$0xff]   ;;  %487 = vst [vmem:[%s15288_s19 + $0x1c8] sm:$0xff] %v486_v57   ;;  %v498_v60 = vld [vmem:[%s15283_s18 + $0x300] sm:$0xff]  }
  0x33   : > { %491 = vst [vmem:[%s15288_s19 + $0x1d0] sm:$0xff] %v490_v58   ;;  %495 = vst [vmem:[%s15288_s19 + $0x1d8] sm:$0xff] %v494_v59   ;;  %v502_v61 = vld [vmem:[%s15283_s18 + $0x308] sm:$0xff]   ;;  %v506_v62 = vld [vmem:[%s15283_s18 + $0x310] sm:$0xff]  }
  0x34   : > { %499 = vst [vmem:[%s15288_s19 + $0x1e0] sm:$0xff] %v498_v60   ;;  %503 = vst [vmem:[%s15288_s19 + $0x1e8] sm:$0xff] %v502_v61   ;;  %v510_v63 = vld [vmem:[%s15283_s18 + $0x318] sm:$0xff]   ;;  %v514_v0 = vld [vmem:[%s15283_s18 + $0x320] sm:$0xff]  }
  0x35   : > { %507 = vst [vmem:[%s15288_s19 + $0x1f0] sm:$0xff] %v506_v62   ;;  %v518_v1 = vld [vmem:[%s15283_s18 + $0x328] sm:$0xff]   ;;  %511 = vst [vmem:[%s15288_s19 + $0x1f8] sm:$0xff] %v510_v63   ;;  %v522_v2 = vld [vmem:[%s15283_s18 + $0x330] sm:$0xff]  }
  0x36   : > { %515 = vst [vmem:[%s15288_s19 + $0x200] sm:$0xff] %v514_v0   ;;  %519 = vst [vmem:[%s15288_s19 + $0x208] sm:$0xff] %v518_v1   ;;  %v526_v3 = vld [vmem:[%s15283_s18 + $0x338] sm:$0xff]   ;;  %v530_v4 = vld [vmem:[%s15283_s18 + $0x340] sm:$0xff]  }
  0x37   : > { %523 = vst [vmem:[%s15288_s19 + $0x210] sm:$0xff] %v522_v2   ;;  %527 = vst [vmem:[%s15288_s19 + $0x218] sm:$0xff] %v526_v3   ;;  %v534_v5 = vld [vmem:[%s15283_s18 + $0x348] sm:$0xff]   ;;  %v538_v6 = vld [vmem:[%s15283_s18 + $0x350] sm:$0xff]  }
  0x38   : > { %531 = vst [vmem:[%s15288_s19 + $0x220] sm:$0xff] %v530_v4   ;;  %v542_v7 = vld [vmem:[%s15283_s18 + $0x358] sm:$0xff]   ;;  %535 = vst [vmem:[%s15288_s19 + $0x228] sm:$0xff] %v534_v5   ;;  %v546_v8 = vld [vmem:[%s15283_s18 + $0x480] sm:$0xff]  }
  0x39   : > { %539 = vst [vmem:[%s15288_s19 + $0x230] sm:$0xff] %v538_v6   ;;  %543 = vst [vmem:[%s15288_s19 + $0x238] sm:$0xff] %v542_v7   ;;  %v550_v9 = vld [vmem:[%s15283_s18 + $0x488] sm:$0xff]   ;;  %v554_v10 = vld [vmem:[%s15283_s18 + $0x490] sm:$0xff]  }
  0x3a   : > { %547 = vst [vmem:[%s15288_s19 + $0x240] sm:$0xff] %v546_v8   ;;  %551 = vst [vmem:[%s15288_s19 + $0x248] sm:$0xff] %v550_v9   ;;  %v558_v11 = vld [vmem:[%s15283_s18 + $0x498] sm:$0xff]   ;;  %v562_v12 = vld [vmem:[%s15283_s18 + $0x4a0] sm:$0xff]  }
  0x3b   : > { %555 = vst [vmem:[%s15288_s19 + $0x250] sm:$0xff] %v554_v10   ;;  %v566_v13 = vld [vmem:[%s15283_s18 + $0x4a8] sm:$0xff]   ;;  %559 = vst [vmem:[%s15288_s19 + $0x258] sm:$0xff] %v558_v11   ;;  %v570_v14 = vld [vmem:[%s15283_s18 + $0x4b0] sm:$0xff]  }
  0x3c   : > { %563 = vst [vmem:[%s15288_s19 + $0x260] sm:$0xff] %v562_v12   ;;  %567 = vst [vmem:[%s15288_s19 + $0x268] sm:$0xff] %v566_v13   ;;  %v574_v15 = vld [vmem:[%s15283_s18 + $0x4b8] sm:$0xff]   ;;  %v578_v16 = vld [vmem:[%s15283_s18 + $0x4c0] sm:$0xff]  }
  0x3d   : > { %571 = vst [vmem:[%s15288_s19 + $0x270] sm:$0xff] %v570_v14   ;;  %575 = vst [vmem:[%s15288_s19 + $0x278] sm:$0xff] %v574_v15   ;;  %v582_v17 = vld [vmem:[%s15283_s18 + $0x4c8] sm:$0xff]   ;;  %v586_v18 = vld [vmem:[%s15283_s18 + $0x4d0] sm:$0xff]  }
  0x3e   : > { %579 = vst [vmem:[%s15288_s19 + $0x280] sm:$0xff] %v578_v16   ;;  %v590_v19 = vld [vmem:[%s15283_s18 + $0x4d8] sm:$0xff]   ;;  %583 = vst [vmem:[%s15288_s19 + $0x288] sm:$0xff] %v582_v17   ;;  %v594_v20 = vld [vmem:[%s15283_s18 + $0x4e0] sm:$0xff]  }
  0x3f   : > { %587 = vst [vmem:[%s15288_s19 + $0x290] sm:$0xff] %v586_v18   ;;  %591 = vst [vmem:[%s15288_s19 + $0x298] sm:$0xff] %v590_v19   ;;  %v598_v21 = vld [vmem:[%s15283_s18 + $0x4e8] sm:$0xff]   ;;  %v602_v22 = vld [vmem:[%s15283_s18 + $0x4f0] sm:$0xff]  }
  0x40   : > { %595 = vst [vmem:[%s15288_s19 + $0x2a0] sm:$0xff] %v594_v20   ;;  %599 = vst [vmem:[%s15288_s19 + $0x2a8] sm:$0xff] %v598_v21   ;;  %v606_v23 = vld [vmem:[%s15283_s18 + $0x4f8] sm:$0xff]   ;;  %v610_v24 = vld [vmem:[%s15283_s18 + $0x500] sm:$0xff]  }
  0x41   : > { %603 = vst [vmem:[%s15288_s19 + $0x2b0] sm:$0xff] %v602_v22   ;;  %v614_v25 = vld [vmem:[%s15283_s18 + $0x508] sm:$0xff]   ;;  %607 = vst [vmem:[%s15288_s19 + $0x2b8] sm:$0xff] %v606_v23   ;;  %v618_v26 = vld [vmem:[%s15283_s18 + $0x510] sm:$0xff]  }
  0x42   : > { %611 = vst [vmem:[%s15288_s19 + $0x2c0] sm:$0xff] %v610_v24   ;;  %615 = vst [vmem:[%s15288_s19 + $0x2c8] sm:$0xff] %v614_v25   ;;  %v622_v27 = vld [vmem:[%s15283_s18 + $0x518] sm:$0xff]   ;;  %v626_v28 = vld [vmem:[%s15283_s18 + $0x520] sm:$0xff]  }
  0x43   : > { %619 = vst [vmem:[%s15288_s19 + $0x2d0] sm:$0xff] %v618_v26   ;;  %623 = vst [vmem:[%s15288_s19 + $0x2d8] sm:$0xff] %v622_v27   ;;  %v630_v29 = vld [vmem:[%s15283_s18 + $0x528] sm:$0xff]   ;;  %v634_v30 = vld [vmem:[%s15283_s18 + $0x530] sm:$0xff]  }
  0x44   : > { %627 = vst [vmem:[%s15288_s19 + $0x2e0] sm:$0xff] %v626_v28   ;;  %v638_v31 = vld [vmem:[%s15283_s18 + $0x538] sm:$0xff]   ;;  %631 = vst [vmem:[%s15288_s19 + $0x2e8] sm:$0xff] %v630_v29   ;;  %v642_v32 = vld [vmem:[%s15283_s18 + $0x540] sm:$0xff]  }
  0x45   : > { %635 = vst [vmem:[%s15288_s19 + $0x2f0] sm:$0xff] %v634_v30   ;;  %639 = vst [vmem:[%s15288_s19 + $0x2f8] sm:$0xff] %v638_v31   ;;  %v646_v33 = vld [vmem:[%s15283_s18 + $0x548] sm:$0xff]   ;;  %v650_v34 = vld [vmem:[%s15283_s18 + $0x550] sm:$0xff]  }
  0x46   : > { %643 = vst [vmem:[%s15288_s19 + $0x300] sm:$0xff] %v642_v32   ;;  %647 = vst [vmem:[%s15288_s19 + $0x308] sm:$0xff] %v646_v33   ;;  %v654_v35 = vld [vmem:[%s15283_s18 + $0x558] sm:$0xff]   ;;  %v658_v36 = vld [vmem:[%s15283_s18 + $0x560] sm:$0xff]  }
  0x47   : > { %651 = vst [vmem:[%s15288_s19 + $0x310] sm:$0xff] %v650_v34   ;;  %v662_v37 = vld [vmem:[%s15283_s18 + $0x568] sm:$0xff]   ;;  %655 = vst [vmem:[%s15288_s19 + $0x318] sm:$0xff] %v654_v35   ;;  %v666_v38 = vld [vmem:[%s15283_s18 + $0x570] sm:$0xff]  }
  0x48   : > { %659 = vst [vmem:[%s15288_s19 + $0x320] sm:$0xff] %v658_v36   ;;  %663 = vst [vmem:[%s15288_s19 + $0x328] sm:$0xff] %v662_v37   ;;  %v670_v39 = vld [vmem:[%s15283_s18 + $0x578] sm:$0xff]   ;;  %v674_v40 = vld [vmem:[%s15283_s18 + $0x580] sm:$0xff]  }
  0x49   : > { %667 = vst [vmem:[%s15288_s19 + $0x330] sm:$0xff] %v666_v38   ;;  %671 = vst [vmem:[%s15288_s19 + $0x338] sm:$0xff] %v670_v39   ;;  %v678_v41 = vld [vmem:[%s15283_s18 + $0x588] sm:$0xff]   ;;  %v682_v42 = vld [vmem:[%s15283_s18 + $0x590] sm:$0xff]  }
  0x4a   : > { %675 = vst [vmem:[%s15288_s19 + $0x340] sm:$0xff] %v674_v40   ;;  %v686_v43 = vld [vmem:[%s15283_s18 + $0x598] sm:$0xff]   ;;  %679 = vst [vmem:[%s15288_s19 + $0x348] sm:$0xff] %v678_v41   ;;  %v690_v44 = vld [vmem:[%s15283_s18 + $0x6c0] sm:$0xff]  }
  0x4b   : > { %683 = vst [vmem:[%s15288_s19 + $0x350] sm:$0xff] %v682_v42   ;;  %687 = vst [vmem:[%s15288_s19 + $0x358] sm:$0xff] %v686_v43   ;;  %v694_v45 = vld [vmem:[%s15283_s18 + $0x6c8] sm:$0xff]   ;;  %v698_v46 = vld [vmem:[%s15283_s18 + $0x6d0] sm:$0xff]  }
  0x4c   : > { %691 = vst [vmem:[%s15288_s19 + $0x360] sm:$0xff] %v690_v44   ;;  %695 = vst [vmem:[%s15288_s19 + $0x368] sm:$0xff] %v694_v45   ;;  %v702_v47 = vld [vmem:[%s15283_s18 + $0x6d8] sm:$0xff]   ;;  %v706_v48 = vld [vmem:[%s15283_s18 + $0x6e0] sm:$0xff]  }
  0x4d   : > { %699 = vst [vmem:[%s15288_s19 + $0x370] sm:$0xff] %v698_v46   ;;  %v710_v49 = vld [vmem:[%s15283_s18 + $0x6e8] sm:$0xff]   ;;  %703 = vst [vmem:[%s15288_s19 + $0x378] sm:$0xff] %v702_v47   ;;  %v714_v50 = vld [vmem:[%s15283_s18 + $0x6f0] sm:$0xff]  }
  0x4e   : > { %707 = vst [vmem:[%s15288_s19 + $0x380] sm:$0xff] %v706_v48   ;;  %711 = vst [vmem:[%s15288_s19 + $0x388] sm:$0xff] %v710_v49   ;;  %v718_v51 = vld [vmem:[%s15283_s18 + $0x6f8] sm:$0xff]   ;;  %v722_v52 = vld [vmem:[%s15283_s18 + $0x700] sm:$0xff]  }
  0x4f   : > { %715 = vst [vmem:[%s15288_s19 + $0x390] sm:$0xff] %v714_v50   ;;  %719 = vst [vmem:[%s15288_s19 + $0x398] sm:$0xff] %v718_v51   ;;  %v726_v53 = vld [vmem:[%s15283_s18 + $0x708] sm:$0xff]   ;;  %v730_v54 = vld [vmem:[%s15283_s18 + $0x710] sm:$0xff]  }
  0x50   : > { %723 = vst [vmem:[%s15288_s19 + $0x3a0] sm:$0xff] %v722_v52   ;;  %v734_v55 = vld [vmem:[%s15283_s18 + $0x718] sm:$0xff]   ;;  %727 = vst [vmem:[%s15288_s19 + $0x3a8] sm:$0xff] %v726_v53   ;;  %v738_v56 = vld [vmem:[%s15283_s18 + $0x720] sm:$0xff]  }
  0x51   : > { %731 = vst [vmem:[%s15288_s19 + $0x3b0] sm:$0xff] %v730_v54   ;;  %735 = vst [vmem:[%s15288_s19 + $0x3b8] sm:$0xff] %v734_v55   ;;  %v742_v57 = vld [vmem:[%s15283_s18 + $0x728] sm:$0xff]   ;;  %v746_v58 = vld [vmem:[%s15283_s18 + $0x730] sm:$0xff]  }
  0x52   : > { %739 = vst [vmem:[%s15288_s19 + $0x3c0] sm:$0xff] %v738_v56   ;;  %743 = vst [vmem:[%s15288_s19 + $0x3c8] sm:$0xff] %v742_v57   ;;  %v750_v59 = vld [vmem:[%s15283_s18 + $0x738] sm:$0xff]   ;;  %v754_v60 = vld [vmem:[%s15283_s18 + $0x740] sm:$0xff]  }
  0x53   : > { %747 = vst [vmem:[%s15288_s19 + $0x3d0] sm:$0xff] %v746_v58   ;;  %v758_v61 = vld [vmem:[%s15283_s18 + $0x748] sm:$0xff]   ;;  %751 = vst [vmem:[%s15288_s19 + $0x3d8] sm:$0xff] %v750_v59   ;;  %v762_v62 = vld [vmem:[%s15283_s18 + $0x750] sm:$0xff]  }
  0x54   : > { %755 = vst [vmem:[%s15288_s19 + $0x3e0] sm:$0xff] %v754_v60   ;;  %759 = vst [vmem:[%s15288_s19 + $0x3e8] sm:$0xff] %v758_v61   ;;  %v766_v63 = vld [vmem:[%s15283_s18 + $0x758] sm:$0xff]   ;;  %v770_v0 = vld [vmem:[%s15283_s18 + $0x760] sm:$0xff]  }
  0x55   : > { %763 = vst [vmem:[%s15288_s19 + $0x3f0] sm:$0xff] %v762_v62   ;;  %767 = vst [vmem:[%s15288_s19 + $0x3f8] sm:$0xff] %v766_v63   ;;  %v774_v1 = vld [vmem:[%s15283_s18 + $0x768] sm:$0xff]   ;;  %v778_v2 = vld [vmem:[%s15283_s18 + $0x770] sm:$0xff]  }
  0x56   : > { %771 = vst [vmem:[%s15288_s19 + $0x400] sm:$0xff] %v770_v0   ;;  %v782_v3 = vld [vmem:[%s15283_s18 + $0x778] sm:$0xff]   ;;  %775 = vst [vmem:[%s15288_s19 + $0x408] sm:$0xff] %v774_v1   ;;  %v786_v4 = vld [vmem:[%s15283_s18 + $0x780] sm:$0xff]  }
  0x57   : > { %779 = vst [vmem:[%s15288_s19 + $0x410] sm:$0xff] %v778_v2   ;;  %783 = vst [vmem:[%s15288_s19 + $0x418] sm:$0xff] %v782_v3   ;;  %v790_v5 = vld [vmem:[%s15283_s18 + $0x788] sm:$0xff]   ;;  %v794_v6 = vld [vmem:[%s15283_s18 + $0x790] sm:$0xff]  }
  0x58   : > { %787 = vst [vmem:[%s15288_s19 + $0x420] sm:$0xff] %v786_v4   ;;  %791 = vst [vmem:[%s15288_s19 + $0x428] sm:$0xff] %v790_v5   ;;  %v798_v7 = vld [vmem:[%s15283_s18 + $0x798] sm:$0xff]   ;;  %v802_v8 = vld [vmem:[%s15283_s18 + $0x7a0] sm:$0xff]  }
  0x59   : > { %795 = vst [vmem:[%s15288_s19 + $0x430] sm:$0xff] %v794_v6   ;;  %v806_v9 = vld [vmem:[%s15283_s18 + $0x7a8] sm:$0xff]   ;;  %799 = vst [vmem:[%s15288_s19 + $0x438] sm:$0xff] %v798_v7   ;;  %v810_v10 = vld [vmem:[%s15283_s18 + $0x7b0] sm:$0xff]  }
  0x5a   : > { %803 = vst [vmem:[%s15288_s19 + $0x440] sm:$0xff] %v802_v8   ;;  %807 = vst [vmem:[%s15288_s19 + $0x448] sm:$0xff] %v806_v9   ;;  %v814_v11 = vld [vmem:[%s15283_s18 + $0x7b8] sm:$0xff]   ;;  %v818_v12 = vld [vmem:[%s15283_s18 + $0x7c0] sm:$0xff]  }
  0x5b   : > { %811 = vst [vmem:[%s15288_s19 + $0x450] sm:$0xff] %v810_v10   ;;  %815 = vst [vmem:[%s15288_s19 + $0x458] sm:$0xff] %v814_v11   ;;  %v822_v13 = vld [vmem:[%s15283_s18 + $0x7c8] sm:$0xff]   ;;  %v826_v14 = vld [vmem:[%s15283_s18 + $0x7d0] sm:$0xff]  }
  0x5c   : > { %819 = vst [vmem:[%s15288_s19 + $0x460] sm:$0xff] %v818_v12   ;;  %v830_v15 = vld [vmem:[%s15283_s18 + $0x7d8] sm:$0xff]   ;;  %823 = vst [vmem:[%s15288_s19 + $0x468] sm:$0xff] %v822_v13  }
  0x5d   : > { %827 = vst [vmem:[%s15288_s19 + $0x470] sm:$0xff] %v826_v14   ;;  %831 = vst [vmem:[%s15288_s19 + $0x478] sm:$0xff] %v830_v15  }
  0x5e PF: > { %p12603_p10 = scmp.ge.s32.totalorder %s15183_s27, 1  ;;  %p1432_p11 = scmp.lt.s32.totalorder %s15183_s27, 3 }
  0x60   : > { %p1433_p12 = pnand %p12603_p10, %p1432_p11 }
  0x62   : > { %1436 = sbr.rel (%p1433_p12) target bundleno = 1217 (0x4c1), region = 85 }
  0x67   : > { %v14918_v16 = vld [vmem:[%s19624_s1 + $0x8] sm:$0xff]   ;;  %s15581_s22 = sand.u32 1, %s15175_s25   ;;  %v14921_v17 = vld [vmem:[%s19624_s1] sm:$0xff]   ;;  %vm1629_vm0 = vcmask 130048   ;;  %v14924_v18 = vld [vmem:[%s19624_s1 + $0x10] sm:$0xff]   ;;  %v19661_v56 = vmov 0 }
  0x68   : > { %s14875_s23 = smul.u32 1152, %s15581_s22  ;;  %14871 = vmatprep.subr.bf16.mxu1 %v14918_v16  ;;  %14207 = vmatprep.subr.bf16.mxu0 %v14918_v16  ;;  %vm2198_vm1 = vsmask.f32 3328  ;;  %vm2199_vm2 = vsmask.f32 7440  ;;  %v15624_v46 = vld [vmem:[%s19624_s1 + $0x18] sm:$0xff]  }
  0x69   : > { %14872 = vmatpush3.bf16.msra.mxu1 %v14918_v16  ;;  %14208 = vmatpush3.bf16.msra.mxu0 %v14918_v16  ;;  %v15629_v47 = vld [vmem:[%s19624_s1 + $0x20] sm:$0xff]   ;;  %vm15641_vm3 = vmor %vm2198_vm1, %vm2199_vm2  ;;  %vm6092_vm4 = vcmask 253952   ;;  %vm6111_vm5 = vsmask.f32 256  ;;  %vm6209_vm7 = vsmask.f32 7938 }
  0x6a   : > { %s15590_s14 = scalar_lea.vmem [#allocation3], %s14875_s23  ;;  %14241 = vmatprep.subr.bf16.mxu1 %v14921_v17  ;;  %14275 = vmatprep.subr.bf16.mxu0 %v14924_v18  ;;  %v19662_v56 = vsel %vm15641_vm3, 4294967295, %v19661_v56  ;;  %vm16518_vm6 = vmand %vm6092_vm4, %vm6111_vm5  ;;  %vm6090_vm9 = vcmask 257024   ;;  %vm8137_vm11 = vcmask 1042432   ;;  %vm8138_vm12 = vcmask 1046532   ;;  %s12604_s20 = sshll.u32 %s15581_s22, 7 }
  0x6b   : > { %v14919_v19 = vld [vmem:[%s15590_s14 + $0x120] ss:$8 sps:$4 sm:$0xff]   ;;  %v14920_v20 = vld [vmem:[%s15590_s14 + $0x1b0] ss:$8 sps:$4 sm:$0xff]   ;;  %v2135_v34 = vld [vmem:[%s15590_s14 + $0x4] sm:$0x1] }
  0x6c   : > { %14209 = vmatprep.mubr.msk.bf16.mxu0 %vm1629_vm0, %v14919_v19  ;;  %v14922_v21 = vld [vmem:[%s15590_s14 + $0x130] ss:$8 sps:$4 sm:$0xff]   ;;  %14225 = vmatprep.mubr.msk.bf16.mxu1 %vm1629_vm0, %v14920_v20  ;;  %v14923_v22 = vld [vmem:[%s15590_s14 + $0x1c0] ss:$8 sps:$4 sm:$0xff]   ;;  %v2137_v36 = vld [vmem:[%s15590_s14 + $0xc] sm:$0x1] }
  0x6d   : > { %14210 = vmatmul.mubr.msk.bf16.vlgmr.msra.gmra.mxu0 %vm1629_vm0, %v14922_v21  ;;  %v14925_v23 = vld [vmem:[%s15590_s14 + $0x140] ss:$8 sps:$4 sm:$0xff]   ;;  %14226 = vmatmul.mubr.msk.bf16.vlgmr.msra.gmra.mxu1 %vm1629_vm0, %v14923_v22  ;;  %v14926_v24 = vld [vmem:[%s15590_s14 + $0x1d0] ss:$8 sps:$4 sm:$0xff]   ;;  %v2211_v39 = vshll.u32 %v2135_v34, 16  ;;  %v2225_v42 = vshll.u32 %v2137_v36, 16  ;;  %vm16526_vm8 = vmand %vm6092_vm4, %vm6209_vm7 }
  0x6e   : > { %14276 = vmatpush3.bf16.msra.mxu0 %v14924_v18  ;;  %14242 = vmatpush3.bf16.msra.mxu1 %v14921_v17  ;;  %v14927_v25 = vld [vmem:[%s15590_s14 + $0x150] ss:$8 sps:$4 sm:$0xff]   ;;  %v14928_v26 = vld [vmem:[%s15590_s14 + $0x1e0] ss:$8 sps:$4 sm:$0xff]   ;;  %v2139_v54 = vld [vmem:[%s15590_s14 + $0x14] sm:$0x1] }
  0x6f   : > { %14213 = vmatprep.mubr.msk.bf16.mxu0 %vm1629_vm0, %v14925_v23  ;;  %14229 = vmatprep.mubr.msk.bf16.mxu1 %vm1629_vm0, %v14926_v24  ;;  %v14929_v27 = vld [vmem:[%s15590_s14 + $0x168] ss:$8 sps:$4 sm:$0xff]   ;;  %v14930_v28 = vld [vmem:[%s15590_s14 + $0x1f8] ss:$8 sps:$4 sm:$0xff]   ;;  %v2213_v51 = vrot.slane %v2211_v39, 5  ;;  %v2227_v52 = vrot.slane %v2225_v42, 5  ;;  %vm16544_vm10 = vmand %vm6090_vm9, %vm6209_vm7 }
  0x70   : > { %v14931_v29 = vld [vmem:[%s15590_s14 + $0x178] ss:$8 sps:$4 sm:$0xff]   ;;  %v14932_v30 = vld [vmem:[%s15590_s14 + $0x208] ss:$8 sps:$4 sm:$0xff]   ;;  %14309 = vmatprep.subr.bf16.mxu1 %v15624_v46  ;;  %19663 = vst [vmem:[#allocation7_spill] sm:$0xff] %v19662_v56  ;;  %14343 = vmatprep.subr.bf16.mxu0 %v15629_v47  ;;  %v2239_v63 = vshll.u32 %v2139_v54, 16  ;;  %vm16996_vm13 = vmor %vm8137_vm11, %vm8138_vm12 }
  0x71   : > { %v14933_v31 = vld [vmem:[%s15590_s14 + $0x188] ss:$8 sps:$4 sm:$0xff]   ;;  %v14934_v32 = vld [vmem:[%s15590_s14 + $0x218] ss:$8 sps:$4 sm:$0xff]   ;;  %v2141_v59 = vld [vmem:[%s15590_s14 + $0x1c] sm:$0x1] }
  0x72   : > { %v2134_v33 = vld [vmem:[%s15590_s14] sm:$0xf]  ;;  %v2136_v35 = vld [vmem:[%s15590_s14 + $0x8] sm:$0xf]  ;;  %v2138_v53 = vld [vmem:[%s15590_s14 + $0x10] sm:$0xf] }
  0x73   : > { %v2202_v37 = vshrl.u32 %v2134_v33, 16  ;;  %v2205_v38 = vshll.u32 %v2134_v33, 16  ;;  %v2216_v40 = vshrl.u32 %v2136_v35, 16  ;;  %v2219_v41 = vshll.u32 %v2136_v35, 16  ;;  %v14935_v49 = vld [vmem:[%s15590_s14 + $0x198] ss:$8 sps:$4 sm:$0xff]  }
  0x74   : > { %v14936_v55 = vld [vmem:[%s15590_s14 + $0x228] ss:$8 sps:$4 sm:$0xff]   ;;  %v2140_v58 = vld [vmem:[%s15590_s14 + $0x18] sm:$0xf]  ;;  %v2230_v60 = vshrl.u32 %v2138_v53, 16  ;;  %v2233_v61 = vshll.u32 %v2138_v53, 16 }
  0x75   : > { %14214 = vmatmul.mubr.msk.bf16.gmra.mxu0 %vm1629_vm0, %v14927_v25  ;;  %14230 = vmatmul.mubr.msk.bf16.gmra.mxu1 %vm1629_vm0, %v14928_v26  ;;  %v2204_v43 = vrot.slane %v2202_v37, 4  ;;  %v2207_v44 = vrot.slane %v2205_v38, 5  ;;  %v2218_v45 = vrot.slane %v2216_v40, 4  ;;  %v2221_v48 = vrot.slane %v2219_v41, 5  ;;  %v14937_v6 = vld [vmem:[%s15590_s14] ss:$8 sps:$4 sm:$0xff]  }
  0x76   : > { %14217 = vmatprep.mubr.msk.bf16.mxu0 %vm1629_vm0, %v14929_v27  ;;  %14233 = vmatprep.mubr.msk.bf16.mxu1 %vm1629_vm0, %v14930_v28  ;;  %v2244_v0 = vshrl.u32 %v2140_v58, 16  ;;  %v2247_v1 = vshll.u32 %v2140_v58, 16  ;;  %v2232_v3 = vrot.slane %v2230_v60, 4  ;;  %v2235_v4 = vrot.slane %v2233_v61, 5  ;;  %v2142_v16 = vld [vmem:[%s15590_s14 + $0x20] sm:$0xf] }
  0x77   : > { %v2208_v50 = vor.u32 %v2207_v44, %v2204_v43  ;;  %v2222_v57 = vor.u32 %v2221_v48, %v2218_v45  ;;  %v2253_v5 = vshll.u32 %v2141_v59, 16  ;;  %v2241_v12 = vrot.slane %v2239_v63, 5  ;;  %v2143_v17 = vld [vmem:[%s15590_s14 + $0x24] sm:$0x1]  ;;  %v2144_v18 = vld [vmem:[%s15590_s14 + $0x28] sm:$0xf] }
  0x78   : > { %v2246_v8 = vrot.slane %v2244_v0, 4  ;;  %v2249_v9 = vrot.slane %v2247_v1, 5  ;;  %v2236_v11 = vor.u32 %v2235_v4, %v2232_v3  ;;  %v2145_v20 = vld [vmem:[%s15590_s14 + $0x2c] sm:$0x1]  ;;  %v2258_v21 = vshrl.u32 %v2142_v16, 16  ;;  %s19460_s21 = scalar_lea.vmem [#allocation4], %s12604_s20 }
  0x79   : > { %v2209_v62 = vrot.slane %v2208_v50, 4  ;;  %v2223_v2 = vrot.slane %v2222_v57, 4  ;;  %v2255_v13 = vrot.slane %v2253_v5, 5  ;;  %v2261_v22 = vshll.u32 %v2142_v16, 16  ;;  %v14939_v28 = vld [vmem:[%s15590_s14 + $0x10] ss:$8 sps:$4 sm:$0xff]  }
  0x7a   : > { %v2250_v15 = vor.u32 %v2249_v9, %v2246_v8  ;;  %v2237_v19 = vrot.slane %v2236_v11, 4  ;;  %v2267_v23 = vshll.u32 %v2143_v17, 16  ;;  %v2272_v25 = vshrl.u32 %v2144_v18, 16  ;;  %v14941_v34 = vld [vmem:[%s15590_s14 + $0x20] ss:$8 sps:$4 sm:$0xff]   ;;  %s13779_s23 = sshll.u32 %s12596_s28, 11 }
  0x7b   : > { %v2214_v7 = vsel %vm15641_vm3, %v2209_v62, %v2213_v51  ;;  %v2228_v10 = vsel %vm15641_vm3, %v2223_v2, %v2227_v52  ;;  %v2275_v26 = vshll.u32 %v2144_v18, 16  ;;  %v2281_v27 = vshll.u32 %v2145_v20, 16  ;;  %v2146_v40 = vld [vmem:[%s15590_s14 + $0x30] sm:$0xf]  ;;  %v2147_v41 = vld [vmem:[%s15590_s14 + $0x34] sm:$0x1]  ;;  %s19576_s13 = scalar_lea.hbm %s19630_s7, %s13779_s23 }
  0x7c   : > { %v12707_v14 = vcombine.low %v2214_v7, %v2228_v10  ;;  %v2251_v24 = vrot.slane %v2250_v15, 4  ;;  %v2274_v35 = vrot.slane %v2272_v25, 4  ;;  %v2148_v42 = vld [vmem:[%s15590_s14 + $0x38] sm:$0xf]  ;;  %v15673_v43 = vld [vmem:[%s19624_s1 + $0x28] sm:$0xff]   ;;  %v2286_v48 = vshrl.u32 %v2146_v40, 16 }
  0x7d   : > { %14218 = vmatmul.mubr.msk.bf16.gmra.mxu0 %vm1629_vm0, %v14931_v29  ;;  %14234 = vmatmul.mubr.msk.bf16.gmra.mxu1 %vm1629_vm0, %v14932_v30  ;;  %v2242_v29 = vsel %vm15641_vm3, %v2237_v19, %v2241_v12  ;;  %v2260_v30 = vrot.slane %v2258_v21, 4  ;;  %v2277_v36 = vrot.slane %v2275_v26, 5  ;;  %v2283_v37 = vrot.slane %v2281_v27, 5  ;;  %v2149_v45 = vld [vmem:[%s15590_s14 + $0x3c] sm:$0x1]  ;;  %v15679_v51 = vld [vmem:[%s19624_s1 + $0x30] sm:$0xff]  }
  0x7e   : > { %14221 = vmatprep.mubr.msk.bf16.mxu0 %vm1629_vm0, %v14933_v31  ;;  %14237 = vmatprep.mubr.msk.bf16.mxu1 %vm1629_vm0, %v14934_v32  ;;  %v2263_v31 = vrot.slane %v2261_v22, 5  ;;  %v2269_v32 = vrot.slane %v2267_v23, 5  ;;  %v2256_v33 = vsel %vm15641_vm3, %v2251_v24, %v2255_v13  ;;  %v2295_v50 = vshll.u32 %v2147_v41, 16  ;;  %v2150_v3 = vld [vmem:[%s15590_s14 + $0x48] sm:$0xf]  ;;  %s12529_s29 = sshll.u32 %s19460_s21, 4  ;;  %s19578_s29 = int_to_ptr.vmem [resolvable:$true] %s12529_s29 }
  0x7f   : > { %v12708_v38 = vcombine.low %v2242_v29, %v2256_v33  ;;  %v2278_v44 = vor.u32 %v2277_v36, %v2274_v35  ;;  %v2300_v53 = vshrl.u32 %v2148_v42, 16  ;;  %v2303_v54 = vshll.u32 %v2148_v42, 16  ;;  %v2151_v4 = vld [vmem:[%s15590_s14 + $0x4c] sm:$0x1]  ;;  %v2152_v5 = vld [vmem:[%s15590_s14 + $0x50] sm:$0xf] }
  0x80   : > { %v2264_v39 = vor.u32 %v2263_v31, %v2260_v30  ;;  %v2288_v58 = vrot.slane %v2286_v48, 4  ;;  %v2297_v60 = vrot.slane %v2295_v50, 5  ;;  %v2153_v8 = vld [vmem:[%s15590_s14 + $0x54] sm:$0x1]  ;;  %v2314_v9 = vshrl.u32 %v2150_v3, 16  ;;  %s12515_s15 = scalar_lea.sflag [#allocation5], %s15581_s22 }
  0x81   : > { %v2279_v57 = vrot.slane %v2278_v44, 4  ;;  %v2302_v62 = vrot.slane %v2300_v53, 4  ;;  %v2305_v63 = vrot.slane %v2303_v54, 5  ;;  %v2317_v10 = vshll.u32 %v2150_v3, 16  ;;  %v14943_v15 = vld [vmem:[%s15590_s14 + $0x48] ss:$8 sps:$4 sm:$0xff]  }
  0x82   : > { %v2265_v52 = vrot.slane %v2264_v39, 4  ;;  %v2323_v11 = vshll.u32 %v2151_v4, 16  ;;  %v2328_v12 = vshrl.u32 %v2152_v5, 16  ;;  %v2331_v13 = vshll.u32 %v2152_v5, 16  ;;  %v2154_v23 = vld [vmem:[%s15590_s14 + $0x58] sm:$0xf] }
  0x83   : > { %v2284_v1 = vsel %vm15641_vm3, %v2279_v57, %v2283_v37  ;;  %v2306_v7 = vor.u32 %v2305_v63, %v2302_v62  ;;  %v2316_v16 = vrot.slane %v2314_v9, 4  ;;  %v2319_v17 = vrot.slane %v2317_v10, 5  ;;  %v2155_v27 = vld [vmem:[%s15590_s14 + $0x5c] sm:$0x1]  ;;  %v2158_v50 = vld [vmem:[%s15590_s14 + $0x68] sm:$0xf] }
  0x84   : > { %v2270_v61 = vsel %vm15641_vm3, %v2265_v52, %v2269_v32  ;;  %v2337_v18 = vshll.u32 %v2153_v8, 16  ;;  %v2325_v20 = vrot.slane %v2323_v11, 5  ;;  %v2330_v21 = vrot.slane %v2328_v12, 4  ;;  %v2157_v32 = vld [vmem:[%s15590_s14 + $0x64] sm:$0x1]  ;;  %s15123_s16 = scalar_lea.vmem %s19578_s29, 2048 }
  0x85   : > { %14222 = vmatmul.mubr.msk.bf16.gmra.mxu0 %vm1629_vm0, %v14935_v49  ;;  %14238 = vmatmul.mubr.msk.bf16.gmra.mxu1 %vm1629_vm0, %v14936_v55  ;;  %v2289_v49 = vshll.u32 %v2146_v40, 16  ;;  %v2309_v55 = vshll.u32 %v2149_v45, 16  ;;  %v2333_v22 = vrot.slane %v2331_v13, 5  ;;  %v2320_v25 = vor.u32 %v2319_v17, %v2316_v16  ;;  %v14944_v45 = vld [vmem:[%s15590_s14 + $0x58] ss:$8 sps:$4 sm:$0xff]   ;;  %p15124_p13 = scmp.ne.s32.totalorder %s19578_s29, %s15123_s16  ;;  %s15186_s28 = smov [#allocation4]  }
  0x86   : > { %14243 = vmatprep.mubr.msk.bf16.mxu1 %vm1629_vm0, %v14937_v6  ;;  %14277 = vmatprep.mubr.msk.bf16.mxu0 %vm1629_vm0, %v12707_v14  ;;  %v12709_v6 = vcombine.low %v2270_v61, %v2284_v1  ;;  %v2307_v14 = vrot.slane %v2306_v7, 4  ;;  %v2339_v26 = vrot.slane %v2337_v18, 5  ;;  %v2342_v29 = vshrl.u32 %v2154_v23, 16  ;;  %v2159_v52 = vld [vmem:[%s15590_s14 + $0x6c] sm:$0x1] }
  0x87   : > { %v2291_v59 = vrot.slane %v2289_v49, 5  ;;  %v2311_v0 = vrot.slane %v2309_v55, 5  ;;  %v2334_v31 = vor.u32 %v2333_v22, %v2330_v21  ;;  %v2345_v33 = vshll.u32 %v2154_v23, 16  ;;  %v2160_v57 = vld [vmem:[%s15590_s14 + $0x70] sm:$0xf]  ;;  %p15125_p0 = pnand %p15124_p13, %p15267_p6 }
  0x88   : > { %v2321_v35 = vrot.slane %v2320_v25, 4  ;;  %v2344_v36 = vrot.slane %v2342_v29, 4  ;;  %v2365_v42 = vshll.u32 %v2157_v32, 16  ;;  %v2373_v62 = vshll.u32 %v2158_v50, 16  ;;  %v14945_v1 = vld [vmem:[%s15590_s14 + $0x68] ss:$8 sps:$4 sm:$0xff]  }
  0x89   : > { %v2292_v2 = vor.u32 %v2291_v59, %v2288_v58  ;;  %v2312_v24 = vsel %vm15641_vm3, %v2307_v14, %v2311_v0  ;;  %v2335_v39 = vrot.slane %v2334_v31, 4  ;;  %v2347_v40 = vrot.slane %v2345_v33, 5  ;;  %v2161_v58 = vld [vmem:[%s15590_s14 + $0x74] sm:$0x1]  ;;  %v2162_v8 = vld [vmem:[%s15590_s14 + $0x78] sm:$0xf]  ;;  %p15126_p1 = pneg %p15125_p0 }
  0x8a   : > { %v2326_v44 = vsel %vm15641_vm3, %v2321_v35, %v2325_v20  ;;  %v2367_v55 = vrot.slane %v2365_v42, 5  ;;  %v2370_v59 = vshrl.u32 %v2158_v50, 16  ;;  %v2379_v63 = vshll.u32 %v2159_v52, 16  ;;  %v2163_v11 = vld [vmem:[%s15590_s14 + $0x7c] sm:$0x1] }
  0x8b   : > { %v2340_v53 = vsel %vm15641_vm3, %v2335_v39, %v2339_v26  ;;  %v2348_v54 = vor.u32 %v2347_v40, %v2344_v36  ;;  %v2384_v3 = vshrl.u32 %v2160_v57, 16  ;;  %v2387_v4 = vshll.u32 %v2160_v57, 16  ;;  %v2164_v12 = vld [vmem:[%s15590_s14 + $0x80] sm:$0xf]  ;;  %v2165_v16 = vld [vmem:[%s15590_s14 + $0x84] sm:$0x1] }
  0x8c   : > { %v2393_v7 = vshll.u32 %v2161_v58, 16  ;;  %v2398_v17 = vshrl.u32 %v2162_v8, 16  ;;  %v2401_v20 = vshll.u32 %v2162_v8, 16  ;;  %v2407_v21 = vshll.u32 %v2163_v11, 16  ;;  %v14946_v23 = vld [vmem:[%s15590_s14 + $0x78] ss:$8 sps:$4 sm:$0xff]  }
  0x8d   : > { %14278 = vmatmul.mubr.msk.bf16.vlgmr.msra.gmra.mxu0 %vm1629_vm0, %v12708_v38  ;;  %14244 = vmatmul.mubr.msk.bf16.vlgmr.msra.gmra.mxu1 %vm1629_vm0, %v14939_v28  ;;  %v2156_v28 = vld [vmem:[%s15590_s14 + $0x60] sm:$0xf]  ;;  %v2349_v0 = vrot.slane %v2348_v54, 4  ;;  %v2386_v10 = vrot.slane %v2384_v3, 4  ;;  %v2412_v25 = vshrl.u32 %v2164_v12, 16  ;;  %v2415_v26 = vshll.u32 %v2164_v12, 16 }
  0x8e   : > { %14344 = vmatpush3.bf16.msra.mxu0 %v15629_v47  ;;  %14310 = vmatpush3.bf16.msra.mxu1 %v15624_v46  ;;  %v14942_v47 = vld [vmem:[%s15590_s14 + $0x30] ss:$8 sps:$4 sm:$0xff]   ;;  %v2293_v46 = vrot.slane %v2292_v2, 4  ;;  %v2356_v37 = vshrl.u32 %v2156_v28, 16  ;;  %v2359_v38 = vshll.u32 %v2156_v28, 16  ;;  %v2372_v2 = vrot.slane %v2370_v59, 4 }
  0x8f   : > { %14247 = vmatprep.mubr.msk.bf16.mxu1 %vm1629_vm0, %v14941_v34  ;;  %14377 = vmatprep.subr.bf16.mxu1 %v15673_v43  ;;  %v2351_v34 = vshll.u32 %v2155_v27, 16  ;;  %v2166_v27 = vld [vmem:[%s15590_s14 + $0x90] sm:$0xf]  ;;  %v2403_v29 = vrot.slane %v2401_v20, 5  ;;  %v2421_v31 = vshll.u32 %v2165_v16, 16  ;;  %v2414_v35 = vrot.slane %v2412_v25, 4 }
  0x90   : > { %14411 = vmatprep.subr.bf16.mxu0 %v15679_v51  ;;  %14281 = vmatprep.mubr.msk.bf16.mxu0 %vm1629_vm0, %v12709_v6  ;;  %v2298_v19 = vsel %vm15641_vm3, %v2293_v46, %v2297_v60  ;;  %v2358_v48 = vrot.slane %v2356_v37, 4  ;;  %v2361_v49 = vrot.slane %v2359_v38, 5  ;;  %v12711_v60 = vcombine.low %v2326_v44, %v2340_v53  ;;  %v14947_v32 = vld [vmem:[%s15590_s14 + $0x90] ss:$8 sps:$4 sm:$0xff]   ;;  %v2167_v33 = vld [vmem:[%s15590_s14 + $0x94] sm:$0x1] }
  0x91   : > { %v12710_v30 = vcombine.low %v2298_v19, %v2312_v24  ;;  %v2353_v41 = vrot.slane %v2351_v34, 5  ;;  %v2375_v6 = vrot.slane %v2373_v62, 5  ;;  %v2389_v46 = vrot.slane %v2387_v4, 5  ;;  %v2168_v37 = vld [vmem:[%s15590_s14 + $0x98] sm:$0xf] }
  0x92   : > { %v2362_v61 = vor.u32 %v2361_v49, %v2358_v48  ;;  %v2400_v24 = vrot.slane %v2398_v17, 4  ;;  %v2417_v36 = vrot.slane %v2415_v26, 5  ;;  %v2169_v38 = vld [vmem:[%s15590_s14 + $0x9c] sm:$0x1]  ;;  %v2426_v42 = vshrl.u32 %v2166_v27, 16 }
  0x93   : > { %v2354_v9 = vsel %vm15641_vm3, %v2349_v0, %v2353_v41  ;;  %v2376_v14 = vor.u32 %v2375_v6, %v2372_v2  ;;  %v2390_v19 = vor.u32 %v2389_v46, %v2386_v10  ;;  %v2423_v41 = vrot.slane %v2421_v31, 5  ;;  %v2170_v50 = vld [vmem:[%s15590_s14 + $0xa0] sm:$0xf]  ;;  %v2171_v57 = vld [vmem:[%s15590_s14 + $0xa4] sm:$0x1] }
  0x94   : > { %v2363_v5 = vrot.slane %v2362_v61, 4  ;;  %v2404_v40 = vor.u32 %v2403_v29, %v2400_v24  ;;  %v2429_v48 = vshll.u32 %v2166_v27, 16  ;;  %v2435_v49 = vshll.u32 %v2167_v33, 16  ;;  %v2172_v62 = vld [vmem:[%s15590_s14 + $0xa8] sm:$0xf] }
  0x95   : > { %14248 = vmatmul.mubr.msk.bf16.gmra.mxu1 %vm1629_vm0, %v14942_v47  ;;  %14282 = vmatmul.mubr.msk.bf16.gmra.mxu0 %vm1629_vm0, %v12710_v30  ;;  %v2381_v47 = vrot.slane %v2379_v63, 5  ;;  %v2377_v22 = vrot.slane %v2376_v14, 4  ;;  %v2391_v28 = vrot.slane %v2390_v19, 4  ;;  %v2409_v30 = vrot.slane %v2407_v21, 5  ;;  %v2173_v2 = vld [vmem:[%s15590_s14 + $0xac] sm:$0x1] }
  0x96   : > { %14251 = vmatprep.mubr.msk.bf16.mxu1 %vm1629_vm0, %v14943_v15  ;;  %14285 = vmatprep.mubr.msk.bf16.mxu0 %vm1629_vm0, %v12711_v60  ;;  %v2368_v13 = vsel %vm15641_vm3, %v2363_v5, %v2367_v55  ;;  %v2395_v15 = vrot.slane %v2393_v7, 5  ;;  %v2405_v52 = vrot.slane %v2404_v40, 4  ;;  %v2428_v53 = vrot.slane %v2426_v42, 4  ;;  %v14949_v11 = vld [vmem:[%s15590_s14 + $0xb0] ss:$8 sps:$4 sm:$0xff]  }
  0x97   : > { %v12712_v18 = vcombine.low %v2354_v9, %v2368_v13  ;;  %v2382_v34 = vsel %vm15641_vm3, %v2377_v22, %v2381_v47  ;;  %v2440_v54 = vshrl.u32 %v2168_v37, 16  ;;  %v2443_v55 = vshll.u32 %v2168_v37, 16  ;;  %v14948_v47 = vld [vmem:[%s15590_s14 + $0xa0] ss:$8 sps:$4 sm:$0xff]   ;;  %v2174_v12 = vld [vmem:[%s15590_s14 + $0xb0] sm:$0xf] }
  0x98   : > { %v2396_v39 = vsel %vm15641_vm3, %v2391_v28, %v2395_v15  ;;  %v2431_v59 = vrot.slane %v2429_v48, 5  ;;  %v2437_v60 = vrot.slane %v2435_v49, 5  ;;  %v2449_v61 = vshll.u32 %v2169_v38, 16  ;;  %v2175_v17 = vld [vmem:[%s15590_s14 + $0xb4] sm:$0x1] }
  0x99   : > { %v12713_v44 = vcombine.low %v2382_v34, %v2396_v39  ;;  %v2410_v63 = vsel %vm15641_vm3, %v2405_v52, %v2409_v30  ;;  %v2442_v0 = vrot.slane %v2440_v54, 4  ;;  %v2454_v3 = vshrl.u32 %v2170_v50, 16  ;;  %v2176_v21 = vld [vmem:[%s15590_s14 + $0xb8] sm:$0xf]  ;;  %v2177_v27 = vld [vmem:[%s15590_s14 + $0xbc] sm:$0x1] }
  0x9a   : > { %v2432_v5 = vor.u32 %v2431_v59, %v2428_v53  ;;  %v2451_v6 = vrot.slane %v2449_v61, 5  ;;  %v2457_v7 = vshll.u32 %v2170_v50, 16  ;;  %v2463_v46 = vshll.u32 %v2171_v57, 16  ;;  %v14950_v48 = vld [vmem:[%s15590_s14 + $0xc0] ss:$8 sps:$4 sm:$0xff]  }
  0x9b   : > { %v2456_v10 = vrot.slane %v2454_v3, 4  ;;  %v2468_v15 = vshrl.u32 %v2172_v62, 16  ;;  %v2471_v16 = vshll.u32 %v2172_v62, 16  ;;  %v2477_v20 = vshll.u32 %v2173_v2, 16  ;;  %v2180_v49 = vld [vmem:[%s15590_s14 + $0xc8] sm:$0xf] }
  0x9c   : > { %v2433_v13 = vrot.slane %v2432_v5, 4  ;;  %v2459_v14 = vrot.slane %v2457_v7, 5  ;;  %v2465_v19 = vrot.slane %v2463_v46, 5  ;;  %v2482_v22 = vshrl.u32 %v2174_v12, 16  ;;  %v2181_v50 = vld [vmem:[%s15590_s14 + $0xcc] sm:$0x1] }
  0x9d   : > { %14252 = vmatmul.mubr.msk.bf16.gmra.mxu1 %vm1629_vm0, %v14944_v45  ;;  %14286 = vmatmul.mubr.msk.bf16.gmra.mxu0 %vm1629_vm0, %v12712_v18  ;;  %v2418_v45 = vor.u32 %v2417_v36, %v2414_v35  ;;  %v2470_v25 = vrot.slane %v2468_v15, 4  ;;  %v2473_v26 = vrot.slane %v2471_v16, 5  ;;  %v2479_v29 = vrot.slane %v2477_v20, 5  ;;  %v2178_v36 = vld [vmem:[%s15590_s14 + $0xc0] sm:$0xf] }
  0x9e   : > { %14255 = vmatprep.mubr.msk.bf16.mxu1 %vm1629_vm0, %v14945_v1  ;;  %14289 = vmatprep.mubr.msk.bf16.mxu0 %vm1629_vm0, %v12713_v44  ;;  %v2445_v1 = vrot.slane %v2443_v55, 5  ;;  %v2460_v24 = vor.u32 %v2459_v14, %v2456_v10  ;;  %v2484_v30 = vrot.slane %v2482_v22, 4  ;;  %v2485_v31 = vshll.u32 %v2174_v12, 16  ;;  %v2182_v2 = vld [vmem:[%s15590_s14 + $0xd8] sm:$0xf] }
  0x9f   : > { %v2419_v58 = vrot.slane %v2418_v45, 4  ;;  %v2474_v34 = vor.u32 %v2473_v26, %v2470_v25  ;;  %v2491_v35 = vshll.u32 %v2175_v17, 16  ;;  %v2496_v38 = vshrl.u32 %v2176_v21, 16  ;;  %v2184_v46 = vld [vmem:[%s15590_s14 + $0xe0] sm:$0xf] }
  0xa0   : > { %v2446_v9 = vor.u32 %v2445_v1, %v2442_v0  ;;  %v2461_v33 = vrot.slane %v2460_v24, 4  ;;  %v2487_v37 = vrot.slane %v2485_v31, 5  ;;  %v2499_v39 = vshll.u32 %v2176_v21, 16  ;;  %v14951_v1 = vld [vmem:[%s15590_s14 + $0xd8] ss:$8 sps:$4 sm:$0xff]  }
  0xa1   : > { %v2424_v4 = vsel %vm15641_vm3, %v2419_v58, %v2423_v41  ;;  %v2505_v40 = vshll.u32 %v2177_v27, 16  ;;  %v2179_v41 = vld [vmem:[%s15590_s14 + $0xc4] sm:$0x1]  ;;  %v2475_v44 = vrot.slane %v2474_v34, 4  ;;  %v2493_v45 = vrot.slane %v2491_v35, 5 }
  0xa2   : > { %v12714_v8 = vcombine.low %v2410_v63, %v2424_v4  ;;  %v2447_v18 = vrot.slane %v2446_v9, 4  ;;  %v2466_v42 = vsel %vm15641_vm3, %v2461_v33, %v2465_v19  ;;  %v2488_v52 = vor.u32 %v2487_v37, %v2484_v30  ;;  %v14952_v24 = vld [vmem:[%s15590_s14 + $0xe8] ss:$8 sps:$4 sm:$0xff]   ;;  %v2187_v33 = vld [vmem:[%s15590_s14 + $0xec] sm:$0x1] }
  0xa3   : > { %v2498_v53 = vrot.slane %v2496_v38, 4  ;;  %v2501_v54 = vrot.slane %v2499_v39, 5  ;;  %v2507_v55 = vrot.slane %v2505_v40, 5  ;;  %v2480_v57 = vsel %vm15641_vm3, %v2475_v44, %v2479_v29  ;;  %v2186_v29 = vld [vmem:[%s15590_s14 + $0xe8] sm:$0xf] }
  0xa4   : > { %v2452_v28 = vsel %vm15641_vm3, %v2447_v18, %v2451_v6  ;;  %v2510_v58 = vshrl.u32 %v2178_v36, 16  ;;  %v2513_v59 = vshll.u32 %v2178_v36, 16  ;;  %v12716_v61 = vcombine.low %v2466_v42, %v2480_v57  ;;  %v2188_v34 = vld [vmem:[%s15590_s14 + $0xf0] sm:$0xf]  ;;  %v2189_v37 = vld [vmem:[%s15590_s14 + $0xf4] sm:$0x1] }
  0xa5   : > { %14256 = vmatmul.mubr.msk.bf16.gmra.mxu1 %vm1629_vm0, %v14946_v23  ;;  %14290 = vmatmul.mubr.msk.bf16.gmra.mxu0 %vm1629_vm0, %v12714_v8  ;;  %v2438_v23 = vsel %vm15641_vm3, %v2433_v13, %v2437_v60  ;;  %v2519_v60 = vshll.u32 %v2179_v41, 16  ;;  %v2489_v62 = vrot.slane %v2488_v52, 4  ;;  %v2502_v63 = vor.u32 %v2501_v54, %v2498_v53  ;;  %v2185_v13 = vld [vmem:[%s15590_s14 + $0xe4] sm:$0x1]  ;;  %v14953_v52 = vld [vmem:[%s15590_s14 + $0xf8] ss:$8 sps:$4 sm:$0xff]  }
  0xa6   : > { %14259 = vmatprep.mubr.msk.bf16.mxu1 %vm1629_vm0, %v14947_v32  ;;  %v12715_v32 = vcombine.low %v2438_v23, %v2452_v28  ;;  %v2524_v0 = vshrl.u32 %v2180_v49, 16  ;;  %v2512_v3 = vrot.slane %v2510_v58, 4  ;;  %v2515_v4 = vrot.slane %v2513_v59, 5  ;;  %v2190_v58 = vld [vmem:[%s15590_s14 + $0xf8] sm:$0xf] }
  0xa7   : > { %v2521_v5 = vrot.slane %v2519_v60, 5  ;;  %v2527_v6 = vshll.u32 %v2180_v49, 16  ;;  %v2494_v7 = vsel %vm15641_vm3, %v2489_v62, %v2493_v45  ;;  %v2503_v8 = vrot.slane %v2502_v63, 4  ;;  %v2191_v62 = vld [vmem:[%s15590_s14 + $0xfc] sm:$0x1] }
  0xa8   : > { %14293 = vmatprep.mubr.msk.bf16.mxu0 %vm1629_vm0, %v12715_v32  ;;  %v2526_v9 = vrot.slane %v2524_v0, 4  ;;  %v2533_v10 = vshll.u32 %v2181_v50, 16  ;;  %v2538_v14 = vshrl.u32 %v2182_v2, 16  ;;  %v2541_v15 = vshll.u32 %v2182_v2, 16  ;;  %v2192_v63 = vld [vmem:[%s15590_s14 + $0x100] sm:$0xf] }
  0xa9   : > { %v2529_v12 = vrot.slane %v2527_v6, 5  ;;  %v2508_v16 = vsel %vm15641_vm3, %v2503_v8, %v2507_v55  ;;  %v2552_v19 = vshrl.u32 %v2184_v46, 16  ;;  %v2555_v28 = vshll.u32 %v2184_v46, 16  ;;  %v2193_v2 = vld [vmem:[%s15590_s14 + $0x104] sm:$0x1] }
  0xaa   : > { %v2535_v17 = vrot.slane %v2533_v10, 5  ;;  %v12717_v20 = vcombine.low %v2494_v7, %v2508_v16  ;;  %v2540_v23 = vrot.slane %v2538_v14, 4  ;;  %v2543_v25 = vrot.slane %v2541_v15, 5  ;;  %v2194_v16 = vld [vmem:[%s15590_s14 + $0x108] sm:$0xf] }
  0xab   : > { %v2530_v22 = vor.u32 %v2529_v12, %v2526_v9  ;;  %v2554_v27 = vrot.slane %v2552_v19, 4  ;;  %v2561_v32 = vshll.u32 %v2185_v13, 16  ;;  %v2557_v36 = vrot.slane %v2555_v28, 5 }
  0xac   : > { %v2544_v35 = vor.u32 %v2543_v25, %v2540_v23  ;;  %v2566_v38 = vshrl.u32 %v2186_v29, 16  ;;  %v2569_v39 = vshll.u32 %v2186_v29, 16  ;;  %v2575_v42 = vshll.u32 %v2187_v33, 16 }
  0xad   : > { %14260 = vmatmul.mubr.msk.bf16.gmra.mxu1 %vm1629_vm0, %v14948_v47  ;;  %v2183_v47 = vld [vmem:[%s15590_s14 + $0xdc] sm:$0x1]  ;;  %14294 = vmatmul.mubr.msk.bf16.gmra.mxu0 %vm1629_vm0, %v12716_v61  ;;  %v2531_v31 = vrot.slane %v2530_v22, 4  ;;  %v2563_v41 = vrot.slane %v2561_v32, 5  ;;  %v2580_v44 = vshrl.u32 %v2188_v34, 16  ;;  %v2558_v49 = vor.u32 %v2557_v36, %v2554_v27 }
  0xae   : > { %14263 = vmatprep.mubr.msk.bf16.mxu1 %vm1629_vm0, %v14949_v11  ;;  %v2516_v11 = vor.u32 %v2515_v4, %v2512_v3  ;;  %v2547_v18 = vshll.u32 %v2183_v47, 16  ;;  %14297 = vmatprep.mubr.msk.bf16.mxu0 %vm1629_vm0, %v12717_v20  ;;  %v2568_v50 = vrot.slane %v2566_v38, 4  ;;  %v2571_v53 = vrot.slane %v2569_v39, 5  ;;  %v2195_v20 = vld [vmem:[%s15590_s14 + $0x10c] sm:$0x1] }
  0xaf   : > { %v2536_v40 = vsel %vm15641_vm3, %v2531_v31, %v2535_v17  ;;  %v2577_v54 = vrot.slane %v2575_v42, 5  ;;  %v2582_v55 = vrot.slane %v2580_v44, 4  ;;  %v2583_v57 = vshll.u32 %v2188_v34, 16 }
  0xb0   : > { %v2517_v21 = vrot.slane %v2516_v11, 4  ;;  %v2549_v26 = vrot.slane %v2547_v18, 5  ;;  %v2559_v60 = vrot.slane %v2558_v49, 4  ;;  %v2589_v61 = vshll.u32 %v2189_v37, 16  ;;  %v14954_v11 = vld [vmem:[%s15590_s14 + $0x108] ss:$8 sps:$4 sm:$0xff]  }
  0xb1   : > { %v2572_v0 = vor.u32 %v2571_v53, %v2568_v50  ;;  %v2594_v3 = vshrl.u32 %v2190_v58, 16  ;;  %v2597_v4 = vshll.u32 %v2190_v58, 16  ;;  %v2603_v47 = vshll.u32 %v2191_v62, 16  ;;  %v15831_v49 = vld [vmem:[%s19624_s1 + $0x38] sm:$0xff]  }
  0xb2   : > { %v2522_v30 = vsel %vm15641_vm3, %v2517_v21, %v2521_v5  ;;  %v2564_v5 = vsel %vm15641_vm3, %v2559_v60, %v2563_v41  ;;  %v2591_v6 = vrot.slane %v2589_v61, 5  ;;  %v2608_v7 = vshrl.u32 %v2192_v63, 16  ;;  %v2196_v21 = vld [vmem:[%s15590_s14 + $0x110] sm:$0xf]  ;;  %v14956_v61 = vld [vmem:[%s15590_s14 + $0x360] ss:$8 sps:$4 sm:$0xff]  }
  0xb3   : > { %v12718_v45 = vcombine.low %v2522_v30, %v2536_v40  ;;  %v2573_v9 = vrot.slane %v2572_v0, 4  ;;  %v2596_v46 = vrot.slane %v2594_v3, 4  ;;  %v2599_v12 = vrot.slane %v2597_v4, 5  ;;  %v14965_v0 = vld [vmem:[%s15590_s14 + $0x288] ss:$8 sps:$4 sm:$0xff]  }
  0xb4   : > { %v2605_v13 = vrot.slane %v2603_v47, 5  ;;  %v2610_v14 = vrot.slane %v2608_v7, 4  ;;  %v2611_v15 = vshll.u32 %v2192_v63, 16  ;;  %v2617_v19 = vshll.u32 %v2193_v2, 16  ;;  %v14963_v63 = vld [vmem:[%s15590_s14 + $0x270] ss:$8 sps:$4 sm:$0xff]  }
  0xb5   : > { %14264 = vmatmul.mubr.msk.bf16.gmra.mxu1 %vm1629_vm0, %v14950_v48  ;;  %v2545_v48 = vrot.slane %v2544_v35, 4  ;;  %14298 = vmatmul.mubr.msk.bf16.gmra.mxu0 %vm1629_vm0, %v12718_v45  ;;  %v2578_v17 = vsel %vm15641_vm3, %v2573_v9, %v2577_v54  ;;  %v2600_v22 = vor.u32 %v2599_v12, %v2596_v46  ;;  %v2622_v25 = vshrl.u32 %v2194_v16, 16  ;;  %v14955_v35 = vld [vmem:[%s15590_s14 + $0x240] ss:$8 sps:$4 sm:$0xff]   ;;  %v14973_v7 = vld [vmem:[%s15590_s14 + $0x2d0] ss:$8 sps:$4 sm:$0xff]  }
  0xb6   : > { %14267 = vmatprep.mubr.msk.bf16.mxu1 %vm1629_vm0, %v14951_v1  ;;  %v2585_v1 = vrot.slane %v2583_v57, 5  ;;  %v2613_v23 = vrot.slane %v2611_v15, 5  ;;  %v2619_v28 = vrot.slane %v2617_v19, 5  ;;  %v2631_v29 = vshll.u32 %v2195_v20, 16  ;;  %v15856_v2 = vld [vmem:[%s19624_s1 + $0x40] sm:$0xff]  }
  0xb7   : > { %v2550_v59 = vsel %vm15641_vm3, %v2545_v48, %v2549_v26  ;;  %v2625_v26 = vshll.u32 %v2194_v16, 16  ;;  %v2636_v30 = vshrl.u32 %v2196_v21, 16  ;;  %v2601_v32 = vrot.slane %v2600_v22, 4  ;;  %v14967_v3 = vld [vmem:[%s15590_s14 + $0x298] ss:$8 sps:$4 sm:$0xff]  }
  0xb8   : > { %v12719_v8 = vcombine.low %v2550_v59, %v2564_v5  ;;  %v2586_v10 = vor.u32 %v2585_v1, %v2582_v55  ;;  %v2614_v33 = vor.u32 %v2613_v23, %v2610_v14  ;;  %v2624_v34 = vrot.slane %v2622_v25, 4  ;;  %v14958_v55 = vld [vmem:[%s15590_s14 + $0x250] ss:$8 sps:$4 sm:$0xff]   ;;  %v14961_v59 = vld [vmem:[%s15590_s14 + $0x260] ss:$8 sps:$4 sm:$0xff]  }
  0xb9   : > { %v2627_v36 = vrot.slane %v2625_v26, 5  ;;  %v2638_v37 = vrot.slane %v2636_v30, 4  ;;  %v2639_v38 = vshll.u32 %v2196_v21, 16  ;;  %v2606_v39 = vsel %vm15641_vm3, %v2601_v32, %v2605_v13  ;;  %v14962_v1 = vld [vmem:[%s15590_s14 + $0x380] ss:$8 sps:$4 sm:$0xff]  }
  0xba   : > { %14301 = vmatprep.mubr.msk.bf16.mxu0 %vm1629_vm0, %v12719_v8  ;;  %v2587_v18 = vrot.slane %v2586_v10, 4  ;;  %v2615_v40 = vrot.slane %v2614_v33, 4  ;;  %v2633_v44 = vrot.slane %v2631_v29, 5  ;;  %v14969_v4 = vld [vmem:[%s15590_s14 + $0x2a8] ss:$8 sps:$4 sm:$0xff]   ;;  %vm7530_vm14 = vcmask 261120  }
  0xbb   : > { %v2628_v42 = vor.u32 %v2627_v36, %v2624_v34  ;;  %v2641_v45 = vrot.slane %v2639_v38, 5  ;;  %v14964_v5 = vld [vmem:[%s15590_s14 + $0x390] ss:$8 sps:$4 sm:$0xff]   ;;  %v14975_v9 = vld [vmem:[%s15590_s14 + $0x2e0] ss:$8 sps:$4 sm:$0xff]  }
  0xbc   : > { %v2592_v27 = vsel %vm15641_vm3, %v2587_v18, %v2591_v6  ;;  %v2620_v48 = vsel %vm15641_vm3, %v2615_v40, %v2619_v28  ;;  %v14966_v6 = vld [vmem:[%s15590_s14 + $0x3a8] ss:$8 sps:$4 sm:$0xff]   ;;  %v14971_v47 = vld [vmem:[%s15590_s14 + $0x2b8] ss:$8 sps:$4 sm:$0xff]   ;;  %v12877_v13 = vld [vmem:[%s15590_s14 + $0x24c] sm:$0x1] }
  0xbd   : > { %14268 = vmatmul.mubr.msk.bf16.gmra.mxu1 %vm1629_vm0, %v14952_v24  ;;  %v2197_v24 = vld [vmem:[%s15590_s14 + $0x114] sm:$0x1]  ;;  %v12720_v31 = vcombine.low %v2578_v17, %v2592_v27  ;;  %v12721_v50 = vcombine.low %v2606_v39, %v2620_v48  ;;  %v2642_v53 = vor.u32 %v2641_v45, %v2638_v37  ;;  %v14970_v8 = vld [vmem:[%s15590_s14 + $0x3c8] ss:$8 sps:$4 sm:$0xff]   ;;  %v12874_v46 = vld [vmem:[%s15590_s14 + $0x240] sm:$0xf] }
  0xbe   : > { %14271 = vmatprep.mubr.msk.bf16.mxu1 %vm1629_vm0, %v14953_v52  ;;  %v2645_v41 = vshll.u32 %v2197_v24, 16  ;;  %v2629_v52 = vrot.slane %v2628_v42, 4  ;;  %v14977_v10 = vld [vmem:[%s15590_s14 + $0x2f0] ss:$8 sps:$4 sm:$0xff]   ;;  %v12876_v12 = vld [vmem:[%s15590_s14 + $0x248] sm:$0xf] }
  0xbf   : > { %14302 = vmatmul.mubr.msk.bf16.gmra.mxu0 %vm1629_vm0, %v12720_v31  ;;  %v2643_v58 = vrot.slane %v2642_v53, 4  ;;  %v3738_v14 = vshrl.u32 %v12874_v46, 16  ;;  %v3741_v15 = vshll.u32 %v12874_v46, 16  ;;  %v3752_v16 = vshrl.u32 %v12876_v12, 16  ;;  %v14972_v17 = vld [vmem:[%s15590_s14 + $0x3d8] ss:$8 sps:$4 sm:$0xff]  }
  0xc0   : > { %v2647_v54 = vrot.slane %v2645_v41, 5  ;;  %14305 = vmatprep.mubr.msk.bf16.mxu0 %vm1629_vm0, %v12721_v50  ;;  %v2634_v57 = vsel %vm15641_vm3, %v2629_v52, %v2633_v44  ;;  %v3755_v18 = vshll.u32 %v12876_v12, 16  ;;  %v3761_v24 = vshll.u32 %v12877_v13, 16  ;;  %v12878_v25 = vld [vmem:[%s15590_s14 + $0x250] sm:$0xf] }
  0xc1   : > { %v3740_v19 = vrot.slane %v3738_v14, 4  ;;  %v3743_v20 = vrot.slane %v3741_v15, 5  ;;  %v3754_v22 = vrot.slane %v3752_v16, 4  ;;  %v14974_v26 = vld [vmem:[%s15590_s14 + $0x3f0] ss:$8 sps:$4 sm:$0xff]   ;;  %v3766_v32 = vshrl.u32 %v12878_v25, 16 }
  0xc2   : > { %v2648_v60 = vsel %vm15641_vm3, %v2643_v58, %v2647_v54  ;;  %v3757_v23 = vrot.slane %v3755_v18, 5  ;;  %v12879_v28 = vld [vmem:[%s15590_s14 + $0x254] sm:$0x1]  ;;  %v12880_v29 = vld [vmem:[%s15590_s14 + $0x258] sm:$0xf]  ;;  %v3769_v33 = vshll.u32 %v12878_v25, 16 }
  0xc3   : > { %v12722_v62 = vcombine.low %v2634_v57, %v2648_v60  ;;  %v3744_v27 = vor.u32 %v3743_v20, %v3740_v19  ;;  %v12881_v31 = vld [vmem:[%s15590_s14 + $0x25c] sm:$0x1]  ;;  %v14979_v34 = vld [vmem:[%s15590_s14 + $0x300] ss:$8 sps:$4 sm:$0xff]   ;;  %v3783_v36 = vshll.u32 %v12880_v29, 16  ;;  %v3763_v40 = vrot.slane %v3761_v24, 5 }
  0xc4   : > { %v3758_v30 = vor.u32 %v3757_v23, %v3754_v22  ;;  %v14981_v37 = vld [vmem:[%s15590_s14 + $0x318] ss:$8 sps:$4 sm:$0xff]   ;;  %v3775_v41 = vshll.u32 %v12879_v28, 16  ;;  %v3768_v44 = vrot.slane %v3766_v32, 4  ;;  %v3771_v45 = vrot.slane %v3769_v33, 5 }
  0xc5   : > { %14272 = vmatmul.mubr.msk.bf16.gmra.mxu1 %vm1629_vm0, %v14954_v11  ;;  %v12875_v11 = vld [vmem:[%s15590_s14 + $0x244] sm:$0x1]  ;;  %v15895_v38 = vrot.slane %v3744_v27, 4  ;;  %v3789_v48 = vshll.u32 %v12881_v31, 16  ;;  %v14976_v50 = vld [vmem:[%s15590_s14 + $0x400] ss:$8 sps:$4 sm:$0xff]  }
  0xc6   : > { %14311 = vmatprep.mubr.msk.bf16.mxu1 %vm1629_vm0, %v14955_v35  ;;  %v3747_v21 = vshll.u32 %v12875_v11, 16  ;;  %v3780_v35 = vshrl.u32 %v12880_v29, 16  ;;  %v3759_v42 = vrot.slane %v3758_v30, 4  ;;  %v3785_v53 = vrot.slane %v3783_v36, 5  ;;  %v12882_v54 = vld [vmem:[%s15590_s14 + $0x260] sm:$0xf] }
  0xc7   : > { %14306 = vmatmul.mubr.msk.bf16.gmra.mxu0 %vm1629_vm0, %v12722_v62  ;;  %v12883_v57 = vld [vmem:[%s15590_s14 + $0x264] sm:$0x1]  ;;  %v12884_v58 = vld [vmem:[%s15590_s14 + $0x268] sm:$0xf]  ;;  %v3797_v60 = vshll.u32 %v12882_v54, 16 }
  0xc8   : > { %14345 = vmatprep.mubr.msk.bf16.mxu0 %vm1629_vm0, %v14956_v61  ;;  %v15897_v39 = vrot.slane %v3747_v21, 5  ;;  %v3782_v52 = vrot.slane %v3780_v35, 4  ;;  %v12885_v61 = vld [vmem:[%s15590_s14 + $0x26c] sm:$0x1]  ;;  %v3808_v62 = vshrl.u32 %v12884_v58, 16  ;;  %v3764_v13 = vsel %vm15641_vm3, %v3759_v42, %v3763_v40 }
  0xc9   : > { %v3817_v46 = vshll.u32 %v12885_v61, 16  ;;  %v12886_v11 = vld [vmem:[%s15590_s14 + $0x270] sm:$0xf]  ;;  %v12887_v12 = vld [vmem:[%s15590_s14 + $0x274] sm:$0x1] }
  0xca   : > { %v12888_v15 = vld [vmem:[%s15590_s14 + $0x278] sm:$0xf]  ;;  %v12889_v16 = vld [vmem:[%s15590_s14 + $0x27c] sm:$0x1]  ;;  %v3825_v18 = vshll.u32 %v12886_v11, 16  ;;  %v3831_v20 = vshll.u32 %v12887_v12, 16 }
  0xcb   : > { %v3836_v21 = vshrl.u32 %v12888_v15, 16  ;;  %v3839_v22 = vshll.u32 %v12888_v15, 16  ;;  %v14980_v23 = vld [vmem:[%s15590_s14 + $0x420] ss:$8 sps:$4 sm:$0xff]   ;;  %v3819_v30 = vrot.slane %v3817_v46, 5  ;;  %v3845_v36 = vshll.u32 %v12889_v16, 16 }
  0xcc   : > { %v3827_v27 = vrot.slane %v3825_v18, 5  ;;  %v14982_v28 = vld [vmem:[%s15590_s14 + $0x438] ss:$8 sps:$4 sm:$0xff]   ;;  %v3833_v40 = vrot.slane %v3831_v20, 5  ;;  %v12892_v42 = vld [vmem:[%s15590_s14 + $0x290] sm:$0xf] }
  0xcd   : > { %14312 = vmatmul.mubr.msk.bf16.vlgmr.msra.gmra.mxu1 %vm1629_vm0, %v14958_v55  ;;  %v14978_v55 = vld [vmem:[%s15590_s14 + $0x410] ss:$8 sps:$4 sm:$0xff]   ;;  %v3838_v31 = vrot.slane %v3836_v21, 4  ;;  %v3841_v32 = vrot.slane %v3839_v22, 5  ;;  %v3847_v61 = vrot.slane %v3845_v36, 5 }
  0xce   : > { %14378 = vmatpush3.bf16.msra.mxu1 %v15673_v43  ;;  %14315 = vmatprep.mubr.msk.bf16.mxu1 %vm1629_vm0, %v14961_v59  ;;  %v14959_v43 = vld [vmem:[%s15590_s14 + $0x370] ss:$8 sps:$4 sm:$0xff]   ;;  %v3794_v59 = vshrl.u32 %v12882_v54, 16  ;;  %v3867_v54 = vshll.u32 %v12892_v42, 16 }
  0xcf   : > { %14445 = vmatprep.subr.bf16.mxu1 %v15831_v49  ;;  %14346 = vmatmul.mubr.msk.bf16.vlgmr.msra.gmra.mxu0 %vm1629_vm0, %v14959_v43  ;;  %v3772_v43 = vor.u32 %v3771_v45, %v3768_v44  ;;  %v14984_v12 = vld [vmem:[%s15590_s14 + $0x448] ss:$8 sps:$4 sm:$0xff]  }
  0xd0   : > { %14412 = vmatpush3.bf16.msra.mxu0 %v15679_v51  ;;  %14349 = vmatprep.mubr.msk.bf16.mxu0 %vm1629_vm0, %v14962_v1  ;;  %v14968_v51 = vld [vmem:[%s15590_s14 + $0x3b8] ss:$8 sps:$4 sm:$0xff]   ;;  %v15909_v1 = vrot.slane %v3775_v41, 5  ;;  %v3842_v41 = vor.u32 %v3841_v32, %v3838_v31  ;;  %v12901_v31 = vld [vmem:[%s15590_s14 + $0x2b4] sm:$0x1] }
  0xd1   : > { %14479 = vmatprep.subr.bf16.mxu0 %v15856_v2  ;;  %v3773_v19 = vrot.slane %v3772_v43, 4 }
  0xd5   : > { %14316 = vmatmul.mubr.msk.bf16.gmra.mxu1 %vm1629_vm0, %v14963_v63  ;;  %v3811_v63 = vshll.u32 %v12884_v58, 16 }
  0xd6   : > { %14319 = vmatprep.mubr.msk.bf16.mxu1 %vm1629_vm0, %v14965_v0  ;;  %v14983_v0 = vld [vmem:[%s15590_s14 + $0x328] ss:$8 sps:$4 sm:$0xff]  }
  0xd7   : > { %14350 = vmatmul.mubr.msk.bf16.gmra.mxu0 %vm1629_vm0, %v14964_v5  ;;  %v14985_v5 = vld [vmem:[%s15590_s14 + $0x338] ss:$8 sps:$4 sm:$0xff]  }
  0xd8   : > { %14353 = vmatprep.mubr.msk.bf16.mxu0 %vm1629_vm0, %v14966_v6  ;;  %v3786_v6 = vor.u32 %v3785_v53, %v3782_v52  ;;  %v12893_v52 = vld [vmem:[%s15590_s14 + $0x294] sm:$0x1]  ;;  %v3864_v53 = vshrl.u32 %v12892_v42, 16  ;;  %v14988_v42 = vld [vmem:[%s15590_s14 + $0x468] ss:$8 sps:$4 sm:$0xff]  }
  0xda   : > { %v3787_v24 = vrot.slane %v3786_v6, 4 }
  0xdd   : > { %14320 = vmatmul.mubr.msk.bf16.gmra.mxu1 %vm1629_vm0, %v14967_v3  ;;  %v3796_v3 = vrot.slane %v3794_v59, 4 }
  0xde   : > { %14323 = vmatprep.mubr.msk.bf16.mxu1 %vm1629_vm0, %v14969_v4  ;;  %v3799_v4 = vrot.slane %v3797_v60, 5  ;;  %v3843_v60 = vrot.slane %v3842_v41, 4 }
  0xdf   : > { %14354 = vmatmul.mubr.msk.bf16.gmra.mxu0 %vm1629_vm0, %v14968_v51  ;;  %v3813_v51 = vrot.slane %v3811_v63, 5  ;;  %v3869_v63 = vrot.slane %v3867_v54, 5 }
  0xe0   : > { %14357 = vmatprep.mubr.msk.bf16.mxu0 %vm1629_vm0, %v14970_v8  ;;  %v3750_v8 = vsel %vm15641_vm3, %v15895_v38, %v15897_v39  ;;  %v12891_v38 = vld [vmem:[%s15590_s14 + $0x28c] sm:$0x1]  ;;  %v14987_v39 = vld [vmem:[%s15590_s14 + $0x348] ss:$8 sps:$4 sm:$0xff]  }
  0xe1   : > { %v12940_v33 = vcombine.low %v3750_v8, %v3764_v13  ;;  %v3859_v59 = vshll.u32 %v12891_v38, 16  ;;  %v3848_v13 = vsel %vm15641_vm3, %v3843_v60, %v3847_v61 }
  0xe5   : > { %14324 = vmatmul.mubr.msk.bf16.gmra.mxu1 %vm1629_vm0, %v14971_v47  ;;  %v3803_v47 = vshll.u32 %v12883_v57, 16 }
  0xe6   : > { %14327 = vmatprep.mubr.msk.bf16.mxu1 %vm1629_vm0, %v14973_v7  ;;  %v3810_v7 = vrot.slane %v3808_v62, 4  ;;  %v3866_v62 = vrot.slane %v3864_v53, 4 }
  0xe7   : > { %14358 = vmatmul.mubr.msk.bf16.gmra.mxu0 %vm1629_vm0, %v14972_v17  ;;  %v3822_v17 = vshrl.u32 %v12886_v11, 16  ;;  %v15925_v25 = vrot.slane %v3803_v47, 5  ;;  %v12896_v47 = vld [vmem:[%s15590_s14 + $0x2a0] sm:$0xf] }
  0xe8   : > { %14361 = vmatprep.mubr.msk.bf16.mxu0 %vm1629_vm0, %v14974_v26  ;;  %v3814_v14 = vor.u32 %v3813_v51, %v3810_v7  ;;  %v12897_v7 = vld [vmem:[%s15590_s14 + $0x2a4] sm:$0x1]  ;;  %v3892_v46 = vshrl.u32 %v12896_v47, 16  ;;  %v3895_v11 = vshll.u32 %v12896_v47, 16 }
  0xe9   : > { %v3824_v26 = vrot.slane %v3822_v17, 4  ;;  %v14986_v17 = vld [vmem:[%s15590_s14 + $0x458] ss:$8 sps:$4 sm:$0xff]   ;;  %v3901_v21 = vshll.u32 %v12897_v7, 16 }
  0xea   : > { %v3897_v20 = vrot.slane %v3895_v11, 5 }
  0xeb   : > { %v3828_v35 = vor.u32 %v3827_v27, %v3824_v26  ;;  %v12898_v26 = vld [vmem:[%s15590_s14 + $0x2a8] sm:$0xf]  ;;  %v12899_v27 = vld [vmem:[%s15590_s14 + $0x2ac] sm:$0x1] }
  0xec   : > { %v3906_v32 = vshrl.u32 %v12898_v26, 16 }
  0xed   : > { %14328 = vmatmul.mubr.msk.bf16.gmra.mxu1 %vm1629_vm0, %v14975_v9  ;;  %v3791_v9 = vrot.slane %v3789_v48, 5  ;;  %v3778_v48 = vsel %vm15641_vm3, %v3773_v19, %v15909_v1  ;;  %v3873_v1 = vshll.u32 %v12893_v52, 16  ;;  %v3894_v19 = vrot.slane %v3892_v46, 4  ;;  %v14989_v52 = vld [vmem:[%s15590_s14 + $0x8] ss:$8 sps:$4 sm:$0xff]  }
  0xee   : > { %14331 = vmatprep.mubr.msk.bf16.mxu1 %vm1629_vm0, %v14977_v10  ;;  %v3800_v10 = vor.u32 %v3799_v4, %v3796_v3  ;;  %v12894_v3 = vld [vmem:[%s15590_s14 + $0x298] sm:$0xf]  ;;  %v12895_v4 = vld [vmem:[%s15590_s14 + $0x29c] sm:$0x1] }
  0xef   : > { %14362 = vmatmul.mubr.msk.bf16.gmra.mxu0 %vm1629_vm0, %v14976_v50  ;;  %v3792_v50 = vsel %vm15641_vm3, %v3787_v24, %v3791_v9  ;;  %v3878_v51 = vshrl.u32 %v12894_v3, 16  ;;  %v3881_v8 = vshll.u32 %v12894_v3, 16  ;;  %v3887_v18 = vshll.u32 %v12895_v4, 16 }
  0xf0   : > { %14365 = vmatprep.mubr.msk.bf16.mxu0 %vm1629_vm0, %v14978_v55  ;;  %v3801_v29 = vrot.slane %v3800_v10, 4  ;;  %v3829_v55 = vrot.slane %v3828_v35, 4  ;;  %v15954_v10 = vrot.slane %v3859_v59, 5  ;;  %v3875_v24 = vrot.slane %v3873_v1, 5  ;;  %v12903_v59 = vld [vmem:[%s15590_s14 + $0x2bc] sm:$0x1] }
  0xf1   : > { %v3880_v15 = vrot.slane %v3878_v51, 4  ;;  %v3883_v16 = vrot.slane %v3881_v8, 5  ;;  %v3915_v35 = vshll.u32 %v12899_v27, 16  ;;  %v15969_v38 = vrot.slane %v3887_v18, 5  ;;  %v12908_v18 = vld [vmem:[%s15590_s14 + $0x2d8] sm:$0xf] }
  0xf2   : > { %v3806_v43 = vsel %vm15641_vm3, %v3801_v29, %v15925_v25  ;;  %v3834_v9 = vsel %vm15641_vm3, %v3829_v55, %v3833_v40  ;;  %v3898_v29 = vor.u32 %v3897_v20, %v3894_v19  ;;  %v3908_v40 = vrot.slane %v3906_v32, 4  ;;  %v12909_v19 = vld [vmem:[%s15590_s14 + $0x2dc] sm:$0x1]  ;;  %v14993_v32 = vld [vmem:[%s15590_s14 + $0x28] ss:$8 sps:$4 sm:$0xff]  }
  0xf3   : > { %v3884_v25 = vor.u32 %v3883_v16, %v3880_v15  ;;  %v3943_v3 = vshll.u32 %v12903_v59, 16  ;;  %v12907_v15 = vld [vmem:[%s15590_s14 + $0x2d4] sm:$0x1] }
  0xf4   : > { %v3899_v54 = vrot.slane %v3898_v29, 4 }
  0xf5   : > { %14332 = vmatmul.mubr.msk.bf16.gmra.mxu1 %vm1629_vm0, %v14979_v34  ;;  %v3815_v34 = vrot.slane %v3814_v14, 4  ;;  %v3870_v14 = vor.u32 %v3869_v63, %v3866_v62  ;;  %v12904_v62 = vld [vmem:[%s15590_s14 + $0x2c0] sm:$0xf]  ;;  %v12905_v63 = vld [vmem:[%s15590_s14 + $0x2c4] sm:$0x1] }
  0xf6   : > { %14335 = vmatprep.mubr.msk.bf16.mxu1 %vm1629_vm0, %v14981_v37  ;;  %v12890_v37 = vld [vmem:[%s15590_s14 + $0x288] sm:$0xf]  ;;  %v3948_v4 = vshrl.u32 %v12904_v62, 16 }
  0xf7   : > { %v3850_v44 = vshrl.u32 %v12890_v37, 16  ;;  %v3853_v45 = vshll.u32 %v12890_v37, 16  ;;  %14366 = vmatmul.mubr.msk.bf16.gmra.mxu0 %vm1629_vm0, %v14980_v23 }
  0xf8   : > { %14369 = vmatprep.mubr.msk.bf16.mxu0 %vm1629_vm0, %v14982_v28  ;;  %v15963_v28 = vcombine.low %v3834_v9, %v3848_v13  ;;  %v3950_v8 = vrot.slane %v3948_v4, 4  ;;  %v15997_v13 = vrot.slane %v3943_v3, 5 }
  0xf9   : > { %v3852_v57 = vrot.slane %v3850_v44, 4  ;;  %v3855_v58 = vrot.slane %v3853_v45, 5  ;;  %v15974_v44 = vrot.slane %v3884_v25, 4  ;;  %v3976_v25 = vshrl.u32 %v12908_v18, 16 }
  0xfb   : > { %v3856_v6 = vor.u32 %v3855_v58, %v3852_v57  ;;  %v3917_v57 = vrot.slane %v3915_v35, 5  ;;  %v12902_v58 = vld [vmem:[%s15590_s14 + $0x2b8] sm:$0xf]  ;;  %v3890_v46 = vsel %vm15641_vm3, %v15974_v44, %v15969_v38  ;;  %v3978_v35 = vrot.slane %v3976_v25, 4 }
  0xfd   : > { %14336 = vmatmul.mubr.msk.bf16.gmra.mxu1 %vm1629_vm0, %v14983_v0  ;;  %v12941_v0 = vcombine.low %v3778_v48, %v3792_v50  ;;  %v3857_v23 = vrot.slane %v3856_v6, 4  ;;  %v3929_v50 = vshll.u32 %v12901_v31, 16  ;;  %v3985_v31 = vshll.u32 %v12909_v19, 16 }
  0xfe   : > { %14339 = vmatprep.mubr.msk.bf16.mxu1 %vm1629_vm0, %v14985_v5  ;;  %v3820_v5 = vsel %vm15641_vm3, %v3815_v34, %v3819_v30  ;;  %v12900_v30 = vld [vmem:[%s15590_s14 + $0x2b0] sm:$0xf]  ;;  %v3871_v34 = vrot.slane %v3870_v14, 4 }
  0xff   : > { %v12942_v22 = vcombine.low %v3806_v43, %v3820_v5  ;;  %14370 = vmatmul.mubr.msk.bf16.gmra.mxu0 %vm1629_vm0, %v14984_v12  ;;  %v3920_v36 = vshrl.u32 %v12900_v30, 16  ;;  %v3923_v37 = vshll.u32 %v12900_v30, 16  ;;  %v3862_v53 = vsel %vm15641_vm3, %v3857_v23, %v15954_v10  ;;  %v12906_v14 = vld [vmem:[%s15590_s14 + $0x2d0] sm:$0xf] }
 0x100   : > { %14373 = vmatprep.mubr.msk.bf16.mxu0 %vm1629_vm0, %v14986_v17  ;;  %v3876_v60 = vsel %vm15641_vm3, %v3871_v34, %v3875_v24  ;;  %v3937_v43 = vshll.u32 %v12902_v58, 16  ;;  %v3951_v5 = vshll.u32 %v12904_v62, 16  ;;  %v3931_v47 = vrot.slane %v3929_v50, 5 }
 0x101   : > { %v3922_v45 = vrot.slane %v3920_v36, 4  ;;  %v3925_v48 = vrot.slane %v3923_v37, 5  ;;  %v12944_v51 = vcombine.low %v3862_v53, %v3876_v60  ;;  %v3957_v10 = vshll.u32 %v12905_v63, 16 }
 0x102   : > { %v3953_v9 = vrot.slane %v3951_v5, 5  ;;  %v3962_v20 = vshrl.u32 %v12906_v14, 16  ;;  %v3971_v24 = vshll.u32 %v12907_v15, 16 }
 0x103   : > { %v3926_v61 = vor.u32 %v3925_v48, %v3922_v45  ;;  %v3959_v27 = vrot.slane %v3957_v10, 5  ;;  %v12912_v45 = vld [vmem:[%s15590_s14 + $0x2e8] sm:$0xf]  ;;  %v12913_v48 = vld [vmem:[%s15590_s14 + $0x2ec] sm:$0x1] }
 0x104   : > { %v3954_v17 = vor.u32 %v3953_v9, %v3950_v8  ;;  %v3964_v29 = vrot.slane %v3962_v20, 4  ;;  %v12916_v8 = vld [vmem:[%s15590_s14 + $0x2f8] sm:$0xf]  ;;  %v12917_v9 = vld [vmem:[%s15590_s14 + $0x2fc] sm:$0x1] }
 0x105   : > { %14340 = vmatmul.mubr.msk.bf16.gmra.mxu1 %vm1629_vm0, %v14987_v39  ;;  %v15971_v39 = vrot.slane %v3901_v21, 5  ;;  %v3927_v6 = vrot.slane %v3926_v61, 4  ;;  %v3965_v21 = vshll.u32 %v12906_v14, 16  ;;  %v4013_v61 = vshll.u32 %v12913_v48, 16 }
 0x106   : > { %14379 = vmatprep.mubr.msk.bf16.mxu1 %vm1629_vm0, %v12940_v33  ;;  %v3909_v33 = vshll.u32 %v12898_v26, 16  ;;  %v3979_v26 = vshll.u32 %v12908_v18, 16  ;;  %v3955_v34 = vrot.slane %v3954_v17, 4  ;;  %v4035_v14 = vshll.u32 %v12916_v8, 16 }
 0x107   : > { %14374 = vmatmul.mubr.msk.bf16.gmra.mxu0 %vm1629_vm0, %v14988_v42  ;;  %v3904_v11 = vsel %vm15641_vm3, %v3899_v54, %v15971_v39  ;;  %v3932_v23 = vsel %vm15641_vm3, %v3927_v6, %v3931_v47  ;;  %v3967_v30 = vrot.slane %v3965_v21, 5  ;;  %v3973_v39 = vrot.slane %v3971_v24, 5  ;;  %v12914_v6 = vld [vmem:[%s15590_s14 + $0x2f0] sm:$0xf]  ;;  %v12915_v47 = vld [vmem:[%s15590_s14 + $0x2f4] sm:$0x1] }
 0x108   : > { %v3911_v41 = vrot.slane %v3909_v33, 5  ;;  %14413 = vmatprep.mubr.msk.bf16.mxu0 %vm1629_vm0, %v14989_v52  ;;  %v3981_v36 = vrot.slane %v3979_v26, 5  ;;  %v12945_v37 = vcombine.low %v3890_v46, %v3904_v11  ;;  %v3960_v63 = vsel %vm15641_vm3, %v3955_v34, %v3959_v27  ;;  %v12918_v27 = vld [vmem:[%s15590_s14 + $0x300] sm:$0xf] }
 0x109   : > { %v3968_v38 = vor.u32 %v3967_v30, %v3964_v29  ;;  %v4018_v10 = vshrl.u32 %v12914_v6, 16  ;;  %v4021_v46 = vshll.u32 %v12914_v6, 16  ;;  %v4041_v18 = vshll.u32 %v12917_v9, 16  ;;  %v12919_v29 = vld [vmem:[%s15590_s14 + $0x304] sm:$0x1] }
 0x10a   : > { %v3912_v55 = vor.u32 %v3911_v41, %v3908_v40  ;;  %v3987_v40 = vrot.slane %v3985_v31, 5  ;;  %v12910_v41 = vld [vmem:[%s15590_s14 + $0x2e0] sm:$0xf]  ;;  %v3982_v44 = vor.u32 %v3981_v36, %v3978_v35  ;;  %v4046_v34 = vshrl.u32 %v12918_v27, 16 }
 0x10b   : > { %v3990_v50 = vshrl.u32 %v12910_v41, 16  ;;  %v3993_v52 = vshll.u32 %v12910_v41, 16  ;;  %v3969_v53 = vrot.slane %v3968_v38, 4  ;;  %v4023_v17 = vrot.slane %v4021_v46, 5 }
 0x10c   : > { %v3913_v1 = vrot.slane %v3912_v55, 4  ;;  %v4004_v55 = vshrl.u32 %v12912_v45, 16  ;;  %v4043_v26 = vrot.slane %v4041_v18, 5  ;;  %v4049_v35 = vshll.u32 %v12918_v27, 16  ;;  %v12928_v18 = vld [vmem:[%s15590_s14 + $0x330] sm:$0xf] }
 0x10d   : > { %14380 = vmatmul.mubr.msk.bf16.vlgmr.msra.gmra.mxu1 %vm1629_vm0, %v12941_v0  ;;  %v3934_v0 = vshrl.u32 %v12902_v58, 16  ;;  %v3983_v58 = vrot.slane %v3982_v44, 4  ;;  %v3992_v59 = vrot.slane %v3990_v50, 4  ;;  %v3995_v60 = vrot.slane %v3993_v52, 5  ;;  %v14996_v44 = vld [vmem:[%s15590_s14 + $0x60] ss:$8 sps:$4 sm:$0xff]  }
 0x10e   : > { %14446 = vmatpush3.bf16.msra.mxu1 %v15831_v49  ;;  %14383 = vmatprep.mubr.msk.bf16.mxu1 %vm1629_vm0, %v12942_v22  ;;  %v3939_v49 = vrot.slane %v3937_v43, 5  ;;  %v3918_v16 = vsel %vm15641_vm3, %v3913_v1, %v3917_v57  ;;  %v14991_v22 = vld [vmem:[%s15590_s14 + $0x18] ss:$8 sps:$4 sm:$0xff]   ;;  %v4007_v57 = vshll.u32 %v12912_v45, 16  ;;  %v3974_v3 = vsel %vm15641_vm3, %v3969_v53, %v3973_v39 }
 0x10f   : > { %v3936_v7 = vrot.slane %v3934_v0, 4  ;;  %v12946_v42 = vcombine.low %v3918_v16, %v3932_v23  ;;  %14414 = vmatmul.mubr.msk.bf16.vlgmr.msra.gmra.mxu0 %vm1629_vm0, %v14991_v22  ;;  %v4006_v0 = vrot.slane %v4004_v55, 4  ;;  %v14994_v1 = vld [vmem:[%s15590_s14 + $0x38] ss:$8 sps:$4 sm:$0xff]   ;;  %v3996_v4 = vor.u32 %v3995_v60, %v3992_v59  ;;  %v12923_v59 = vld [vmem:[%s15590_s14 + $0x31c] sm:$0x1] }
 0x110   : > { %14480 = vmatpush3.bf16.msra.mxu0 %v15856_v2  ;;  %14417 = vmatprep.mubr.msk.bf16.mxu0 %vm1629_vm0, %v14993_v32  ;;  %v4009_v43 = vrot.slane %v4007_v57, 5  ;;  %v4015_v2 = vrot.slane %v4013_v61, 5  ;;  %v4020_v16 = vrot.slane %v4018_v10, 4  ;;  %v4037_v22 = vrot.slane %v4035_v14, 5  ;;  %v12920_v32 = vld [vmem:[%s15590_s14 + $0x308] sm:$0xf] }
 0x111   : > { %v3940_v12 = vor.u32 %v3939_v49, %v3936_v7  ;;  %v14995_v7 = vld [vmem:[%s15590_s14 + $0x50] ss:$8 sps:$4 sm:$0xff]   ;;  %v3988_v49 = vsel %vm15641_vm3, %v3983_v58, %v3987_v40  ;;  %v3997_v11 = vrot.slane %v3996_v4, 4  ;;  %v4060_v38 = vshrl.u32 %v12920_v32, 16  ;;  %v14998_v14 = vld [vmem:[%s15590_s14 + $0x80] ss:$8 sps:$4 sm:$0xff]  }
 0x112   : > { %v12948_v20 = vcombine.low %v3974_v3, %v3988_v49  ;;  %v4024_v24 = vor.u32 %v4023_v17, %v4020_v16  ;;  %v4063_v39 = vshll.u32 %v12920_v32, 16  ;;  %v4048_v41 = vrot.slane %v4046_v34, 4  ;;  %v14997_v45 = vld [vmem:[%s15590_s14 + $0x70] ss:$8 sps:$4 sm:$0xff]  }
 0x113   : > { %v3941_v33 = vrot.slane %v3940_v12, 4  ;;  %v4027_v12 = vshll.u32 %v12915_v47, 16  ;;  %v4062_v50 = vrot.slane %v4060_v38, 4  ;;  %v12922_v58 = vld [vmem:[%s15590_s14 + $0x318] sm:$0xf]  ;;  %v4083_v3 = vshll.u32 %v12923_v59, 16 }
 0x114   : > { %v4025_v36 = vrot.slane %v4024_v24, 4  ;;  %v4065_v52 = vrot.slane %v4063_v39, 5 }
 0x115   : > { %14384 = vmatmul.mubr.msk.bf16.gmra.mxu1 %vm1629_vm0, %v15963_v28  ;;  %v12911_v28 = vld [vmem:[%s15590_s14 + $0x2e4] sm:$0x1]  ;;  %v3946_v62 = vsel %vm15641_vm3, %v3941_v33, %v15997_v13  ;;  %v4032_v13 = vshrl.u32 %v12916_v8, 16  ;;  %v4029_v25 = vrot.slane %v4027_v12, 5  ;;  %v12921_v33 = vld [vmem:[%s15590_s14 + $0x30c] sm:$0x1] }
 0x116   : > { %14387 = vmatprep.mubr.msk.bf16.mxu1 %vm1629_vm0, %v12944_v51  ;;  %v3999_v54 = vshll.u32 %v12911_v28, 16  ;;  %v4010_v51 = vor.u32 %v4009_v43, %v4006_v0  ;;  %v12947_v19 = vcombine.low %v3946_v62, %v3960_v63  ;;  %v4051_v28 = vrot.slane %v4049_v35, 5  ;;  %v12924_v62 = vld [vmem:[%s15590_s14 + $0x320] sm:$0xf]  ;;  %v12925_v63 = vld [vmem:[%s15590_s14 + $0x324] sm:$0x1] }
 0x117   : > { %v4034_v21 = vrot.slane %v4032_v13, 4  ;;  %14418 = vmatmul.mubr.msk.bf16.gmra.mxu0 %vm1629_vm0, %v14994_v1  ;;  %v4030_v53 = vsel %vm15641_vm3, %v4025_v36, %v4029_v25  ;;  %v4066_v61 = vor.u32 %v4065_v52, %v4062_v50  ;;  %v4074_v0 = vshrl.u32 %v12922_v58, 16  ;;  %v12926_v12 = vld [vmem:[%s15590_s14 + $0x328] sm:$0xf]  ;;  %v12927_v13 = vld [vmem:[%s15590_s14 + $0x32c] sm:$0x1] }
 0x118   : > { %v4001_v5 = vrot.slane %v3999_v54, 5  ;;  %v4011_v15 = vrot.slane %v4010_v51, 4  ;;  %14421 = vmatprep.mubr.msk.bf16.mxu0 %vm1629_vm0, %v14995_v7  ;;  %v4052_v54 = vor.u32 %v4051_v28, %v4048_v41  ;;  %v4077_v43 = vshll.u32 %v12922_v58, 16 }
 0x119   : > { %v4038_v31 = vor.u32 %v4037_v22, %v4034_v21  ;;  %v4088_v4 = vshrl.u32 %v12924_v62, 16  ;;  %v4076_v6 = vrot.slane %v4074_v0, 4  ;;  %v4097_v7 = vshll.u32 %v12925_v63, 16 }
 0x11a   : > { %v4002_v23 = vsel %vm15641_vm3, %v3997_v11, %v4001_v5  ;;  %v4016_v30 = vsel %vm15641_vm3, %v4011_v15, %v4015_v2  ;;  %v4053_v1 = vrot.slane %v4052_v54, 4  ;;  %v4091_v5 = vshll.u32 %v12924_v62, 16  ;;  %v12933_v54 = vld [vmem:[%s15590_s14 + $0x344] sm:$0x1] }
 0x11b   : > { %v4039_v40 = vrot.slane %v4038_v31, 4  ;;  %v12949_v48 = vcombine.low %v4002_v23, %v4016_v30  ;;  %v4067_v2 = vrot.slane %v4066_v61, 4  ;;  %v4079_v47 = vrot.slane %v4077_v43, 5 }
 0x11c   : > { %v4090_v51 = vrot.slane %v4088_v4, 4  ;;  %v4093_v8 = vrot.slane %v4091_v5, 5  ;;  %v4085_v46 = vrot.slane %v4083_v3, 5  ;;  %v4099_v11 = vrot.slane %v4097_v7, 5  ;;  %v15000_v4 = vld [vmem:[%s15590_s14 + $0xa8] ss:$8 sps:$4 sm:$0xff]  }
 0x11d   : > { %14388 = vmatmul.mubr.msk.bf16.gmra.mxu1 %vm1629_vm0, %v12945_v37  ;;  %v4055_v37 = vshll.u32 %v12919_v29, 16  ;;  %v4044_v60 = vsel %vm15641_vm3, %v4039_v40, %v4043_v26  ;;  %v4080_v10 = vor.u32 %v4079_v47, %v4076_v6  ;;  %v4105_v21 = vshll.u32 %v12926_v12, 16  ;;  %v15001_v47 = vld [vmem:[%s15590_s14 + $0xb8] ss:$8 sps:$4 sm:$0xff]  }
 0x11e   : > { %14391 = vmatprep.mubr.msk.bf16.mxu1 %vm1629_vm0, %v12946_v42  ;;  %v4069_v42 = vshll.u32 %v12921_v33, 16  ;;  %v12950_v49 = vcombine.low %v4030_v53, %v4044_v60  ;;  %v4094_v17 = vor.u32 %v4093_v8, %v4090_v51  ;;  %v4111_v24 = vshll.u32 %v12927_v13, 16  ;;  %v14999_v33 = vld [vmem:[%s15590_s14 + $0x98] ss:$8 sps:$4 sm:$0xff]  }
 0x11f   : > { %v4057_v55 = vrot.slane %v4055_v37, 5  ;;  %14422 = vmatmul.mubr.msk.bf16.gmra.mxu0 %vm1629_vm0, %v14996_v44  ;;  %v4081_v23 = vrot.slane %v4080_v10, 4  ;;  %v4116_v25 = vshrl.u32 %v12928_v18, 16  ;;  %v4119_v26 = vshll.u32 %v12928_v18, 16  ;;  %v12930_v44 = vld [vmem:[%s15590_s14 + $0x338] sm:$0xf] }
 0x120   : > { %v4071_v57 = vrot.slane %v4069_v42, 5  ;;  %14425 = vmatprep.mubr.msk.bf16.mxu0 %vm1629_vm0, %v14997_v45  ;;  %v4095_v29 = vrot.slane %v4094_v17, 4  ;;  %v4107_v31 = vrot.slane %v4105_v21, 5  ;;  %v4113_v28 = vrot.slane %v4111_v24, 5  ;;  %v12931_v45 = vld [vmem:[%s15590_s14 + $0x33c] sm:$0x1] }
 0x121   : > { %v4058_v9 = vsel %vm15641_vm3, %v4053_v1, %v4057_v55  ;;  %v4086_v36 = vsel %vm15641_vm3, %v4081_v23, %v4085_v46  ;;  %v4118_v37 = vrot.slane %v4116_v25, 4  ;;  %v4121_v38 = vrot.slane %v4119_v26, 5  ;;  %v12932_v53 = vld [vmem:[%s15590_s14 + $0x340] sm:$0xf]  ;;  %v12934_v10 = vld [vmem:[%s15590_s14 + $0x348] sm:$0xf] }
 0x122   : > { %v4072_v16 = vsel %vm15641_vm3, %v4067_v2, %v4071_v57  ;;  %v4100_v40 = vsel %vm15641_vm3, %v4095_v29, %v4099_v11  ;;  %v4130_v55 = vshrl.u32 %v12930_v44, 16  ;;  %v4133_v57 = vshll.u32 %v12930_v44, 16  ;;  %v12935_v46 = vld [vmem:[%s15590_s14 + $0x34c] sm:$0x1] }
 0x123   : > { %v12951_v35 = vcombine.low %v4058_v9, %v4072_v16  ;;  %v12952_v50 = vcombine.low %v4086_v36, %v4100_v40  ;;  %v4122_v52 = vor.u32 %v4121_v38, %v4118_v37  ;;  %v4139_v60 = vshll.u32 %v12931_v45, 16  ;;  %v12937_v16 = vld [vmem:[%s15590_s14 + $0x354] sm:$0x1] }
 0x124   : > { %v4144_v61 = vshrl.u32 %v12932_v53, 16  ;;  %v4147_v62 = vshll.u32 %v12932_v53, 16  ;;  %v4132_v43 = vrot.slane %v4130_v55, 4  ;;  %v4135_v1 = vrot.slane %v4133_v57, 5  ;;  %v13108_v53 = vld [vmem:[%s15590_s14 + $0xc] sm:$0x1] }
 0x125   : > { %14392 = vmatmul.mubr.msk.bf16.gmra.mxu1 %vm1629_vm0, %v12947_v19  ;;  %v12929_v19 = vld [vmem:[%s15590_s14 + $0x334] sm:$0x1]  ;;  %v4123_v0 = vrot.slane %v4122_v52, 4  ;;  %v4153_v3 = vshll.u32 %v12933_v54, 16  ;;  %v4141_v8 = vrot.slane %v4139_v60, 5  ;;  %v4158_v17 = vshrl.u32 %v12934_v10, 16 }
 0x126   : > { %14395 = vmatprep.mubr.msk.bf16.mxu1 %vm1629_vm0, %v12948_v20  ;;  %v4102_v20 = vshrl.u32 %v12926_v12, 16  ;;  %v4125_v32 = vshll.u32 %v12929_v19, 16  ;;  %v4146_v2 = vrot.slane %v4144_v61, 4  ;;  %v4149_v6 = vrot.slane %v4147_v62, 5  ;;  %v13107_v52 = vld [vmem:[%s15590_s14 + $0x8] sm:$0xf] }
 0x127   : > { %14426 = vmatmul.mubr.msk.bf16.gmra.mxu0 %vm1629_vm0, %v14998_v14  ;;  %v4136_v51 = vor.u32 %v4135_v1, %v4132_v43  ;;  %v4155_v9 = vrot.slane %v4153_v3, 5  ;;  %v12936_v14 = vld [vmem:[%s15590_s14 + $0x350] sm:$0xf]  ;;  %v4161_v18 = vshll.u32 %v12934_v10, 16  ;;  %v4167_v21 = vshll.u32 %v12935_v46, 16 }
 0x128   : > { %v4104_v30 = vrot.slane %v4102_v20, 4  ;;  %v4127_v42 = vrot.slane %v4125_v32, 5  ;;  %14429 = vmatprep.mubr.msk.bf16.mxu0 %vm1629_vm0, %v14999_v33  ;;  %v4150_v13 = vor.u32 %v4149_v6, %v4146_v2  ;;  %v4172_v23 = vshrl.u32 %v12936_v14, 16  ;;  %v15002_v54 = vld [vmem:[%s15590_s14 + $0xc8] ss:$8 sps:$4 sm:$0xff]  }
 0x129   : > { %v4137_v20 = vrot.slane %v4136_v51, 4  ;;  %v4175_v24 = vshll.u32 %v12936_v14, 16  ;;  %v4160_v29 = vrot.slane %v4158_v17, 4  ;;  %v13110_v60 = vld [vmem:[%s15590_s14 + $0x14] sm:$0x1]  ;;  %v5274_v61 = vshrl.u32 %v13107_v52, 16 }
 0x12a   : > { %v4108_v41 = vor.u32 %v4107_v31, %v4104_v30  ;;  %v4128_v12 = vsel %vm15641_vm3, %v4123_v0, %v4127_v42  ;;  %v4151_v26 = vrot.slane %v4150_v13, 4  ;;  %v4163_v30 = vrot.slane %v4161_v18, 5  ;;  %v15003_v51 = vld [vmem:[%s15590_s14 + $0xe0] ss:$8 sps:$4 sm:$0xff]   ;;  %v13111_v18 = vld [vmem:[%s15590_s14 + $0x18] sm:$0xf] }
 0x12b   : > { %v4181_v31 = vshll.u32 %v12937_v16, 16  ;;  %v4174_v36 = vrot.slane %v4172_v23, 4  ;;  %v4177_v37 = vrot.slane %v4175_v24, 5  ;;  %v5277_v43 = vshll.u32 %v13107_v52, 16  ;;  %v15007_v14 = vld [vmem:[%s15590_s14 + $0x128] ss:$8 sps:$4 sm:$0xff]  }
 0x12c   : > { %v4109_v59 = vrot.slane %v4108_v41, 4  ;;  %v4156_v40 = vsel %vm15641_vm3, %v4151_v26, %v4155_v9  ;;  %v4164_v41 = vor.u32 %v4163_v30, %v4160_v29  ;;  %v5283_v1 = vshll.u32 %v13108_v53, 16  ;;  %v13113_v26 = vld [vmem:[%s15590_s14 + $0x20] sm:$0xf]  ;;  %v13114_v29 = vld [vmem:[%s15590_s14 + $0x24] sm:$0x1] }
 0x12d   : > { %v16066_v15 = vpop.f32.mrf.mxu0  ;;  %v16072_v22 = vpop.f32.mrf.mxu1  ;;  %14396 = vmatmul.mubr.msk.bf16.gmra.mxu1 %vm1629_vm0, %v12949_v48  ;;  %v4178_v45 = vor.u32 %v4177_v37, %v4174_v36  ;;  %v5276_v6 = vrot.slane %v5274_v61, 4  ;;  %v5279_v10 = vrot.slane %v5277_v43, 5  ;;  %v5302_v30 = vshrl.u32 %v13111_v18, 16  ;;  %v15004_v52 = vld [vmem:[%s15590_s14 + $0xf0] ss:$8 sps:$4 sm:$0xff]  }
 0x12e   : > { %14399 = vmatprep.mubr.msk.bf16.mxu1 %vm1629_vm0, %v12950_v49  ;;  %v4114_v49 = vsel %vm15641_vm3, %v4109_v59, %v4113_v28  ;;  %v4169_v28 = vrot.slane %v4167_v21, 5  ;;  %v4165_v57 = vrot.slane %v4164_v41, 4  ;;  %v13109_v59 = vld [vmem:[%s15590_s14 + $0x10] sm:$0xf]  ;;  %v16153_v46 = vrot.slane %v5283_v1, 5 }
 0x12f   : > { %v16075_v27 = vpop.f32.mrf.mxu0  ;;  %v16079_v34 = vpop.f32.mrf.mxu1  ;;  %v12953_v33 = vcombine.low %v4114_v49, %v4128_v12  ;;  %14430 = vmatmul.mubr.msk.bf16.gmra.mxu0 %vm1629_vm0, %v15000_v4  ;;  %v4179_v0 = vrot.slane %v4178_v45, 4  ;;  %v5288_v3 = vshrl.u32 %v13109_v59, 16  ;;  %v5297_v49 = vshll.u32 %v13110_v60, 16  ;;  %v15005_v60 = vld [vmem:[%s15590_s14 + $0x100] ss:$8 sps:$4 sm:$0xff]  }
 0x130   : > { %14433 = vmatprep.mubr.msk.bf16.mxu0 %vm1629_vm0, %v15001_v47  ;;  %v4170_v2 = vsel %vm15641_vm3, %v4165_v57, %v4169_v28  ;;  %v5291_v47 = vshll.u32 %v13109_v59, 16  ;;  %v5280_v24 = vor.u32 %v5279_v10, %v5276_v6  ;;  %v5316_v37 = vshrl.u32 %v13113_v26, 16 }
 0x131   : > { %v16083_v39 = vpop.f32.mrf.mxu0  ;;  %v16089_v48 = vpop.f32.mrf.mxu1  ;;  %v5290_v12 = vrot.slane %v5288_v3, 4  ;;  %v16158_v17 = vrot.slane %v5297_v49, 5  ;;  %v13115_v3 = vld [vmem:[%s15590_s14 + $0x28] sm:$0xf] }
 0x132   : > { %v5293_v16 = vrot.slane %v5291_v47, 5  ;;  %v5281_v28 = vrot.slane %v5280_v24, 4  ;;  %v5318_v57 = vrot.slane %v5316_v37, 4  ;;  %v5330_v10 = vshrl.u32 %v13115_v3, 16  ;;  %v15009_v37 = vld [vmem:[%s15590_s14 + $0x148] ss:$8 sps:$4 sm:$0xff]  }
 0x133   : > { %v16094_v58 = vpop.f32.mrf.mxu0  ;;  %v16097_v63 = vpop.f32.mrf.mxu1 }
 0x134   : > { %v5286_v47 = vsel %vm15641_vm3, %v5281_v28, %v16153_v46  ;;  %v5332_v46 = vrot.slane %v5330_v10, 4 }
 0x135   : > { %v16100_v5 = vpop.f32.mrf.mxu0  ;;  %v16103_v7 = vpop.f32.mrf.mxu1  ;;  %14400 = vmatmul.mubr.msk.bf16.gmra.mxu1 %vm1629_vm0, %v12951_v35  ;;  %v4142_v35 = vsel %vm15641_vm3, %v4137_v20, %v4141_v8  ;;  %v13112_v20 = vld [vmem:[%s15590_s14 + $0x1c] sm:$0x1] }
 0x136   : > { %14403 = vmatprep.mubr.msk.bf16.mxu1 %vm1629_vm0, %v12952_v50  ;;  %v12954_v44 = vcombine.low %v4142_v35, %v4156_v40  ;;  %v4183_v50 = vrot.slane %v4181_v31, 5  ;;  %v5305_v31 = vshll.u32 %v13111_v18, 16  ;;  %v5294_v35 = vor.u32 %v5293_v16, %v5290_v12 }
 0x137   : > { %v16110_v11 = vpop.f32.mrf.mxu0  ;;  %v16117_v19 = vpop.f32.mrf.mxu1  ;;  %14434 = vmatmul.mubr.msk.bf16.gmra.mxu0 %vm1629_vm0, %v15002_v54  ;;  %v5311_v36 = vshll.u32 %v13112_v20, 16  ;;  %v5319_v40 = vshll.u32 %v13113_v26, 16  ;;  %v5333_v12 = vshll.u32 %v13115_v3, 16 }
 0x138   : > { %v4184_v9 = vsel %vm15641_vm3, %v4179_v0, %v4183_v50  ;;  %14437 = vmatprep.mubr.msk.bf16.mxu0 %vm1629_vm0, %v15003_v51  ;;  %v5307_v45 = vrot.slane %v5305_v31, 5  ;;  %v5325_v50 = vshll.u32 %v13114_v29, 16  ;;  %v5295_v54 = vrot.slane %v5294_v35, 4  ;;  %v13117_v51 = vld [vmem:[%s15590_s14 + $0x30] sm:$0xf] }
 0x139   : > { %v16119_v25 = vpop.f32.mrf.mxu0  ;;  %v16121_v32 = vpop.f32.mrf.mxu1  ;;  %v12955_v23 = vcombine.low %v4170_v2, %v4184_v9  ;;  %v5321_v59 = vrot.slane %v5319_v40, 5  ;;  %v5313_v43 = vrot.slane %v5311_v36, 5  ;;  %v13116_v2 = vld [vmem:[%s15590_s14 + $0x2c] sm:$0x1]  ;;  %v13118_v9 = vld [vmem:[%s15590_s14 + $0x34] sm:$0x1] }
 0x13a   : > { %v5327_v1 = vrot.slane %v5325_v50, 5  ;;  %v5300_v18 = vsel %vm15641_vm3, %v5295_v54, %v16158_v17  ;;  %v5335_v29 = vrot.slane %v5333_v12, 5  ;;  %v15008_v35 = vld [vmem:[%s15590_s14 + $0x138] ss:$8 sps:$4 sm:$0xff]   ;;  %v5353_v40 = vshll.u32 %v13118_v9, 16 }
 0x13b   : > { %v16126_v38 = vpop.f32.mrf.mxu0  ;;  %v16131_v42 = vpop.f32.mrf.mxu1  ;;  %v5322_v49 = vor.u32 %v5321_v59, %v5318_v57  ;;  %v13119_v57 = vld [vmem:[%s15590_s14 + $0x38] sm:$0xf]  ;;  %v13120_v59 = vld [vmem:[%s15590_s14 + $0x3c] sm:$0x1] }
 0x13c   : > { %v5361_v12 = vshll.u32 %v13119_v57, 16 }
 0x13d   : > { %v16136_v55 = vpop.f32.mrf.mxu0  ;;  %v16140_v62 = vpop.f32.mrf.mxu1  ;;  %14404 = vmatmul.mubr.msk.bf16.gmra.mxu1 %vm1629_vm0, %v12953_v33  ;;  %v5323_v26 = vrot.slane %v5322_v49, 4  ;;  %v13122_v49 = vld [vmem:[%s15590_s14 + $0x44] sm:$0x1] }
 0x13e   : > { %14407 = vmatprep.mubr.msk.bf16.mxu1 %vm1629_vm0, %v12954_v44  ;;  %v5304_v44 = vrot.slane %v5302_v30, 4  ;;  %v5347_v30 = vshll.u32 %v13117_v51, 16 }
 0x13f   : > { %v16143_v4 = vpop.f32.mrf.mxu0  ;;  %v16149_v8 = vpop.f32.mrf.mxu1  ;;  %14438 = vmatmul.mubr.msk.bf16.gmra.mxu0 %vm1629_vm0, %v15004_v52  ;;  %v13121_v52 = vld [vmem:[%s15590_s14 + $0x40] sm:$0xf] }
 0x140   : > { %v5308_v0 = vor.u32 %v5307_v45, %v5304_v44  ;;  %v5328_v44 = vsel %vm15641_vm3, %v5323_v26, %v5327_v1  ;;  %v5336_v45 = vor.u32 %v5335_v29, %v5332_v46  ;;  %v5349_v54 = vrot.slane %v5347_v30, 5  ;;  %14441 = vmatprep.mubr.msk.bf16.mxu0 %vm1629_vm0, %v15005_v60  ;;  %v15006_v26 = vld [vmem:[%s15590_s14 + $0x110] ss:$8 sps:$4 sm:$0xff]  }
 0x141   : > { %v16155_v13 = vpop.f32.mrf.mxu0  ;;  %v16162_v21 = vpop.f32.mrf.mxu1 }
 0x142   : > { %v5309_v20 = vrot.slane %v5308_v0, 4  ;;  %v5337_v10 = vrot.slane %v5336_v45, 4 }
 0x143   : > { %v16167_v33 = vpop.f32.mrf.mxu0  ;;  %v16170_v41 = vpop.f32.mrf.mxu1 }
 0x144   : > { %19664 = vst [vmem:[#allocation8_spill] sm:$0xff] %v16170_v41  ;;  %v5314_v36 = vsel %vm15641_vm3, %v5309_v20, %v5313_v43  ;;  %v13173_v43 = vcombine.low %v5286_v47, %v5300_v18  ;;  %v5367_v20 = vshll.u32 %v13120_v59, 16  ;;  %v5375_v47 = vshll.u32 %v13121_v52, 16  ;;  %v13124_v59 = vld [vmem:[%s15590_s14 + $0x54] sm:$0x1] }
 0x145   : > { %v16173_v53 = vpop.f32.mrf.mxu0  ;;  %v16176_v61 = vpop.f32.mrf.mxu1  ;;  %14408 = vmatmul.mubr.msk.bf16.gmra.mxu1 %vm1629_vm0, %v12955_v23  ;;  %v5339_v23 = vshll.u32 %v13116_v2, 16  ;;  %v16212_v3 = vcombine.low %v5314_v36, %v5328_v44  ;;  %v5355_v2 = vrot.slane %v5353_v40, 5  ;;  %v5381_v18 = vshll.u32 %v13122_v49, 16  ;;  %v13123_v40 = vld [vmem:[%s15590_s14 + $0x50] sm:$0xf] }
 0x146   : > { %14447 = vmatprep.mubr.msk.bf16.mxu1 %vm1629_vm0, %v15007_v14  ;;  %v5344_v14 = vshrl.u32 %v13117_v51, 16  ;;  %v5358_v51 = vshrl.u32 %v13119_v57, 16  ;;  %v5369_v44 = vrot.slane %v5367_v20, 5 }
 0x147   : > { %v16181_v6 = vpop.f32.mrf.mxu0  ;;  %v16189_v16 = vpop.f32.mrf.mxu1  ;;  %v5341_v50 = vrot.slane %v5339_v23, 5  ;;  %v5383_v57 = vrot.slane %v5381_v18, 5  ;;  %14442 = vmatmul.mubr.msk.bf16.gmra.mxu0 %vm1629_vm0, %v15006_v26 }
 0x148   : > { %v5346_v17 = vrot.slane %v5344_v14, 4  ;;  %v5360_v60 = vrot.slane %v5358_v51, 4  ;;  %v5372_v14 = vshrl.u32 %v13121_v52, 16  ;;  %v13125_v51 = vld [vmem:[%s15590_s14 + $0x58] sm:$0xf]  ;;  %14481 = vmatprep.mubr.msk.bf16.mxu0 %vm1629_vm0, %v13173_v43 }
 0x149   : > { %v16194_v24 = vpop.f32.mrf.mxu0  ;;  %v16196_v31 = vpop.f32.mrf.mxu1  ;;  %v5342_v30 = vsel %vm15641_vm3, %v5337_v10, %v5341_v50 }
 0x14a   : > { %v5350_v1 = vor.u32 %v5349_v54, %v5346_v17  ;;  %v5363_v17 = vrot.slane %v5361_v12, 5  ;;  %v5374_v45 = vrot.slane %v5372_v14, 4  ;;  %v5377_v54 = vrot.slane %v5375_v47, 5  ;;  %v15010_v12 = vld [vmem:[%s15590_s14 + $0x158] ss:$8 sps:$4 sm:$0xff]  }
 0x14b   : > { %v16203_v28 = vpop.f32.mrf.mxu0  ;;  %v16210_v0 = vpop.f32.mrf.mxu1  ;;  %v5389_v14 = vshll.u32 %v13123_v40, 16 }
 0x14c   : > { %19665 = vst [vmem:[#allocation9_spill] sm:$0xff] %v16210_v0  ;;  %v5351_v36 = vrot.slane %v5350_v1, 4  ;;  %v5364_v50 = vor.u32 %v5363_v17, %v5360_v60  ;;  %v5378_v20 = vor.u32 %v5377_v54, %v5374_v45  ;;  %v5395_v60 = vshll.u32 %v13124_v59, 16  ;;  %v13127_v54 = vld [vmem:[%s15590_s14 + $0x60] sm:$0xf] }
 0x14d   : > { %v14279_v9 = vpop.f32.mrf.mxu0  ;;  %v14245_v23 = vpop.f32.mrf.mxu1  ;;  %14448 = vmatmul.mubr.msk.bf16.vlgmr.msra.gmra.mxu1 %vm1629_vm0, %v15008_v35 }
 0x14e   : > { %v2016_v46 = vadd.f32 %v14245_v23, %v16066_v15  ;;  %14451 = vmatprep.mubr.msk.bf16.mxu1 %vm1629_vm0, %v15009_v37  ;;  %v5356_v49 = vsel %vm15641_vm3, %v5351_v36, %v5355_v2  ;;  %v5386_v23 = vshrl.u32 %v13123_v40, 16  ;;  %v5365_v18 = vrot.slane %v5364_v50, 4  ;;  %v15011_v2 = vld [vmem:[%s15590_s14 + $0x170] ss:$8 sps:$4 sm:$0xff]   ;;  %v13126_v36 = vld [vmem:[%s15590_s14 + $0x5c] sm:$0x1] }
 0x14f   : > { %v2788_v29 = vpop.f32.mrf.mxu0  ;;  %v2007_v35 = vpop.f32.mrf.mxu1  ;;  %v16230_v1 = vcombine.low %v5342_v30, %v5356_v49  ;;  %v5379_v30 = vrot.slane %v5378_v20, 4  ;;  %v5400_v40 = vshrl.u32 %v13125_v51, 16  ;;  %v13128_v50 = vld [vmem:[%s15590_s14 + $0x64] sm:$0x1]  ;;  %14482 = vmatmul.mubr.msk.bf16.vlgmr.msra.gmra.mxu0 %vm1629_vm0, %v16212_v3 }
 0x150   : > { %v16224_v52 = vadd.f32 %v14279_v9, %v2016_v46  ;;  %v2008_v15 = vadd.f32 %v2007_v35, %v16075_v27  ;;  %v5388_v17 = vrot.slane %v5386_v23, 4  ;;  %v5391_v35 = vrot.slane %v5389_v14, 5 }
 0x151   : > { %v14280_v37 = vpop.f32.mrf.mxu0  ;;  %v14246_v10 = vpop.f32.mrf.mxu1  ;;  %v5384_v43 = vsel %vm15641_vm3, %v5379_v30, %v5383_v57  ;;  %v5402_v49 = vrot.slane %v5400_v40, 4  ;;  %v5409_v23 = vshll.u32 %v13126_v36, 16  ;;  %v15012_v57 = vld [vmem:[%s15590_s14 + $0x180] ss:$8 sps:$4 sm:$0xff]   ;;  %14485 = vmatprep.mubr.msk.bf16.mxu0 %vm1629_vm0, %v16230_v1 }
 0x152   : > { %v16234_v9 = vadd.f32 %v2788_v29, %v2008_v15  ;;  %v2019_v27 = vadd.f32 %v14246_v10, %v16083_v39  ;;  %v5370_v39 = vsel %vm15641_vm3, %v5365_v18, %v5369_v44  ;;  %v16245_v29 = vrot.slane %v5395_v60, 5  ;;  %v13129_v18 = vld [vmem:[%s15590_s14 + $0x68] sm:$0xf] }
 0x153   : > { %v2791_v47 = vpop.f32.mrf.mxu0  ;;  %v2010_v46 = vpop.f32.mrf.mxu1  ;;  %v5392_v15 = vor.u32 %v5391_v35, %v5388_v17  ;;  %v16255_v20 = vcombine.low %v5370_v39, %v5384_v43  ;;  %v5414_v60 = vshrl.u32 %v13127_v54, 16  ;;  %v5411_v30 = vrot.slane %v5409_v23, 5  ;;  %v13130_v17 = vld [vmem:[%s15590_s14 + $0x6c] sm:$0x1] }
 0x154   : > { %v16240_v45 = vadd.f32 %v14280_v37, %v2019_v27  ;;  %v2011_v26 = vadd.f32 %v2010_v46, %v16094_v58  ;;  %v5403_v37 = vshll.u32 %v13125_v51, 16  ;;  %v5417_v51 = vshll.u32 %v13127_v54, 16  ;;  %v13131_v54 = vld [vmem:[%s15590_s14 + $0x70] sm:$0xf] }
 0x155   : > { %v14249_v59 = vpop.f32.mrf.mxu1  ;;  %14452 = vmatmul.mubr.msk.bf16.gmra.mxu1 %vm1629_vm0, %v15010_v12  ;;  %v14283_v44 = vpop.f32.mrf.mxu0  ;;  %v5393_v14 = vrot.slane %v5392_v15, 4  ;;  %v5423_v35 = vshll.u32 %v13128_v50, 16  ;;  %v15013_v50 = vld [vmem:[%s15590_s14 + $0x190] ss:$8 sps:$4 sm:$0xff]   ;;  %v5431_v23 = vshll.u32 %v13129_v18, 16 }
 0x156   : > { %v16252_v10 = vadd.f32 %v2791_v47, %v2011_v26  ;;  %v2032_v58 = vadd.f32 %v14249_v59, %v16100_v5  ;;  %14455 = vmatprep.mubr.msk.bf16.mxu1 %vm1629_vm0, %v15011_v2  ;;  %v5405_v27 = vrot.slane %v5403_v37, 5  ;;  %v5416_v26 = vrot.slane %v5414_v60, 4 }
 0x157   : > { %v2023_v12 = vpop.f32.mrf.mxu1  ;;  %v2804_v5 = vpop.f32.mrf.mxu0  ;;  %v5398_v36 = vsel %vm15641_vm3, %v5393_v14, %v16245_v29  ;;  %v5419_v39 = vrot.slane %v5417_v51, 5  ;;  %v5425_v15 = vrot.slane %v5423_v35, 5  ;;  %v5428_v37 = vshrl.u32 %v13129_v18, 16  ;;  %v13133_v14 = vld [vmem:[%s15590_s14 + $0x78] sm:$0xf]  ;;  %14486 = vmatmul.mubr.msk.bf16.gmra.mxu0 %vm1629_vm0, %v16255_v20 }
 0x158   : > { %19666 = vst [vmem:[#allocation10_spill] sm:$0xff] %v16252_v10  ;;  %v16260_v46 = vadd.f32 %v14283_v44, %v2032_v58  ;;  %v2024_v47 = vadd.f32 %v2023_v12, %v16110_v11  ;;  %v5406_v40 = vor.u32 %v5405_v27, %v5402_v49  ;;  %v13132_v58 = vld [vmem:[%s15590_s14 + $0x74] sm:$0x1]  ;;  %v5437_v12 = vshll.u32 %v13130_v17, 16  ;;  %v13134_v51 = vld [vmem:[%s15590_s14 + $0x7c] sm:$0x1] }
 0x159   : > { %v14250_v2 = vpop.f32.mrf.mxu1  ;;  %v14284_v43 = vpop.f32.mrf.mxu0  ;;  %v5420_v44 = vor.u32 %v5419_v39, %v5416_v26  ;;  %v5430_v60 = vrot.slane %v5428_v37, 4  ;;  %v5433_v18 = vrot.slane %v5431_v23, 5  ;;  %v15014_v37 = vld [vmem:[%s15590_s14 + $0x1a0] ss:$8 sps:$4 sm:$0xff]   ;;  %v5459_v23 = vshll.u32 %v13133_v14, 16 }
 0x15a   : > { %v16270_v11 = vadd.f32 %v2804_v5, %v2024_v47  ;;  %v2035_v59 = vadd.f32 %v14250_v2, %v16119_v25  ;;  %v5407_v49 = vrot.slane %v5406_v40, 4  ;;  %v5442_v47 = vshrl.u32 %v13131_v54, 16 }
 0x15b   : > { %v2026_v29 = vpop.f32.mrf.mxu1  ;;  %v2807_v25 = vpop.f32.mrf.mxu0  ;;  %v5421_v1 = vrot.slane %v5420_v44, 4  ;;  %v5439_v17 = vrot.slane %v5437_v12, 5  ;;  %v5434_v39 = vor.u32 %v5433_v18, %v5430_v60  ;;  %v5465_v12 = vshll.u32 %v13134_v51, 16 }
 0x15c   : > { %v16278_v3 = vadd.f32 %v14284_v43, %v2035_v59  ;;  %v2027_v27 = vadd.f32 %v2026_v29, %v16126_v38  ;;  %v5412_v5 = vsel %vm15641_vm3, %v5407_v49, %v5411_v30  ;;  %v5444_v26 = vrot.slane %v5442_v47, 4  ;;  %v13135_v29 = vld [vmem:[%s15590_s14 + $0x80] sm:$0xf] }
 0x15d   : > { %v14253_v35 = vpop.f32.mrf.mxu1  ;;  %14456 = vmatmul.mubr.msk.bf16.gmra.mxu1 %vm1629_vm0, %v15012_v57  ;;  %v13177_v40 = vcombine.low %v5398_v36, %v5412_v5  ;;  %v5426_v30 = vsel %vm15641_vm3, %v5421_v1, %v5425_v15  ;;  %v5445_v43 = vshll.u32 %v13131_v54, 16  ;;  %v5451_v57 = vshll.u32 %v13132_v58, 16  ;;  %v14287_v49 = vpop.f32.mrf.mxu0 }
 0x15e   : > { %v16285_v2 = vadd.f32 %v2807_v25, %v2027_v27  ;;  %v2048_v38 = vadd.f32 %v14253_v35, %v16136_v55  ;;  %14459 = vmatprep.mubr.msk.bf16.mxu1 %vm1629_vm0, %v15013_v50  ;;  %v5456_v36 = vshrl.u32 %v13133_v14, 16  ;;  %v13136_v55 = vld [vmem:[%s15590_s14 + $0x84] sm:$0x1]  ;;  %v15015_v27 = vld [vmem:[%s15590_s14 + $0x1b8] ss:$8 sps:$4 sm:$0xff]   ;;  %v5435_v50 = vrot.slane %v5434_v39, 4 }
 0x15f   : > { %v2039_v59 = vpop.f32.mrf.mxu1  ;;  %v5447_v15 = vrot.slane %v5445_v43, 5  ;;  %v5453_v60 = vrot.slane %v5451_v57, 5  ;;  %v2820_v54 = vpop.f32.mrf.mxu0  ;;  %v5461_v5 = vrot.slane %v5459_v23, 5  ;;  %v5467_v14 = vrot.slane %v5465_v12, 5  ;;  %14489 = vmatprep.mubr.msk.bf16.mxu0 %vm1629_vm0, %v13177_v40  ;;  %v13138_v57 = vld [vmem:[%s15590_s14 + $0x8c] sm:$0x1] }
 0x160   : > { %19667 = vst [vmem:[#allocation11_spill] sm:$0xff] %v16285_v2  ;;  %v2040_v44 = vadd.f32 %v2039_v59, %v16143_v4  ;;  %v16296_v25 = vadd.f32 %v14287_v49, %v2048_v38  ;;  %v5458_v4 = vrot.slane %v5456_v36, 4  ;;  %v5440_v51 = vsel %vm15641_vm3, %v5435_v50, %v5439_v17  ;;  %v13137_v38 = vld [vmem:[%s15590_s14 + $0x88] sm:$0xf]  ;;  %v13139_v12 = vld [vmem:[%s15590_s14 + $0x98] sm:$0xf] }
 0x161   : > { %v14254_v47 = vpop.f32.mrf.mxu1  ;;  %v5448_v18 = vor.u32 %v5447_v15, %v5444_v26  ;;  %v5470_v39 = vshrl.u32 %v13135_v29, 16  ;;  %v13178_v20 = vcombine.low %v5426_v30, %v5440_v51  ;;  %v14288_v59 = vpop.f32.mrf.mxu0  ;;  %v5473_v49 = vshll.u32 %v13135_v29, 16  ;;  %v13140_v51 = vld [vmem:[%s15590_s14 + $0x9c] sm:$0x1] }
 0x162   : > { %v2051_v58 = vadd.f32 %v14254_v47, %v16155_v13  ;;  %v16304_v35 = vadd.f32 %v2820_v54, %v2040_v44  ;;  %v5462_v13 = vor.u32 %v5461_v5, %v5458_v4  ;;  %v5479_v44 = vshll.u32 %v13136_v55, 16 }
 0x163   : > { %v2042_v1 = vpop.f32.mrf.mxu1  ;;  %v5449_v40 = vrot.slane %v5448_v18, 4  ;;  %v5472_v17 = vrot.slane %v5470_v39, 4  ;;  %v2823_v26 = vpop.f32.mrf.mxu0  ;;  %v5475_v47 = vrot.slane %v5473_v49, 5  ;;  %v5487_v55 = vshll.u32 %v13137_v38, 16  ;;  %14490 = vmatmul.mubr.msk.bf16.gmra.mxu0 %vm1629_vm0, %v13178_v20 }
 0x164   : > { %v2043_v43 = vadd.f32 %v2042_v1, %v16167_v33  ;;  %v16309_v36 = vadd.f32 %v14288_v59, %v2051_v58  ;;  %v5463_v50 = vrot.slane %v5462_v13, 4  ;;  %v5484_v33 = vshrl.u32 %v13137_v38, 16  ;;  %v13141_v1 = vld [vmem:[%s15590_s14 + $0xa0] sm:$0xf] }
 0x165   : > { %v14257_v23 = vpop.f32.mrf.mxu1  ;;  %14460 = vmatmul.mubr.msk.bf16.gmra.mxu1 %vm1629_vm0, %v15014_v37  ;;  %v5454_v15 = vsel %vm15641_vm3, %v5449_v40, %v5453_v60  ;;  %v5481_v37 = vrot.slane %v5479_v44, 5  ;;  %v5476_v4 = vor.u32 %v5475_v47, %v5472_v17  ;;  %v15016_v60 = vld [vmem:[%s15590_s14 + $0x1c8] ss:$8 sps:$4 sm:$0xff]   ;;  %v15017_v13 = vld [vmem:[%s15590_s14 + $0x1d8] ss:$8 sps:$4 sm:$0xff]   ;;  %v14291_v38 = vpop.f32.mrf.mxu0 }
 0x166   : > { %v2064_v30 = vadd.f32 %v14257_v23, %v16173_v53  ;;  %14463 = vmatprep.mubr.msk.bf16.mxu1 %vm1629_vm0, %v15015_v27  ;;  %v16315_v29 = vadd.f32 %v2823_v26, %v2043_v43  ;;  %v5468_v58 = vsel %vm15641_vm3, %v5463_v50, %v5467_v14  ;;  %v5486_v5 = vrot.slane %v5484_v33, 4 }
 0x167   : > { %v2055_v54 = vpop.f32.mrf.mxu1  ;;  %v5493_v53 = vshll.u32 %v13138_v57, 16  ;;  %v13179_v18 = vcombine.low %v5454_v15, %v5468_v58  ;;  %v5489_v27 = vrot.slane %v5487_v55, 5  ;;  %v5498_v43 = vshrl.u32 %v13139_v12, 16  ;;  %v2836_v20 = vpop.f32.mrf.mxu0 }
 0x168   : > { %19668 = vst [vmem:[#allocation12_spill] sm:$0xff] %v16315_v29  ;;  %v2056_v39 = vadd.f32 %v2055_v54, %v16181_v6  ;;  %v5477_v49 = vrot.slane %v5476_v4, 4  ;;  %v5501_v57 = vshll.u32 %v13139_v12, 16  ;;  %v16329_v23 = vadd.f32 %v14291_v38, %v2064_v30  ;;  %v13142_v6 = vld [vmem:[%s15590_s14 + $0xa4] sm:$0x1] }
 0x169   : > { %v14258_v59 = vpop.f32.mrf.mxu1  ;;  %v5495_v14 = vrot.slane %v5493_v53, 5  ;;  %14493 = vmatprep.mubr.msk.bf16.mxu0 %vm1629_vm0, %v13179_v18  ;;  %v5490_v17 = vor.u32 %v5489_v27, %v5486_v5  ;;  %v5500_v26 = vrot.slane %v5498_v43, 4  ;;  %v5507_v50 = vshll.u32 %v13140_v51, 16  ;;  %v14292_v5 = vpop.f32.mrf.mxu0 }
 0x16a   : > { %v2067_v40 = vadd.f32 %v14258_v59, %v16194_v24  ;;  %v5482_v47 = vsel %vm15641_vm3, %v5477_v49, %v5481_v37  ;;  %v5503_v15 = vrot.slane %v5501_v57, 5  ;;  %v5512_v55 = vshrl.u32 %v13141_v1, 16  ;;  %v13143_v24 = vld [vmem:[%s15590_s14 + $0xa8] sm:$0xf]  ;;  %v13145_v59 = vld [vmem:[%s15590_s14 + $0xb0] sm:$0xf] }
 0x16b   : > { %v2058_v44 = vpop.f32.mrf.mxu1  ;;  %v5491_v12 = vrot.slane %v5490_v17, 4  ;;  %v16336_v54 = vadd.f32 %v2836_v20, %v2056_v39  ;;  %v5509_v30 = vrot.slane %v5507_v50, 5  ;;  %v5515_v58 = vshll.u32 %v13141_v1, 16  ;;  %v2839_v49 = vpop.f32.mrf.mxu0  ;;  %v13146_v17 = vld [vmem:[%s15590_s14 + $0xb4] sm:$0x1] }
 0x16c   : > { %v2059_v33 = vadd.f32 %v2058_v44, %v16203_v28  ;;  %v5504_v53 = vor.u32 %v5503_v15, %v5500_v26  ;;  %v5514_v37 = vrot.slane %v5512_v55, 4  ;;  %v5521_v51 = vshll.u32 %v13142_v6, 16  ;;  %v13144_v28 = vld [vmem:[%s15590_s14 + $0xac] sm:$0x1]  ;;  %v13147_v50 = vld [vmem:[%s15590_s14 + $0xb8] sm:$0xf] }
 0x16d   : > { %v14261_v4 = vpop.f32.mrf.mxu1  ;;  %14464 = vmatmul.mubr.msk.bf16.gmra.mxu1 %vm1629_vm0, %v15016_v60  ;;  %v5496_v27 = vsel %vm15641_vm3, %v5491_v12, %v5495_v14  ;;  %v16344_v39 = vadd.f32 %v14292_v5, %v2067_v40  ;;  %v5517_v1 = vrot.slane %v5515_v58, 5  ;;  %v5526_v43 = vshrl.u32 %v13143_v24, 16  ;;  %v15018_v20 = vld [vmem:[%s15590_s14 + $0x1e8] ss:$8 sps:$4 sm:$0xff]   ;;  %v13148_v12 = vld [vmem:[%s15590_s14 + $0xbc] sm:$0x1] }
 0x16e   : > { %v2080_v18 = vadd.f32 %v14261_v4, %v16072_v22  ;;  %14467 = vmatprep.mubr.msk.bf16.mxu1 %vm1629_vm0, %v15017_v13  ;;  %v13180_v38 = vcombine.low %v5482_v47, %v5496_v27  ;;  %v5505_v57 = vrot.slane %v5504_v53, 4  ;;  %v5523_v22 = vrot.slane %v5521_v51, 5  ;;  %v15019_v58 = vld [vmem:[%s15590_s14 + $0x200] ss:$8 sps:$4 sm:$0xff]   ;;  %v14295_v51 = vpop.f32.mrf.mxu0 }
 0x16f   : > { %v2071_v60 = vpop.f32.mrf.mxu1  ;;  %v5529_v44 = vshll.u32 %v13143_v24, 16  ;;  %v16348_v13 = vadd.f32 %v2839_v49, %v2059_v33  ;;  %v5518_v6 = vor.u32 %v5517_v1, %v5514_v37  ;;  %v5528_v14 = vrot.slane %v5526_v43, 4  ;;  %v13149_v37 = vld [vmem:[%s15590_s14 + $0xc0] sm:$0xf] }
 0x170   : > { %v5535_v40 = vshll.u32 %v13144_v28, 16  ;;  %14494 = vmatmul.mubr.msk.bf16.gmra.mxu0 %vm1629_vm0, %v13180_v38  ;;  %v5540_v47 = vshrl.u32 %v13145_v59, 16  ;;  %v5543_v55 = vshll.u32 %v13145_v59, 16  ;;  %v5510_v4 = vsel %vm15641_vm3, %v5505_v57, %v5509_v30 }
 0x171   : > { %19669 = vst [vmem:[#allocation13_spill] sm:$0xff] %v16348_v13  ;;  %v14262_v26 = vpop.f32.mrf.mxu1  ;;  %v5531_v15 = vrot.slane %v5529_v44, 5  ;;  %v5519_v24 = vrot.slane %v5518_v6, 4  ;;  %v5549_v33 = vshll.u32 %v13146_v17, 16  ;;  %v2072_v5 = vadd.f32 %v2071_v60, %v16079_v34  ;;  %v2852_v44 = vpop.f32.mrf.mxu0  ;;  %v13150_v6 = vld [vmem:[%s15590_s14 + $0xc4] sm:$0x1] }
 0x172   : > { %v5537_v27 = vrot.slane %v5535_v40, 5  ;;  %v5542_v1 = vrot.slane %v5540_v47, 4  ;;  %v5545_v43 = vrot.slane %v5543_v55, 5  ;;  %v16363_v38 = vadd.f32 %v14295_v51, %v2080_v18  ;;  %v13151_v40 = vld [vmem:[%s15590_s14 + $0xc8] sm:$0xf] }
 0x173   : > { %v16358_v53 = vpop.f32.mrf.mxu1  ;;  %v5532_v28 = vor.u32 %v5531_v15, %v5528_v14  ;;  %v5524_v59 = vsel %vm15641_vm3, %v5519_v24, %v5523_v22  ;;  %v5551_v30 = vrot.slane %v5549_v33, 5  ;;  %v2083_v49 = vadd.f32 %v14262_v26, %v16089_v48  ;;  %v13152_v48 = vld [vmem:[%s15590_s14 + $0xcc] sm:$0x1]  ;;  %v13153_v51 = vld [vmem:[%s15590_s14 + $0xd0] sm:$0xf] }
 0x174   : > { %v13181_v60 = vcombine.low %v5510_v4, %v5524_v59  ;;  %v5546_v17 = vor.u32 %v5545_v43, %v5542_v1  ;;  %v5554_v14 = vshrl.u32 %v13147_v50, 16  ;;  %v16370_v22 = vadd.f32 %v2852_v44, %v2072_v5  ;;  %v14296_v4 = vpop.f32.mrf.mxu0 }
 0x175   : > { %v14265_v34 = vpop.f32.mrf.mxu1  ;;  %14468 = vmatmul.mubr.msk.bf16.gmra.mxu1 %vm1629_vm0, %v15018_v20  ;;  %v5533_v57 = vrot.slane %v5532_v28, 4  ;;  %v5557_v18 = vshll.u32 %v13147_v50, 16  ;;  %v5563_v15 = vshll.u32 %v13148_v12, 16  ;;  %v5568_v47 = vshrl.u32 %v13149_v37, 16  ;;  %v15020_v28 = vld [vmem:[%s15590_s14 + $0x210] ss:$8 sps:$4 sm:$0xff]  }
 0x176   : > { %14471 = vmatprep.mubr.msk.bf16.mxu1 %vm1629_vm0, %v15019_v58  ;;  %14497 = vmatprep.mubr.msk.bf16.mxu0 %vm1629_vm0, %v13181_v60  ;;  %v5547_v55 = vrot.slane %v5546_v17, 4  ;;  %v5556_v24 = vrot.slane %v5554_v14, 4  ;;  %v5571_v33 = vshll.u32 %v13149_v37, 16  ;;  %v16376_v58 = vadd.f32 %v14296_v4, %v2083_v49  ;;  %v16382_v43 = vpop.f32.mrf.mxu0  ;;  %v13154_v49 = vld [vmem:[%s15590_s14 + $0xd4] sm:$0x1] }
 0x177   : > { %v2087_v26 = vpop.f32.mrf.mxu1  ;;  %v5538_v20 = vsel %vm15641_vm3, %v5533_v57, %v5537_v27  ;;  %v5559_v5 = vrot.slane %v5557_v18, 5  ;;  %v5570_v50 = vrot.slane %v5568_v47, 4  ;;  %19670 = vst [vmem:[#allocation14_spill] sm:$0xff] %v16382_v43  ;;  %v5565_v59 = vrot.slane %v5563_v15, 5  ;;  %v15021_v57 = vld [vmem:[%s15590_s14 + $0x220] ss:$8 sps:$4 sm:$0xff]  }
 0x178   : > { %v5552_v1 = vsel %vm15641_vm3, %v5547_v55, %v5551_v30  ;;  %v5573_v27 = vrot.slane %v5571_v33, 5  ;;  %v5577_v60 = vshll.u32 %v13150_v6, 16  ;;  %v2096_v37 = vadd.f32 %v14265_v34, %v16103_v7  ;;  %v14299_v34 = vpop.f32.mrf.mxu0  ;;  %v13165_v43 = vld [vmem:[%s15590_s14 + $0x108] sm:$0xf] }
 0x179   : > { %v14266_v12 = vpop.f32.mrf.mxu1  ;;  %v13182_v17 = vcombine.low %v5538_v20, %v5552_v1  ;;  %v5560_v44 = vor.u32 %v5559_v5, %v5556_v24  ;;  %v5582_v14 = vshrl.u32 %v13151_v40, 16  ;;  %v5585_v13 = vshll.u32 %v13151_v40, 16  ;;  %v13155_v1 = vld [vmem:[%s15590_s14 + $0xe0] sm:$0xf] }
 0x17a   : > { %v5574_v47 = vor.u32 %v5573_v27, %v5570_v50  ;;  %v5579_v4 = vrot.slane %v5577_v60, 5  ;;  %v5591_v29 = vshll.u32 %v13152_v48, 16  ;;  %v5596_v6 = vshrl.u32 %v13153_v51, 16  ;;  %v13156_v27 = vld [vmem:[%s15590_s14 + $0xe4] sm:$0x1] }
 0x17b   : > { %v16387_v18 = vpop.f32.mrf.mxu1  ;;  %14498 = vmatmul.mubr.msk.bf16.gmra.mxu0 %vm1629_vm0, %v13182_v17  ;;  %v5561_v30 = vrot.slane %v5560_v44, 4  ;;  %v5584_v15 = vrot.slane %v5582_v14, 4  ;;  %v5599_v55 = vshll.u32 %v13153_v51, 16  ;;  %v5587_v24 = vrot.slane %v5585_v13, 5  ;;  %v2868_v17 = vpop.f32.mrf.mxu0  ;;  %v15022_v44 = vld [vmem:[%s15590_s14 + $0x230] ss:$8 sps:$4 sm:$0xff]  }
 0x17c   : > { %v5575_v7 = vrot.slane %v5574_v47, 4  ;;  %v5593_v33 = vrot.slane %v5591_v29, 5  ;;  %v5605_v5 = vshll.u32 %v13154_v49, 16  ;;  %v16394_v48 = vadd.f32 %v14299_v34, %v2096_v37  ;;  %v13158_v47 = vld [vmem:[%s15590_s14 + $0xec] sm:$0x1] }
 0x17d   : > { %v14269_v20 = vpop.f32.mrf.mxu1  ;;  %14472 = vmatmul.mubr.msk.bf16.gmra.mxu1 %vm1629_vm0, %v15020_v28  ;;  %v5566_v40 = vsel %vm15641_vm3, %v5561_v30, %v5565_v59  ;;  %v5598_v50 = vrot.slane %v5596_v6, 4  ;;  %v5601_v51 = vrot.slane %v5599_v55, 5  ;;  %v5588_v29 = vor.u32 %v5587_v24, %v5584_v15  ;;  %v13157_v59 = vld [vmem:[%s15590_s14 + $0xe8] sm:$0xf]  ;;  %v13159_v34 = vld [vmem:[%s15590_s14 + $0xf0] sm:$0xf] }
 0x17e   : > { %14475 = vmatprep.mubr.msk.bf16.mxu1 %vm1629_vm0, %v15021_v57  ;;  %v5580_v13 = vsel %vm15641_vm3, %v5575_v7, %v5579_v4  ;;  %v5607_v60 = vrot.slane %v5605_v5, 5  ;;  %v2088_v57 = vadd.f32 %v2087_v26, %v16117_v19  ;;  %v2099_v14 = vadd.f32 %v14266_v12, %v16121_v32  ;;  %v14300_v4 = vpop.f32.mrf.mxu0  ;;  %v13160_v24 = vld [vmem:[%s15590_s14 + $0xf4] sm:$0x1] }
 0x17f   : > { %v16398_v28 = vpop.f32.mrf.mxu1  ;;  %v13183_v37 = vcombine.low %v5566_v40, %v5580_v13  ;;  %v5602_v49 = vor.u32 %v5601_v51, %v5598_v50  ;;  %v5589_v6 = vrot.slane %v5588_v29, 4  ;;  %v5610_v15 = vshrl.u32 %v13155_v1, 16  ;;  %v13161_v50 = vld [vmem:[%s15590_s14 + $0xf8] sm:$0xf] }
 0x180   : > { %v16409_v55 = vadd.f32 %v2868_v17, %v2088_v57  ;;  %v5613_v7 = vshll.u32 %v13155_v1, 16  ;;  %v16414_v26 = vadd.f32 %v14300_v4, %v2099_v14  ;;  %v5619_v5 = vshll.u32 %v13156_v27, 16  ;;  %v16421_v51 = vpop.f32.mrf.mxu0 }
 0x181   : > { %v16407_v30 = vpop.f32.mrf.mxu1  ;;  %14501 = vmatprep.mubr.msk.bf16.mxu0 %vm1629_vm0, %v13183_v37  ;;  %v5603_v19 = vrot.slane %v5602_v49, 4  ;;  %v5624_v40 = vshrl.u32 %v13157_v59, 16  ;;  %v5594_v12 = vsel %vm15641_vm3, %v5589_v6, %v5593_v33  ;;  %19672 = vst [vmem:[#allocation16_spill] sm:$0xff] %v16421_v51  ;;  %v5612_v13 = vrot.slane %v5610_v15, 4  ;;  %v15023_v49 = vld [vmem:[%s19626_s3 + $0x18] sm:$0xff]  }
 0x182   : > { %v5615_v1 = vrot.slane %v5613_v7, 5  ;;  %v5627_v29 = vshll.u32 %v13157_v59, 16  ;;  %v5621_v17 = vrot.slane %v5619_v5, 5  ;;  %v5633_v4 = vshll.u32 %v13158_v47, 16  ;;  %v13162_v15 = vld [vmem:[%s15590_s14 + $0xfc] sm:$0x1]  ;;  %14513 = vmatprep.subr.bf16.mxu1 %v15023_v49 }
 0x183   : > { %v16417_v32 = vpop.f32.mrf.mxu1  ;;  %v5608_v57 = vsel %vm15641_vm3, %v5603_v19, %v5607_v60  ;;  %v5626_v37 = vrot.slane %v5624_v40, 4  ;;  %v2112_v59 = vadd.f32 %v14269_v20, %v16140_v62  ;;  %v5638_v7 = vshrl.u32 %v13159_v34, 16  ;;  %v13163_v19 = vld [vmem:[%s15590_s14 + $0x100] sm:$0xf]  ;;  %14514 = vmatpush3.bf16.msra.mxu1 %v15023_v49 }
 0x184   : > { %19671 = vst [vmem:[#allocation15_spill] sm:$0xff] %v16417_v32  ;;  %v13184_v33 = vcombine.low %v5594_v12, %v5608_v57  ;;  %v5616_v14 = vor.u32 %v5615_v1, %v5612_v13  ;;  %v5629_v6 = vrot.slane %v5627_v29, 5  ;;  %v5641_v51 = vshll.u32 %v13159_v34, 16  ;;  %v14303_v13 = vpop.f32.mrf.mxu0 }
 0x185   : > { %v16425_v27 = vpop.f32.mrf.mxu1  ;;  %14476 = vmatmul.mubr.msk.bf16.gmra.mxu1 %vm1629_vm0, %v15022_v44  ;;  %v5647_v60 = vshll.u32 %v13160_v24, 16  ;;  %v15024_v44 = vld [vmem:[%s19626_s3 + $0x8] sm:$0xff]   ;;  %v5635_v47 = vrot.slane %v5633_v4, 5  ;;  %v5652_v62 = vshrl.u32 %v13161_v50, 16  ;;  %v16440_v20 = vadd.f32 %v14303_v13, %v2112_v59  ;;  %v13164_v4 = vld [vmem:[%s15590_s14 + $0x104] sm:$0x1] }
 0x186   : > { %14502 = vmatmul.mubr.msk.bf16.gmra.mxu0 %vm1629_vm0, %v13184_v33  ;;  %v5617_v40 = vrot.slane %v5616_v14, 4  ;;  %v5630_v12 = vor.u32 %v5629_v6, %v5626_v37  ;;  %v5640_v34 = vrot.slane %v5638_v7, 4  ;;  %v5643_v24 = vrot.slane %v5641_v51, 5  ;;  %14549 = vmatprep.subr.bf16.mxu0 %v15024_v44  ;;  %v2884_v6 = vpop.f32.mrf.mxu0 }
 0x187   : > { %v16434_v5 = vpop.f32.mrf.mxu1  ;;  %v5649_v1 = vrot.slane %v5647_v60, 5  ;;  %v5654_v37 = vrot.slane %v5652_v62, 4  ;;  %v5655_v14 = vshll.u32 %v13161_v50, 16  ;;  %14550 = vmatpush3.bf16.msra.mxu0 %v15024_v44  ;;  %v5661_v59 = vshll.u32 %v13162_v15, 16  ;;  %v13166_v60 = vld [vmem:[%s15590_s14 + $0x10c] sm:$0x1] }
 0x188   : > { %v5622_v57 = vsel %vm15641_vm3, %v5617_v40, %v5621_v17  ;;  %v5631_v33 = vrot.slane %v5630_v12, 4  ;;  %v5644_v49 = vor.u32 %v5643_v24, %v5640_v34  ;;  %v2104_v51 = vadd.f32 %v16398_v28, %v16149_v8  ;;  %v14304_v50 = vpop.f32.mrf.mxu0  ;;  %v13167_v62 = vld [vmem:[%s15590_s14 + $0x110] sm:$0xf] }
 0x189   : > { %v16442_v29 = vpop.f32.mrf.mxu1  ;;  %v2115_v7 = vadd.f32 %v16407_v30, %v16162_v21  ;;  %v5657_v40 = vrot.slane %v5655_v14, 5  ;;  %v5666_v12 = vshrl.u32 %v13163_v19, 16  ;;  %v5663_v34 = vrot.slane %v5661_v59, 5  ;;  %v13169_v59 = vld [vmem:[%s15590_s14 + $0x118] sm:$0xf] }
 0x18a   : > { %v5636_v17 = vsel %vm15641_vm3, %v5631_v33, %v5635_v47  ;;  %v5645_v15 = vrot.slane %v5644_v49, 4  ;;  %v16458_v24 = vadd.f32 %v2884_v6, %v2104_v51  ;;  %v16462_v30 = vpop.f32.mrf.mxu0  ;;  %v5669_v47 = vshll.u32 %v13163_v19, 16  ;;  %v13168_v49 = vld [vmem:[%s15590_s14 + $0x114] sm:$0x1] }
 0x18b   : > { %v16453_v13 = vpop.f32.mrf.mxu1  ;;  %v13185_v44 = vcombine.low %v5622_v57, %v5636_v17  ;;  %v5658_v28 = vor.u32 %v5657_v40, %v5654_v37  ;;  %v16460_v21 = vadd.f32 %v14304_v50, %v2115_v7  ;;  %19674 = vst [vmem:[#allocation18_spill] sm:$0xff] %v16462_v30  ;;  %v5668_v2 = vrot.slane %v5666_v12, 4  ;;  %v13170_v7 = vld [vmem:[%s15590_s14 + $0x11c] sm:$0x1] }
 0x18c   : > { %19673 = vst [vmem:[#allocation17_spill] sm:$0xff] %v16453_v13  ;;  %v5650_v33 = vsel %vm15641_vm3, %v5645_v15, %v5649_v1  ;;  %v5675_v14 = vshll.u32 %v13164_v4, 16  ;;  %v5680_v57 = vshrl.u32 %v13165_v43, 16  ;;  %v5671_v17 = vrot.slane %v5669_v47, 5  ;;  %v14307_v13 = vpop.f32.mrf.mxu0 }
 0x18d   : > { %v14313_v8 = vpop.f32.mrf.mxu1  ;;  %14505 = vmatprep.mubr.msk.bf16.mxu0 %vm1629_vm0, %v13185_v44  ;;  %v5659_v51 = vrot.slane %v5658_v28, 4  ;;  %v5683_v37 = vshll.u32 %v13165_v43, 16  ;;  %v5689_v40 = vshll.u32 %v13166_v60, 16  ;;  %v2128_v19 = vadd.f32 %v16425_v27, %v16176_v61 }
 0x18e   : > { %v5677_v50 = vrot.slane %v5675_v14, 5  ;;  %v5682_v10 = vrot.slane %v5680_v57, 4  ;;  %v5694_v12 = vshrl.u32 %v13167_v62, 16  ;;  %v5672_v4 = vor.u32 %v5671_v17, %v5668_v2  ;;  %v2900_v27 = vpop.f32.mrf.mxu0 }
 0x18f   : > { %v3151_v6 = vpop.f32.mrf.mxu1  ;;  %v5664_v1 = vsel %vm15641_vm3, %v5659_v51, %v5663_v34  ;;  %v5685_v15 = vrot.slane %v5683_v37, 5  ;;  %v5691_v30 = vrot.slane %v5689_v40, 5  ;;  %v16474_v28 = vadd.f32 %v14307_v13, %v2128_v19 }
 0x190   : > { %v13186_v0 = vcombine.low %v5650_v33, %v5664_v1  ;;  %v5696_v43 = vrot.slane %v5694_v12, 4  ;;  %v5697_v60 = vshll.u32 %v13167_v62, 16  ;;  %v5673_v14 = vrot.slane %v5672_v4, 4  ;;  %v14308_v40 = vpop.f32.mrf.mxu0 }
 0x191   : > { %v14314_v44 = vpop.f32.mrf.mxu1  ;;  %v5686_v57 = vor.u32 %v5685_v15, %v5682_v10  ;;  %v5703_v32 = vshll.u32 %v13168_v49, 16  ;;  %v5708_v61 = vshrl.u32 %v13169_v59, 16  ;;  %v5711_v34 = vshll.u32 %v13169_v59, 16 }
 0x192   : > { %14506 = vmatmul.mubr.msk.bf16.gmra.mxu0 %vm1629_vm0, %v13186_v0  ;;  %v5699_v41 = vrot.slane %v5697_v60, 5  ;;  %v5717_v2 = vshll.u32 %v13170_v7, 16  ;;  %v2120_v51 = vadd.f32 %v16434_v5, %v16189_v16  ;;  %v5678_v13 = vsel %vm15641_vm3, %v5673_v14, %v5677_v50  ;;  %v16489_v5 = vpop.f32.mrf.mxu0 }
 0x193   : > { %v16476_v47 = vpop.f32.mrf.mxu1  ;;  %v5687_v62 = vrot.slane %v5686_v57, 4  ;;  %v5705_v17 = vrot.slane %v5703_v32, 5  ;;  %v5710_v37 = vrot.slane %v5708_v61, 4  ;;  %v5713_v49 = vrot.slane %v5711_v34, 5 }
 0x194   : > { %v5700_v10 = vor.u32 %v5699_v41, %v5696_v43  ;;  %v5719_v19 = vrot.slane %v5717_v2, 5  ;;  %v16483_v12 = vadd.f32 %v2900_v27, %v2120_v51  ;;  %v2131_v16 = vadd.f32 %v16442_v29, %v16196_v31  ;;  %v14347_v43 = vpop.f32.mrf.mxu0  ;;  %v6119_v51 = vld [vmem:[#allocation2 + $0x18] sm:$0x1] }
 0x195   : > { %v14317_v33 = vpop.f32.mrf.mxu1  ;;  %v5692_v59 = vsel %vm15641_vm3, %v5687_v62, %v5691_v30  ;;  %v3280_v7 = vadd.f32 %v14313_v8, %v16224_v52  ;;  %v5714_v1 = vor.u32 %v5713_v49, %v5710_v37  ;;  %v3278_v41 = vadd.f32 %v3151_v6, %v16234_v9 }
 0x196   : > { %v13187_v50 = vcombine.low %v5678_v13, %v5692_v59  ;;  %v5701_v32 = vrot.slane %v5700_v10, 4  ;;  %v16493_v15 = vadd.f32 %v14308_v40, %v2131_v16  ;;  %v3281_v60 = vadd.f32 %v14314_v44, %v16240_v45  ;;  %v3514_v14 = vpop.f32.mrf.mxu0  ;;  %v6217_v13 = vld [vmem:[#allocation2 + $0x1c] sm:$0x1] }
 0x197   : > { %v3167_v0 = vpop.f32.mrf.mxu1  ;;  %v5715_v29 = vrot.slane %v5714_v1, 4  ;;  %v16499_v30 = vadd.f32 %v14347_v43, %v3280_v7  ;;  %v3284_v52 = vadd.f32 %v14317_v33, %v16260_v46  ;;  %v16508_v44 = vadd.f32 %v3514_v14, %v3278_v41 }
 0x198   : > { %14509 = vmatprep.mubr.msk.bf16.mxu0 %vm1629_vm0, %v13187_v50  ;;  %v5706_v31 = vsel %vm15641_vm3, %v5701_v32, %v5705_v17  ;;  %v3282_v9 = vadd.f32 %v3167_v0, %v16270_v11  ;;  %v14348_v27 = vpop.f32.mrf.mxu0  ;;  %v6120_v62 = vsel %vm16518_vm6, 0, %v6119_v51  ;;  %v6218_v40 = vsel %vm16526_vm8, 0, %v6217_v13 }
 0x199   : > { %v14318_v4 = vpop.f32.mrf.mxu1  ;;  %v5720_v45 = vsel %vm15641_vm3, %v5715_v29, %v5719_v19  ;;  %v16511_v2 = vadd.f32 %v14348_v27, %v3281_v60  ;;  %6121 = vst [vmem:[#allocation2 + $0x18] sm:$0x1] %v6120_v62  ;;  %6219 = vst [vmem:[#allocation2 + $0x1c] sm:$0x1] %v6218_v40  ;;  %v19680_v32 = vmov 0 }
 0x19a   : > { %v3285_v6 = vadd.f32 %v14318_v4, %v16278_v3  ;;  %v13188_v61 = vcombine.low %v5706_v31, %v5720_v45  ;;  %v16514_v11 = vpop.f32.mrf.mxu0  ;;  %v19681_v32 = vsel %vm16544_vm10, 4294967295, %v19680_v32  ;;  %v6113_v31 = vld [vmem:[#allocation2 + $0x8] sm:$0x1]  ;;  %v6211_v29 = vld [vmem:[#allocation2 + $0xc] sm:$0x1] }
 0x19b   : > { %v16502_v8 = vpop.f32.mrf.mxu1  ;;  %19682 = vst [vmem:[#allocation20_spill] sm:$0xff] %v19681_v32  ;;  %v6114_v14 = vsel %vm16518_vm6, 0, %v6113_v31  ;;  %v6220_v45 = vld [vmem:[#allocation2 + $0x24] sm:$0x1]  ;;  %v6214_v62 = vld [vmem:[#allocation2 + $0x14] sm:$0x1] }
 0x19c   : > { %14510 = vmatmul.mubr.msk.bf16.gmra.mxu0 %vm1629_vm0, %v13188_v61  ;;  %v14351_v37 = vpop.f32.mrf.mxu0  ;;  %6115 = vst [vmem:[#allocation2 + $0x8] sm:$0x1] %v6114_v14  ;;  %v6221_v27 = vsel %vm16526_vm8, 0, %v6220_v45  ;;  %v6125_v14 = vld [vmem:[#allocation2 + $0x28] sm:$0x1] }
 0x19d   : > { %v14321_v57 = vpop.f32.mrf.mxu1  ;;  %v16533_v10 = vadd.f32 %v14351_v37, %v3284_v52  ;;  %6222 = vst [vmem:[#allocation2 + $0x24] sm:$0x1] %v6221_v27  ;;  %v6134_v27 = vld [vmem:[#allocation2 + $0x40] sm:$0x1] }
 0x19e   : > { %v3288_v34 = vadd.f32 %v14321_v57, %v16296_v25  ;;  %v3530_v19 = vpop.f32.mrf.mxu0 }
 0x19f   : > { %v3183_v46 = vpop.f32.mrf.mxu1  ;;  %v16537_v0 = vadd.f32 %v3530_v19, %v3282_v9  ;;  %v6212_v9 = vsel %vm16526_vm8, 0, %v6211_v29  ;;  %v6215_v19 = vsel %vm16526_vm8, 0, %v6214_v62 }
 0x1a0   : > { %v3286_v3 = vadd.f32 %v3183_v46, %v16304_v35  ;;  %v14352_v16 = vpop.f32.mrf.mxu0  ;;  %6213 = vst [vmem:[#allocation2 + $0xc] sm:$0x1] %v6212_v9  ;;  %6216 = vst [vmem:[#allocation2 + $0x14] sm:$0x1] %v6215_v19  ;;  %v6223_v9 = vld [vmem:[#allocation2 + $0x2c] sm:$0x1] }
 0x1a1   : > { %v14322_v25 = vpop.f32.mrf.mxu1  ;;  %19679 = vst [vmem:[#allocation19_spill] sm:$0xff] %v16537_v0  ;;  %v16540_v50 = vadd.f32 %v14352_v16, %v3285_v6  ;;  %v6224_v45 = vsel %vm16526_vm8, 0, %v6223_v9  ;;  %v15185_v9 = vmov 0  }
 0x1a2   : > { %v3289_v35 = vadd.f32 %v14322_v25, %v16309_v36  ;;  %v16548_v1 = vpop.f32.mrf.mxu0  ;;  %v6116_v25 = vld [vmem:[#allocation2 + $0x10] sm:$0x1]  ;;  %6225 = vst [vmem:[#allocation2 + $0x2c] sm:$0x1] %v6224_v45  ;;  %6091 = vst.msk [vmem:[#allocation2] sm:$0xf] %vm6090_vm9, %v15185_v9 }
 0x1a3   : > { %v16535_v49 = vpop.f32.mrf.mxu1  ;;  %v6117_v40 = vsel %vm16518_vm6, 0, %v6116_v25  ;;  %v6135_v25 = vsel %vm16518_vm6, 0, %v6134_v27  ;;  %6093 = vst.msk [vmem:[#allocation2 + $0x4] sm:$0x1] %vm6092_vm4, %v15185_v9  ;;  %6095 = vst.msk [vmem:[#allocation2 + $0x54] sm:$0x1] %vm6092_vm4, %v15185_v9 }
 0x1a4   : > { %v14355_v43 = vpop.f32.mrf.mxu0  ;;  %6118 = vst [vmem:[#allocation2 + $0x10] sm:$0x1] %v6117_v40  ;;  %6136 = vst [vmem:[#allocation2 + $0x40] sm:$0x1] %v6135_v25 }
 0x1a5   : > { %v14325_v59 = vpop.f32.mrf.mxu1  ;;  %6094 = vst.msk [vmem:[#allocation2 + $0x50] sm:$0xf] %vm6090_vm9, %v15185_v9  ;;  %6096 = vst.msk [vmem:[#allocation2 + $0xa0] sm:$0xf] %vm6090_vm9, %v15185_v9 }
 0x1a6   : > { %v3292_v7 = vadd.f32 %v14325_v59, %v16329_v23  ;;  %v16552_v23 = vadd.f32 %v14355_v43, %v3288_v34  ;;  %v3546_v6 = vpop.f32.mrf.mxu0  ;;  %6097 = vst.msk [vmem:[#allocation2 + $0xa4] sm:$0x1] %vm6092_vm4, %v15185_v9  ;;  %6099 = vst.msk [vmem:[#allocation2 + $0xf4] sm:$0x1] %vm6092_vm4, %v15185_v9 }
 0x1a7   : > { %v3199_v36 = vpop.f32.mrf.mxu1  ;;  %v16560_v57 = vadd.f32 %v3546_v6, %v3286_v3  ;;  %6098 = vst.msk [vmem:[#allocation2 + $0xf0] sm:$0xf] %vm6090_vm9, %v15185_v9  ;;  %6101 = vst.msk [vmem:[#allocation2 + $0x48] sm:$0xf] %vm6090_vm9, %v15185_v9 }
 0x1a8   : > { %v3290_v41 = vadd.f32 %v3199_v36, %v16336_v54  ;;  %v6122_v54 = vld [vmem:[#allocation2 + $0x20] sm:$0x1]  ;;  %v14356_v34 = vpop.f32.mrf.mxu0  ;;  %6102 = vst.msk [vmem:[#allocation2 + $0x4c] sm:$0x1] %vm6092_vm4, %v15185_v9  ;;  %6104 = vst.msk [vmem:[#allocation2 + $0x9c] sm:$0x1] %vm6092_vm4, %v15185_v9 }
 0x1a9   : > { %v14326_v4 = vpop.f32.mrf.mxu1  ;;  %v6123_v61 = vsel %vm16518_vm6, 0, %v6122_v54  ;;  %v16567_v51 = vadd.f32 %v14356_v34, %v3289_v35  ;;  %v6229_v35 = vld [vmem:[#allocation2 + $0x3c] sm:$0x1]  ;;  %6103 = vst.msk [vmem:[#allocation2 + $0x98] sm:$0xf] %vm6090_vm9, %v15185_v9 }
 0x1aa   : > { %v3293_v60 = vadd.f32 %v14326_v4, %v16344_v39  ;;  %6124 = vst [vmem:[#allocation2 + $0x20] sm:$0x1] %v6123_v61  ;;  %v16569_v37 = vpop.f32.mrf.mxu0  ;;  %v15025_v61 = vld [vmem:[%s19626_s3 + $0x10] sm:$0xff]   ;;  %6105 = vst.msk [vmem:[#allocation2 + $0xe8] sm:$0xf] %vm6090_vm9, %v15185_v9 }
 0x1ab   : > { %v16554_v52 = vpop.f32.mrf.mxu1  ;;  %14515 = vmatprep.subr.bf16.mxu1 %v15025_v61  ;;  %6106 = vst.msk [vmem:[#allocation2 + $0xec] sm:$0x1] %vm6092_vm4, %v15185_v9  ;;  %6108 = vst.msk [vmem:[#allocation2 + $0x13c] sm:$0x1] %vm6092_vm4, %v15185_v9 }
 0x1ac   : > { %v14359_v16 = vpop.f32.mrf.mxu0  ;;  %14516 = vmatpush3.bf16.msra.mxu1 %v15025_v61  ;;  %6107 = vst.msk [vmem:[#allocation2 + $0x138] sm:$0xf] %vm6090_vm9, %v15185_v9  ;;  %v6241_v61 = vld [vmem:[#allocation2 + $0x6c] sm:$0x1] }
 0x1ad   : > { %v14329_v39 = vpop.f32.mrf.mxu1  ;;  %v16585_v43 = vadd.f32 %v14359_v16, %v3292_v7  ;;  %v15026_v16 = vld [vmem:[%s19626_s3] sm:$0xff]  }
 0x1ae   : > { %v3296_v46 = vadd.f32 %v14329_v39, %v16363_v38  ;;  %v6131_v38 = vld [vmem:[#allocation2 + $0x38] sm:$0x1]  ;;  %v3562_v29 = vpop.f32.mrf.mxu0  ;;  %14551 = vmatprep.subr.bf16.mxu0 %v15026_v16 }
 0x1af   : > { %v3215_v13 = vpop.f32.mrf.mxu1  ;;  %v6132_v4 = vsel %vm16518_vm6, 0, %v6131_v38  ;;  %v16589_v6 = vadd.f32 %v3562_v29, %v3290_v41  ;;  %v6232_v41 = vld [vmem:[#allocation2 + $0x44] sm:$0x1]  ;;  %14552 = vmatpush3.bf16.msra.mxu0 %v15026_v16 }
 0x1b0   : > { %v16572_v3 = vadd.f32 %v3215_v13, %v16370_v22  ;;  %v6230_v22 = vsel %vm16526_vm8, 0, %v6229_v35  ;;  %6133 = vst [vmem:[#allocation2 + $0x38] sm:$0x1] %v6132_v4  ;;  %v14360_v39 = vpop.f32.mrf.mxu0  ;;  %v6233_v62 = vsel %vm16526_vm8, 0, %v6232_v41  ;;  %v6128_v4 = vld [vmem:[#allocation2 + $0x30] sm:$0x1] }
 0x1b1   : > { %v14330_v59 = vpop.f32.mrf.mxu1  ;;  %6231 = vst [vmem:[#allocation2 + $0x3c] sm:$0x1] %v6230_v22  ;;  %v16601_v34 = vadd.f32 %v14360_v39, %v3293_v60  ;;  %6234 = vst [vmem:[#allocation2 + $0x44] sm:$0x1] %v6233_v62  ;;  %v6129_v29 = vsel %vm16518_vm6, 0, %v6128_v4 }
 0x1b2   : > { %v16579_v36 = vadd.f32 %v14330_v59, %v16376_v58  ;;  %v6126_v58 = vsel %vm16518_vm6, 0, %v6125_v14  ;;  %v16607_v40 = vpop.f32.mrf.mxu0  ;;  %6130 = vst [vmem:[#allocation2 + $0x30] sm:$0x1] %v6129_v29  ;;  %v6137_v62 = vld [vmem:[#allocation2 + $0x58] sm:$0x1] }
 0x1b3   : > { %v16587_v31 = vpop.f32.mrf.mxu1  ;;  %6127 = vst [vmem:[#allocation2 + $0x28] sm:$0x1] %v6126_v58 }
 0x1b4   : > { %v14363_v59 = vpop.f32.mrf.mxu0 }
 0x1b5   : > { %v14333_v54 = vpop.f32.mrf.mxu1  ;;  %v16615_v38 = vadd.f32 %v14363_v59, %v3296_v46  ;;  %v6138_v59 = vsel %vm16518_vm6, 0, %v6137_v62 }
 0x1b6   : > { %v16596_v7 = vadd.f32 %v14333_v54, %v16394_v48  ;;  %v3578_v22 = vpop.f32.mrf.mxu0  ;;  %v6143_v54 = vld [vmem:[#allocation2 + $0x68] sm:$0x1]  ;;  %6139 = vst [vmem:[#allocation2 + $0x58] sm:$0x1] %v6138_v59  ;;  %v6253_v59 = vld [vmem:[#allocation2 + $0x8c] sm:$0x1] }
 0x1b7   : > { %v3231_v13 = vpop.f32.mrf.mxu1  ;;  %v6144_v39 = vsel %vm16518_vm6, 0, %v6143_v54  ;;  %v6238_v54 = vld [vmem:[#allocation2 + $0x64] sm:$0x1] }
 0x1b8   : > { %v16610_v48 = vadd.f32 %v3231_v13, %v16409_v55  ;;  %v6226_v55 = vld [vmem:[#allocation2 + $0x34] sm:$0x1]  ;;  %v14364_v58 = vpop.f32.mrf.mxu0  ;;  %6145 = vst [vmem:[#allocation2 + $0x68] sm:$0x1] %v6144_v39 }
 0x1b9   : > { %v14334_v19 = vpop.f32.mrf.mxu1  ;;  %v6227_v14 = vsel %vm16526_vm8, 0, %v6226_v55  ;;  %v16649_v27 = vadd.f32 %v14364_v58, %v16579_v36  ;;  %v6146_v55 = vld [vmem:[#allocation2 + $0x70] sm:$0x1] }
 0x1ba   : > { %v16613_v60 = vadd.f32 %v14334_v19, %v16414_v26  ;;  %v16643_v26 = vadd.f32 %v3578_v22, %v16572_v3  ;;  %6228 = vst [vmem:[#allocation2 + $0x34] sm:$0x1] %v6227_v14  ;;  %v6242_v3 = vsel %vm16526_vm8, 0, %v6241_v61  ;;  %v16653_v13 = vpop.f32.mrf.mxu0  ;;  %v6244_v22 = vld [vmem:[#allocation2 + $0x74] sm:$0x1]  ;;  %v6147_v14 = vsel %vm16518_vm6, 0, %v6146_v55 }
 0x1bb   : > { %v16617_v35 = vpop.f32.mrf.mxu1  ;;  %6243 = vst [vmem:[#allocation2 + $0x6c] sm:$0x1] %v6242_v3  ;;  %v6245_v9 = vsel %vm16526_vm8, 0, %v6244_v22  ;;  %6148 = vst [vmem:[#allocation2 + $0x70] sm:$0x1] %v6147_v14  ;;  %v6254_v55 = vsel %vm16526_vm8, 0, %v6253_v59 }
 0x1bc   : > { %v14367_v16 = vpop.f32.mrf.mxu0  ;;  %6246 = vst [vmem:[#allocation2 + $0x74] sm:$0x1] %v6245_v9  ;;  %6255 = vst [vmem:[#allocation2 + $0x8c] sm:$0x1] %v6254_v55  ;;  %v6250_v55 = vld [vmem:[#allocation2 + $0x84] sm:$0x1] }
 0x1bd   : > { %v14337_v46 = vpop.f32.mrf.mxu1  ;;  %v16662_v29 = vadd.f32 %v14367_v16, %v16596_v7  ;;  %v6239_v7 = vsel %vm16526_vm8, 0, %v6238_v54 }
 0x1be   : > { %v3304_v45 = vadd.f32 %v14337_v46, %v16440_v20  ;;  %v6235_v20 = vld [vmem:[#allocation2 + $0x5c] sm:$0x1]  ;;  %v6140_v46 = vld [vmem:[#allocation2 + $0x60] sm:$0x1]  ;;  %v3594_v58 = vpop.f32.mrf.mxu0  ;;  %6240 = vst [vmem:[#allocation2 + $0x64] sm:$0x1] %v6239_v7 }
 0x1bf   : > { %v3247_v41 = vpop.f32.mrf.mxu1  ;;  %v6236_v36 = vsel %vm16526_vm8, 0, %v6235_v20  ;;  %v16675_v39 = vadd.f32 %v3594_v58, %v16610_v48  ;;  %v6158_v7 = vld [vmem:[#allocation2 + $0x90] sm:$0x1] }
 0x1c0   : > { %v3302_v25 = vadd.f32 %v3247_v41, %v16458_v24  ;;  %6237 = vst [vmem:[#allocation2 + $0x5c] sm:$0x1] %v6236_v36  ;;  %v14368_v41 = vpop.f32.mrf.mxu0 }
 0x1c1   : > { %v14338_v19 = vpop.f32.mrf.mxu1  ;;  %v16679_v62 = vadd.f32 %v14368_v41, %v16613_v60 }
 0x1c2   : > { %v3305_v4 = vadd.f32 %v14338_v19, %v16460_v21  ;;  %v6141_v21 = vsel %vm16518_vm6, 0, %v6140_v46  ;;  %v6155_v19 = vld [vmem:[#allocation2 + $0x88] sm:$0x1]  ;;  %v16681_v36 = vpop.f32.mrf.mxu0  ;;  %v6247_v46 = vld [vmem:[#allocation2 + $0x7c] sm:$0x1] }
 0x1c3   : > { %v16664_v24 = vpop.f32.mrf.mxu1  ;;  %6142 = vst [vmem:[#allocation2 + $0x60] sm:$0x1] %v6141_v21  ;;  %v6156_v48 = vsel %vm16518_vm6, 0, %v6155_v19  ;;  %v6248_v58 = vsel %vm16526_vm8, 0, %v6247_v46  ;;  %v6152_v19 = vld [vmem:[#allocation2 + $0x80] sm:$0x1] }
 0x1c4   : > { %6157 = vst [vmem:[#allocation2 + $0x88] sm:$0x1] %v6156_v48  ;;  %v14371_v14 = vpop.f32.mrf.mxu0  ;;  %6249 = vst [vmem:[#allocation2 + $0x7c] sm:$0x1] %v6248_v58  ;;  %v6153_v48 = vsel %vm16518_vm6, 0, %v6152_v19 }
 0x1c5   : > { %v14341_v61 = vpop.f32.mrf.mxu1  ;;  %v16691_v54 = vadd.f32 %v14371_v14, %v3304_v45  ;;  %6154 = vst [vmem:[#allocation2 + $0x80] sm:$0x1] %v6153_v48  ;;  %v6161_v48 = vld [vmem:[#allocation2 + $0xa8] sm:$0x1] }
 0x1c6   : > { %v3308_v3 = vadd.f32 %v14341_v61, %v16474_v28  ;;  %v6149_v28 = vld [vmem:[#allocation2 + $0x78] sm:$0x1]  ;;  %v3610_v21 = vpop.f32.mrf.mxu0 }
 0x1c7   : > { %v3263_v20 = vpop.f32.mrf.mxu1  ;;  %v6150_v9 = vsel %vm16518_vm6, 0, %v6149_v28  ;;  %v16697_v61 = vadd.f32 %v3610_v21, %v3302_v25  ;;  %v6251_v28 = vsel %vm16526_vm8, 0, %v6250_v55 }
 0x1c8   : > { %v3306_v16 = vadd.f32 %v3263_v20, %v16483_v12  ;;  %6151 = vst [vmem:[#allocation2 + $0x78] sm:$0x1] %v6150_v9  ;;  %v6256_v20 = vld [vmem:[#allocation2 + $0x94] sm:$0x1]  ;;  %v14372_v45 = vpop.f32.mrf.mxu0  ;;  %6252 = vst [vmem:[#allocation2 + $0x84] sm:$0x1] %v6251_v28 }
 0x1c9   : > { %v14342_v22 = vpop.f32.mrf.mxu1  ;;  %v6257_v59 = vsel %vm16526_vm8, 0, %v6256_v20  ;;  %v6162_v28 = vsel %vm16518_vm6, 0, %v6161_v48  ;;  %v6170_v48 = vld [vmem:[#allocation2 + $0xc0] sm:$0x1] }
 0x1ca   : > { %v3309_v60 = vadd.f32 %v14342_v22, %v16493_v15  ;;  %v6159_v15 = vsel %vm16518_vm6, 0, %v6158_v7  ;;  %v16707_v22 = vadd.f32 %v14372_v45, %v3305_v4  ;;  %6258 = vst [vmem:[#allocation2 + $0x94] sm:$0x1] %v6257_v59  ;;  %v16713_v14 = vpop.f32.mrf.mxu0  ;;  %v6167_v7 = vld [vmem:[#allocation2 + $0xb8] sm:$0x1] }
 0x1cb   : > { %v16693_v12 = vpop.f32.mrf.mxu1  ;;  %6160 = vst [vmem:[#allocation2 + $0x90] sm:$0x1] %v6159_v15  ;;  %v6265_v4 = vld [vmem:[#allocation2 + $0xbc] sm:$0x1]  ;;  %v6168_v20 = vsel %vm16518_vm6, 0, %v6167_v7 }
 0x1cc   : > { %v14375_v46 = vpop.f32.mrf.mxu0  ;;  %v6266_v19 = vsel %vm16526_vm8, 0, %v6265_v4  ;;  %6169 = vst [vmem:[#allocation2 + $0xb8] sm:$0x1] %v6168_v20  ;;  %6163 = vst [vmem:[#allocation2 + $0xa8] sm:$0x1] %v6162_v28 }
 0x1cd   : > { %v16699_v41 = vpop.f32.mrf.mxu1  ;;  %v16717_v58 = vadd.f32 %v14375_v46, %v3308_v3  ;;  %6267 = vst [vmem:[#allocation2 + $0xbc] sm:$0x1] %v6266_v19  ;;  %v6259_v3 = vld [vmem:[#allocation2 + $0xac] sm:$0x1] }
 0x1ce   : > { %v3626_v15 = vpop.f32.mrf.mxu0  ;;  %v6260_v46 = vsel %vm16526_vm8, 0, %v6259_v3  ;;  %v6268_v3 = vld [vmem:[#allocation2 + $0xc4] sm:$0x1] }
 0x1cf   : > { %v16709_v25 = vpop.f32.mrf.mxu1  ;;  %v16725_v45 = vadd.f32 %v3626_v15, %v3306_v16  ;;  %6261 = vst [vmem:[#allocation2 + $0xac] sm:$0x1] %v6260_v46  ;;  %v6269_v46 = vsel %vm16526_vm8, 0, %v6268_v3 }
 0x1d0   : > { %v14376_v55 = vpop.f32.mrf.mxu0  ;;  %6270 = vst [vmem:[#allocation2 + $0xc4] sm:$0x1] %v6269_v46 }
 0x1d1   : > { %v16715_v9 = vpop.f32.mrf.mxu1  ;;  %v16733_v32 = vadd.f32 %v14376_v55, %v3309_v60  ;;  %v6171_v60 = vsel %vm16518_vm6, 0, %v6170_v48 }
 0x1d2   : > { %v16737_v16 = vpop.f32.mrf.mxu0  ;;  %6172 = vst [vmem:[#allocation2 + $0xc0] sm:$0x1] %v6171_v60  ;;  %v6262_v60 = vld [vmem:[#allocation2 + $0xb4] sm:$0x1] }
 0x1d3   : > { %v16719_v21 = vpop.f32.mrf.mxu1  ;;  %19684 = vst [vmem:[#allocation22_spill] sm:$0xff] %v16737_v16 }
 0x1d4   : > { %v16739_v15 = vpop.f32.mrf.mxu0 }
 0x1d5   : > { %v16727_v59 = vpop.f32.mrf.mxu1  ;;  %19685 = vst [vmem:[#allocation23_spill] sm:$0xff] %v16739_v15 }
 0x1d6   : > { %v16744_v56 = vpop.f32.mrf.mxu0 }
 0x1d7   : > { %v16735_v7 = vpop.f32.mrf.mxu1  ;;  %19687 = vst [vmem:[#allocation25_spill] sm:$0xff] %v16744_v56 }
 0x1d8   : > { %19683 = vst [vmem:[#allocation21_spill] sm:$0xff] %v16735_v7  ;;  %v16748_v55 = vpop.f32.mrf.mxu0 }
 0x1d9   : > { %v14386_v4 = vpop.f32.mrf.mxu1  ;;  %19688 = vst [vmem:[#allocation26_spill] sm:$0xff] %v16748_v55 }
 0x1da   : > { %v4458_v20 = vadd.f32 %v14386_v4, %v16540_v50  ;;  %v16753_v50 = vpop.f32.mrf.mxu0 }
 0x1db   : > { %v16742_v19 = vpop.f32.mrf.mxu1 }
 0x1dc   : > { %19686 = vst [vmem:[#allocation24_spill] sm:$0xff] %v16742_v19  ;;  %v16756_v56 = vpop.f32.mrf.mxu0 }
 0x1dd   : > { %v14389_v0 = vpop.f32.mrf.mxu1  ;;  %19689 = vst [vmem:[#allocation27_spill] sm:$0xff] %v16756_v56 }
 0x1de   : > { %v4461_v28 = vadd.f32 %v14389_v0, %v16552_v23  ;;  %v16761_v55 = vpop.f32.mrf.mxu0  ;;  %v6164_v23 = vld [vmem:[#allocation2 + $0xb0] sm:$0x1] }
 0x1df   : > { %v4356_v15 = vpop.f32.mrf.mxu1  ;;  %19691 = vst [vmem:[#allocation29_spill] sm:$0xff] %v16761_v55  ;;  %v6165_v46 = vsel %vm16518_vm6, 0, %v6164_v23 }
 0x1e0   : > { %v4459_v4 = vadd.f32 %v4356_v15, %v16560_v57  ;;  %v14420_v7 = vpop.f32.mrf.mxu0  ;;  %v6263_v57 = vsel %vm16526_vm8, 0, %v6262_v60  ;;  %6166 = vst [vmem:[#allocation2 + $0xb0] sm:$0x1] %v6165_v46 }
 0x1e1   : > { %v14390_v19 = vpop.f32.mrf.mxu1  ;;  %v16768_v15 = vadd.f32 %v14420_v7, %v4458_v20  ;;  %6264 = vst [vmem:[#allocation2 + $0xb4] sm:$0x1] %v6263_v57 }
 0x1e2   : > { %v4462_v48 = vadd.f32 %v14390_v19, %v16567_v51  ;;  %v6179_v51 = vld [vmem:[#allocation2 + $0xd8] sm:$0x1]  ;;  %v6277_v19 = vld [vmem:[#allocation2 + $0xdc] sm:$0x1]  ;;  %v16770_v55 = vpop.f32.mrf.mxu0 }
 0x1e3   : > { %v16759_v16 = vpop.f32.mrf.mxu1  ;;  %19692 = vst [vmem:[#allocation30_spill] sm:$0xff] %v16768_v15  ;;  %19693 = vst [vmem:[#allocation31_spill] sm:$0xff] %v16770_v55  ;;  %v6173_v15 = vld [vmem:[#allocation2 + $0xc8] sm:$0x1]  ;;  %v6271_v55 = vld [vmem:[#allocation2 + $0xcc] sm:$0x1] }
 0x1e4   : > { %19690 = vst [vmem:[#allocation28_spill] sm:$0xff] %v16759_v16  ;;  %v14423_v7 = vpop.f32.mrf.mxu0 }
 0x1e5   : > { %v14393_v0 = vpop.f32.mrf.mxu1  ;;  %v16778_v60 = vadd.f32 %v14423_v7, %v4461_v28 }
 0x1e6   : > { %v4465_v3 = vadd.f32 %v14393_v0, %v16585_v43  ;;  %v6180_v43 = vsel %vm16518_vm6, 0, %v6179_v51  ;;  %v6278_v0 = vsel %vm16526_vm8, 0, %v6277_v19  ;;  %v4719_v57 = vpop.f32.mrf.mxu0  ;;  %v6174_v51 = vsel %vm16518_vm6, 0, %v6173_v15  ;;  %v6182_v15 = vld [vmem:[#allocation2 + $0xe0] sm:$0x1] }
 0x1e7   : > { %v4372_v56 = vpop.f32.mrf.mxu1  ;;  %6181 = vst [vmem:[#allocation2 + $0xd8] sm:$0x1] %v6180_v43  ;;  %6279 = vst [vmem:[#allocation2 + $0xdc] sm:$0x1] %v6278_v0  ;;  %v6272_v19 = vsel %vm16526_vm8, 0, %v6271_v55  ;;  %v6183_v55 = vsel %vm16518_vm6, 0, %v6182_v15 }
 0x1e8   : > { %v4463_v16 = vadd.f32 %v4372_v56, %v16589_v6  ;;  %19694 = vst [vmem:[#allocation32_spill] sm:$0xff] %v16778_v60  ;;  %v16782_v56 = vadd.f32 %v4719_v57, %v4459_v4  ;;  %v14424_v43 = vpop.f32.mrf.mxu0  ;;  %6175 = vst [vmem:[#allocation2 + $0xc8] sm:$0x1] %v6174_v51 }
 0x1e9   : > { %v14394_v23 = vpop.f32.mrf.mxu1  ;;  %6273 = vst [vmem:[#allocation2 + $0xcc] sm:$0x1] %v6272_v19  ;;  %v16792_v28 = vadd.f32 %v14424_v43, %v4462_v48  ;;  %6184 = vst [vmem:[#allocation2 + $0xe0] sm:$0x1] %v6183_v55 }
 0x1ea   : > { %v4466_v20 = vadd.f32 %v14394_v23, %v16601_v34  ;;  %19695 = vst [vmem:[#allocation33_spill] sm:$0xff] %v16782_v56  ;;  %v15031_v34 = vld [vmem:[%s19626_s3 + $0x28] sm:$0xff]   ;;  %v16794_v23 = vpop.f32.mrf.mxu0 }
 0x1eb   : > { %v16780_v46 = vpop.f32.mrf.mxu1  ;;  %19696 = vst [vmem:[#allocation34_spill] sm:$0xff] %v16792_v28  ;;  %14585 = vmatprep.subr.bf16.mxu1 %v15031_v34 }
 0x1ed   : > { %v14397_v6 = vpop.f32.mrf.mxu1 }
 0x1ee   : > { %v4469_v0 = vadd.f32 %v14397_v6, %v16615_v38  ;;  %v6280_v38 = vld [vmem:[#allocation2 + $0xe4] sm:$0x1]  ;;  %v14427_v6 = vpop.f32.mrf.mxu0 }
 0x1ef   : > { %v4388_v4 = vpop.f32.mrf.mxu1  ;;  %v6281_v48 = vsel %vm16526_vm8, 0, %v6280_v38  ;;  %v16802_v19 = vadd.f32 %v14427_v6, %v4465_v3  ;;  %v15032_v3 = vld [vmem:[%s19626_s3 + $0x38] sm:$0xff]   ;;  %v6176_v38 = vld [vmem:[#allocation2 + $0xd0] sm:$0x1] }
 0x1f0   : > { %v4467_v7 = vadd.f32 %v4388_v4, %v16643_v26  ;;  %6282 = vst [vmem:[#allocation2 + $0xe4] sm:$0x1] %v6281_v48  ;;  %v4735_v26 = vpop.f32.mrf.mxu0  ;;  %v6177_v48 = vsel %vm16518_vm6, 0, %v6176_v38  ;;  %14621 = vmatprep.subr.bf16.mxu0 %v15032_v3 }
 0x1f1   : > { %v14398_v57 = vpop.f32.mrf.mxu1  ;;  %19697 = vst [vmem:[#allocation35_spill] sm:$0xff] %v16802_v19  ;;  %v16806_v34 = vadd.f32 %v4735_v26, %v4463_v16  ;;  %6178 = vst [vmem:[#allocation2 + $0xd0] sm:$0x1] %v6177_v48  ;;  %v19711_v19 = vld [vmem:[#allocation10_spill] sm:$0xff] }
 0x1f2   : > { %v4470_v51 = vadd.f32 %v14398_v57, %v16649_v27  ;;  %v14428_v28 = vpop.f32.mrf.mxu0 }
 0x1f3   : > { %v16804_v43 = vpop.f32.mrf.mxu1  ;;  %19698 = vst [vmem:[#allocation36_spill] sm:$0xff] %v16806_v34  ;;  %v16809_v56 = vadd.f32 %v14428_v28, %v4466_v20 }
 0x1f4   : > { %v16811_v27 = vpop.f32.mrf.mxu0 }
 0x1f5   : > { %v14401_v4 = vpop.f32.mrf.mxu1  ;;  %19699 = vst [vmem:[#allocation37_spill] sm:$0xff] %v16809_v56  ;;  %v16838_v56 = vld [vmem:[#allocation2] sm:$0xf] }
 0x1f6   : > { %v4473_v15 = vadd.f32 %v14401_v4, %v16662_v29  ;;  %v14431_v6 = vpop.f32.mrf.mxu0  ;;  %v6274_v29 = vld [vmem:[#allocation2 + $0xd4] sm:$0x1]  ;;  %19703 = vst [vmem:[#allocation41_spill] sm:$0xff] %v16838_v56 }
 0x1f7   : > { %v4404_v60 = vpop.f32.mrf.mxu1  ;;  %v16820_v20 = vadd.f32 %v14431_v6, %v4469_v0 }
 0x1f8   : > { %v4471_v57 = vadd.f32 %v4404_v60, %v16675_v39  ;;  %v6275_v39 = vsel %vm16526_vm8, 0, %v6274_v29  ;;  %v6191_v60 = vld [vmem:[#allocation2 + $0x108] sm:$0x1]  ;;  %v4751_v26 = vpop.f32.mrf.mxu0 }
 0x1f9   : > { %v14402_v55 = vpop.f32.mrf.mxu1  ;;  %19700 = vst [vmem:[#allocation38_spill] sm:$0xff] %v16820_v20  ;;  %6276 = vst [vmem:[#allocation2 + $0xd4] sm:$0x1] %v6275_v39  ;;  %v6192_v4 = vsel %vm16518_vm6, 0, %v6191_v60 }
 0x1fa   : > { %v4474_v16 = vadd.f32 %v14402_v55, %v16679_v62  ;;  %v6289_v62 = vld [vmem:[#allocation2 + $0x10c] sm:$0x1]  ;;  %v16828_v55 = vadd.f32 %v4751_v26, %v4467_v7  ;;  %6193 = vst [vmem:[#allocation2 + $0x108] sm:$0x1] %v6192_v4  ;;  %v14432_v6 = vpop.f32.mrf.mxu0  ;;  %v6185_v4 = vld [vmem:[#allocation2 + $0xf8] sm:$0x1] }
 0x1fb   : > { %v16822_v28 = vpop.f32.mrf.mxu1  ;;  %v6290_v0 = vsel %vm16526_vm8, 0, %v6289_v62  ;;  %v16833_v48 = vadd.f32 %v14432_v6, %v4470_v51  ;;  %v6283_v62 = vld [vmem:[#allocation2 + $0xfc] sm:$0x1]  ;;  %v6186_v51 = vsel %vm16518_vm6, 0, %v6185_v4  ;;  %v6194_v6 = vld [vmem:[#allocation2 + $0x110] sm:$0x1] }
 0x1fc   : > { %19701 = vst [vmem:[#allocation39_spill] sm:$0xff] %v16828_v55  ;;  %6291 = vst [vmem:[#allocation2 + $0x10c] sm:$0x1] %v6290_v0  ;;  %v16835_v20 = vpop.f32.mrf.mxu0  ;;  %v7018_v0 = vshrl.u32 %v16838_v56, 16 }
 0x1fd   : > { %v14405_v38 = vpop.f32.mrf.mxu1  ;;  %19702 = vst [vmem:[#allocation40_spill] sm:$0xff] %v16833_v48  ;;  %6187 = vst [vmem:[#allocation2 + $0xf8] sm:$0x1] %v6186_v51 }
 0x1fe   : > { %v4477_v3 = vadd.f32 %v14405_v38, %v16691_v54  ;;  %v14435_v7 = vpop.f32.mrf.mxu0  ;;  %v6284_v38 = vsel %vm16526_vm8, 0, %v6283_v62  ;;  %v2075_v62 = vadd.f32 %v16358_v53, %v16097_v63  ;;  %v3279_v63 = vadd.f32 %v16476_v47, %v19711_v19  ;;  %v19712_v53 = vld [vmem:[#allocation11_spill] sm:$0xff] }
 0x1ff   : > { %v4420_v29 = vpop.f32.mrf.mxu1  ;;  %v16843_v55 = vadd.f32 %v14435_v7, %v4473_v15  ;;  %6285 = vst [vmem:[#allocation2 + $0xfc] sm:$0x1] %v6284_v38  ;;  %v7021_v15 = vshll.u32 %v16838_v56, 16  ;;  %v6195_v7 = vsel %vm16518_vm6, 0, %v6194_v6  ;;  %v19706_v38 = vld [vmem:[#allocation8_spill] sm:$0xff]  ;;  %v19709_v56 = vld [vmem:[#allocation9_spill] sm:$0xff] }
 0x200   : > { %v4475_v39 = vadd.f32 %v4420_v29, %v16697_v61  ;;  %v4767_v61 = vpop.f32.mrf.mxu0  ;;  %6196 = vst [vmem:[#allocation2 + $0x110] sm:$0x1] %v6195_v7 }
 0x201   : > { %v14406_v60 = vpop.f32.mrf.mxu1  ;;  %19704 = vst [vmem:[#allocation42_spill] sm:$0xff] %v16843_v55  ;;  %v16852_v29 = vadd.f32 %v4767_v61, %v4471_v57  ;;  %v2091_v57 = vadd.f32 %v16387_v18, %v16131_v42  ;;  %v19707_v61 = vld [vmem:[#allocation15_spill] sm:$0xff]  ;;  %v6957_v42 = vld [vmem:[#allocation2 + $0x50] sm:$0xf]  ;;  %v19714_v18 = vld [vmem:[#allocation12_spill] sm:$0xff] }
 0x202   : > { %v16841_v26 = vadd.f32 %v14406_v60, %v16707_v22  ;;  %v6292_v22 = vld [vmem:[#allocation2 + $0x114] sm:$0x1]  ;;  %v14436_v55 = vpop.f32.mrf.mxu0 }
 0x203   : > { %v16845_v54 = vpop.f32.mrf.mxu1  ;;  %19705 = vst [vmem:[#allocation43_spill] sm:$0xff] %v16852_v29  ;;  %v6293_v4 = vsel %vm16526_vm8, 0, %v6292_v22  ;;  %v2107_v29 = vadd.f32 %v19707_v61, %v19706_v38  ;;  %v16868_v48 = vadd.f32 %v14436_v55, %v4474_v16  ;;  %v19710_v22 = vld [vmem:[#allocation17_spill] sm:$0xff]  ;;  %v3287_v16 = vadd.f32 %v16535_v49, %v19714_v18  ;;  %v19715_v61 = vld [vmem:[#allocation14_spill] sm:$0xff] }
 0x204   : > { %6294 = vst [vmem:[#allocation2 + $0x114] sm:$0x1] %v6293_v4  ;;  %v2123_v34 = vadd.f32 %v19710_v22, %v19709_v56  ;;  %v7020_v4 = vrot.slane %v7018_v0, 4  ;;  %v7023_v38 = vrot.slane %v7021_v15, 5  ;;  %v2932_v56 = vadd.f32 %v19715_v61, %v2075_v62  ;;  %v19716_v22 = vld [vmem:[#allocation13_spill] sm:$0xff]  ;;  %v19718_v18 = vld [vmem:[#allocation18_spill] sm:$0xff] }
 0x205   : > { %v14409_v60 = vpop.f32.mrf.mxu1  ;;  %19708 = vst [vmem:[#allocation8_spill] sm:$0xff] %v16868_v48  ;;  %v3291_v47 = vadd.f32 %v16554_v52, %v19716_v22  ;;  %v7133_v49 = vshll.u32 %v6957_v42, 16  ;;  %v2940_v0 = vadd.f32 %v19718_v18, %v2107_v29  ;;  %v3642_v62 = vadd.f32 %v16514_v11, %v3279_v63  ;;  %v16898_v22 = vld [vmem:[#allocation2 + $0x4] sm:$0x1] }
 0x206   : > { %v16862_v51 = vadd.f32 %v14409_v60, %v16717_v58  ;;  %v3283_v58 = vadd.f32 %v16502_v8, %v19712_v53  ;;  %v16876_v60 = vpop.f32.mrf.mxu0  ;;  %v19717_v53 = vld [vmem:[#allocation16_spill] sm:$0xff]  ;;  %v2944_v15 = vadd.f32 %v16489_v5, %v2123_v34  ;;  %v3295_v29 = vadd.f32 %v16587_v31, %v2932_v56 }
 0x207   : > { %v4436_v6 = vpop.f32.mrf.mxu1  ;;  %19713 = vst [vmem:[#allocation15_spill] sm:$0xff] %v16876_v60  ;;  %v2936_v48 = vadd.f32 %v19717_v53, %v2091_v57  ;;  %v7130_v60 = vshrl.u32 %v6957_v42, 16  ;;  %v3654_v42 = vadd.f32 %v16607_v40, %v3291_v47  ;;  %v3303_v11 = vadd.f32 %v16664_v24, %v2940_v0 }
 0x208   : > { %v16879_v7 = vadd.f32 %v4436_v6, %v16725_v45  ;;  %v14439_v19 = vpop.f32.mrf.mxu0  ;;  %v3646_v52 = vadd.f32 %v16548_v1, %v3283_v58  ;;  %v3307_v34 = vadd.f32 %v16693_v12, %v2944_v15  ;;  %v7135_v58 = vrot.slane %v7133_v49, 5  ;;  %v19719_v15 = vld [vmem:[#allocation19_spill] sm:$0xff] }
 0x209   : > { %v14410_v55 = vpop.f32.mrf.mxu1  ;;  %v16890_v45 = vadd.f32 %v14439_v19, %v4477_v3  ;;  %v7027_v19 = vshll.u32 %v16898_v22, 16  ;;  %v3299_v5 = vadd.f32 %v16617_v35, %v2936_v48  ;;  %v4453_v40 = vadd.f32 %v16699_v41, %v16499_v30  ;;  %v6203_v48 = vld [vmem:[#allocation2 + $0x128] sm:$0x1] }
 0x20a   : > { %v16887_v8 = vadd.f32 %v14410_v55, %v16733_v32  ;;  %v4783_v61 = vpop.f32.mrf.mxu0  ;;  %v3650_v32 = vadd.f32 %v16569_v37, %v3287_v16  ;;  %v7024_v55 = vor.u32 %v7023_v38, %v7020_v4  ;;  %v6188_v16 = vld [vmem:[#allocation2 + $0x100] sm:$0x1]  ;;  %v6286_v4 = vld [vmem:[#allocation2 + $0x104] sm:$0x1]  ;;  %v4451_v31 = vadd.f32 %v16709_v25, %v16508_v44 }
 0x20b   : > { %v16892_v6 = vpop.f32.mrf.mxu1  ;;  %v16901_v57 = vadd.f32 %v4783_v61, %v4475_v39  ;;  %v7132_v39 = vrot.slane %v7130_v60, 4  ;;  %v6189_v24 = vsel %vm16518_vm6, 0, %v6188_v16  ;;  %v6287_v12 = vsel %vm16526_vm8, 0, %v6286_v4  ;;  %v19720_v61 = vld [vmem:[#allocation21_spill] sm:$0xff] }
 0x20c   : > { %v14440_v1 = vpop.f32.mrf.mxu0  ;;  %v16922_v38 = vrot.slane %v7024_v55, 4  ;;  %v16924_v56 = vrot.slane %v7027_v19, 5  ;;  %6190 = vst [vmem:[#allocation2 + $0x100] sm:$0x1] %v6189_v24  ;;  %6288 = vst [vmem:[#allocation2 + $0x104] sm:$0x1] %v6287_v12  ;;  %v3658_v41 = vadd.f32 %v16653_v13, %v3295_v29  ;;  %v4454_v25 = vadd.f32 %v16715_v9, %v16511_v2 }
 0x20d   : > { %v14449_v3 = vpop.f32.mrf.mxu1  ;;  %v16910_v63 = vadd.f32 %v14440_v1, %v16841_v26  ;;  %v6301_v26 = vld [vmem:[#allocation2 + $0x12c] sm:$0x1]  ;;  %v6204_v30 = vsel %vm16518_vm6, 0, %v6203_v48  ;;  %v4452_v47 = vadd.f32 %v16719_v21, %v3642_v62  ;;  %v4457_v53 = vadd.f32 %v16727_v59, %v16533_v10  ;;  %v6993_v2 = vld [vmem:[#allocation2 + $0x54] sm:$0x1]  ;;  %v19721_v9 = vld [vmem:[#allocation22_spill] sm:$0xff] }
 0x20e   : > { %v16916_v35 = vpop.f32.mrf.mxu0  ;;  %v6302_v44 = vsel %vm16526_vm8, 0, %v6301_v26  ;;  %6205 = vst [vmem:[#allocation2 + $0x128] sm:$0x1] %v6204_v30  ;;  %v3662_v18 = vadd.f32 %v16681_v36, %v3299_v5  ;;  %v3666_v0 = vadd.f32 %v16713_v14, %v3303_v11  ;;  %v4455_v55 = vadd.f32 %v19720_v61, %v19719_v15  ;;  %v19722_v62 = vld [vmem:[#allocation23_spill] sm:$0xff]  ;;  %v19723_v16 = vld [vmem:[#allocation25_spill] sm:$0xff]  ;;  %v19724_v36 = vld [vmem:[#allocation24_spill] sm:$0xff] }
 0x20f   : > { %v5050_v37 = vpop.f32.mrf.mxu1  ;;  %6303 = vst [vmem:[#allocation2 + $0x12c] sm:$0x1] %v6302_v44  ;;  %v3670_v21 = vadd.f32 %v19721_v9, %v3307_v34  ;;  %v4816_v29 = vadd.f32 %v19722_v62, %v4453_v40  ;;  %v7136_v59 = vor.u32 %v7135_v58, %v7132_v39  ;;  %v7139_v1 = vshll.u32 %v6993_v2, 16  ;;  %v19726_v12 = vld [vmem:[#allocation26_spill] sm:$0xff]  ;;  %v19727_v48 = vld [vmem:[#allocation27_spill] sm:$0xff]  ;;  %v19728_v58 = vld [vmem:[#allocation28_spill] sm:$0xff] }
 0x210   : > { %v14443_v49 = vpop.f32.mrf.mxu0  ;;  %v4814_v4 = vadd.f32 %v19723_v16, %v4451_v31  ;;  %v4456_v5 = vadd.f32 %v19724_v36, %v3646_v52  ;;  %v7030_v24 = vsel %vm15641_vm3, %v16922_v38, %v16924_v56  ;;  %v4817_v34 = vadd.f32 %v19726_v12, %v4454_v25  ;;  %v8041_v30 = vld [vmem:[#allocation2] sm:$0xe] }
 0x211   : > { %v14450_v60 = vpop.f32.mrf.mxu1  ;;  %v16941_v13 = vadd.f32 %v14443_v49, %v16862_v51  ;;  %v4815_v40 = vadd.f32 %v16753_v50, %v4452_v47  ;;  %v4820_v39 = vadd.f32 %v19727_v48, %v4457_v53  ;;  %v4460_v26 = vadd.f32 %v19728_v58, %v3650_v32  ;;  %v6197_v47 = vld [vmem:[#allocation2 + $0x118] sm:$0x1]  ;;  %v16970_v32 = vld [vmem:[%s19625_s2] ss:$0 sm:$0xff] }
 0x212   : > { %v4799_v10 = vpop.f32.mrf.mxu0  ;;  %v4464_v52 = vadd.f32 %v16780_v46, %v3654_v42  ;;  %v5179_v49 = vadd.f32 %v14449_v3, %v4816_v29  ;;  %v5177_v2 = vadd.f32 %v5050_v37, %v4814_v4  ;;  %v16963_v25 = vrot.slane %v7136_v59, 4  ;;  %v19729_v42 = vld [vmem:[#allocation29_spill] sm:$0xff]  ;;  %v6295_v29 = vld [vmem:[#allocation2 + $0x11c] sm:$0x1] }
 0x213   : > { %v5053_v19 = vpop.f32.mrf.mxu1  ;;  %v16948_v14 = vadd.f32 %v4799_v10, %v16879_v7  ;;  %v4468_v7 = vadd.f32 %v16804_v43, %v3658_v41  ;;  %v16965_v50 = vrot.slane %v7139_v1, 5  ;;  %v6198_v43 = vsel %vm16518_vm6, 0, %v6197_v47  ;;  %v6206_v10 = vld [vmem:[#allocation2 + $0x130] sm:$0x1]  ;;  %v6304_v59 = vld [vmem:[#allocation2 + $0x134] sm:$0x1] }
 0x214   : > { %v14444_v31 = vpop.f32.mrf.mxu0  ;;  %v8142_v3 = vrot.slane %v16898_v22, 5  ;;  %v4818_v37 = vadd.f32 %v19729_v42, %v4455_v55  ;;  %v4472_v41 = vadd.f32 %v16822_v28, %v3662_v18  ;;  %v4476_v53 = vadd.f32 %v16845_v54, %v3666_v0  ;;  %6199 = vst [vmem:[#allocation2 + $0x118] sm:$0x1] %v6198_v43  ;;  %v19730_v28 = vld [vmem:[#allocation31_spill] sm:$0xff]  ;;  %v19734_v47 = vld [vmem:[#allocation30_spill] sm:$0xff] }
 0x215   : > { %v14453_v11 = vpop.f32.mrf.mxu1  ;;  %v16961_v44 = vadd.f32 %v14444_v31, %v16887_v8  ;;  %v13311_v8 = vrot.slane %v8041_v30, 9  ;;  %v5180_v62 = vadd.f32 %v14450_v60, %v4817_v34  ;;  %v6296_v4 = vsel %vm16526_vm8, 0, %v6295_v29  ;;  %v17021_v29 = vld [vmem:[#allocation2 + $0xa0] sm:$0xf] }
 0x216   : > { %v4802_v61 = vpop.f32.mrf.mxu0  ;;  %v6207_v22 = vsel %vm16518_vm6, 0, %v6206_v10  ;;  %v6305_v55 = vsel %vm16526_vm8, 0, %v6304_v59  ;;  %v4819_v18 = vadd.f32 %v19730_v28, %v4456_v5  ;;  %v4823_v54 = vadd.f32 %v16794_v23, %v4460_v26  ;;  %6297 = vst [vmem:[#allocation2 + $0x11c] sm:$0x1] %v6296_v4 }
 0x217   : > { %v5066_v15 = vpop.f32.mrf.mxu1  ;;  %v16987_v60 = vadd.f32 %v16811_v27, %v4464_v52  ;;  %v4480_v0 = vadd.f32 %v16892_v6, %v3670_v21  ;;  %6208 = vst [vmem:[#allocation2 + $0x130] sm:$0x1] %v6207_v22  ;;  %6306 = vst [vmem:[#allocation2 + $0x134] sm:$0x1] %v6305_v55  ;;  %v16991_v12 = vadd.f32 %v16835_v20, %v4468_v7  ;;  %v19733_v27 = vld [vmem:[#allocation15_spill] sm:$0xff]  ;;  %v7245_v22 = vshll.u32 %v17021_v29, 16 }
 0x218   : > { %v14483_v9 = vpop.f32.mrf.mxu0  ;;  %v5178_v58 = vadd.f32 %v5053_v19, %v4815_v40  ;;  %v17001_v6 = vadd.f32 %v19733_v27, %v4472_v41  ;;  %v17004_v21 = vadd.f32 %v16916_v35, %v4476_v53  ;;  %v7142_v20 = vsel %vm15641_vm3, %v16963_v25, %v16965_v50 }
 0x219   : > { %v14454_v46 = vpop.f32.mrf.mxu1  ;;  %v5989_v1 = vadd.f32 %v14483_v9, %v5179_v49  ;;  %v17012_v19 = vsel %vm16996_vm13, %v13311_v8, %v8142_v3  ;;  %v5183_v52 = vadd.f32 %v14453_v11, %v4820_v39  ;;  %v17015_v49 = vadd.f32 %v4802_v61, %v4480_v0  ;;  %v19736_v39 = vld [vmem:[#allocation33_spill] sm:$0xff] }
 0x21a   : > { %v5860_v36 = vpop.f32.mrf.mxu0  ;;  %v5184_v43 = vadd.f32 %v14454_v46, %v19734_v47  ;;  %v7242_v46 = vshrl.u32 %v17021_v29, 16  ;;  %v19738_v47 = vld [vmem:[#allocation35_spill] sm:$0xff] }
 0x21b   : > { %v5069_v16 = vpop.f32.mrf.mxu1  ;;  %v6028_v34 = vadd.f32 %v16970_v32, %v5989_v1  ;;  %v5987_v48 = vadd.f32 %v5860_v36, %v5177_v2  ;;  %v5181_v2 = vadd.f32 %v5066_v15, %v4818_v37  ;;  %v19737_v15 = vld [vmem:[#allocation34_spill] sm:$0xff] }
 0x21c   : > { %v14484_v5 = vpop.f32.mrf.mxu0  ;;  %v17018_v42 = vadd.f32 %v5069_v16, %v4819_v18 }
 0x21d   : > { %v14457_v31 = vpop.f32.mrf.mxu1  ;;  %v6060_v40 = vmax.f32 %v6028_v34, 0.0  ;;  %v6026_v26 = vadd.f32 %v16970_v32, %v5987_v48  ;;  %v5990_v30 = vadd.f32 %v14484_v5, %v5180_v62  ;;  %v19735_v62 = vld [vmem:[#allocation32_spill] sm:$0xff]  ;;  %v6769_v5 = vld [vmem:[#allocation2 + $0x18] sm:$0xf] }
 0x21e   : > { %v5863_v35 = vpop.f32.mrf.mxu0  ;;  %v17024_v11 = vadd.f32 %v14457_v31, %v19735_v62 }
 0x21f   : > { %v5082_v7 = vpop.f32.mrf.mxu1  ;;  %v13748_v41 = vpack.c.bf16 %v6060_v40, %v6060_v40  ;;  %v6058_v53 = vmax.f32 %v6026_v26, 0.0  ;;  %v6029_v9 = vadd.f32 %v16970_v32, %v5990_v30  ;;  %v5988_v8 = vadd.f32 %v5863_v35, %v5178_v58  ;;  %v6772_v40 = vld [vmem:[#allocation2 + $0x1c] sm:$0x1] }
 0x220   : > { %v14487_v10 = vpop.f32.mrf.mxu0  ;;  %v17027_v61 = vadd.f32 %v5082_v7, %v19736_v39 }
 0x221   : > { %v14458_v3 = vpop.f32.mrf.mxu1  ;;  %v6452_v59 = vshrl.u32 %v13748_v41, 16  ;;  %v13746_v1 = vpack.c.bf16 %v6058_v53, %v6058_v53  ;;  %v6061_v16 = vmax.f32 %v6029_v9, 0.0  ;;  %v6455_v55 = vshll.u32 %v13748_v41, 16 }
 0x222   : > { %v17030_v37 = vadd.f32 %v14458_v3, %v19737_v15  ;;  %v6027_v28 = vadd.f32 %v16970_v32, %v5988_v8  ;;  %v5993_v18 = vadd.f32 %v14487_v10, %v5183_v52  ;;  %v5876_v0 = vpop.f32.mrf.mxu0  ;;  %v6757_v8 = vld [vmem:[#allocation2 + $0x8] sm:$0xf]  ;;  %v6760_v3 = vld [vmem:[#allocation2 + $0xc] sm:$0x1] }
 0x223   : > { %v5085_v4 = vpop.f32.mrf.mxu1  ;;  %v6454_v34 = vrot.slane %v6452_v59, 7  ;;  %v6436_v48 = vshrl.u32 %v13746_v1, 16  ;;  %v6439_v58 = vshll.u32 %v13746_v1, 16  ;;  %v13749_v31 = vpack.c.bf16 %v6061_v16, %v6061_v16 }
 0x224   : > { %v17035_v36 = vadd.f32 %v5085_v4, %v4823_v54  ;;  %v6059_v26 = vmax.f32 %v6027_v28, 0.0  ;;  %v6032_v30 = vadd.f32 %v16970_v32, %v5993_v18  ;;  %v5991_v7 = vadd.f32 %v5876_v0, %v5181_v2  ;;  %v14488_v35 = vpop.f32.mrf.mxu0 }
 0x225   : > { %v14461_v27 = vpop.f32.mrf.mxu1  ;;  %v6457_v53 = vor.u32 %v6455_v55, %v6454_v34  ;;  %v6458_v52 = vrot.slane %v6454_v34, 4  ;;  %v6438_v9 = vrot.slane %v6436_v48, 7  ;;  %v6460_v54 = vshrl.u32 %v13749_v31, 16 }
 0x226   : > { %v17039_v41 = vadd.f32 %v14461_v27, %v19738_v47  ;;  %v6463_v10 = vshll.u32 %v13749_v31, 16  ;;  %v13747_v62 = vpack.c.bf16 %v6059_v26, %v6059_v26  ;;  %v6064_v39 = vmax.f32 %v6032_v30, 0.0  ;;  %v5879_v59 = vpop.f32.mrf.mxu0  ;;  %v6775_v26 = vld [vmem:[#allocation2 + $0x20] sm:$0xf] }
 0x227   : > { %v6030_v15 = vadd.f32 %v16970_v32, %v5991_v7  ;;  %v6770_v16 = vsel %vm16544_vm10, %v6457_v53, %v6769_v5  ;;  %v6773_v2 = vsel %vm16518_vm6, %v6458_v52, %v6772_v40  ;;  %v6441_v4 = vor.u32 %v6439_v58, %v6438_v9  ;;  %v6778_v5 = vld [vmem:[#allocation2 + $0x24] sm:$0x1] }
 0x228   : > { %v6442_v28 = vrot.slane %v6438_v9, 4  ;;  %6771 = vst [vmem:[#allocation2 + $0x18] sm:$0xf] %v6770_v16  ;;  %6774 = vst [vmem:[#allocation2 + $0x1c] sm:$0x1] %v6773_v2  ;;  %v6462_v55 = vrot.slane %v6460_v54, 7  ;;  %v13752_v34 = vpack.c.bf16 %v6064_v39, %v6064_v39  ;;  %v14491_v48 = vpop.f32.mrf.mxu0  ;;  %v5994_v7 = vadd.f32 %v14488_v35, %v5184_v43 }
 0x229   : > { %v6444_v18 = vshrl.u32 %v13747_v62, 16  ;;  %v6447_v0 = vshll.u32 %v13747_v62, 16  ;;  %v6758_v31 = vsel %vm16544_vm10, %v6441_v4, %v6757_v8  ;;  %v6062_v30 = vmax.f32 %v6030_v15, 0.0  ;;  %v6763_v9 = vld [vmem:[#allocation2 + $0x10] sm:$0xf] }
 0x22a   : > { %v6761_v27 = vsel %vm16518_vm6, %v6442_v28, %v6760_v3  ;;  %6759 = vst [vmem:[#allocation2 + $0x8] sm:$0xf] %v6758_v31  ;;  %v6465_v58 = vor.u32 %v6463_v10, %v6462_v55  ;;  %v6466_v40 = vrot.slane %v6462_v55, 4  ;;  %v6484_v53 = vshrl.u32 %v13752_v34, 16  ;;  %v5892_v52 = vpop.f32.mrf.mxu0  ;;  %v6766_v54 = vld [vmem:[#allocation2 + $0x14] sm:$0x1] }
 0x22b   : > { %6762 = vst [vmem:[#allocation2 + $0xc] sm:$0x1] %v6761_v27  ;;  %v6446_v47 = vrot.slane %v6444_v18, 7  ;;  %v6487_v62 = vshll.u32 %v13752_v34, 16  ;;  %v13750_v39 = vpack.c.bf16 %v6062_v30, %v6062_v30  ;;  %v6033_v8 = vadd.f32 %v16970_v32, %v5994_v7  ;;  %v6796_v34 = vld [vmem:[#allocation2 + $0x3c] sm:$0x1] }
 0x22c   : > { %v5992_v16 = vadd.f32 %v5879_v59, %v17018_v42  ;;  %v6776_v3 = vsel %vm16544_vm10, %v6465_v58, %v6775_v26  ;;  %v6779_v43 = vsel %vm16518_vm6, %v6466_v40, %v6778_v5  ;;  %v14492_v15 = vpop.f32.mrf.mxu0  ;;  %v6486_v2 = vrot.slane %v6484_v53, 7  ;;  %v6793_v59 = vld [vmem:[#allocation2 + $0x38] sm:$0xf]  ;;  %v6781_v30 = vld [vmem:[#allocation2 + $0x28] sm:$0xf] }
 0x22d   : > { %v6449_v35 = vor.u32 %v6447_v0, %v6446_v47  ;;  %v6450_v10 = vrot.slane %v6446_v47, 4  ;;  %6777 = vst [vmem:[#allocation2 + $0x20] sm:$0xf] %v6776_v3  ;;  %6780 = vst [vmem:[#allocation2 + $0x24] sm:$0x1] %v6779_v43  ;;  %v6468_v4 = vshrl.u32 %v13750_v39, 16  ;;  %v5997_v0 = vadd.f32 %v14491_v48, %v17024_v11 }
 0x22e   : > { %v6471_v28 = vshll.u32 %v13750_v39, 16  ;;  %v6065_v55 = vmax.f32 %v6033_v8, 0.0  ;;  %v6031_v31 = vadd.f32 %v16970_v32, %v5992_v16  ;;  %v6489_v27 = vor.u32 %v6487_v62, %v6486_v2  ;;  %v6784_v7 = vld [vmem:[#allocation2 + $0x2c] sm:$0x1] }
 0x22f   : > { %v6764_v18 = vsel %vm16544_vm10, %v6449_v35, %v6763_v9  ;;  %v6767_v42 = vsel %vm16518_vm6, %v6450_v10, %v6766_v54  ;;  %v6490_v26 = vrot.slane %v6486_v2, 4  ;;  %v6470_v5 = vrot.slane %v6468_v4, 7  ;;  %v5895_v54 = vpop.f32.mrf.mxu0  ;;  %v5098_v10 = vpop.f32.mrf.mxu1  ;;  %v6799_v2 = vld [vmem:[#allocation2 + $0x40] sm:$0xf] }
 0x230   : > { %6765 = vst [vmem:[#allocation2 + $0x10] sm:$0xf] %v6764_v18  ;;  %6768 = vst [vmem:[#allocation2 + $0x14] sm:$0x1] %v6767_v42  ;;  %v13753_v58 = vpack.c.bf16 %v6065_v55, %v6065_v55  ;;  %v6063_v40 = vmax.f32 %v6031_v31, 0.0  ;;  %v6036_v47 = vadd.f32 %v16970_v32, %v5997_v0  ;;  %v5995_v53 = vadd.f32 %v5892_v52, %v17027_v61 }
 0x231   : > { %v5998_v9 = vadd.f32 %v14492_v15, %v17030_v37  ;;  %v6794_v39 = vsel %vm16544_vm10, %v6489_v27, %v6793_v59  ;;  %v6797_v11 = vsel %vm16518_vm6, %v6490_v26, %v6796_v34  ;;  %v6473_v48 = vor.u32 %v6471_v28, %v6470_v5  ;;  %v14495_v18 = vpop.f32.mrf.mxu0  ;;  %v6802_v42 = vld [vmem:[#allocation2 + $0x44] sm:$0x1] }
 0x232   : > { %v6474_v62 = vrot.slane %v6470_v5, 4  ;;  %6795 = vst [vmem:[#allocation2 + $0x38] sm:$0xf] %v6794_v39  ;;  %6798 = vst [vmem:[#allocation2 + $0x3c] sm:$0x1] %v6797_v11  ;;  %v6492_v8 = vshrl.u32 %v13753_v58, 16  ;;  %v13751_v3 = vpack.c.bf16 %v6063_v40, %v6063_v40  ;;  %v6034_v52 = vadd.f32 %v16970_v32, %v5995_v53  ;;  %v14462_v39 = vpop.f32.mrf.mxu1 }
 0x233   : > { %v6495_v16 = vshll.u32 %v13753_v58, 16  ;;  %v6068_v43 = vmax.f32 %v6036_v47, 0.0  ;;  %v6782_v61 = vsel %vm16544_vm10, %v6473_v48, %v6781_v30  ;;  %v6037_v35 = vadd.f32 %v16970_v32, %v5998_v9  ;;  %v6787_v30 = vld [vmem:[#allocation2 + $0x30] sm:$0xf]  ;;  %v6790_v58 = vld [vmem:[#allocation2 + $0x34] sm:$0x1] }
 0x234   : > { %v6785_v37 = vsel %vm16518_vm6, %v6474_v62, %v6784_v7  ;;  %6783 = vst [vmem:[#allocation2 + $0x28] sm:$0xf] %v6782_v61  ;;  %v6494_v15 = vrot.slane %v6492_v8, 7  ;;  %v6476_v4 = vshrl.u32 %v13751_v3, 16  ;;  %v6479_v28 = vshll.u32 %v13751_v3, 16  ;;  %v5908_v62 = vpop.f32.mrf.mxu0 }
 0x235   : > { %6786 = vst [vmem:[#allocation2 + $0x2c] sm:$0x1] %v6785_v37  ;;  %v13756_v55 = vpack.c.bf16 %v6068_v43, %v6068_v43  ;;  %v6066_v59 = vmax.f32 %v6034_v52, 0.0  ;;  %v6069_v34 = vmax.f32 %v6037_v35, 0.0  ;;  %v5996_v31 = vadd.f32 %v5895_v54, %v17035_v36  ;;  %v6817_v48 = vld [vmem:[#allocation2 + $0x68] sm:$0xf] }
 0x236   : > { %v6001_v0 = vadd.f32 %v14495_v18, %v17039_v41  ;;  %v6497_v27 = vor.u32 %v6495_v16, %v6494_v15  ;;  %v6498_v26 = vrot.slane %v6494_v15, 4  ;;  %v6478_v5 = vrot.slane %v6476_v4, 7  ;;  %v6820_v16 = vld [vmem:[#allocation2 + $0x6c] sm:$0x1]  ;;  %v6805_v35 = vld [vmem:[#allocation2 + $0x58] sm:$0xf] }
 0x237   : > { %v6516_v7 = vshrl.u32 %v13756_v55, 16  ;;  %v6519_v40 = vshll.u32 %v13756_v55, 16  ;;  %v13754_v47 = vpack.c.bf16 %v6066_v59, %v6066_v59  ;;  %v13757_v53 = vpack.c.bf16 %v6069_v34, %v6069_v34  ;;  %v6808_v15 = vld [vmem:[#allocation2 + $0x5c] sm:$0x1]  ;;  %v6823_v59 = vld [vmem:[#allocation2 + $0x70] sm:$0xf]  ;;  %v5101_v34 = vpop.f32.mrf.mxu1 }
 0x238   : > { %v6035_v9 = vadd.f32 %v16970_v32, %v5996_v31  ;;  %v6800_v11 = vsel %vm16544_vm10, %v6497_v27, %v6799_v2  ;;  %v6803_v36 = vsel %vm16518_vm6, %v6498_v26, %v6802_v42  ;;  %v6481_v54 = vor.u32 %v6479_v28, %v6478_v5  ;;  %v6826_v31 = vld [vmem:[#allocation2 + $0x74] sm:$0x1] }
 0x239   : > { %v6482_v41 = vrot.slane %v6478_v5, 4  ;;  %6801 = vst [vmem:[#allocation2 + $0x40] sm:$0xf] %v6800_v11  ;;  %6804 = vst [vmem:[#allocation2 + $0x44] sm:$0x1] %v6803_v36  ;;  %v6518_v8 = vrot.slane %v6516_v7, 7  ;;  %v6040_v26 = vadd.f32 %v16970_v32, %v6001_v0 }
 0x23a   : > { %v6500_v3 = vshrl.u32 %v13754_v47, 16  ;;  %v6503_v43 = vshll.u32 %v13754_v47, 16  ;;  %v6524_v61 = vshrl.u32 %v13757_v53, 16  ;;  %v6788_v37 = vsel %vm16544_vm10, %v6481_v54, %v6787_v30  ;;  %v19740_v5 = vld [vmem:[#allocation36_spill] sm:$0xff]  ;;  %v19741_v7 = vld [vmem:[#allocation37_spill] sm:$0xff]  ;;  %v14496_v47 = vpop.f32.mrf.mxu0 }
 0x23b   : > { %v6791_v52 = vsel %vm16518_vm6, %v6482_v41, %v6790_v58  ;;  %v6527_v2 = vshll.u32 %v13757_v53, 16  ;;  %v6067_v4 = vmax.f32 %v6035_v9, 0.0  ;;  %6789 = vst [vmem:[#allocation2 + $0x30] sm:$0xf] %v6788_v37  ;;  %v6521_v28 = vor.u32 %v6519_v40, %v6518_v8  ;;  %v17089_v11 = vld [vmem:[#allocation2 + $0x8] sm:$0xf] }
 0x23c   : > { %6792 = vst [vmem:[#allocation2 + $0x34] sm:$0x1] %v6791_v52  ;;  %v6522_v55 = vrot.slane %v6518_v8, 4  ;;  %v6502_v18 = vrot.slane %v6500_v3, 7  ;;  %v6526_v42 = vrot.slane %v6524_v61, 7  ;;  %v5189_v30 = vadd.f32 %v5098_v10, %v19740_v5  ;;  %v14465_v61 = vpop.f32.mrf.mxu1 }
 0x23d   : > { %v13755_v27 = vpack.c.bf16 %v6067_v4, %v6067_v4  ;;  %v5192_v58 = vadd.f32 %v14462_v39, %v19741_v7  ;;  %v6818_v53 = vsel %vm16544_vm10, %v6521_v28, %v6817_v48  ;;  %v6072_v3 = vmax.f32 %v6040_v26, 0.0  ;;  %v6814_v4 = vld [vmem:[#allocation2 + $0x64] sm:$0x1] }
 0x23e   : > { %v6821_v40 = vsel %vm16518_vm6, %v6522_v55, %v6820_v16  ;;  %v6505_v9 = vor.u32 %v6503_v43, %v6502_v18  ;;  %v6506_v36 = vrot.slane %v6502_v18, 4  ;;  %6819 = vst [vmem:[#allocation2 + $0x68] sm:$0xf] %v6818_v53  ;;  %v6529_v54 = vor.u32 %v6527_v2, %v6526_v42  ;;  %v5911_v2 = vpop.f32.mrf.mxu0  ;;  %v5114_v7 = vpop.f32.mrf.mxu1 }
 0x23f   : > { %6822 = vst [vmem:[#allocation2 + $0x6c] sm:$0x1] %v6821_v40  ;;  %v6530_v0 = vrot.slane %v6526_v42, 4  ;;  %v6508_v41 = vshrl.u32 %v13755_v27, 16  ;;  %v6511_v10 = vshll.u32 %v13755_v27, 16  ;;  %v5999_v48 = vadd.f32 %v5908_v62, %v5189_v30 }
 0x240   : > { %v6806_v39 = vsel %vm16544_vm10, %v6505_v9, %v6805_v35  ;;  %v6809_v8 = vsel %vm16518_vm6, %v6506_v36, %v6808_v15  ;;  %v6824_v16 = vsel %vm16544_vm10, %v6529_v54, %v6823_v59  ;;  %v6002_v52 = vadd.f32 %v14496_v47, %v5192_v58  ;;  %v6811_v35 = vld [vmem:[#allocation2 + $0x60] sm:$0xf]  ;;  %v14499_v53 = vpop.f32.mrf.mxu0  ;;  %v6841_v9 = vld [vmem:[#allocation2 + $0x88] sm:$0xf]  ;;  %v6844_v36 = vld [vmem:[#allocation2 + $0x8c] sm:$0x1] }
 0x241   : > { %6807 = vst [vmem:[#allocation2 + $0x58] sm:$0xf] %v6806_v39  ;;  %6810 = vst [vmem:[#allocation2 + $0x5c] sm:$0x1] %v6809_v8  ;;  %v6827_v43 = vsel %vm16518_vm6, %v6530_v0, %v6826_v31  ;;  %v6510_v37 = vrot.slane %v6508_v41, 7  ;;  %v13760_v28 = vpack.c.bf16 %v6072_v3, %v6072_v3  ;;  %v6038_v15 = vadd.f32 %v16970_v32, %v5999_v48  ;;  %v19742_v39 = vld [vmem:[#allocation41_spill] sm:$0xff] }
 0x242   : > { %6825 = vst [vmem:[#allocation2 + $0x70] sm:$0xf] %v6824_v16  ;;  %6828 = vst [vmem:[#allocation2 + $0x74] sm:$0x1] %v6827_v43  ;;  %v5190_v62 = vadd.f32 %v5101_v34, %v16987_v60  ;;  %v7032_v55 = vshrl.u32 %v17089_v11, 16  ;;  %v6041_v59 = vadd.f32 %v16970_v32, %v6002_v52  ;;  %v7035_v31 = vshll.u32 %v17089_v11, 16 }
 0x243   : > { %v6513_v18 = vor.u32 %v6511_v10, %v6510_v37  ;;  %v6514_v42 = vrot.slane %v6510_v37, 4  ;;  %v6548_v27 = vshrl.u32 %v13760_v28, 16  ;;  %v6551_v26 = vshll.u32 %v13760_v28, 16  ;;  %v19743_v3 = vld [vmem:[#allocation38_spill] sm:$0xff]  ;;  %v19744_v16 = vld [vmem:[#allocation39_spill] sm:$0xff] }
 0x244   : > { %v6070_v5 = vmax.f32 %v6038_v15, 0.0  ;;  %v6000_v30 = vadd.f32 %v5911_v2, %v5190_v62  ;;  %v6073_v60 = vmax.f32 %v6041_v59, 0.0  ;;  %v17112_v34 = vrot.slane %v7032_v55, 4  ;;  %v6829_v59 = vld [vmem:[#allocation2 + $0x78] sm:$0xf] }
 0x245   : > { %v6812_v58 = vsel %vm16544_vm10, %v6513_v18, %v6811_v35  ;;  %v6815_v47 = vsel %vm16518_vm6, %v6514_v42, %v6814_v4  ;;  %v6550_v40 = vrot.slane %v6548_v27, 7  ;;  %v17115_v41 = vrot.slane %v7035_v31, 5  ;;  %v17121_v4 = vld [vmem:[#allocation2 + $0x10] sm:$0xf]  ;;  %v5924_v18 = vpop.f32.mrf.mxu0  ;;  %v6832_v31 = vld [vmem:[#allocation2 + $0x7c] sm:$0x1] }
 0x246   : > { %6813 = vst [vmem:[#allocation2 + $0x60] sm:$0xf] %v6812_v58  ;;  %6816 = vst [vmem:[#allocation2 + $0x64] sm:$0x1] %v6815_v47  ;;  %v13758_v54 = vpack.c.bf16 %v6070_v5, %v6070_v5  ;;  %v6039_v0 = vadd.f32 %v16970_v32, %v6000_v30  ;;  %v13761_v10 = vpack.c.bf16 %v6073_v60, %v6073_v60  ;;  %v6847_v5 = vld [vmem:[#allocation2 + $0x90] sm:$0xf] }
 0x247   : > { %v13277_v8 = vcombine.low %v19742_v39, %v17089_v11  ;;  %v5195_v48 = vadd.f32 %v14465_v61, %v19743_v3  ;;  %v5193_v43 = vadd.f32 %v5114_v7, %v19744_v16  ;;  %v6553_v37 = vor.u32 %v6551_v26, %v6550_v40 }
 0x248   : > { %v6554_v52 = vrot.slane %v6550_v40, 4  ;;  %v6532_v2 = vshrl.u32 %v13758_v54, 16  ;;  %v6535_v35 = vshll.u32 %v13758_v54, 16  ;;  %v6556_v28 = vshrl.u32 %v13761_v10, 16 }
 0x249   : > { %v6559_v15 = vshll.u32 %v13761_v10, 16  ;;  %v6071_v62 = vmax.f32 %v6039_v0, 0.0  ;;  %14553 = vmatprep.mubr.msk.bf16.mxu0 %vm7530_vm14, %v13277_v8  ;;  %v6005_v55 = vadd.f32 %v14499_v53, %v5195_v48  ;;  %v6842_v11 = vsel %vm16544_vm10, %v6553_v37, %v6841_v9  ;;  %v6850_v53 = vld [vmem:[#allocation2 + $0x94] sm:$0x1]  ;;  %v6952_v8 = vld [vmem:[#allocation2 + $0x18] sm:$0xf] }
 0x24a   : > { %v6845_v61 = vsel %vm16518_vm6, %v6554_v52, %v6844_v36  ;;  %v6534_v42 = vrot.slane %v6532_v2, 7  ;;  %v6003_v27 = vadd.f32 %v5924_v18, %v5193_v43  ;;  %6843 = vst [vmem:[#allocation2 + $0x88] sm:$0xf] %v6842_v11  ;;  %v6558_v26 = vrot.slane %v6556_v28, 7  ;;  %v14466_v36 = vpop.f32.mrf.mxu1  ;;  %v6835_v28 = vld [vmem:[#allocation2 + $0x80] sm:$0xf] }
 0x24b   : > { %6846 = vst [vmem:[#allocation2 + $0x8c] sm:$0x1] %v6845_v61  ;;  %v13759_v30 = vpack.c.bf16 %v6071_v62, %v6071_v62  ;;  %v6044_v7 = vadd.f32 %v16970_v32, %v6005_v55  ;;  %v7046_v58 = vshrl.u32 %v17121_v4, 16  ;;  %v7049_v9 = vshll.u32 %v17121_v4, 16  ;;  %v14500_v61 = vpop.f32.mrf.mxu0 }
 0x24c   : > { %v6537_v47 = vor.u32 %v6535_v35, %v6534_v42  ;;  %v6538_v60 = vrot.slane %v6534_v42, 4  ;;  %v6042_v40 = vadd.f32 %v16970_v32, %v6003_v27  ;;  %v6561_v54 = vor.u32 %v6559_v15, %v6558_v26  ;;  %v6838_v15 = vld [vmem:[#allocation2 + $0x84] sm:$0x1]  ;;  %v5117_v42 = vpop.f32.mrf.mxu1 }
 0x24d   : > { %v6562_v0 = vrot.slane %v6558_v26, 4  ;;  %v6540_v10 = vshrl.u32 %v13759_v30, 16  ;;  %v6543_v39 = vshll.u32 %v13759_v30, 16  ;;  %v6076_v16 = vmax.f32 %v6044_v7, 0.0  ;;  %v15042_v30 = vld [vmem:[%s19626_s3 + $0x30] sm:$0xff]  }
 0x24e   : > { %v6830_v3 = vsel %vm16544_vm10, %v6537_v47, %v6829_v59  ;;  %v6833_v48 = vsel %vm16518_vm6, %v6538_v60, %v6832_v31  ;;  %v6074_v43 = vmax.f32 %v6042_v40, 0.0  ;;  %v6848_v37 = vsel %vm16544_vm10, %v6561_v54, %v6847_v5  ;;  %v17145_v5 = vld [vmem:[#allocation2 + $0x20] sm:$0xf]  ;;  %v6865_v54 = vld [vmem:[#allocation2 + $0xb8] sm:$0xf] }
 0x24f   : > { %6831 = vst [vmem:[#allocation2 + $0x78] sm:$0xf] %v6830_v3  ;;  %6834 = vst [vmem:[#allocation2 + $0x7c] sm:$0x1] %v6833_v48  ;;  %v6851_v52 = vsel %vm16518_vm6, %v6562_v0, %v6850_v53  ;;  %v6542_v2 = vrot.slane %v6540_v10, 7  ;;  %v17140_v35 = vrot.slane %v7046_v58, 4  ;;  %v13764_v62 = vpack.c.bf16 %v6076_v16, %v6076_v16 }
 0x250   : > { %6849 = vst [vmem:[#allocation2 + $0x90] sm:$0xf] %v6848_v37  ;;  %6852 = vst [vmem:[#allocation2 + $0x94] sm:$0x1] %v6851_v52  ;;  %v13762_v55 = vpack.c.bf16 %v6074_v43, %v6074_v43  ;;  %v17142_v18 = vrot.slane %v7049_v9, 5  ;;  %v7060_v11 = vshrl.u32 %v6952_v8, 16  ;;  %v13278_v26 = vcombine.low %v17121_v4, %v6952_v8  ;;  %v5927_v52 = vpop.f32.mrf.mxu0 }
 0x251   : > { %v6545_v59 = vor.u32 %v6543_v39, %v6542_v2  ;;  %v6546_v31 = vrot.slane %v6542_v2, 4  ;;  %v7063_v27 = vshll.u32 %v6952_v8, 16  ;;  %v6580_v7 = vshrl.u32 %v13764_v62, 16  ;;  %v6954_v53 = vld [vmem:[#allocation2 + $0x28] sm:$0xf]  ;;  %v14469_v2 = vpop.f32.mrf.mxu1 }
 0x252   : > { %v6583_v58 = vshll.u32 %v13764_v62, 16  ;;  %v6564_v47 = vshrl.u32 %v13762_v55, 16  ;;  %v6567_v60 = vshll.u32 %v13762_v55, 16  ;;  %v6868_v0 = vld [vmem:[#allocation2 + $0xbc] sm:$0x1]  ;;  %v17154_v10 = vrot.slane %v7060_v11, 4  ;;  %14554 = vmatmul.mubr.msk.bf16.vlgmr.msra.gmra.mxu0 %vm7530_vm14, %v13278_v26 }
 0x253   : > { %v6836_v40 = vsel %vm16544_vm10, %v6545_v59, %v6835_v28  ;;  %v6839_v9 = vsel %vm16518_vm6, %v6546_v31, %v6838_v15  ;;  %v6853_v4 = vld [vmem:[#allocation2 + $0xa8] sm:$0xf]  ;;  %v17156_v39 = vrot.slane %v7063_v27, 5  ;;  %v6582_v8 = vrot.slane %v6580_v7, 7  ;;  %v6856_v48 = vld [vmem:[#allocation2 + $0xac] sm:$0x1] }
 0x254   : > { %6837 = vst [vmem:[#allocation2 + $0x80] sm:$0xf] %v6836_v40  ;;  %6840 = vst [vmem:[#allocation2 + $0x84] sm:$0x1] %v6839_v9  ;;  %v6566_v3 = vrot.slane %v6564_v47, 7  ;;  %v19745_v16 = vld [vmem:[#allocation40_spill] sm:$0xff]  ;;  %v5194_v37 = vadd.f32 %v5117_v42, %v16991_v12  ;;  %v7052_v38 = vor.u32 %v17142_v18, %v17140_v35 }
 0x255   : > { %v5196_v43 = vadd.f32 %v14466_v36, %v19745_v16  ;;  %v15106_v28 = vld [vmem:[%s19626_s3 + $0x38] sm:$0xff]   ;;  %v7074_v15 = vshrl.u32 %v17145_v5, 16  ;;  %v7077_v62 = vshll.u32 %v17145_v5, 16  ;;  %v7088_v55 = vshrl.u32 %v6954_v53, 16  ;;  %v6986_v47 = vld [vmem:[#allocation2 + $0xc] sm:$0x1] }
 0x256   : > { %14622 = vmatpush3.bf16.msra.mxu0 %v15106_v28  ;;  %v7091_v11 = vshll.u32 %v6954_v53, 16  ;;  %v6585_v59 = vor.u32 %v6583_v58, %v6582_v8  ;;  %v6586_v31 = vrot.slane %v6582_v8, 4  ;;  %v6569_v27 = vor.u32 %v6567_v60, %v6566_v3  ;;  %v14503_v60 = vpop.f32.mrf.mxu0  ;;  %v17178_v8 = vld [vmem:[#allocation2 + $0x30] sm:$0xf] }
 0x257   : > { %14623 = vmatprep.subr.bf16.mxu0 %v15042_v30  ;;  %v6570_v36 = vrot.slane %v6566_v3, 4  ;;  %v6006_v26 = vadd.f32 %v14500_v61, %v5196_v43  ;;  %v6004_v12 = vadd.f32 %v5927_v52, %v5194_v37  ;;  %v17166_v42 = vrot.slane %v7074_v15, 4  ;;  %v5130_v61 = vpop.f32.mrf.mxu1  ;;  %v15053_v3 = vld [vmem:[%s19626_s3 + $0x58] sm:$0xff]  }
 0x258   : > { %v17168_v7 = vrot.slane %v7077_v62, 5  ;;  %v6866_v40 = vsel %vm16544_vm10, %v6585_v59, %v6865_v54  ;;  %v6869_v9 = vsel %vm16518_vm6, %v6586_v31, %v6868_v0  ;;  %v6854_v16 = vsel %vm16544_vm10, %v6569_v27, %v6853_v4  ;;  %v19746_v52 = vld [vmem:[#allocation42_spill] sm:$0xff]  ;;  %v19747_v59 = vld [vmem:[#allocation43_spill] sm:$0xff] }
 0x259   : > { %v6857_v58 = vsel %vm16518_vm6, %v6570_v36, %v6856_v48  ;;  %6867 = vst [vmem:[#allocation2 + $0xb8] sm:$0xf] %v6866_v40  ;;  %6870 = vst [vmem:[#allocation2 + $0xbc] sm:$0x1] %v6869_v9  ;;  %v6045_v54 = vadd.f32 %v16970_v32, %v6006_v26  ;;  %v6043_v0 = vadd.f32 %v16970_v32, %v6004_v12  ;;  %v17185_v4 = vrot.slane %v7088_v55, 4 }
 0x25a   : > { %14624 = vmatpush3.bf16.msra.mxu0 %v15042_v30  ;;  %6855 = vst [vmem:[#allocation2 + $0xa8] sm:$0xf] %v6854_v16  ;;  %6858 = vst [vmem:[#allocation2 + $0xac] sm:$0x1] %v6857_v58  ;;  %v17187_v48 = vrot.slane %v7091_v11, 5  ;;  %v13279_v43 = vcombine.low %v17145_v5, %v6954_v53  ;;  %v7038_v30 = vor.u32 %v17115_v41, %v17112_v34  ;;  %v7041_v37 = vshll.u32 %v6986_v47, 16  ;;  %v5940_v5 = vpop.f32.mrf.mxu0 }
 0x25b   : > { %v5199_v28 = vadd.f32 %v14469_v2, %v19746_v52  ;;  %14693 = vmatprep.subr.bf16.mxu0 %v15053_v3  ;;  %v6077_v15 = vmax.f32 %v6045_v54, 0.0  ;;  %v6075_v62 = vmax.f32 %v6043_v0, 0.0  ;;  %v5197_v31 = vadd.f32 %v5130_v61, %v19747_v59  ;;  %v6956_v27 = vld [vmem:[#allocation2 + $0x38] sm:$0xf]  ;;  %v6987_v54 = vld [vmem:[#allocation2 + $0x14] sm:$0x1] }
 0x25c   : > { %v7102_v36 = vshrl.u32 %v17178_v8, 16  ;;  %14557 = vmatprep.mubr.msk.bf16.mxu0 %vm7530_vm14, %v13279_v43  ;;  %v7039_v55 = vrot.slane %v7038_v30, 4  ;;  %v7043_v11 = vrot.slane %v7041_v37, 5  ;;  %v7105_v53 = vshll.u32 %v17178_v8, 16  ;;  %v6871_v0 = vld [vmem:[#allocation2 + $0xc0] sm:$0xf] }
 0x25d   : > { %v6009_v26 = vadd.f32 %v14503_v60, %v5199_v28  ;;  %v13765_v34 = vpack.c.bf16 %v6077_v15, %v6077_v15  ;;  %v13763_v41 = vpack.c.bf16 %v6075_v62, %v6075_v62  ;;  %v6007_v12 = vadd.f32 %v5940_v5, %v5197_v31  ;;  %v6874_v15 = vld [vmem:[#allocation2 + $0xc4] sm:$0x1] }
 0x25e   : > { %v17197_v2 = vrot.slane %v7102_v36, 4  ;;  %v7044_v47 = vsel %vm15641_vm3, %v7039_v55, %v7043_v11  ;;  %v17202_v9 = vrot.slane %v7105_v53, 5  ;;  %v7116_v16 = vshrl.u32 %v6956_v27, 16  ;;  %v14470_v36 = vpop.f32.mrf.mxu1  ;;  %v6859_v55 = vld [vmem:[#allocation2 + $0xb0] sm:$0xf] }
 0x25f   : > { %v6048_v40 = vadd.f32 %v16970_v32, %v6009_v26  ;;  %v6588_v58 = vshrl.u32 %v13765_v34, 16  ;;  %v6591_v61 = vshll.u32 %v13765_v34, 16  ;;  %v6572_v3 = vshrl.u32 %v13763_v41, 16  ;;  %v6862_v11 = vld [vmem:[#allocation2 + $0xb4] sm:$0x1] }
 0x260   : > { %v6575_v60 = vshll.u32 %v13763_v41, 16  ;;  %v13243_v43 = vcombine.low %v7030_v24, %v7044_v47  ;;  %v6046_v37 = vadd.f32 %v16970_v32, %v6007_v12  ;;  %v17210_v52 = vrot.slane %v7116_v16, 4  ;;  %v6988_v41 = vld [vmem:[#allocation2 + $0x1c] sm:$0x1] }
 0x261   : > { %v6080_v30 = vmax.f32 %v6048_v40, 0.0  ;;  %v6590_v28 = vrot.slane %v6588_v58, 7  ;;  %v6574_v62 = vrot.slane %v6572_v3, 7  ;;  %v7119_v59 = vshll.u32 %v6956_v27, 16  ;;  %v14504_v58 = vpop.f32.mrf.mxu0 }
 0x262   : > { %v13280_v31 = vcombine.low %v17178_v8, %v6956_v27  ;;  %14517 = vmatprep.mubr.msk.bf16.mxu1 %vm7530_vm14, %v13243_v43  ;;  %v6078_v5 = vmax.f32 %v6046_v37, 0.0  ;;  %v7055_v56 = vshll.u32 %v6987_v54, 16  ;;  %v7053_v43 = vrot.slane %v7052_v38, 4 }
 0x263   : > { %v13768_v26 = vpack.c.bf16 %v6080_v30, %v6080_v30  ;;  %v6593_v24 = vor.u32 %v6591_v61, %v6590_v28  ;;  %v6594_v32 = vrot.slane %v6590_v28, 4  ;;  %v6577_v53 = vor.u32 %v6575_v60, %v6574_v62  ;;  %v5133_v61 = vpop.f32.mrf.mxu1  ;;  %v6892_v30 = vld [vmem:[#allocation2 + $0xdc] sm:$0x1] }
 0x264   : > { %v6578_v34 = vrot.slane %v6574_v62, 4  ;;  %14558 = vmatmul.mubr.msk.bf16.gmra.mxu0 %vm7530_vm14, %v13280_v31  ;;  %v13766_v27 = vpack.c.bf16 %v6078_v5, %v6078_v5  ;;  %v17217_v47 = vrot.slane %v7119_v59, 5  ;;  %v7057_v37 = vrot.slane %v7055_v56, 5  ;;  %v19748_v62 = vld [vmem:[#allocation8_spill] sm:$0xff] }
 0x265   : > { %v6612_v12 = vshrl.u32 %v13768_v26, 16  ;;  %v6615_v8 = vshll.u32 %v13768_v26, 16  ;;  %v6872_v40 = vsel %vm16544_vm10, %v6593_v24, %v6871_v0  ;;  %v6875_v16 = vsel %vm16518_vm6, %v6594_v32, %v6874_v15  ;;  %v6889_v0 = vld [vmem:[#allocation2 + $0xd8] sm:$0xf]  ;;  %v6877_v26 = vld [vmem:[#allocation2 + $0xc8] sm:$0xf] }
 0x266   : > { %v6860_v35 = vsel %vm16544_vm10, %v6577_v53, %v6859_v55  ;;  %v6863_v18 = vsel %vm16518_vm6, %v6578_v34, %v6862_v11  ;;  %6873 = vst [vmem:[#allocation2 + $0xc0] sm:$0xf] %v6872_v40  ;;  %6876 = vst [vmem:[#allocation2 + $0xc4] sm:$0x1] %v6875_v16  ;;  %v6596_v60 = vshrl.u32 %v13766_v27, 16  ;;  %v6599_v54 = vshll.u32 %v13766_v27, 16  ;;  %v14473_v27 = vpop.f32.mrf.mxu1 }
 0x267   : > { %6861 = vst [vmem:[#allocation2 + $0xb0] sm:$0xf] %v6860_v35  ;;  %6864 = vst [vmem:[#allocation2 + $0xb4] sm:$0x1] %v6863_v18  ;;  %v6614_v3 = vrot.slane %v6612_v12, 7  ;;  %v7066_v28 = vor.u32 %v17156_v39, %v17154_v10  ;;  %v7069_v15 = vshll.u32 %v6988_v41, 16  ;;  %v5200_v59 = vadd.f32 %v14470_v36, %v19748_v62  ;;  %v5943_v12 = vpop.f32.mrf.mxu0 }
 0x268   : > { %v6598_v11 = vrot.slane %v6596_v60, 7  ;;  %v5198_v5 = vadd.f32 %v5133_v61, %v17001_v6  ;;  %v6958_v24 = vld [vmem:[#allocation2 + $0x58] sm:$0xf]  ;;  %v6880_v32 = vld [vmem:[#allocation2 + $0xcc] sm:$0x1]  ;;  %v7058_v38 = vsel %vm15641_vm3, %v7053_v43, %v7057_v37  ;;  %v15041_v43 = vld [vmem:[%s19626_s3 + $0x20] sm:$0xff]  }
 0x269   : > { %v6617_v31 = vor.u32 %v6615_v8, %v6614_v3  ;;  %v6618_v55 = vrot.slane %v6614_v3, 4  ;;  %v7067_v53 = vrot.slane %v7066_v28, 4  ;;  %v7071_v34 = vrot.slane %v7069_v15, 5  ;;  %v17242_v8 = vld [vmem:[%s19625_s2] ss:$0 sm:$0xff]  ;;  %v14507_v62 = vpop.f32.mrf.mxu0 }
 0x26a   : > { %v6010_v56 = vadd.f32 %v14504_v58, %v5200_v59  ;;  %v6601_v36 = vor.u32 %v6599_v54, %v6598_v11  ;;  %v6602_v41 = vrot.slane %v6598_v11, 4  ;;  %v6008_v16 = vadd.f32 %v5943_v12, %v5198_v5  ;;  %v6989_v18 = vld [vmem:[#allocation2 + $0x24] sm:$0x1]  ;;  %v6990_v54 = vld [vmem:[#allocation2 + $0x2c] sm:$0x1]  ;;  %v5146_v59 = vpop.f32.mrf.mxu1 }
 0x26b   : > { %v6890_v10 = vsel %vm16544_vm10, %v6617_v31, %v6889_v0  ;;  %v6893_v39 = vsel %vm16518_vm6, %v6618_v55, %v6892_v30  ;;  %v7072_v6 = vsel %vm15641_vm3, %v7067_v53, %v7071_v34  ;;  %v7144_v35 = vshrl.u32 %v6958_v24, 16  ;;  %v15108_v28 = vld [vmem:[#allocation2 + $0x50] sm:$0xf]  ;;  %v15109_v5 = vld [vmem:[%s19626_s3 + $0x28] sm:$0xff]   ;;  %v17267_v34 = vld [vmem:[#allocation2 + $0x60] sm:$0xf] }
 0x26c   : > { %6891 = vst [vmem:[#allocation2 + $0xd8] sm:$0xf] %v6890_v10  ;;  %6894 = vst [vmem:[#allocation2 + $0xdc] sm:$0x1] %v6893_v39  ;;  %v6049_v40 = vadd.f32 %v17242_v8, %v6010_v56  ;;  %v6878_v58 = vsel %vm16544_vm10, %v6601_v36, %v6877_v26  ;;  %v6881_v61 = vsel %vm16518_vm6, %v6602_v41, %v6880_v32  ;;  %v7147_v60 = vshll.u32 %v6958_v24, 16  ;;  %v5956_v41 = vpop.f32.mrf.mxu0 }
 0x26d   : > { %v13244_v3 = vcombine.low %v7058_v38, %v7072_v6  ;;  %6879 = vst [vmem:[#allocation2 + $0xc8] sm:$0xf] %v6878_v58  ;;  %6882 = vst [vmem:[#allocation2 + $0xcc] sm:$0x1] %v6881_v61  ;;  %v6047_v30 = vadd.f32 %v17242_v8, %v6008_v16  ;;  %v17253_v37 = vrot.slane %v7144_v35, 4  ;;  %v13281_v15 = vcombine.low %v15108_v28, %v6958_v24 }
 0x26e   : > { %v6081_v0 = vmax.f32 %v6049_v40, 0.0  ;;  %v17256_v31 = vrot.slane %v7147_v60, 5  ;;  %v7080_v55 = vor.u32 %v17168_v7, %v17166_v42  ;;  %v7083_v11 = vshll.u32 %v6989_v18, 16  ;;  %v6895_v6 = vld [vmem:[#allocation2 + $0xe0] sm:$0xf] }
 0x26f   : > { %14518 = vmatmul.mubr.msk.bf16.vlgmr.msra.gmra.mxu1 %vm7530_vm14, %v13244_v3  ;;  %v7094_v26 = vor.u32 %v17187_v48, %v17185_v4  ;;  %v6079_v24 = vmax.f32 %v6047_v30, 0.0  ;;  %14561 = vmatprep.mubr.msk.bf16.mxu0 %vm7530_vm14, %v13281_v15  ;;  %v7097_v38 = vshll.u32 %v6990_v54, 16  ;;  %v5203_v53 = vadd.f32 %v14473_v27, %v16890_v45  ;;  %v15051_v4 = vld [vmem:[%s19626_s3 + $0x48] sm:$0xff]   ;;  %v6898_v3 = vld [vmem:[#allocation2 + $0xe4] sm:$0x1] }
 0x270   : > { %14586 = vmatpush3.bf16.msra.mxu1 %v15109_v5  ;;  %v13769_v32 = vpack.c.bf16 %v6081_v0, %v6081_v0  ;;  %v7081_v56 = vrot.slane %v7080_v55, 4  ;;  %v7085_v42 = vrot.slane %v7083_v11, 5  ;;  %v5201_v12 = vadd.f32 %v5146_v59, %v16901_v57  ;;  %v6960_v16 = vld [vmem:[#allocation2 + $0x68] sm:$0xf]  ;;  %v6883_v60 = vld [vmem:[#allocation2 + $0xd0] sm:$0xf]  ;;  %v14474_v11 = vpop.f32.mrf.mxu1 }
 0x271   : > { %v7095_v7 = vrot.slane %v7094_v26, 4  ;;  %14587 = vmatprep.subr.bf16.mxu1 %v15041_v43  ;;  %v13767_v39 = vpack.c.bf16 %v6079_v24, %v6079_v24  ;;  %v7099_v36 = vrot.slane %v7097_v38, 5  ;;  %v6013_v27 = vadd.f32 %v14507_v62, %v5203_v53  ;;  %v6886_v26 = vld [vmem:[#allocation2 + $0xd4] sm:$0x1] }
 0x272   : > { %v6620_v48 = vshrl.u32 %v13769_v32, 16  ;;  %v6623_v10 = vshll.u32 %v13769_v32, 16  ;;  %v7086_v45 = vsel %vm15641_vm3, %v7081_v56, %v7085_v42  ;;  %v6011_v40 = vadd.f32 %v5956_v41, %v5201_v12 }
 0x273   : > { %v7158_v35 = vshrl.u32 %v17267_v34, 16  ;;  %v6604_v18 = vshrl.u32 %v13767_v39, 16  ;;  %v6607_v58 = vshll.u32 %v13767_v39, 16  ;;  %v7100_v61 = vsel %vm15641_vm3, %v7095_v7, %v7099_v36  ;;  %v17294_v39 = vld [vmem:[#allocation2 + $0x3c] sm:$0x1] }
 0x274   : > { %v6622_v57 = vrot.slane %v6620_v48, 7  ;;  %14588 = vmatpush3.bf16.msra.mxu1 %v15041_v43  ;;  %v13245_v54 = vcombine.low %v7086_v45, %v7100_v61  ;;  %v6052_v0 = vadd.f32 %v17242_v8, %v6013_v27  ;;  %v6050_v30 = vadd.f32 %v17242_v8, %v6011_v40  ;;  %v5149_v27 = vpop.f32.mrf.mxu1  ;;  %v6913_v61 = vld [vmem:[#allocation2 + $0x108] sm:$0xf] }
 0x275   : > { %v17280_v28 = vrot.slane %v7158_v35, 4  ;;  %14657 = vmatprep.subr.bf16.mxu1 %v15051_v4  ;;  %v6606_v59 = vrot.slane %v6604_v18, 7  ;;  %v7161_v55 = vshll.u32 %v17267_v34, 16  ;;  %v7172_v32 = vshrl.u32 %v6960_v16, 16 }
 0x276   : > { %v6625_v15 = vor.u32 %v6623_v10, %v6622_v57  ;;  %v6626_v62 = vrot.slane %v6622_v57, 4  ;;  %14521 = vmatprep.mubr.msk.bf16.mxu1 %vm7530_vm14, %v13245_v54  ;;  %v6084_v43 = vmax.f32 %v6052_v0, 0.0  ;;  %v6082_v5 = vmax.f32 %v6050_v30, 0.0  ;;  %v17292_v10 = vld [vmem:[#allocation2 + $0x34] sm:$0x1] }
 0x277   : > { %v7175_v24 = vshll.u32 %v6960_v16, 16  ;;  %v6609_v56 = vor.u32 %v6607_v58, %v6606_v59  ;;  %v6610_v42 = vrot.slane %v6606_v59, 4  ;;  %v17288_v4 = vrot.slane %v7161_v55, 5  ;;  %v14508_v58 = vpop.f32.mrf.mxu0  ;;  %v6916_v0 = vld [vmem:[#allocation2 + $0x10c] sm:$0x1] }
 0x278   : > { %v6896_v38 = vsel %vm16544_vm10, %v6625_v15, %v6895_v6  ;;  %v6899_v53 = vsel %vm16518_vm6, %v6626_v62, %v6898_v3  ;;  %v13772_v7 = vpack.c.bf16 %v6084_v43, %v6084_v43  ;;  %v13770_v12 = vpack.c.bf16 %v6082_v5, %v6082_v5  ;;  %v6901_v15 = vld [vmem:[#allocation2 + $0xf8] sm:$0xf]  ;;  %v6904_v55 = vld [vmem:[#allocation2 + $0xfc] sm:$0x1] }
 0x279   : > { %6897 = vst [vmem:[#allocation2 + $0xe0] sm:$0xf] %v6896_v38  ;;  %6900 = vst [vmem:[#allocation2 + $0xe4] sm:$0x1] %v6899_v53  ;;  %v17290_v48 = vrot.slane %v7172_v32, 4  ;;  %v6884_v36 = vsel %vm16544_vm10, %v6609_v56, %v6883_v60  ;;  %v6887_v41 = vsel %vm16518_vm6, %v6610_v42, %v6886_v26  ;;  %v17300_v6 = vrot.slane %v7175_v24, 5  ;;  %v14477_v42 = vpop.f32.mrf.mxu1 }
 0x27a   : > { %v13282_v45 = vcombine.low %v17267_v34, %v6960_v16  ;;  %6885 = vst [vmem:[#allocation2 + $0xd0] sm:$0xf] %v6884_v36  ;;  %6888 = vst [vmem:[#allocation2 + $0xd4] sm:$0x1] %v6887_v41  ;;  %v6644_v40 = vshrl.u32 %v13772_v7, 16  ;;  %v6647_v35 = vshll.u32 %v13772_v7, 16  ;;  %v7108_v3 = vor.u32 %v17202_v9, %v17197_v2 }
 0x27b   : > { %v6628_v57 = vshrl.u32 %v13770_v12, 16  ;;  %v6631_v18 = vshll.u32 %v13770_v12, 16  ;;  %v7111_v60 = vshll.u32 %v17292_v10, 16  ;;  %v7122_v54 = vor.u32 %v17217_v47, %v17210_v52  ;;  %v5959_v52 = vpop.f32.mrf.mxu0  ;;  %v6961_v47 = vld [vmem:[#allocation2 + $0x70] sm:$0xf] }
 0x27c   : > { %14562 = vmatmul.mubr.msk.bf16.gmra.mxu0 %vm7530_vm14, %v13282_v45  ;;  %v7125_v34 = vshll.u32 %v17294_v39, 16  ;;  %v6646_v16 = vrot.slane %v6644_v40, 7  ;;  %v5204_v62 = vadd.f32 %v14474_v11, %v16910_v63  ;;  %v5202_v59 = vadd.f32 %v5149_v27, %v17004_v21  ;;  %v6962_v21 = vld [vmem:[#allocation2 + $0x78] sm:$0xf] }
 0x27d   : > { %v6630_v30 = vrot.slane %v6628_v57, 7  ;;  %v7109_v26 = vrot.slane %v7108_v3, 4  ;;  %v7113_v43 = vrot.slane %v7111_v60, 5  ;;  %v7123_v5 = vrot.slane %v7122_v54, 4  ;;  %v17326_v57 = vld [vmem:[#allocation2 + $0x5c] sm:$0x1] }
 0x27e   : > { %v7127_v2 = vrot.slane %v7125_v34, 5  ;;  %v6649_v9 = vor.u32 %v6647_v35, %v6646_v16  ;;  %v6650_v32 = vrot.slane %v6646_v16, 4  ;;  %v6014_v63 = vadd.f32 %v14508_v58, %v5204_v62 }
 0x27f   : > { %v6633_v24 = vor.u32 %v6631_v18, %v6630_v30  ;;  %v6634_v38 = vrot.slane %v6630_v30, 4  ;;  %v7114_v53 = vsel %vm15641_vm3, %v7109_v26, %v7113_v43  ;;  %v6012_v11 = vadd.f32 %v5959_v52, %v5202_v59  ;;  %v5162_v30 = vpop.f32.mrf.mxu1 }
 0x280   : > { %v7128_v56 = vsel %vm15641_vm3, %v7123_v5, %v7127_v2  ;;  %v6914_v7 = vsel %vm16544_vm10, %v6649_v9, %v6913_v61  ;;  %v6917_v12 = vsel %vm16518_vm6, %v6650_v32, %v6916_v0  ;;  %v6053_v27 = vadd.f32 %v17242_v8, %v6014_v63  ;;  %v14511_v0 = vpop.f32.mrf.mxu0  ;;  %v6964_v63 = vld [vmem:[#allocation2 + $0x88] sm:$0xf] }
 0x281   : > { %v6902_v36 = vsel %vm16544_vm10, %v6633_v24, %v6901_v15  ;;  %v6905_v41 = vsel %vm16518_vm6, %v6634_v38, %v6904_v55  ;;  %6915 = vst [vmem:[#allocation2 + $0x108] sm:$0xf] %v6914_v7  ;;  %6918 = vst [vmem:[#allocation2 + $0x10c] sm:$0x1] %v6917_v12  ;;  %v13246_v45 = vcombine.low %v7114_v53, %v7128_v56  ;;  %v7186_v35 = vshrl.u32 %v6961_v47, 16 }
 0x282   : > { %6903 = vst [vmem:[#allocation2 + $0xf8] sm:$0xf] %v6902_v36  ;;  %6906 = vst [vmem:[#allocation2 + $0xfc] sm:$0x1] %v6905_v41  ;;  %v6051_v40 = vadd.f32 %v17242_v8, %v6012_v11  ;;  %v7189_v18 = vshll.u32 %v6961_v47, 16  ;;  %v7200_v58 = vshrl.u32 %v6962_v21, 16  ;;  %v13283_v3 = vcombine.low %v6961_v47, %v6962_v21  ;;  %v5972_v56 = vpop.f32.mrf.mxu0 }
 0x283   : > { %v7203_v61 = vshll.u32 %v6962_v21, 16  ;;  %14522 = vmatmul.mubr.msk.bf16.gmra.mxu1 %vm7530_vm14, %v13246_v45  ;;  %v6085_v60 = vmax.f32 %v6053_v27, 0.0  ;;  %v17329_v34 = vrot.slane %v7186_v35, 4  ;;  %v7150_v16 = vor.u32 %v17256_v31, %v17253_v37  ;;  %v17333_v15 = vld [vmem:[#allocation2 + $0x80] sm:$0xf] }
 0x284   : > { %v6083_v54 = vmax.f32 %v6051_v40, 0.0  ;;  %v17335_v62 = vrot.slane %v7189_v18, 5  ;;  %v17337_v59 = vrot.slane %v7200_v58, 4  ;;  %14565 = vmatprep.mubr.msk.bf16.mxu0 %vm7530_vm14, %v13283_v3  ;;  %v7153_v26 = vshll.u32 %v17326_v57, 16  ;;  %v6919_v11 = vld [vmem:[#allocation2 + $0x110] sm:$0xf] }
 0x285   : > { %v17339_v55 = vrot.slane %v7203_v61, 5  ;;  %v13773_v43 = vpack.c.bf16 %v6085_v60, %v6085_v60  ;;  %v7151_v2 = vrot.slane %v7150_v16, 4  ;;  %v5207_v9 = vadd.f32 %v14477_v42, %v16941_v13  ;;  %v6922_v21 = vld [vmem:[#allocation2 + $0x114] sm:$0x1]  ;;  %v6907_v41 = vld [vmem:[#allocation2 + $0x100] sm:$0xf] }
 0x286   : > { %v13771_v5 = vpack.c.bf16 %v6083_v54, %v6083_v54  ;;  %v7155_v37 = vrot.slane %v7153_v26, 5  ;;  %v5205_v31 = vadd.f32 %v5162_v30, %v16948_v14  ;;  %v7214_v32 = vshrl.u32 %v17333_v15, 16  ;;  %v6910_v40 = vld [vmem:[#allocation2 + $0x104] sm:$0x1]  ;;  %v14478_v30 = vpop.f32.mrf.mxu1 }
 0x287   : > { %v7217_v24 = vshll.u32 %v17333_v15, 16  ;;  %v6652_v38 = vshrl.u32 %v13773_v43, 16  ;;  %v6655_v52 = vshll.u32 %v13773_v43, 16  ;;  %v6017_v12 = vadd.f32 %v14511_v0, %v5207_v9  ;;  %v17361_v0 = vld [vmem:[#allocation2 + $0x6c] sm:$0x1] }
 0x288   : > { %v6636_v47 = vshrl.u32 %v13771_v5, 16  ;;  %v6639_v53 = vshll.u32 %v13771_v5, 16  ;;  %v7156_v7 = vsel %vm15641_vm3, %v7151_v2, %v7155_v37  ;;  %v6015_v13 = vadd.f32 %v5972_v56, %v5205_v31  ;;  %v17367_v43 = vld [vmem:[#allocation2 + $0x64] sm:$0x1] }
 0x289   : > { %v17349_v42 = vrot.slane %v7214_v32, 4  ;;  %v6654_v14 = vrot.slane %v6652_v38, 7  ;;  %v13247_v45 = vcombine.low %v7142_v20, %v7156_v7  ;;  %v17356_v27 = vrot.slane %v7217_v24, 5 }
 0x28a   : > { %v6638_v36 = vrot.slane %v6636_v47, 7  ;;  %v6056_v35 = vadd.f32 %v17242_v8, %v6017_v12  ;;  %v6054_v18 = vadd.f32 %v17242_v8, %v6015_v13  ;;  %v7228_v58 = vshrl.u32 %v6964_v63, 16 }
 0x28b   : > { %v7231_v61 = vshll.u32 %v6964_v63, 16  ;;  %v6657_v3 = vor.u32 %v6655_v52, %v6654_v14  ;;  %v6658_v60 = vrot.slane %v6654_v14, 4  ;;  %14525 = vmatprep.mubr.msk.bf16.mxu1 %vm7530_vm14, %v13247_v45  ;;  %v13284_v24 = vcombine.low %v17333_v15, %v6964_v63  ;;  %v14512_v15 = vpop.f32.mrf.mxu0  ;;  %v6298_v63 = vld [vmem:[#allocation2 + $0x124] sm:$0x1] }
 0x28c   : > { %v6641_v54 = vor.u32 %v6639_v53, %v6638_v36  ;;  %v6642_v16 = vrot.slane %v6638_v36, 4  ;;  %v6088_v25 = vmax.f32 %v6056_v35, 0.0  ;;  %v6086_v50 = vmax.f32 %v6054_v18, 0.0  ;;  %v6925_v18 = vld [vmem:[#allocation2 + $0x118] sm:$0xf] }
 0x28d   : > { %v17363_v20 = vrot.slane %v7228_v58, 4  ;;  %v17365_v26 = vrot.slane %v7231_v61, 5  ;;  %v6920_v5 = vsel %vm16544_vm10, %v6657_v3, %v6919_v11  ;;  %v6923_v2 = vsel %vm16518_vm6, %v6658_v60, %v6922_v21  ;;  %v5165_v11 = vpop.f32.mrf.mxu1  ;;  %v6200_v21 = vld [vmem:[#allocation2 + $0x120] sm:$0x1]  ;;  %14566 = vmatmul.mubr.msk.bf16.gmra.mxu0 %vm7530_vm14, %v13284_v24  ;;  %v6928_v58 = vld [vmem:[#allocation2 + $0x11c] sm:$0x1] }
 0x28e   : > { %v6908_v9 = vsel %vm16544_vm10, %v6641_v54, %v6907_v41  ;;  %v6911_v37 = vsel %vm16518_vm6, %v6642_v16, %v6910_v40  ;;  %6921 = vst [vmem:[#allocation2 + $0x110] sm:$0xf] %v6920_v5  ;;  %6924 = vst [vmem:[#allocation2 + $0x114] sm:$0x1] %v6923_v2  ;;  %v13776_v31 = vpack.c.bf16 %v6088_v25, %v6088_v25  ;;  %v7167_v52 = vshll.u32 %v17367_v43, 16  ;;  %v5975_v5 = vpop.f32.mrf.mxu0 }
 0x28f   : > { %6909 = vst [vmem:[#allocation2 + $0x100] sm:$0xf] %v6908_v9  ;;  %6912 = vst [vmem:[#allocation2 + $0x104] sm:$0x1] %v6911_v37  ;;  %v13774_v32 = vpack.c.bf16 %v6086_v50, %v6086_v50  ;;  %v7164_v38 = vor.u32 %v17288_v4, %v17280_v28  ;;  %v7178_v47 = vor.u32 %v17300_v6, %v17290_v48  ;;  %v7181_v53 = vshll.u32 %v17361_v0, 16 }
 0x290   : > { %v5208_v56 = vadd.f32 %v14478_v30, %v16961_v44  ;;  %v6676_v7 = vshrl.u32 %v13776_v31, 16  ;;  %v6679_v12 = vshll.u32 %v13776_v31, 16  ;;  %v7169_v4 = vrot.slane %v7167_v52, 5  ;;  %v6937_v48 = vld [vmem:[#allocation2 + $0x128] sm:$0xf] }
 0x291   : > { %v6660_v13 = vshrl.u32 %v13774_v32, 16  ;;  %v6663_v14 = vshll.u32 %v13774_v32, 16  ;;  %v7165_v28 = vrot.slane %v7164_v38, 4  ;;  %v7179_v36 = vrot.slane %v7178_v47, 4  ;;  %v6940_v6 = vld [vmem:[#allocation2 + $0x12c] sm:$0x1] }
 0x292   : > { %v7183_v41 = vrot.slane %v7181_v53, 5  ;;  %v6678_v45 = vrot.slane %v6676_v7, 7  ;;  %v6018_v35 = vadd.f32 %v14512_v15, %v5208_v56  ;;  %v5206_v44 = vadd.f32 %v5165_v11, %v17015_v49  ;;  %v6966_v49 = vld [vmem:[#allocation2 + $0xa8] sm:$0xf]  ;;  %v17400_v32 = vld [vmem:[#allocation2 + $0x74] sm:$0x1] }
 0x293   : > { %v6662_v40 = vrot.slane %v6660_v13, 7  ;;  %v7170_v61 = vsel %vm15641_vm3, %v7165_v28, %v7169_v4  ;;  %v6201_v60 = vsel %vm16518_vm6, 0, %v6200_v21  ;;  %v6299_v54 = vsel %vm16526_vm8, 0, %v6298_v63  ;;  %v17416_v11 = vld [vmem:[#allocation2 + $0x7c] sm:$0x1] }
 0x294   : > { %v7184_v3 = vsel %vm15641_vm3, %v7179_v36, %v7183_v41  ;;  %v6681_v16 = vor.u32 %v6679_v12, %v6678_v45  ;;  %v6682_v30 = vrot.slane %v6678_v45, 4  ;;  %6202 = vst [vmem:[#allocation2 + $0x120] sm:$0x1] %v6201_v60  ;;  %6300 = vst [vmem:[#allocation2 + $0x124] sm:$0x1] %v6299_v54  ;;  %v6057_v9 = vadd.f32 %v17242_v8, %v6018_v35 }
 0x295   : > { %v6665_v25 = vor.u32 %v6663_v14, %v6662_v40  ;;  %v6666_v50 = vrot.slane %v6662_v40, 4  ;;  %v13248_v2 = vcombine.low %v7170_v61, %v7184_v3  ;;  %v6016_v37 = vadd.f32 %v5975_v5, %v5206_v44  ;;  %v15110_v7 = vld [vmem:[#allocation2 + $0xa0] sm:$0xf]  ;;  %v6967_v15 = vld [vmem:[#allocation2 + $0xb0] sm:$0xf] }
 0x296   : > { %v17398_v31 = vrot.slane %v7242_v46, 4  ;;  %v6938_v17 = vsel %vm16544_vm10, %v6681_v16, %v6937_v48  ;;  %v6941_v24 = vsel %vm16518_vm6, %v6682_v30, %v6940_v6  ;;  %v6089_v46 = vmax.f32 %v6057_v9, 0.0  ;;  %v6968_v45 = vld [vmem:[#allocation2 + $0xb8] sm:$0xf]  ;;  %v6943_v40 = vld [vmem:[#allocation2 + $0x130] sm:$0xf] }
 0x297   : > { %v6926_v38 = vsel %vm16544_vm10, %v6665_v25, %v6925_v18  ;;  %v6929_v52 = vsel %vm16518_vm6, %v6666_v50, %v6928_v58  ;;  %6939 = vst [vmem:[#allocation2 + $0x128] sm:$0xf] %v6938_v17  ;;  %6942 = vst [vmem:[#allocation2 + $0x12c] sm:$0x1] %v6941_v24  ;;  %14526 = vmatmul.mubr.msk.bf16.gmra.mxu1 %vm7530_vm14, %v13248_v2  ;;  %v6055_v47 = vadd.f32 %v17242_v8, %v6016_v37  ;;  %v6946_v35 = vld [vmem:[#allocation2 + $0x134] sm:$0x1] }
 0x298   : > { %6927 = vst [vmem:[#allocation2 + $0x118] sm:$0xf] %v6926_v38  ;;  %6930 = vst [vmem:[#allocation2 + $0x11c] sm:$0x1] %v6929_v52  ;;  %v17414_v53 = vrot.slane %v7245_v22, 5  ;;  %v7256_v56 = vshrl.u32 %v6966_v49, 16  ;;  %v13285_v12 = vcombine.low %v15110_v7, %v6966_v49  ;;  %v7192_v13 = vor.u32 %v17335_v62, %v17329_v34 }
 0x299   : > { %v7259_v21 = vshll.u32 %v6966_v49, 16  ;;  %v7195_v14 = vshll.u32 %v17400_v32, 16  ;;  %v13777_v63 = vpack.c.bf16 %v6089_v46, %v6089_v46  ;;  %v6087_v28 = vmax.f32 %v6055_v47, 0.0  ;;  %v17432_v54 = vld [vmem:[#allocation2 + $0x84] sm:$0x1] }
 0x29a   : > { %v17421_v4 = vrot.slane %v7256_v56, 4  ;;  %v7206_v29 = vor.u32 %v17339_v55, %v17337_v59  ;;  %14569 = vmatprep.mubr.msk.bf16.mxu0 %vm7530_vm14, %v13285_v12  ;;  %v7193_v8 = vrot.slane %v7192_v13, 4  ;;  %v7209_v41 = vshll.u32 %v17416_v11, 16  ;;  %v17434_v16 = vld [vmem:[#allocation2 + $0x8c] sm:$0x1] }
 0x29b   : > { %v17425_v22 = vrot.slane %v7259_v21, 5  ;;  %v7197_v36 = vrot.slane %v7195_v14, 5  ;;  %v6684_v34 = vshrl.u32 %v13777_v63, 16  ;;  %v6687_v62 = vshll.u32 %v13777_v63, 16  ;;  %v6969_v49 = vld [vmem:[#allocation2 + $0xc0] sm:$0xf] }
 0x29c   : > { %v13775_v48 = vpack.c.bf16 %v6087_v28, %v6087_v28  ;;  %v13286_v6 = vcombine.low %v6967_v15, %v6968_v45  ;;  %v7207_v18 = vrot.slane %v7206_v29, 4  ;;  %v7211_v59 = vrot.slane %v7209_v41, 5  ;;  %v6931_v17 = vld [vmem:[#allocation2 + $0x120] sm:$0xf]  ;;  %v6970_v38 = vld [vmem:[#allocation2 + $0xc8] sm:$0xf] }
 0x29d   : > { %v7198_v44 = vsel %vm15641_vm3, %v7193_v8, %v7197_v36  ;;  %v7270_v55 = vshrl.u32 %v6967_v15, 16  ;;  %v6686_v58 = vrot.slane %v6684_v34, 7  ;;  %v7273_v60 = vshll.u32 %v6967_v15, 16  ;;  %v6934_v52 = vld [vmem:[#allocation2 + $0x124] sm:$0x1] }
 0x29e   : > { %v6668_v61 = vshrl.u32 %v13775_v48, 16  ;;  %v6671_v3 = vshll.u32 %v13775_v48, 16  ;;  %14570 = vmatmul.mubr.msk.bf16.gmra.mxu0 %vm7530_vm14, %v13286_v6  ;;  %v7212_v30 = vsel %vm15641_vm3, %v7207_v18, %v7211_v59  ;;  %v7284_v50 = vshrl.u32 %v6968_v45, 16  ;;  %v17461_v48 = vld [vmem:[#allocation2 + $0xac] sm:$0x1] }
 0x29f   : > { %v17438_v25 = vrot.slane %v7270_v55, 4  ;;  %v7287_v5 = vshll.u32 %v6968_v45, 16  ;;  %v6689_v2 = vor.u32 %v6687_v62, %v6686_v58  ;;  %v6690_v9 = vrot.slane %v6686_v58, 4  ;;  %v17473_v18 = vld [vmem:[#allocation2 + $0xa4] sm:$0x1] }
 0x2a0   : > { %v6670_v37 = vrot.slane %v6668_v61, 7  ;;  %v13249_v24 = vcombine.low %v7198_v44, %v7212_v30  ;;  %v17440_v46 = vrot.slane %v7273_v60, 5  ;;  %v17442_v47 = vrot.slane %v7284_v50, 4  ;;  %v6972_v55 = vld [vmem:[#allocation2 + $0xd8] sm:$0xf] }
 0x2a1   : > { %v17444_v56 = vrot.slane %v7287_v5, 5  ;;  %v7220_v21 = vor.u32 %v17356_v27, %v17349_v42  ;;  %v6944_v7 = vsel %vm16544_vm10, %v6689_v2, %v6943_v40  ;;  %v6947_v12 = vsel %vm16518_vm6, %v6690_v9, %v6946_v35  ;;  %v6971_v40 = vld [vmem:[#allocation2 + $0xd0] sm:$0xf]  ;;  %v17483_v30 = vld [vmem:[#allocation2 + $0xbc] sm:$0x1] }
 0x2a2   : > { %v6673_v13 = vor.u32 %v6671_v3, %v6670_v37  ;;  %v6674_v14 = vrot.slane %v6670_v37, 4  ;;  %14529 = vmatprep.mubr.msk.bf16.mxu1 %vm7530_vm14, %v13249_v24  ;;  %6945 = vst [vmem:[#allocation2 + $0x130] sm:$0xf] %v6944_v7  ;;  %6948 = vst [vmem:[#allocation2 + $0x134] sm:$0x1] %v6947_v12  ;;  %v7223_v63 = vshll.u32 %v17432_v54, 16  ;;  %v7234_v28 = vor.u32 %v17365_v26, %v17363_v20 }
 0x2a3   : > { %v7221_v15 = vrot.slane %v7220_v21, 4  ;;  %v7237_v42 = vshll.u32 %v17434_v16, 16  ;;  %v7298_v8 = vshrl.u32 %v6969_v49, 16  ;;  %v7301_v36 = vshll.u32 %v6969_v49, 16  ;;  %v17486_v9 = vld [vmem:[#allocation2 + $0xb4] sm:$0x1] }
 0x2a4   : > { %v6932_v27 = vsel %vm16544_vm10, %v6673_v13, %v6931_v17  ;;  %v6935_v29 = vsel %vm16518_vm6, %v6674_v14, %v6934_v52  ;;  %v7225_v41 = vrot.slane %v7223_v63, 5  ;;  %v7235_v45 = vrot.slane %v7234_v28, 4  ;;  %v6974_v14 = vld [vmem:[#allocation2 + $0xf8] sm:$0xf] }
 0x2a5   : > { %6933 = vst [vmem:[#allocation2 + $0x120] sm:$0xf] %v6932_v27  ;;  %6936 = vst [vmem:[#allocation2 + $0x124] sm:$0x1] %v6935_v29  ;;  %v7239_v34 = vrot.slane %v7237_v42, 5  ;;  %v7312_v62 = vshrl.u32 %v6970_v38, 16  ;;  %v13287_v1 = vcombine.low %v6969_v49, %v6970_v38  ;;  %v7248_v59 = vor.u32 %v17414_v53, %v17398_v31 }
 0x2a6   : > { %v17463_v6 = vrot.slane %v7298_v8, 4  ;;  %v17465_v20 = vrot.slane %v7301_v36, 5  ;;  %v7315_v26 = vshll.u32 %v6970_v38, 16  ;;  %v7226_v33 = vsel %vm15641_vm3, %v7221_v15, %v7225_v41  ;;  %v17508_v41 = vld [vmem:[#allocation2 + $0xc4] sm:$0x1] }
 0x2a7   : > { %v7240_v35 = vsel %vm15641_vm3, %v7235_v45, %v7239_v34  ;;  %v17471_v44 = vrot.slane %v7312_v62, 4  ;;  %14573 = vmatprep.mubr.msk.bf16.mxu0 %vm7530_vm14, %v13287_v1  ;;  %v7251_v3 = vshll.u32 %v17473_v18, 16  ;;  %v7262_v60 = vor.u32 %v17425_v22, %v17421_v4  ;;  %v6973_v22 = vld [vmem:[#allocation2 + $0xf0] sm:$0xf]  ;;  %v17510_v62 = vld [vmem:[#allocation2 + $0xcc] sm:$0x1] }
 0x2a8   : > { %v13250_v58 = vcombine.low %v7226_v33, %v7240_v35  ;;  %v17477_v61 = vrot.slane %v7315_v26, 5  ;;  %v7249_v50 = vrot.slane %v7248_v59, 4  ;;  %v7265_v5 = vshll.u32 %v17461_v48, 16 }
 0x2a9   : > { %v7326_v49 = vshrl.u32 %v6971_v40, 16  ;;  %v7329_v2 = vshll.u32 %v6971_v40, 16  ;;  %v7253_v31 = vrot.slane %v7251_v3, 5  ;;  %v7263_v53 = vrot.slane %v7262_v60, 4 }
 0x2aa   : > { %14530 = vmatmul.mubr.msk.bf16.gmra.mxu1 %vm7530_vm14, %v13250_v58  ;;  %v7340_v37 = vshrl.u32 %v6972_v55, 16  ;;  %v7343_v17 = vshll.u32 %v6972_v55, 16  ;;  %v7267_v24 = vrot.slane %v7265_v5, 5  ;;  %v13288_v4 = vcombine.low %v6971_v40, %v6972_v55  ;;  %v6975_v40 = vld [vmem:[#allocation2 + $0x100] sm:$0xf] }
 0x2ab   : > { %v17489_v38 = vrot.slane %v7326_v49, 4  ;;  %v17491_v52 = vrot.slane %v7329_v2, 5  ;;  %v7254_v21 = vsel %vm15641_vm3, %v7249_v50, %v7253_v31  ;;  %v7276_v13 = vor.u32 %v17440_v46, %v17438_v25  ;;  %v6976_v58 = vld [vmem:[#allocation2 + $0x108] sm:$0xf] }
 0x2ac   : > { %v17495_v7 = vrot.slane %v7340_v37, 4  ;;  %v17497_v12 = vrot.slane %v7343_v17, 5  ;;  %v7268_v15 = vsel %vm15641_vm3, %v7263_v53, %v7267_v24  ;;  %14574 = vmatmul.mubr.msk.bf16.gmra.mxu0 %vm7530_vm14, %v13288_v4  ;;  %v7279_v63 = vshll.u32 %v17486_v9, 16  ;;  %v17532_v37 = vld [vmem:[#allocation2 + $0xdc] sm:$0x1] }
 0x2ad   : > { %v7290_v28 = vor.u32 %v17444_v56, %v17442_v47  ;;  %v7293_v42 = vshll.u32 %v17483_v30, 16  ;;  %v13251_v27 = vcombine.low %v7254_v21, %v7268_v15  ;;  %v7277_v29 = vrot.slane %v7276_v13, 4  ;;  %v17535_v4 = vld [vmem:[#allocation2 + $0xd4] sm:$0x1] }
 0x2ae   : > { %v7354_v8 = vshrl.u32 %v6973_v22, 16  ;;  %v7357_v36 = vshll.u32 %v6973_v22, 16  ;;  %v7281_v25 = vrot.slane %v7279_v63, 5  ;;  %v7368_v34 = vshrl.u32 %v6974_v14, 16 }
 0x2af   : > { %v7291_v46 = vrot.slane %v7290_v28, 4  ;;  %v7295_v45 = vrot.slane %v7293_v42, 5  ;;  %14533 = vmatprep.mubr.msk.bf16.mxu1 %vm7530_vm14, %v13251_v27  ;;  %v7371_v47 = vshll.u32 %v6974_v14, 16  ;;  %v13289_v56 = vcombine.low %v6973_v22, %v6974_v14  ;;  %v6978_v42 = vld [vmem:[#allocation2 + $0x118] sm:$0xf] }
 0x2b0   : > { %v17513_v26 = vrot.slane %v7354_v8, 4  ;;  %v17515_v1 = vrot.slane %v7357_v36, 5  ;;  %v7282_v33 = vsel %vm15641_vm3, %v7277_v29, %v7281_v25  ;;  %v17521_v59 = vrot.slane %v7368_v34, 4 }
 0x2b1   : > { %v7296_v35 = vsel %vm15641_vm3, %v7291_v46, %v7295_v45  ;;  %v7304_v55 = vor.u32 %v17465_v20, %v17463_v6  ;;  %v17525_v60 = vrot.slane %v7371_v47, 5  ;;  %14577 = vmatprep.mubr.msk.bf16.mxu0 %vm7530_vm14, %v13289_v56  ;;  %v7307_v50 = vshll.u32 %v17508_v41, 16 }
 0x2b2   : > { %v13252_v3 = vcombine.low %v7282_v33, %v7296_v35  ;;  %v7318_v5 = vor.u32 %v17477_v61, %v17471_v44  ;;  %v7321_v2 = vshll.u32 %v17510_v62, 16  ;;  %v7382_v31 = vshrl.u32 %v6975_v40, 16  ;;  %v6977_v61 = vld [vmem:[#allocation2 + $0x110] sm:$0xf] }
 0x2b3   : > { %v7305_v49 = vrot.slane %v7304_v55, 4  ;;  %v7385_v53 = vshll.u32 %v6975_v40, 16  ;;  %v7309_v6 = vrot.slane %v7307_v50, 5  ;;  %v7396_v17 = vshrl.u32 %v6976_v58, 16 }
 0x2b4   : > { %14534 = vmatmul.mubr.msk.bf16.gmra.mxu1 %vm7530_vm14, %v13252_v3  ;;  %v7319_v20 = vrot.slane %v7318_v5, 4  ;;  %v7399_v24 = vshll.u32 %v6976_v58, 16  ;;  %v7323_v22 = vrot.slane %v7321_v2, 5  ;;  %v17537_v21 = vrot.slane %v7382_v31, 4  ;;  %v6979_v3 = vld [vmem:[#allocation2 + $0x120] sm:$0xf] }
 0x2b5   : > { %v17539_v13 = vrot.slane %v7385_v53, 5  ;;  %v13290_v44 = vcombine.low %v6975_v40, %v6976_v58  ;;  %v7310_v14 = vsel %vm15641_vm3, %v7305_v49, %v7309_v6  ;;  %v17543_v15 = vrot.slane %v7396_v17, 4  ;;  %v17556_v40 = vld [vmem:[#allocation2 + $0xfc] sm:$0x1]  ;;  %v17563_v5 = vld [vmem:[#allocation2 + $0xf4] sm:$0x1] }
 0x2b6   : > { %v17545_v63 = vrot.slane %v7399_v24, 5  ;;  %v7332_v28 = vor.u32 %v17491_v52, %v17489_v38  ;;  %v7324_v27 = vsel %vm15641_vm3, %v7319_v20, %v7323_v22  ;;  %v7335_v29 = vshll.u32 %v17535_v4, 16  ;;  %v6980_v2 = vld [vmem:[#allocation2 + $0x128] sm:$0xf] }
 0x2b7   : > { %14578 = vmatmul.mubr.msk.bf16.gmra.mxu0 %vm7530_vm14, %v13290_v44  ;;  %v7346_v8 = vor.u32 %v17497_v12, %v17495_v7  ;;  %v7349_v36 = vshll.u32 %v17532_v37, 16  ;;  %v13253_v25 = vcombine.low %v7310_v14, %v7324_v27  ;;  %v7410_v45 = vshrl.u32 %v6977_v61, 16 }
 0x2b8   : > { %v7333_v46 = vrot.slane %v7332_v28, 4  ;;  %v7413_v34 = vshll.u32 %v6977_v61, 16  ;;  %v7337_v47 = vrot.slane %v7335_v29, 5  ;;  %v7424_v52 = vshrl.u32 %v6978_v42, 16 }
 0x2b9   : > { %v7347_v56 = vrot.slane %v7346_v8, 4  ;;  %v7351_v38 = vrot.slane %v7349_v36, 5  ;;  %14537 = vmatprep.mubr.msk.bf16.mxu1 %vm7530_vm14, %v13253_v25  ;;  %v7412_v33 = vrot.slane %v7410_v45, 4  ;;  %v7427_v55 = vshll.u32 %v6978_v42, 16 }
 0x2ba   : > { %v7415_v35 = vrot.slane %v7413_v34, 5  ;;  %v13291_v58 = vcombine.low %v6977_v61, %v6978_v42  ;;  %v7338_v7 = vsel %vm15641_vm3, %v7333_v46, %v7337_v47  ;;  %v7426_v50 = vrot.slane %v7424_v52, 4  ;;  %v17572_v61 = vld [vmem:[#allocation2 + $0x10c] sm:$0x1]  ;;  %v17575_v42 = vld [vmem:[#allocation2 + $0x104] sm:$0x1] }
 0x2bb   : > { %v7352_v12 = vsel %vm15641_vm3, %v7347_v56, %v7351_v38  ;;  %v7360_v49 = vor.u32 %v17515_v1, %v17513_v26  ;;  %v7429_v53 = vrot.slane %v7427_v55, 5  ;;  %v7363_v6 = vshll.u32 %v17563_v5, 16  ;;  %v15047_v34 = vld [vmem:[#allocation2 + $0x8] ss:$8 sps:$4 sm:$0xff]   ;;  %v17590_v55 = vld [vmem:[#allocation2 + $0x11c] sm:$0x1] }
 0x2bc   : > { %v13254_v31 = vcombine.low %v7338_v7, %v7352_v12  ;;  %14581 = vmatprep.mubr.msk.bf16.mxu0 %vm7530_vm14, %v13291_v58  ;;  %v7374_v20 = vor.u32 %v17525_v60, %v17521_v59  ;;  %v7377_v24 = vshll.u32 %v17556_v40, 16  ;;  %v7438_v22 = vshrl.u32 %v6979_v3, 16  ;;  %v17577_v59 = vld [vmem:[#allocation2 + $0x114] sm:$0x1]  ;;  %v17594_v7 = vld [vmem:[#allocation2 + $0x124] sm:$0x1] }
 0x2bd   : > { %v7361_v17 = vrot.slane %v7360_v49, 4  ;;  %v7441_v44 = vshll.u32 %v6979_v3, 16  ;;  %v7365_v26 = vrot.slane %v7363_v6, 5  ;;  %v7452_v14 = vshrl.u32 %v6980_v2, 16  ;;  %v8042_v6 = vld [vmem:[#allocation2 + $0x8] sm:$0xe] }
 0x2be   : > { %14538 = vmatmul.mubr.msk.bf16.gmra.mxu1 %vm7530_vm14, %v13254_v31  ;;  %v7375_v1 = vrot.slane %v7374_v20, 4  ;;  %v7455_v28 = vshll.u32 %v6980_v2, 16  ;;  %v7379_v27 = vrot.slane %v7377_v24, 5  ;;  %v7440_v29 = vrot.slane %v7438_v22, 4 }
 0x2bf   : > { %v7443_v8 = vrot.slane %v7441_v44, 5  ;;  %v13292_v36 = vcombine.low %v6979_v3, %v6980_v2  ;;  %v7366_v60 = vsel %vm15641_vm3, %v7361_v17, %v7365_v26  ;;  %v7454_v25 = vrot.slane %v7452_v14, 4  ;;  %v17598_v17 = vld [vmem:[#allocation2 + $0x12c] sm:$0x1]  ;;  %v15048_v14 = vld [vmem:[#allocation2 + $0x18] ss:$8 sps:$4 sm:$0xff]  }
 0x2c0   : > { %v7457_v46 = vrot.slane %v7455_v28, 5  ;;  %v7388_v45 = vor.u32 %v17539_v13, %v17537_v21  ;;  %v7380_v47 = vsel %vm15641_vm3, %v7375_v1, %v7379_v27  ;;  %v7391_v56 = vshll.u32 %v17575_v42, 16  ;;  %v15049_v27 = vld [vmem:[#allocation2 + $0x28] ss:$8 sps:$4 sm:$0xff]  }
 0x2c1   : > { %14582 = vmatmul.mubr.msk.bf16.gmra.mxu0 %vm7530_vm14, %v13292_v36  ;;  %v7402_v38 = vor.u32 %v17545_v63, %v17543_v15  ;;  %v7405_v52 = vshll.u32 %v17572_v61, 16  ;;  %v13255_v58 = vcombine.low %v7366_v60, %v7380_v47  ;;  %v7416_v21 = vor.u32 %v7415_v35, %v7412_v33 }
 0x2c2   : > { %v7389_v3 = vrot.slane %v7388_v45, 4  ;;  %14625 = vmatprep.mubr.msk.bf16.mxu0 %vm7530_vm14, %v15047_v34  ;;  %v7419_v13 = vshll.u32 %v17577_v59, 16  ;;  %v7393_v12 = vrot.slane %v7391_v56, 5  ;;  %v7430_v31 = vor.u32 %v7429_v53, %v7426_v50  ;;  %v8043_v50 = vld [vmem:[#allocation2 + $0x10] sm:$0xe] }
 0x2c3   : > { %v7403_v49 = vrot.slane %v7402_v38, 4  ;;  %v7407_v2 = vrot.slane %v7405_v52, 5  ;;  %14541 = vmatprep.mubr.msk.bf16.mxu1 %vm7530_vm14, %v13255_v58  ;;  %v7417_v15 = vrot.slane %v7416_v21, 4  ;;  %v7433_v20 = vshll.u32 %v17590_v55, 16  ;;  %v8044_v45 = vld [vmem:[#allocation2 + $0x18] sm:$0xe] }
 0x2c4   : > { %v7421_v63 = vrot.slane %v7419_v13, 5  ;;  %v7444_v24 = vor.u32 %v7443_v8, %v7440_v29  ;;  %v7394_v33 = vsel %vm15641_vm3, %v7389_v3, %v7393_v12  ;;  %v7431_v22 = vrot.slane %v7430_v31, 4  ;;  %v15063_v34 = vld [vmem:[%s19626_s3 + $0x50] sm:$0xff]   ;;  %v15111_v56 = vld [vmem:[#allocation2 + $0xc] sm:$0x1] }
 0x2c5   : > { %v7408_v35 = vsel %vm15641_vm3, %v7403_v49, %v7407_v2  ;;  %v7447_v44 = vshll.u32 %v17594_v7, 16  ;;  %v7435_v1 = vrot.slane %v7433_v20, 5  ;;  %v7458_v29 = vor.u32 %v7457_v46, %v7454_v25  ;;  %v15112_v58 = vld [vmem:[#allocation2 + $0x14] sm:$0x1]  ;;  %v8045_v21 = vld [vmem:[#allocation2 + $0x20] sm:$0xe] }
 0x2c6   : > { %v13256_v53 = vcombine.low %v7394_v33, %v7408_v35  ;;  %v7422_v26 = vsel %vm15641_vm3, %v7417_v15, %v7421_v63  ;;  %v7445_v28 = vrot.slane %v7444_v24, 4  ;;  %v7461_v8 = vshll.u32 %v17598_v17, 16  ;;  %v8046_v49 = vld [vmem:[#allocation2 + $0x28] sm:$0xe]  ;;  %v8047_v2 = vld [vmem:[#allocation2 + $0x30] sm:$0xe] }
 0x2c7   : > { %v7449_v36 = vrot.slane %v7447_v44, 5  ;;  %v13312_v60 = vrot.slane %v8042_v6, 9  ;;  %v7436_v47 = vsel %vm15641_vm3, %v7431_v22, %v7435_v1  ;;  %v8146_v38 = vrot.slane %v15111_v56, 5  ;;  %v8048_v31 = vld [vmem:[#allocation2 + $0x38] sm:$0xe] }
 0x2c8   : > { %14542 = vmatmul.mubr.msk.bf16.gmra.mxu1 %vm7530_vm14, %v13256_v53  ;;  %v13313_v52 = vrot.slane %v8043_v50, 9  ;;  %v8150_v3 = vrot.slane %v15112_v58, 5  ;;  %v13257_v25 = vcombine.low %v7422_v26, %v7436_v47  ;;  %v7459_v13 = vrot.slane %v7458_v29, 4  ;;  %v15113_v20 = vld [vmem:[#allocation2 + $0x1c] sm:$0x1] }
 0x2c9   : > { %14626 = vmatmul.mubr.msk.bf16.vlgmr.msra.gmra.mxu0 %vm7530_vm14, %v15048_v14  ;;  %v7450_v46 = vsel %vm15641_vm3, %v7445_v28, %v7449_v36  ;;  %v7463_v12 = vrot.slane %v7461_v8, 5  ;;  %v8147_v6 = vsel %vm16996_vm13, %v13312_v60, %v8146_v38  ;;  %v13314_v63 = vrot.slane %v8044_v45, 9  ;;  %v15114_v33 = vld [vmem:[%s19626_s3 + $0x58] sm:$0xff]   ;;  %v8049_v35 = vld [vmem:[#allocation2 + $0x50] sm:$0xe] }
 0x2ca   : > { %14629 = vmatprep.mubr.msk.bf16.mxu0 %vm7530_vm14, %v15049_v27  ;;  %v17622_v15 = vsel %vm16996_vm13, %v13313_v52, %v8150_v3  ;;  %v8154_v24 = vrot.slane %v15113_v20, 5  ;;  %14694 = vmatpush3.bf16.msra.mxu0 %v15114_v33  ;;  %v8050_v22 = vld [vmem:[#allocation2 + $0x58] sm:$0xe]  ;;  %v13315_v50 = vrot.slane %v8045_v21, 9  ;;  %v15115_v53 = vld [vmem:[#allocation2 + $0x24] sm:$0x1]  ;;  %v13347_v8 = vcombine.low %v17012_v19, %v8147_v6 }
 0x2cb   : > { %14545 = vmatprep.mubr.msk.bf16.mxu1 %vm7530_vm14, %v13257_v25  ;;  %v7464_v44 = vsel %vm15641_vm3, %v7459_v13, %v7463_v12  ;;  %v8158_v26 = vrot.slane %v15115_v53, 5  ;;  %14695 = vmatprep.subr.bf16.mxu0 %v15063_v34  ;;  %v17633_v1 = vld [vmem:[%s19626_s3 + $0x78] sm:$0xff]   ;;  %v13316_v27 = vrot.slane %v8046_v49, 9  ;;  %v15116_v36 = vld [vmem:[#allocation2 + $0x2c] sm:$0x1]  ;;  %v13317_v47 = vrot.slane %v8047_v2, 9 }
 0x2cc   : > { %v13258_v14 = vcombine.low %v7450_v46, %v7464_v44  ;;  %v17637_v28 = vsel %vm16996_vm13, %v13314_v63, %v8154_v24  ;;  %v8162_v29 = vrot.slane %v15116_v36, 5  ;;  %v15050_v60 = vld [vmem:[#allocation2 + $0x38] ss:$8 sps:$4 sm:$0xff]   ;;  %v8166_v56 = vrot.slane %v17292_v10, 5  ;;  %v8052_v52 = vld [vmem:[#allocation2 + $0x68] sm:$0xe] }
 0x2cd   : > { %v13348_v45 = vcombine.low %v17622_v15, %v17637_v28  ;;  %v8051_v38 = vld [vmem:[#allocation2 + $0x60] sm:$0xe]  ;;  %v13318_v21 = vrot.slane %v8048_v31, 9  ;;  %v8170_v25 = vrot.slane %v17294_v39, 5  ;;  %v13319_v46 = vrot.slane %v8049_v35, 9 }
 0x2ce   : > { %v15052_v58 = vld [vmem:[#allocation2 + $0x58] ss:$8 sps:$4 sm:$0xff]   ;;  %v17645_v3 = vsel %vm16996_vm13, %v13316_v27, %v8162_v29  ;;  %v8053_v13 = vld [vmem:[#allocation2 + $0x70] sm:$0xe]  ;;  %14696 = vmatpush3.bf16.msra.mxu0 %v15063_v34  ;;  %v17650_v19 = vsel %vm16996_vm13, %v13315_v50, %v8158_v26  ;;  %v17654_v10 = vsel %vm16996_vm13, %v13317_v47, %v8166_v56  ;;  %v15117_v12 = vld [vmem:[#allocation2 + $0x54] sm:$0x1] }
 0x2cf   : > { %v8174_v49 = vrot.slane %v15117_v12, 5  ;;  %v13320_v2 = vrot.slane %v8050_v22, 9  ;;  %v8054_v6 = vld [vmem:[#allocation2 + $0x78] sm:$0xe]  ;;  %v8055_v63 = vld [vmem:[#allocation2 + $0x80] sm:$0xe]  ;;  %14765 = vmatprep.subr.bf16.mxu0 %v17633_v1  ;;  %v13349_v39 = vcombine.low %v17650_v19, %v17645_v3  ;;  %v17666_v35 = vsel %vm16996_vm13, %v13318_v21, %v8170_v25 }
 0x2d0   : > { %14546 = vmatmul.mubr.msk.bf16.gmra.mxu1 %vm7530_vm14, %v13258_v14  ;;  %v8178_v34 = vrot.slane %v17326_v57, 5  ;;  %v13321_v31 = vrot.slane %v8051_v38, 9  ;;  %v8182_v20 = vrot.slane %v17367_v43, 5  ;;  %v8056_v24 = vld [vmem:[#allocation2 + $0x88] sm:$0xe]  ;;  %v13322_v44 = vrot.slane %v8052_v52, 9 }
 0x2d1   : > { %v8057_v33 = vld [vmem:[#allocation2 + $0xa0] sm:$0xe]  ;;  %14589 = vmatprep.mubr.msk.bf16.mxu1 %vm7530_vm14, %v13347_v8  ;;  %14630 = vmatmul.mubr.msk.bf16.gmra.mxu0 %vm7530_vm14, %v15050_v60  ;;  %v17670_v22 = vsel %vm16996_vm13, %v13319_v46, %v8174_v49  ;;  %v8186_v57 = vrot.slane %v17361_v0, 5  ;;  %v8058_v50 = vld [vmem:[#allocation2 + $0xa8] sm:$0xe]  ;;  %v13350_v43 = vcombine.low %v17654_v10, %v17666_v35  ;;  %v13323_v26 = vrot.slane %v8053_v13, 9 }
 0x2d2   : > { %14633 = vmatprep.mubr.msk.bf16.mxu0 %vm7530_vm14, %v15052_v58  ;;  %v17678_v53 = vsel %vm16996_vm13, %v13320_v2, %v8178_v34  ;;  %v8190_v14 = vrot.slane %v17400_v32, 5  ;;  %v17685_v36 = vsel %vm16996_vm13, %v13321_v31, %v8182_v20  ;;  %v13324_v0 = vrot.slane %v8054_v6, 9  ;;  %v8060_v8 = vld [vmem:[#allocation2 + $0xb8] sm:$0xe]  ;;  %v8059_v38 = vld [vmem:[#allocation2 + $0xb0] sm:$0xe] }
 0x2d3   : > { %v13351_v27 = vcombine.low %v17670_v22, %v17678_v53  ;;  %v8194_v29 = vrot.slane %v17416_v11, 5  ;;  %v17690_v60 = vsel %vm16996_vm13, %v13322_v44, %v8186_v57  ;;  %v13325_v32 = vrot.slane %v8055_v63, 9  ;;  %v8061_v52 = vld [vmem:[#allocation2 + $0xc0] sm:$0xe]  ;;  %v8062_v46 = vld [vmem:[#allocation2 + $0xc8] sm:$0xe] }
 0x2d4   : > { %v17694_v47 = vsel %vm16996_vm13, %v13323_v26, %v8190_v14  ;;  %v8198_v56 = vrot.slane %v17432_v54, 5  ;;  %v13326_v3 = vrot.slane %v8056_v24, 9  ;;  %v8202_v11 = vrot.slane %v17434_v16, 5  ;;  %v15061_v25 = vld [vmem:[%s19626_s3 + $0x40] sm:$0xff]   ;;  %v15054_v13 = vld [vmem:[#allocation2 + $0x68] ss:$8 sps:$4 sm:$0xff]  }
 0x2d5   : > { %v17699_v58 = vsel %vm16996_vm13, %v13324_v0, %v8194_v29  ;;  %v13327_v21 = vrot.slane %v8057_v33, 9  ;;  %v8206_v12 = vrot.slane %v17473_v18, 5  ;;  %v13328_v49 = vrot.slane %v8058_v50, 9  ;;  %v8063_v2 = vld [vmem:[#allocation2 + $0xd0] sm:$0xe]  ;;  %v17753_v0 = vld [vmem:[%s19626_s3 + $0x68] sm:$0xff]  }
 0x2d6   : > { %v13353_v19 = vcombine.low %v17694_v47, %v17699_v58  ;;  %v17709_v54 = vsel %vm16996_vm13, %v13325_v32, %v8198_v56  ;;  %v15055_v6 = vld [vmem:[#allocation2 + $0x78] ss:$8 sps:$4 sm:$0xff]   ;;  %v17714_v16 = vsel %vm16996_vm13, %v13326_v3, %v8202_v11  ;;  %v8210_v63 = vrot.slane %v17461_v48, 5  ;;  %v15118_v48 = vld [vmem:[%s19626_s3 + $0x48] sm:$0xff]   ;;  %v8065_v57 = vld [vmem:[#allocation2 + $0xf0] sm:$0xe] }
 0x2d7   : > { %v13329_v34 = vrot.slane %v8059_v38, 9  ;;  %v8214_v31 = vrot.slane %v17486_v9, 5  ;;  %v8064_v20 = vld [vmem:[#allocation2 + $0xd8] sm:$0xe]  ;;  %v13354_v18 = vcombine.low %v17709_v54, %v17714_v16  ;;  %v17726_v24 = vsel %vm16996_vm13, %v13327_v21, %v8206_v12  ;;  %v8067_v56 = vld [vmem:[#allocation2 + $0x100] sm:$0xe] }
 0x2d8   : > { %14590 = vmatmul.mubr.msk.bf16.vlgmr.msra.gmra.mxu1 %vm7530_vm14, %v13348_v45  ;;  %v13330_v33 = vrot.slane %v8060_v8, 9  ;;  %v8218_v44 = vrot.slane %v17483_v30, 5  ;;  %v17735_v9 = vsel %vm16996_vm13, %v13328_v49, %v8210_v63  ;;  %v13331_v28 = vrot.slane %v8061_v52, 9  ;;  %v8066_v30 = vld [vmem:[#allocation2 + $0xf8] sm:$0xe] }
 0x2d9   : > { %14658 = vmatpush3.bf16.msra.mxu1 %v15118_v48  ;;  %14593 = vmatprep.mubr.msk.bf16.mxu1 %vm7530_vm14, %v13349_v39  ;;  %v17739_v15 = vsel %vm16996_vm13, %v13329_v34, %v8214_v31  ;;  %v8222_v45 = vrot.slane %v17508_v41, 5  ;;  %v13355_v50 = vcombine.low %v17726_v24, %v17735_v9  ;;  %v13332_v26 = vrot.slane %v8062_v46, 9  ;;  %v17763_v38 = vld [vmem:[#allocation2 + $0xc] sm:$0x1]  ;;  %v8068_v21 = vld [vmem:[#allocation2 + $0x108] sm:$0xe] }
 0x2da   : > { %14634 = vmatmul.mubr.msk.bf16.gmra.mxu0 %vm7530_vm14, %v15054_v13  ;;  %14659 = vmatprep.subr.bf16.mxu1 %v15061_v25  ;;  %v17747_v39 = vsel %vm16996_vm13, %v13330_v33, %v8218_v44  ;;  %v8226_v14 = vrot.slane %v17510_v62, 5  ;;  %v13333_v8 = vrot.slane %v8063_v2, 9  ;;  %v8230_v32 = vrot.slane %v17535_v4, 5  ;;  %v17770_v46 = vld [vmem:[#allocation2 + $0x14] sm:$0x1] }
 0x2db   : > { %14637 = vmatprep.mubr.msk.bf16.mxu0 %vm7530_vm14, %v15055_v6  ;;  %v13356_v41 = vcombine.low %v17739_v15, %v17747_v39  ;;  %v17760_v29 = vsel %vm16996_vm13, %v13331_v28, %v8222_v45  ;;  %v13334_v52 = vrot.slane %v8064_v20, 9  ;;  %v8234_v3 = vrot.slane %v17532_v37, 5  ;;  %v9762_v2 = vld [vmem:[#allocation2 + $0x8] sm:$0xe]  ;;  %v9763_v6 = vld [vmem:[#allocation2 + $0x10] sm:$0xe] }
 0x2dc   : > { %v17767_v62 = vsel %vm16996_vm13, %v13332_v26, %v8226_v14  ;;  %v13335_v11 = vrot.slane %v8065_v57, 9  ;;  %v17776_v4 = vsel %vm16996_vm13, %v13333_v8, %v8230_v32  ;;  %v8238_v12 = vrot.slane %v17563_v5, 5  ;;  %v15056_v63 = vld [vmem:[#allocation2 + $0x88] ss:$8 sps:$4 sm:$0xff]   ;;  %v8070_v28 = vld [vmem:[#allocation2 + $0x118] sm:$0xe] }
 0x2dd   : > { %14660 = vmatpush3.bf16.msra.mxu1 %v15061_v25  ;;  %v13357_v13 = vcombine.low %v17760_v29, %v17767_v62  ;;  %v13336_v49 = vrot.slane %v8066_v30, 9  ;;  %v17781_v37 = vsel %vm16996_vm13, %v13334_v52, %v8234_v3  ;;  %v8242_v34 = vrot.slane %v17556_v40, 5  ;;  %v8069_v48 = vld [vmem:[#allocation2 + $0x110] sm:$0xe]  ;;  %v17793_v45 = vld [vmem:[#allocation2 + $0x1c] sm:$0x1] }
 0x2de   : > { %v13337_v25 = vrot.slane %v8067_v56, 9  ;;  %v8246_v31 = vrot.slane %v17575_v42, 5  ;;  %14729 = vmatprep.subr.bf16.mxu1 %v17753_v0  ;;  %v13358_v20 = vcombine.low %v17776_v4, %v17781_v37  ;;  %v17790_v5 = vsel %vm16996_vm13, %v13335_v11, %v8238_v12  ;;  %v9764_v40 = vld [vmem:[#allocation2 + $0x18] sm:$0xe]  ;;  %v17808_v26 = vld [vmem:[#allocation2 + $0x24] sm:$0x1] }
 0x2df   : > { %v13338_v33 = vrot.slane %v8068_v21, 9  ;;  %v8250_v44 = vrot.slane %v17572_v61, 5  ;;  %v17801_v42 = vsel %vm16996_vm13, %v13336_v49, %v8242_v34  ;;  %v13457_v30 = vrot.slane %v9762_v2, 9  ;;  %v15057_v35 = vld [vmem:[#allocation2 + $0xa8] ss:$8 sps:$4 sm:$0xff]  }
 0x2e0   : > { %14594 = vmatmul.mubr.msk.bf16.gmra.mxu1 %vm7530_vm14, %v13350_v43  ;;  %v17805_v57 = vsel %vm16996_vm13, %v13337_v25, %v8246_v31  ;;  %v9860_v61 = vrot.slane %v17763_v38, 5  ;;  %v13352_v10 = vcombine.low %v17685_v36, %v17690_v60  ;;  %v13458_v14 = vrot.slane %v9763_v6, 9  ;;  %v9765_v32 = vld [vmem:[#allocation2 + $0x20] sm:$0xe]  ;;  %v17827_v60 = vld [vmem:[#allocation2 + $0x2c] sm:$0x1] }
 0x2e1   : > { %14597 = vmatprep.mubr.msk.bf16.mxu1 %vm7530_vm14, %v13351_v27  ;;  %v17818_v43 = vsel %vm16996_vm13, %v13338_v33, %v8250_v44  ;;  %v9864_v8 = vrot.slane %v17770_v46, 5  ;;  %v13339_v53 = vrot.slane %v8069_v48, 9  ;;  %v8254_v27 = vrot.slane %v17577_v59, 5  ;;  %v8071_v36 = vld [vmem:[#allocation2 + $0x120] sm:$0xe] }
 0x2e2   : > { %14638 = vmatmul.mubr.msk.bf16.gmra.mxu0 %vm7530_vm14, %v15056_v63  ;;  %v17832_v52 = vsel %vm16996_vm13, %v13457_v30, %v9860_v61  ;;  %v13340_v11 = vrot.slane %v8070_v28, 9  ;;  %v8258_v21 = vrot.slane %v17590_v55, 5  ;;  %v8072_v12 = vld [vmem:[#allocation2 + $0x128] sm:$0xe]  ;;  %v13459_v2 = vrot.slane %v9764_v40, 9 }
 0x2e3   : > { %14641 = vmatprep.mubr.msk.bf16.mxu0 %vm7530_vm14, %v15057_v35  ;;  %v17836_v3 = vsel %vm16996_vm13, %v13458_v14, %v9864_v8  ;;  %v9766_v49 = vld [vmem:[#allocation2 + $0x28] sm:$0xe]  ;;  %v17841_v59 = vsel %vm16996_vm13, %v13339_v53, %v8254_v27  ;;  %v9868_v6 = vrot.slane %v17793_v45, 5  ;;  %v13460_v63 = vrot.slane %v9765_v32, 9  ;;  %v17844_v34 = vld [vmem:[#allocation2 + $0x34] sm:$0x1] }
 0x2e4   : > { %v17848_v25 = vsel %vm16996_vm13, %v13340_v11, %v8258_v21  ;;  %v9872_v31 = vrot.slane %v17808_v26, 5  ;;  %v13341_v33 = vrot.slane %v8071_v36, 9  ;;  %v8262_v55 = vrot.slane %v17594_v7, 5  ;;  %v9767_v44 = vld [vmem:[#allocation2 + $0x30] sm:$0xe] }
 0x2e5   : > { %v13342_v40 = vrot.slane %v8072_v12, 9  ;;  %v8266_v30 = vrot.slane %v17598_v17, 5  ;;  %v8944_v61 = vld [vmem:[#allocation2 + $0x8] sm:$0xf]  ;;  %v13461_v7 = vrot.slane %v9766_v49, 9  ;;  %v9876_v8 = vrot.slane %v17827_v60, 5 }
 0x2e6   : > { %v17859_v35 = vsel %vm16996_vm13, %v13460_v63, %v9872_v31  ;;  %v17863_v14 = vsel %vm16996_vm13, %v13341_v33, %v8262_v55  ;;  %v8946_v32 = vld [vmem:[#allocation2 + $0x10] sm:$0xf]  ;;  %v15058_v53 = vld [vmem:[#allocation2 + $0xb8] ss:$8 sps:$4 sm:$0xff]   ;;  %v17869_v27 = vsel %vm16996_vm13, %v13459_v2, %v9868_v6  ;;  %v13462_v36 = vrot.slane %v9767_v44, 9 }
 0x2e7   : > { %v17873_v17 = vsel %vm16996_vm13, %v13342_v40, %v8266_v30  ;;  %v9880_v11 = vrot.slane %v17844_v34, 5  ;;  %v17876_v21 = vld [vmem:[#allocation2 + $0x3c] sm:$0x1]  ;;  %v9009_v2 = vshrl.u32 %v8944_v61, 16  ;;  %v9012_v6 = vshll.u32 %v8944_v61, 16 }
 0x2e8   : > { %14598 = vmatmul.mubr.msk.bf16.gmra.mxu1 %vm7530_vm14, %v13352_v10  ;;  %v15059_v10 = vld [vmem:[#allocation2 + $0xc8] ss:$8 sps:$4 sm:$0xff]   ;;  %v9768_v63 = vld [vmem:[#allocation2 + $0x38] sm:$0xe]  ;;  %v17889_v33 = vsel %vm16996_vm13, %v13461_v7, %v9876_v8  ;;  %v9018_v47 = vshll.u32 %v17763_v38, 16  ;;  %v9023_v58 = vshrl.u32 %v8946_v32, 16 }
 0x2e9   : > { %14601 = vmatprep.mubr.msk.bf16.mxu1 %vm7530_vm14, %v13353_v19  ;;  %v8948_v31 = vld [vmem:[#allocation2 + $0x18] sm:$0xf]  ;;  %v9026_v19 = vshll.u32 %v8946_v32, 16  ;;  %v9769_v55 = vld [vmem:[#allocation2 + $0x40] sm:$0xe]  ;;  %v17895_v44 = vsel %vm16996_vm13, %v13462_v36, %v9880_v11  ;;  %v9011_v40 = vrot.slane %v9009_v2, 4 }
 0x2ea   : > { %14642 = vmatmul.mubr.msk.bf16.gmra.mxu0 %vm7530_vm14, %v15058_v53  ;;  %v9014_v30 = vrot.slane %v9012_v6, 5  ;;  %v9032_v61 = vshll.u32 %v17770_v46, 16  ;;  %v17898_v53 = vld [vmem:[#allocation2 + $0x44] sm:$0x1]  ;;  %v9020_v49 = vrot.slane %v9018_v47, 5  ;;  %v9025_v7 = vrot.slane %v9023_v58, 4 }
 0x2eb   : > { %14645 = vmatprep.mubr.msk.bf16.mxu0 %vm7530_vm14, %v15059_v10  ;;  %v9028_v8 = vrot.slane %v9026_v19, 5  ;;  %v13463_v12 = vrot.slane %v9768_v63, 9  ;;  %v8950_v38 = vld [vmem:[#allocation2 + $0x20] sm:$0xf]  ;;  %v9884_v22 = vrot.slane %v17876_v21, 5  ;;  %v13464_v10 = vrot.slane %v9769_v55, 9 }
 0x2ec   : > { %v9015_v28 = vor.u32 %v9014_v30, %v9011_v40  ;;  %v9034_v32 = vrot.slane %v9032_v61, 5  ;;  %v15060_v48 = vld [vmem:[#allocation2 + $0xd8] ss:$8 sps:$4 sm:$0xff]   ;;  %v9888_v36 = vrot.slane %v17898_v53, 5  ;;  %v9037_v11 = vshrl.u32 %v8948_v31, 16 }
 0x2ed   : > { %v9029_v56 = vor.u32 %v9028_v8, %v9025_v7  ;;  %v9040_v2 = vshll.u32 %v8948_v31, 16  ;;  %v17902_v6 = vld [vmem:[#allocation2 + $0x5c] sm:$0x1]  ;;  %v17906_v47 = vsel %vm16996_vm13, %v13463_v12, %v9884_v22  ;;  %v9046_v63 = vshll.u32 %v17793_v45, 16  ;;  %v9770_v19 = vld [vmem:[#allocation2 + $0x58] sm:$0xe] }
 0x2ee   : > { %v9016_v46 = vrot.slane %v9015_v28, 4  ;;  %v9051_v58 = vshrl.u32 %v8950_v38, 16  ;;  %v17915_v31 = vsel %vm16996_vm13, %v13464_v10, %v9888_v36  ;;  %v9039_v40 = vrot.slane %v9037_v11, 4  ;;  %v9771_v30 = vld [vmem:[#allocation2 + $0x60] sm:$0xe] }
 0x2ef   : > { %v9030_v55 = vrot.slane %v9029_v56, 4  ;;  %v9042_v28 = vrot.slane %v9040_v2, 5  ;;  %v15062_v45 = vld [vmem:[#allocation2 + $0xf8] ss:$8 sps:$4 sm:$0xff]   ;;  %v13495_v22 = vcombine.low %v17889_v33, %v17895_v44  ;;  %v13496_v16 = vcombine.low %v17906_v47, %v17915_v31  ;;  %v17927_v56 = vld [vmem:[#allocation2 + $0x64] sm:$0x1] }
 0x2f0   : > { %14602 = vmatmul.mubr.msk.bf16.gmra.mxu1 %vm7530_vm14, %v13354_v18  ;;  %v9021_v54 = vsel %vm15641_vm3, %v9016_v46, %v9020_v49  ;;  %v9053_v18 = vrot.slane %v9051_v58, 4  ;;  %v9060_v12 = vshll.u32 %v17808_v26, 16  ;;  %v8952_v61 = vld [vmem:[#allocation2 + $0x28] sm:$0xf]  ;;  %v9048_v7 = vrot.slane %v9046_v63, 5 }
 0x2f1   : > { %14605 = vmatprep.mubr.msk.bf16.mxu1 %vm7530_vm14, %v13355_v50  ;;  %v9035_v24 = vsel %vm15641_vm3, %v9030_v55, %v9034_v32  ;;  %v9043_v9 = vor.u32 %v9042_v28, %v9039_v40  ;;  %v9054_v50 = vshll.u32 %v8950_v38, 16  ;;  %v13465_v49 = vrot.slane %v9770_v19, 9  ;;  %v8954_v36 = vld [vmem:[#allocation2 + $0x30] sm:$0xf]  ;;  %v17942_v55 = vld [vmem:[#allocation2 + $0x6c] sm:$0x1] }
 0x2f2   : > { %14646 = vmatmul.mubr.msk.bf16.gmra.mxu0 %vm7530_vm14, %v15060_v48  ;;  %v9892_v8 = vrot.slane %v17902_v6, 5  ;;  %v13466_v10 = vrot.slane %v9771_v30, 9  ;;  %v17935_v11 = vcombine.low %v9021_v54, %v9035_v24  ;;  %v9896_v46 = vrot.slane %v17927_v56, 5  ;;  %v9772_v30 = vld [vmem:[#allocation2 + $0x68] sm:$0xe] }
 0x2f3   : > { %14649 = vmatprep.mubr.msk.bf16.mxu0 %vm7530_vm14, %v15062_v45  ;;  %v9044_v2 = vrot.slane %v9043_v9, 4  ;;  %v9056_v48 = vrot.slane %v9054_v50, 5  ;;  %v9062_v32 = vrot.slane %v9060_v12, 5  ;;  %v9065_v26 = vshrl.u32 %v8952_v61, 16  ;;  %v9773_v45 = vld [vmem:[#allocation2 + $0x70] sm:$0xe] }
 0x2f4   : > { %v17940_v38 = vsel %vm16996_vm13, %v13465_v49, %v9892_v8  ;;  %v9068_v58 = vshll.u32 %v8952_v61, 16  ;;  %v17946_v19 = vsel %vm16996_vm13, %v13466_v10, %v9896_v46  ;;  %v9074_v40 = vshll.u32 %v17827_v60, 16  ;;  %v17953_v12 = vld [vmem:[#allocation2 + $0x74] sm:$0x1]  ;;  %v15064_v60 = vld [vmem:[#allocation2 + $0x108] ss:$8 sps:$4 sm:$0xff]  }
 0x2f5   : > { %v9057_v63 = vor.u32 %v9056_v48, %v9053_v18  ;;  %v9079_v28 = vshrl.u32 %v8954_v36, 16  ;;  %v9049_v54 = vsel %vm15641_vm3, %v9044_v2, %v9048_v7  ;;  %v13497_v24 = vcombine.low %v17940_v38, %v17946_v19  ;;  %v8956_v18 = vld [vmem:[#allocation2 + $0x38] sm:$0xf]  ;;  %v18123_v38 = vld [vmem:[#allocation2 + $0xd4] sm:$0x1] }
 0x2f6   : > { %v9067_v9 = vrot.slane %v9065_v26, 4  ;;  %v9070_v50 = vrot.slane %v9068_v58, 5  ;;  %v9082_v8 = vshll.u32 %v8954_v36, 16  ;;  %v9088_v10 = vshll.u32 %v17844_v34, 16  ;;  %v15065_v7 = vld [vmem:[#allocation2 + $0x118] ss:$8 sps:$4 sm:$0xff]  }
 0x2f7   : > { %v9058_v61 = vrot.slane %v9057_v63, 4  ;;  %v9081_v49 = vrot.slane %v9079_v28, 4  ;;  %v13467_v48 = vrot.slane %v9772_v30, 9  ;;  %v9900_v46 = vrot.slane %v17942_v55, 5  ;;  %v8958_v36 = vld [vmem:[#allocation2 + $0x40] sm:$0xf] }
 0x2f8   : > { %14606 = vmatmul.mubr.msk.bf16.gmra.mxu1 %vm7530_vm14, %v13356_v41  ;;  %v9071_v2 = vor.u32 %v9070_v50, %v9067_v9  ;;  %v13468_v26 = vrot.slane %v9773_v45, 9  ;;  %v9076_v39 = vrot.slane %v9074_v40, 5  ;;  %v9084_v41 = vrot.slane %v9082_v8, 5  ;;  %v17980_v30 = vld [vmem:[#allocation2 + $0x7c] sm:$0x1] }
 0x2f9   : > { %14609 = vmatprep.mubr.msk.bf16.mxu1 %vm7530_vm14, %v13357_v13  ;;  %v9063_v15 = vsel %vm15641_vm3, %v9058_v61, %v9062_v32  ;;  %v9904_v34 = vrot.slane %v17953_v12, 5  ;;  %v9090_v13 = vrot.slane %v9088_v10, 5  ;;  %v9093_v58 = vshrl.u32 %v8956_v18, 16  ;;  %v9774_v45 = vld [vmem:[#allocation2 + $0x78] sm:$0xe] }
 0x2fa   : > { %14650 = vmatmul.mubr.msk.bf16.gmra.mxu0 %vm7530_vm14, %v15064_v60  ;;  %v17970_v29 = vcombine.low %v9049_v54, %v9063_v15  ;;  %v9072_v62 = vrot.slane %v9071_v2, 4  ;;  %v9085_v63 = vor.u32 %v9084_v41, %v9081_v49  ;;  %v17974_v28 = vsel %vm16996_vm13, %v13467_v48, %v9900_v46  ;;  %v9775_v61 = vld [vmem:[#allocation2 + $0x80] sm:$0xe]  ;;  %v17987_v2 = vld [vmem:[#allocation2 + $0x84] sm:$0x1] }
 0x2fb   : > { %14653 = vmatprep.mubr.msk.bf16.mxu0 %vm7530_vm14, %v15065_v7  ;;  %v17978_v32 = vsel %vm16996_vm13, %v13468_v26, %v9904_v34  ;;  %v9096_v40 = vshll.u32 %v8956_v18, 16  ;;  %v9095_v9 = vrot.slane %v9093_v58, 4  ;;  %v9102_v50 = vshll.u32 %v17876_v21, 16  ;;  %v8960_v15 = vld [vmem:[#allocation2 + $0x58] sm:$0xf] }
 0x2fc   : > { %v9077_v54 = vsel %vm15641_vm3, %v9072_v62, %v9076_v39  ;;  %v9107_v60 = vshrl.u32 %v8958_v36, 16  ;;  %v9086_v49 = vrot.slane %v9085_v63, 4  ;;  %v13498_v8 = vcombine.low %v17974_v28, %v17978_v32  ;;  %v15066_v21 = vld [vmem:[#allocation2 + $0x128] ss:$8 sps:$4 sm:$0xff]   ;;  %v8962_v62 = vld [vmem:[#allocation2 + $0x60] sm:$0xf] }
 0x2fd   : > { %v9098_v10 = vrot.slane %v9096_v40, 5  ;;  %v9110_v7 = vshll.u32 %v8958_v36, 16  ;;  %v9116_v48 = vshll.u32 %v17898_v53, 16  ;;  %v13469_v46 = vrot.slane %v9774_v45, 9 }
 0x2fe   : > { %v9109_v18 = vrot.slane %v9107_v60, 4  ;;  %v9908_v26 = vrot.slane %v17980_v30, 5  ;;  %v9091_v39 = vsel %vm15641_vm3, %v9086_v49, %v9090_v13  ;;  %v13470_v36 = vrot.slane %v9775_v61, 9  ;;  %v9776_v61 = vld [vmem:[#allocation2 + $0x88] sm:$0xe] }
 0x2ff   : > { %v9099_v41 = vor.u32 %v9098_v10, %v9095_v9  ;;  %v9112_v34 = vrot.slane %v9110_v7, 5  ;;  %v19749_v53 = vcombine.low %v17790_v5, %v17801_v42  ;;  %v18001_v58 = vcombine.low %v9077_v54, %v9091_v39  ;;  %v18005_v9 = vld [vmem:[#allocation2 + $0x8c] sm:$0x1]  ;;  %v8964_v39 = vld [vmem:[#allocation2 + $0x68] sm:$0xf] }
 0x300   : > { %14610 = vmatmul.mubr.msk.bf16.gmra.mxu1 %vm7530_vm14, %v13358_v20  ;;  %v9104_v63 = vrot.slane %v9102_v50, 5  ;;  %v9118_v40 = vrot.slane %v9116_v48, 5  ;;  %v9912_v4 = vrot.slane %v17987_v2, 5  ;;  %v9121_v13 = vshrl.u32 %v8960_v15, 16 }
 0x301   : > { %14613 = vmatprep.mubr.msk.bf16.mxu1 %vm7530_vm14, %v19749_v53  ;;  %v9100_v37 = vrot.slane %v9099_v41, 4  ;;  %v9113_v20 = vor.u32 %v9112_v34, %v9109_v18  ;;  %v9124_v45 = vshll.u32 %v8960_v15, 16  ;;  %v19750_v60 = vcombine.low %v17832_v52, %v17836_v3  ;;  %v18022_v3 = vld [vmem:[#allocation2 + $0x94] sm:$0x1]  ;;  %v9777_v18 = vld [vmem:[#allocation2 + $0x90] sm:$0xe] }
 0x302   : > { %14654 = vmatmul.mubr.msk.bf16.gmra.mxu0 %vm7530_vm14, %v15066_v21  ;;  %v18013_v5 = vsel %vm16996_vm13, %v13470_v36, %v9912_v4  ;;  %v9130_v42 = vshll.u32 %v17902_v6, 16  ;;  %v9135_v54 = vshrl.u32 %v8962_v62, 16  ;;  %v9138_v50 = vshll.u32 %v8962_v62, 16  ;;  %v8966_v4 = vld [vmem:[#allocation2 + $0x70] sm:$0xf] }
 0x303   : > { %14697 = vmatprep.mubr.msk.bf16.mxu0 %vm7530_vm14, %v19750_v60  ;;  %v9105_v49 = vsel %vm15641_vm3, %v9100_v37, %v9104_v63  ;;  %v9114_v10 = vrot.slane %v9113_v20, 4  ;;  %v18020_v7 = vsel %vm16996_vm13, %v13469_v46, %v9908_v26  ;;  %v9123_v52 = vrot.slane %v9121_v13, 4 }
 0x304   : > { %v13499_v48 = vcombine.low %v18020_v7, %v18013_v5  ;;  %v9126_v15 = vrot.slane %v9124_v45, 5  ;;  %v9137_v6 = vrot.slane %v9135_v54, 4  ;;  %v9140_v21 = vrot.slane %v9138_v50, 5  ;;  %v18048_v50 = vld [vmem:[#allocation2 + $0xac] sm:$0x1] }
 0x305   : > { %v9119_v41 = vsel %vm15641_vm3, %v9114_v10, %v9118_v40  ;;  %v9144_v34 = vshll.u32 %v17927_v56, 16  ;;  %v13471_v36 = vrot.slane %v9776_v61, 9  ;;  %v9916_v46 = vrot.slane %v18005_v9, 5  ;;  %v15070_v56 = vld [vmem:[%s19626_s3 + $0x70] sm:$0xff]   ;;  %v8968_v61 = vld [vmem:[#allocation2 + $0x78] sm:$0xf] }
 0x306   : > { %v9127_v26 = vor.u32 %v9126_v15, %v9123_v52  ;;  %v9132_v62 = vrot.slane %v9130_v42, 5  ;;  %v9141_v53 = vor.u32 %v9140_v21, %v9137_v6  ;;  %v13472_v63 = vrot.slane %v9777_v18, 9  ;;  %v9778_v18 = vld [vmem:[#allocation2 + $0xa8] sm:$0xe]  ;;  %v18068_v21 = vld [vmem:[#allocation2 + $0xb4] sm:$0x1] }
 0x307   : > { %v19751_v37 = vcombine.low %v17805_v57, %v17818_v43  ;;  %v18034_v20 = vcombine.low %v9105_v49, %v9119_v41  ;;  %v9146_v13 = vrot.slane %v9144_v34, 5  ;;  %v9920_v40 = vrot.slane %v18022_v3, 5 }
 0x308   : > { %v9149_v45 = vshrl.u32 %v8964_v39, 16  ;;  %v19752_v60 = vcombine.low %v17841_v59, %v17848_v25  ;;  %v9128_v42 = vrot.slane %v9127_v26, 4  ;;  %v9142_v54 = vrot.slane %v9141_v53, 4 }
 0x309   : > { %14614 = vmatmul.mubr.msk.bf16.gmra.mxu1 %vm7530_vm14, %v19751_v37  ;;  %v18046_v57 = vsel %vm16996_vm13, %v13471_v36, %v9916_v46  ;;  %v9152_v43 = vshll.u32 %v8964_v39, 16  ;;  %v19753_v49 = vcombine.low %v17869_v27, %v17859_v35  ;;  %v18056_v59 = vsel %vm16996_vm13, %v13472_v63, %v9920_v40  ;;  %v9779_v39 = vld [vmem:[#allocation2 + $0xb0] sm:$0xe]  ;;  %v8970_v63 = vld [vmem:[#allocation2 + $0x80] sm:$0xf] }
 0x30a   : > { %14617 = vmatprep.mubr.msk.bf16.mxu1 %vm7530_vm14, %v19752_v60  ;;  %v9151_v25 = vrot.slane %v9149_v45, 4  ;;  %v9163_v10 = vshrl.u32 %v8966_v4, 16  ;;  %v9166_v52 = vshll.u32 %v8966_v4, 16  ;;  %v9133_v35 = vsel %vm15641_vm3, %v9128_v42, %v9132_v62 }
 0x30b   : > { %14698 = vmatmul.mubr.msk.bf16.vlgmr.msra.gmra.mxu0 %vm7530_vm14, %v19753_v49  ;;  %v9147_v27 = vsel %vm15641_vm3, %v9142_v54, %v9146_v13  ;;  %v9154_v15 = vrot.slane %v9152_v43, 5  ;;  %v9158_v6 = vshll.u32 %v17942_v55, 16  ;;  %v13500_v33 = vcombine.low %v18046_v57, %v18056_v59  ;;  %v9780_v49 = vld [vmem:[#allocation2 + $0xb8] sm:$0xe] }
 0x30c   : > { %14701 = vmatprep.mubr.msk.bf16.mxu0 %vm7530_vm14, %v13495_v22  ;;  %14766 = vmatpush3.bf16.msra.mxu0 %v17633_v1  ;;  %v18070_v41 = vcombine.low %v9133_v35, %v9147_v27  ;;  %v9165_v44 = vrot.slane %v9163_v10, 4  ;;  %v9168_v22 = vrot.slane %v9166_v52, 5  ;;  %v18077_v1 = vld [vmem:[%s19628_s5] sm:$0xff]   ;;  %v9172_v36 = vshll.u32 %v17953_v12, 16  ;;  %v8972_v27 = vld [vmem:[#allocation2 + $0x88] sm:$0xf] }
 0x30d   : > { %14767 = vmatprep.subr.bf16.mxu0 %v15070_v56  ;;  %v9155_v34 = vor.u32 %v9154_v15, %v9151_v25  ;;  %v13473_v55 = vrot.slane %v9778_v18, 9  ;;  %v9924_v46 = vrot.slane %v18048_v50, 5  ;;  %v13474_v62 = vrot.slane %v9779_v39, 9  ;;  %v18100_v25 = vld [vmem:[#allocation2 + $0xbc] sm:$0x1] }
 0x30e   : > { %v9169_v26 = vor.u32 %v9168_v22, %v9165_v44  ;;  %v9928_v53 = vrot.slane %v18068_v21, 5  ;;  %v9177_v4 = vshrl.u32 %v8968_v61, 16  ;;  %v9160_v13 = vrot.slane %v9158_v6, 5  ;;  %v9781_v10 = vld [vmem:[#allocation2 + $0xc0] sm:$0xe] }
 0x30f   : > { %v9156_v37 = vrot.slane %v9155_v34, 4  ;;  %v9174_v40 = vrot.slane %v9172_v36, 5  ;;  %v9180_v45 = vshll.u32 %v8968_v61, 16  ;;  %v19754_v60 = vcombine.low %v17863_v14, %v17873_v17  ;;  %v18111_v35 = vld [vmem:[#allocation2 + $0xc4] sm:$0x1] }
 0x310   : > { %14768 = vmatpush3.bf16.msra.mxu0 %v15070_v56  ;;  %v9170_v12 = vrot.slane %v9169_v26, 4  ;;  %v18088_v42 = vsel %vm16996_vm13, %v13474_v62, %v9928_v53  ;;  %v9179_v54 = vrot.slane %v9177_v4, 4  ;;  %v9186_v43 = vshll.u32 %v17980_v30, 16  ;;  %v8974_v6 = vld [vmem:[#allocation2 + $0x90] sm:$0xf]  ;;  %v15069_v4 = vld [vmem:[%s19626_s3 + $0x60] sm:$0xff]  }
 0x311   : > { %14618 = vmatmul.mubr.msk.bf16.gmra.mxu1 %vm7530_vm14, %v19754_v60  ;;  %14837 = vmatprep.subr.bf16.mxu0 %v18077_v1  ;;  %v9161_v56 = vsel %vm15641_vm3, %v9156_v37, %v9160_v13  ;;  %v18098_v14 = vsel %vm16996_vm13, %v13473_v55, %v9924_v46  ;;  %v9182_v17 = vrot.slane %v9180_v45, 5  ;;  %v9191_v61 = vshrl.u32 %v8970_v63, 16  ;;  %v18121_v26 = vld [vmem:[#allocation2 + $0xcc] sm:$0x1]  ;;  %v9783_v60 = vld [vmem:[#allocation2 + $0xd0] sm:$0xe] }
 0x312   : > { %14661 = vmatprep.mubr.msk.bf16.mxu1 %vm7530_vm14, %v17935_v11  ;;  %v9175_v11 = vsel %vm15641_vm3, %v9170_v12, %v9174_v40  ;;  %v13501_v30 = vcombine.low %v18098_v14, %v18088_v42  ;;  %v9194_v52 = vshll.u32 %v8970_v63, 16  ;;  %v9200_v18 = vshll.u32 %v17987_v2, 16  ;;  %v9782_v63 = vld [vmem:[#allocation2 + $0xc8] sm:$0xe]  ;;  %v9786_v14 = vld [vmem:[#allocation2 + $0xf8] sm:$0xe] }
 0x313   : > { %14702 = vmatmul.mubr.msk.bf16.gmra.mxu0 %vm7530_vm14, %v13496_v16  ;;  %v9183_v47 = vor.u32 %v9182_v17, %v9179_v54  ;;  %v9188_v31 = vrot.slane %v9186_v43, 5  ;;  %v9193_v16 = vrot.slane %v9191_v61, 4  ;;  %v13475_v15 = vrot.slane %v9780_v49, 9 }
 0x314   : > { %14705 = vmatprep.mubr.msk.bf16.mxu0 %vm7530_vm14, %v13497_v24  ;;  %v18117_v39 = vcombine.low %v9161_v56, %v9175_v11  ;;  %v9196_v44 = vrot.slane %v9194_v52, 5  ;;  %v9932_v22 = vrot.slane %v18100_v25, 5  ;;  %v13476_v34 = vrot.slane %v9781_v10, 9  ;;  %v8976_v10 = vld [vmem:[#allocation2 + $0xa8] sm:$0xf] }
 0x315   : > { %v9184_v2 = vrot.slane %v9183_v47, 4  ;;  %v9936_v36 = vrot.slane %v18111_v35, 5  ;;  %v9205_v55 = vshrl.u32 %v8972_v27, 16  ;;  %v9208_v46 = vshll.u32 %v8972_v27, 16 }
 0x316   : > { %v9197_v19 = vor.u32 %v9196_v44, %v9193_v16  ;;  %v9202_v24 = vrot.slane %v9200_v18, 5  ;;  %v18127_v62 = vsel %vm16996_vm13, %v13475_v15, %v9932_v22  ;;  %v9219_v53 = vshrl.u32 %v8974_v6, 16  ;;  %v8978_v18 = vld [vmem:[#allocation2 + $0xb0] sm:$0xf]  ;;  %v9784_v15 = vld [vmem:[#allocation2 + $0xd8] sm:$0xe] }
 0x317   : > { %v18134_v37 = vsel %vm16996_vm13, %v13476_v34, %v9936_v36  ;;  %v9207_v13 = vrot.slane %v9205_v55, 4  ;;  %v9210_v40 = vrot.slane %v9208_v46, 5  ;;  %v9214_v45 = vshll.u32 %v18005_v9, 16  ;;  %v18177_v44 = vld [vmem:[#allocation2 + $0xdc] sm:$0x1] }
 0x318   : > { %v9189_v12 = vsel %vm15641_vm3, %v9184_v2, %v9188_v31  ;;  %v9198_v54 = vrot.slane %v9197_v19, 4  ;;  %v13502_v43 = vcombine.low %v18127_v62, %v18134_v37  ;;  %v9221_v49 = vrot.slane %v9219_v53, 4  ;;  %v18179_v22 = vld [vmem:[#allocation2 + $0xe4] sm:$0x1]  ;;  %v9785_v46 = vld [vmem:[#allocation2 + $0xe0] sm:$0xe] }
 0x319   : > { %14662 = vmatmul.mubr.msk.bf16.vlgmr.msra.gmra.mxu1 %vm7530_vm14, %v17970_v29  ;;  %v9211_v56 = vor.u32 %v9210_v40, %v9207_v13  ;;  %v9222_v17 = vshll.u32 %v8974_v6, 16  ;;  %v9228_v9 = vshll.u32 %v18022_v3, 16  ;;  %v13477_v61 = vrot.slane %v9782_v63, 9 }
 0x31a   : > { %14730 = vmatpush3.bf16.msra.mxu1 %v17753_v0  ;;  %14665 = vmatprep.mubr.msk.bf16.mxu1 %vm7530_vm14, %v18001_v58  ;;  %v9203_v29 = vsel %vm15641_vm3, %v9198_v54, %v9202_v24  ;;  %v9940_v11 = vrot.slane %v18121_v26, 5  ;;  %v13478_v0 = vrot.slane %v9783_v60, 9  ;;  %v9944_v52 = vrot.slane %v18123_v38, 5  ;;  %v18158_v58 = vld [vmem:[%s19626_s3 + $0x88] sm:$0xff]  }
 0x31b   : > { %14706 = vmatmul.mubr.msk.bf16.gmra.mxu0 %vm7530_vm14, %v13498_v8  ;;  %14731 = vmatprep.subr.bf16.mxu1 %v15069_v4  ;;  %v18164_v28 = vcombine.low %v9189_v12, %v9203_v29  ;;  %v9212_v32 = vrot.slane %v9211_v56, 4  ;;  %v9216_v8 = vrot.slane %v9214_v45, 5  ;;  %v9224_v3 = vrot.slane %v9222_v17, 5  ;;  %v8980_v45 = vld [vmem:[#allocation2 + $0xb8] sm:$0xf]  ;;  %v18193_v56 = vpop.f32.mrf.mxu0 }
 0x31c   : > { %14709 = vmatprep.mubr.msk.bf16.mxu0 %vm7530_vm14, %v13499_v48  ;;  %v9230_v27 = vrot.slane %v9228_v9, 5  ;;  %v18168_v47 = vsel %vm16996_vm13, %v13478_v0, %v9944_v52  ;;  %v9233_v31 = vshrl.u32 %v8976_v10, 16  ;;  %v9236_v16 = vshll.u32 %v8976_v10, 16 }
 0x31d   : > { %v9217_v6 = vsel %vm15641_vm3, %v9212_v32, %v9216_v8  ;;  %v9225_v5 = vor.u32 %v9224_v3, %v9221_v49  ;;  %v18174_v7 = vsel %vm16996_vm13, %v13477_v61, %v9940_v11  ;;  %v9242_v48 = vshll.u32 %v18048_v50, 16  ;;  %v8982_v49 = vld [vmem:[#allocation2 + $0xc0] sm:$0xf]  ;;  %v18201_v61 = vld [vmem:[#allocation2 + $0xfc] sm:$0x1] }
 0x31e   : > { %14732 = vmatpush3.bf16.msra.mxu1 %v15069_v4  ;;  %v9235_v34 = vrot.slane %v9233_v31, 4  ;;  %v9238_v2 = vrot.slane %v9236_v16, 5  ;;  %v9247_v36 = vshrl.u32 %v8978_v18, 16  ;;  %v9250_v55 = vshll.u32 %v8978_v18, 16 }
 0x31f   : > { %14801 = vmatprep.subr.bf16.mxu1 %v18158_v58  ;;  %v9226_v19 = vrot.slane %v9225_v5, 4  ;;  %v13503_v24 = vcombine.low %v18174_v7, %v18168_v47  ;;  %v9256_v53 = vshll.u32 %v18068_v21, 16  ;;  %v13479_v63 = vrot.slane %v9784_v15, 9 }
 0x320   : > { %v9239_v50 = vor.u32 %v9238_v2, %v9235_v34  ;;  %v9249_v13 = vrot.slane %v9247_v36, 4  ;;  %v9252_v4 = vrot.slane %v9250_v55, 5  ;;  %v9948_v40 = vrot.slane %v18177_v44, 5  ;;  %v8986_v36 = vld [vmem:[#allocation2 + $0xd0] sm:$0xf] }
 0x321   : > { %14666 = vmatmul.mubr.msk.bf16.gmra.mxu1 %vm7530_vm14, %v18034_v20  ;;  %v9231_v60 = vsel %vm15641_vm3, %v9226_v19, %v9230_v27  ;;  %v9244_v12 = vrot.slane %v9242_v48, 5  ;;  %v13480_v54 = vrot.slane %v9785_v46, 9  ;;  %v9952_v21 = vrot.slane %v18179_v22, 5  ;;  %v18222_v27 = vpop.f32.mrf.mxu0 }
 0x322   : > { %14669 = vmatprep.mubr.msk.bf16.mxu1 %vm7530_vm14, %v18070_v41  ;;  %v18199_v20 = vcombine.low %v9217_v6, %v9231_v60  ;;  %v9240_v17 = vrot.slane %v9239_v50, 4  ;;  %v9253_v9 = vor.u32 %v9252_v4, %v9249_v13  ;;  %v9258_v41 = vrot.slane %v9256_v53, 5  ;;  %v18233_v4 = vld [vmem:[#allocation2 + $0x10c] sm:$0x1] }
 0x323   : > { %14710 = vmatmul.mubr.msk.bf16.gmra.mxu0 %vm7530_vm14, %v13500_v33  ;;  %v18209_v10 = vsel %vm16996_vm13, %v13480_v54, %v9952_v21  ;;  %v9261_v29 = vshrl.u32 %v8980_v45, 16  ;;  %v9264_v57 = vshll.u32 %v8980_v45, 16  ;;  %v9270_v59 = vshll.u32 %v18100_v25, 16  ;;  %v18212_v33 = vld [vmem:[#allocation2 + $0x104] sm:$0x1] }
 0x324   : > { %14713 = vmatprep.mubr.msk.bf16.mxu0 %vm7530_vm14, %v13501_v30  ;;  %v9245_v11 = vsel %vm15641_vm3, %v9240_v17, %v9244_v12  ;;  %v9254_v0 = vrot.slane %v9253_v9, 4  ;;  %v18218_v52 = vsel %vm16996_vm13, %v13479_v63, %v9948_v40  ;;  %v9275_v42 = vshrl.u32 %v8982_v49, 16  ;;  %v9787_v30 = vld [vmem:[#allocation2 + $0x100] sm:$0xe]  ;;  %v8984_v25 = vld [vmem:[#allocation2 + $0xc8] sm:$0xf]  ;;  %v18235_v40 = vpop.f32.mrf.mxu0 }
 0x325   : > { %v13504_v32 = vcombine.low %v18218_v52, %v18209_v10  ;;  %v9263_v8 = vrot.slane %v9261_v29, 4  ;;  %v9266_v3 = vrot.slane %v9264_v57, 5  ;;  %v9278_v18 = vshll.u32 %v8982_v49, 16  ;;  %v9788_v12 = vld [vmem:[#allocation2 + $0x108] sm:$0xe] }
 0x326   : > { %v9259_v31 = vsel %vm15641_vm3, %v9254_v0, %v9258_v41  ;;  %v9272_v16 = vrot.slane %v9270_v59, 5  ;;  %v9277_v15 = vrot.slane %v9275_v42, 4  ;;  %v9284_v6 = vshll.u32 %v18111_v35, 16  ;;  %v9789_v49 = vld [vmem:[#allocation2 + $0x110] sm:$0xe] }
 0x327   : > { %v9267_v5 = vor.u32 %v9266_v3, %v9263_v8  ;;  %v9280_v48 = vrot.slane %v9278_v18, 5  ;;  %v13481_v34 = vrot.slane %v9786_v14, 9  ;;  %v9956_v2 = vrot.slane %v18201_v61, 5  ;;  %v8988_v29 = vld [vmem:[#allocation2 + $0xd8] sm:$0xf] }
 0x328   : > { %v13431_v55 = vcombine.low %v9245_v11, %v9259_v31  ;;  %v13482_v46 = vrot.slane %v9787_v30, 9  ;;  %v9960_v19 = vrot.slane %v18212_v33, 5  ;;  %v9289_v53 = vshrl.u32 %v8984_v25, 16  ;;  %v8990_v59 = vld [vmem:[#allocation2 + $0xe0] sm:$0xf]  ;;  %v18258_v11 = vpop.f32.mrf.mxu0 }
 0x329   : > { %14670 = vmatmul.mubr.msk.bf16.gmra.mxu1 %vm7530_vm14, %v18117_v39  ;;  %v9268_v63 = vrot.slane %v9267_v5, 4  ;;  %v9281_v50 = vor.u32 %v9280_v48, %v9277_v15  ;;  %v9286_v35 = vrot.slane %v9284_v6, 5  ;;  %v9292_v13 = vshll.u32 %v8984_v25, 16  ;;  %19755 = vst [vmem:[#allocation9_spill] sm:$0xff] %v18258_v11  ;;  %v18265_v6 = vld [vmem:[#allocation2 + $0x11c] sm:$0x1] }
 0x32a   : > { %14673 = vmatprep.mubr.msk.bf16.mxu1 %vm7530_vm14, %v18164_v28  ;;  %v9961_v39 = vsel %vm16996_vm13, %v13482_v46, %v9960_v19  ;;  %v9291_v45 = vrot.slane %v9289_v53, 4  ;;  %v9298_v60 = vshll.u32 %v18121_v26, 16  ;;  %v9303_v28 = vshrl.u32 %v8986_v36, 16  ;;  %v9790_v5 = vld [vmem:[#allocation2 + $0x118] sm:$0xe] }
 0x32b   : > { %14714 = vmatmul.mubr.msk.bf16.gmra.mxu0 %vm7530_vm14, %v13502_v43  ;;  %v9273_v54 = vsel %vm15641_vm3, %v9268_v63, %v9272_v16  ;;  %v9282_v21 = vrot.slane %v9281_v50, 4  ;;  %v9957_v62 = vsel %vm16996_vm13, %v13481_v34, %v9956_v2  ;;  %v9294_v37 = vrot.slane %v9292_v13, 5  ;;  %v18252_v43 = vld [vmem:[#allocation2 + $0x114] sm:$0x1]  ;;  %v9791_v46 = vld [vmem:[#allocation2 + $0x120] sm:$0xe] }
 0x32c   : > { %14717 = vmatprep.mubr.msk.bf16.mxu0 %vm7530_vm14, %v13503_v24  ;;  %v13505_v17 = vcombine.low %v9957_v62, %v9961_v39  ;;  %v9305_v26 = vrot.slane %v9303_v28, 4  ;;  %v9306_v9 = vshll.u32 %v8986_v36, 16  ;;  %v9312_v41 = vshll.u32 %v18123_v38, 16  ;;  %v18279_v50 = vld [vmem:[#allocation2 + $0x124] sm:$0x1] }
 0x32d   : > { %v9287_v47 = vsel %vm15641_vm3, %v9282_v21, %v9286_v35  ;;  %v9295_v7 = vor.u32 %v9294_v37, %v9291_v45  ;;  %v13483_v24 = vrot.slane %v9788_v12, 9  ;;  %v9964_v57 = vrot.slane %v18233_v4, 5  ;;  %v8992_v45 = vld [vmem:[#allocation2 + $0xf8] sm:$0xf]  ;;  %v8994_v28 = vld [vmem:[#allocation2 + $0x100] sm:$0xf] }
 0x32e   : > { %v13432_v0 = vcombine.low %v9273_v54, %v9287_v47  ;;  %v9300_v42 = vrot.slane %v9298_v60, 5  ;;  %v9308_v14 = vrot.slane %v9306_v9, 5  ;;  %v13484_v30 = vrot.slane %v9789_v49, 9  ;;  %v18289_v9 = vld [vmem:[#allocation2 + $0x12c] sm:$0x1] }
 0x32f   : > { %v9296_v8 = vrot.slane %v9295_v7, 4  ;;  %v9314_v3 = vrot.slane %v9312_v41, 5  ;;  %v9968_v18 = vrot.slane %v18252_v43, 5  ;;  %v9317_v38 = vshrl.u32 %v8988_v29, 16  ;;  %v15076_v11 = vld [vmem:[#allocation2 + $0x40] ss:$8 sps:$4 sm:$0xff]  }
 0x330   : > { %v9309_v25 = vor.u32 %v9308_v14, %v9305_v26  ;;  %v9965_v31 = vsel %vm16996_vm13, %v13483_v24, %v9964_v57  ;;  %v9320_v16 = vshll.u32 %v8988_v29, 16  ;;  %v9331_v15 = vshrl.u32 %v8990_v59, 16  ;;  %v9792_v24 = vld [vmem:[#allocation2 + $0x128] sm:$0xe] }
 0x331   : > { %14674 = vmatmul.mubr.msk.bf16.gmra.mxu1 %vm7530_vm14, %v18199_v20  ;;  %v9969_v48 = vsel %vm16996_vm13, %v13484_v30, %v9968_v18  ;;  %v9319_v34 = vrot.slane %v9317_v38, 4  ;;  %v9326_v2 = vshll.u32 %v18177_v44, 16  ;;  %v9334_v36 = vshll.u32 %v8990_v59, 16  ;;  %v18271_v20 = vpop.f32.mrf.mxu0  ;;  %v18299_v30 = vld [vmem:[#allocation2 + $0x134] sm:$0x1] }
 0x332   : > { %14677 = vmatprep.mubr.msk.bf16.mxu1 %vm7530_vm14, %v13431_v55  ;;  %v9301_v19 = vsel %vm15641_vm3, %v9296_v8, %v9300_v42  ;;  %v9310_v53 = vrot.slane %v9309_v25, 4  ;;  %v13506_v55 = vcombine.low %v9965_v31, %v9969_v48  ;;  %v9322_v63 = vrot.slane %v9320_v16, 5  ;;  %v9793_v8 = vld [vmem:[#allocation2 + $0x130] sm:$0xe]  ;;  %v18308_v48 = vpop.f32.mrf.mxu1 }
 0x333   : > { %14718 = vmatmul.mubr.msk.bf16.gmra.mxu0 %vm7530_vm14, %v13504_v32  ;;  %v9333_v44 = vrot.slane %v9331_v15, 4  ;;  %v9336_v35 = vrot.slane %v9334_v36, 5  ;;  %v9340_v13 = vshll.u32 %v18179_v22, 16  ;;  %v13485_v39 = vrot.slane %v9790_v5, 9  ;;  %v18287_v37 = vpop.f32.mrf.mxu0 }
 0x334   : > { %14721 = vmatprep.mubr.msk.bf16.mxu0 %vm7530_vm14, %v13505_v17  ;;  %v9315_v10 = vsel %vm15641_vm3, %v9310_v53, %v9314_v3  ;;  %v9323_v52 = vor.u32 %v9322_v63, %v9319_v34  ;;  %v9972_v32 = vrot.slane %v18265_v6, 5  ;;  %v13486_v60 = vrot.slane %v9791_v46, 9  ;;  %v8998_v63 = vld [vmem:[#allocation2 + $0x110] sm:$0xf] }
 0x335   : > { %v13433_v12 = vcombine.low %v9301_v19, %v9315_v10  ;;  %v9328_v54 = vrot.slane %v9326_v2, 5  ;;  %v9337_v21 = vor.u32 %v9336_v35, %v9333_v44  ;;  %v9976_v62 = vrot.slane %v18279_v50, 5  ;;  %v18304_v25 = vpop.f32.mrf.mxu0 }
 0x336   : > { %v9324_v49 = vrot.slane %v9323_v52, 4  ;;  %v9342_v17 = vrot.slane %v9340_v13, 5  ;;  %v9345_v22 = vshrl.u32 %v8992_v45, 16  ;;  %v9348_v26 = vshll.u32 %v8992_v45, 16  ;;  %v10663_v45 = vld [vmem:[#allocation2 + $0x10] sm:$0xf] }
 0x337   : > { %v9338_v41 = vrot.slane %v9337_v21, 4  ;;  %v9977_v29 = vsel %vm16996_vm13, %v13486_v60, %v9976_v62  ;;  %v9354_v47 = vshll.u32 %v18201_v61, 16  ;;  %v9359_v7 = vshrl.u32 %v8994_v28, 16  ;;  %v18317_v10 = vpop.f32.mrf.mxu0 }
 0x338   : > { %v9329_v57 = vsel %vm15641_vm3, %v9324_v49, %v9328_v54  ;;  %v9973_v59 = vsel %vm16996_vm13, %v13485_v39, %v9972_v32  ;;  %v9347_v42 = vrot.slane %v9345_v22, 4  ;;  %v9350_v14 = vrot.slane %v9348_v26, 5  ;;  %v18322_v54 = vpop.f32.mrf.mxu1  ;;  %v10665_v22 = vld [vmem:[#allocation2 + $0x18] sm:$0xf] }
 0x339   : > { %14678 = vmatmul.mubr.msk.bf16.gmra.mxu1 %vm7530_vm14, %v13432_v0  ;;  %v9343_v61 = vsel %vm15641_vm3, %v9338_v41, %v9342_v17  ;;  %v13507_v3 = vcombine.low %v9973_v59, %v9977_v29  ;;  %v9361_v18 = vrot.slane %v9359_v7, 4  ;;  %v9362_v38 = vshll.u32 %v8994_v28, 16  ;;  %v8996_v0 = vld [vmem:[#allocation2 + $0x108] sm:$0xf]  ;;  %v10666_v29 = vld [vmem:[#allocation2 + $0x1c] sm:$0x1] }
 0x33a   : > { %14681 = vmatprep.mubr.msk.bf16.mxu1 %vm7530_vm14, %v13433_v12  ;;  %v9351_v31 = vor.u32 %v9350_v14, %v9347_v42  ;;  %v9356_v16 = vrot.slane %v9354_v47, 5  ;;  %v9368_v15 = vshll.u32 %v18212_v33, 16  ;;  %v13487_v5 = vrot.slane %v9792_v24, 9  ;;  %v10664_v12 = vld [vmem:[#allocation2 + $0x14] sm:$0x1] }
 0x33b   : > { %14722 = vmatmul.mubr.msk.bf16.gmra.mxu0 %vm7530_vm14, %v13506_v55  ;;  %v9364_v34 = vrot.slane %v9362_v38, 5  ;;  %v9980_v2 = vrot.slane %v18289_v9, 5  ;;  %v13488_v36 = vrot.slane %v9793_v8, 9  ;;  %v9984_v46 = vrot.slane %v18299_v30, 5  ;;  %v9000_v42 = vld [vmem:[#allocation2 + $0x118] sm:$0xf]  ;;  %v18331_v38 = vpop.f32.mrf.mxu1 }
 0x33c   : > { %14725 = vmatprep.mubr.msk.bf16.mxu0 %vm7530_vm14, %v13507_v3  ;;  %v13434_v19 = vcombine.low %v9329_v57, %v9343_v61  ;;  %v9352_v53 = vrot.slane %v9351_v31, 4  ;;  %v9373_v44 = vshrl.u32 %v8996_v0, 16  ;;  %v9376_v55 = vshll.u32 %v8996_v0, 16  ;;  %v18328_v14 = vpop.f32.mrf.mxu0 }
 0x33d   : > { %v9365_v35 = vor.u32 %v9364_v34, %v9361_v18  ;;  %v9370_v13 = vrot.slane %v9368_v15, 5  ;;  %v9981_v33 = vsel %vm16996_vm13, %v13487_v5, %v9980_v2  ;;  %v9985_v39 = vsel %vm16996_vm13, %v13488_v36, %v9984_v46  ;;  %v9002_v2 = vld [vmem:[#allocation2 + $0x120] sm:$0xf] }
 0x33e   : > { %v9357_v52 = vsel %vm15641_vm3, %v9352_v53, %v9356_v16  ;;  %v9375_v32 = vrot.slane %v9373_v44, 4  ;;  %v9378_v60 = vrot.slane %v9376_v55, 5  ;;  %v9382_v28 = vshll.u32 %v18233_v4, 16  ;;  %v18334_v44 = vpop.f32.mrf.mxu0 }
 0x33f   : > { %v9366_v21 = vrot.slane %v9365_v35, 4  ;;  %v13508_v62 = vcombine.low %v9981_v33, %v9985_v39  ;;  %v9387_v49 = vshrl.u32 %v8998_v63, 16  ;;  %v9390_v17 = vshll.u32 %v8998_v63, 16  ;;  %v18338_v39 = vpop.f32.mrf.mxu1 }
 0x340   : > { %v9379_v26 = vor.u32 %v9378_v60, %v9375_v32  ;;  %v9396_v41 = vshll.u32 %v18252_v43, 16  ;;  %v10728_v47 = vshrl.u32 %v10663_v45, 16  ;;  %v10731_v7 = vshll.u32 %v10663_v45, 16  ;;  %19756 = vst [vmem:[#allocation17_spill] sm:$0xff] %v18338_v39 }
 0x341   : > { %14682 = vmatmul.mubr.msk.bf16.gmra.mxu1 %vm7530_vm14, %v13434_v19  ;;  %v9371_v24 = vsel %vm15641_vm3, %v9366_v21, %v9370_v13  ;;  %v9389_v4 = vrot.slane %v9387_v49, 4  ;;  %v9392_v57 = vrot.slane %v9390_v17, 5  ;;  %v10737_v59 = vshll.u32 %v10664_v12, 16  ;;  %v10668_v17 = vld [vmem:[#allocation2 + $0x24] sm:$0x1] }
 0x342   : > { %v13435_v8 = vcombine.low %v9357_v52, %v9371_v24  ;;  %v9380_v61 = vrot.slane %v9379_v26, 4  ;;  %v9384_v3 = vrot.slane %v9382_v28, 5  ;;  %v10730_v18 = vrot.slane %v10728_v47, 4  ;;  %v10667_v28 = vld [vmem:[#allocation2 + $0x20] sm:$0xf] }
 0x343   : > { %14726 = vmatmul.mubr.msk.bf16.gmra.mxu0 %vm7530_vm14, %v13508_v62  ;;  %v9393_v43 = vor.u32 %v9392_v57, %v9389_v4  ;;  %v9398_v0 = vrot.slane %v9396_v41, 5  ;;  %v10733_v31 = vrot.slane %v10731_v7, 5  ;;  %v10742_v16 = vshrl.u32 %v10665_v22, 16  ;;  %v18346_v7 = vpop.f32.mrf.mxu0 }
 0x344   : > { %14685 = vmatprep.mubr.msk.bf16.mxu1 %vm7530_vm14, %v13435_v8  ;;  %v10739_v15 = vrot.slane %v10737_v59, 5  ;;  %v10745_v5 = vshll.u32 %v10665_v22, 16  ;;  %v10751_v34 = vshll.u32 %v10666_v29, 16  ;;  %v9401_v36 = vshrl.u32 %v9000_v42, 16  ;;  %v10669_v22 = vld [vmem:[#allocation2 + $0x28] sm:$0xf] }
 0x345   : > { %v9394_v46 = vrot.slane %v9393_v43, 4  ;;  %v10734_v19 = vor.u32 %v10733_v31, %v10730_v18  ;;  %v10744_v53 = vrot.slane %v10742_v16, 4  ;;  %v9404_v63 = vshll.u32 %v9000_v42, 16  ;;  %v18349_v42 = vpop.f32.mrf.mxu1  ;;  %v10670_v8 = vld [vmem:[#allocation2 + $0x2c] sm:$0x1] }
 0x346   : > { %v9385_v55 = vsel %vm15641_vm3, %v9380_v61, %v9384_v3  ;;  %v10747_v35 = vrot.slane %v10745_v5, 5  ;;  %v10753_v13 = vrot.slane %v10751_v34, 5  ;;  %v9403_v33 = vrot.slane %v9401_v36, 4  ;;  %v9004_v31 = vld [vmem:[#allocation2 + $0x128] sm:$0xf]  ;;  %v18353_v36 = vpop.f32.mrf.mxu0 }
 0x347   : > { %v9399_v45 = vsel %vm15641_vm3, %v9394_v46, %v9398_v0  ;;  %v10735_v52 = vrot.slane %v10734_v19, 4  ;;  %v9406_v32 = vrot.slane %v9404_v63, 5  ;;  %v9415_v60 = vshrl.u32 %v9002_v2, 16  ;;  %v9006_v16 = vld [vmem:[#allocation2 + $0x130] sm:$0xf]  ;;  %19757 = vst [vmem:[#allocation10_spill] sm:$0xff] %v18353_v36 }
 0x348   : > { %v13436_v12 = vcombine.low %v9385_v55, %v9399_v45  ;;  %v10748_v21 = vor.u32 %v10747_v35, %v10744_v53  ;;  %v9410_v62 = vshll.u32 %v18265_v6, 16  ;;  %v9418_v49 = vshll.u32 %v9002_v2, 16  ;;  %v18355_v55 = vpop.f32.mrf.mxu1 }
 0x349   : > { %v10740_v26 = vsel %vm15641_vm3, %v10735_v52, %v10739_v15  ;;  %v9407_v41 = vor.u32 %v9406_v32, %v9403_v33  ;;  %v9417_v29 = vrot.slane %v9415_v60, 4  ;;  %v9424_v47 = vshll.u32 %v18279_v50, 16 }
 0x34a   : > { %14686 = vmatmul.mubr.msk.bf16.gmra.mxu1 %vm7530_vm14, %v13436_v12  ;;  %v10749_v24 = vrot.slane %v10748_v21, 4  ;;  %v9420_v4 = vrot.slane %v9418_v49, 5  ;;  %v10756_v57 = vshrl.u32 %v10667_v28, 16  ;;  %v10759_v59 = vshll.u32 %v10667_v28, 16  ;;  %v10671_v12 = vld [vmem:[#allocation2 + $0x30] sm:$0xf] }
 0x34b   : > { %v9408_v6 = vrot.slane %v9407_v41, 4  ;;  %v10765_v61 = vshll.u32 %v10668_v17, 16  ;;  %v10770_v3 = vshrl.u32 %v10669_v22, 16  ;;  %v9412_v5 = vrot.slane %v9410_v62, 5 }
 0x34c   : > { %v10754_v18 = vsel %vm15641_vm3, %v10749_v24, %v10753_v13  ;;  %v9421_v43 = vor.u32 %v9420_v4, %v9417_v29  ;;  %v10758_v0 = vrot.slane %v10756_v57, 4  ;;  %v10761_v50 = vrot.slane %v10759_v59, 5  ;;  %v18365_v4 = vld [vmem:[#allocation2 + $0x34] sm:$0x1]  ;;  %v18367_v57 = vpop.f32.mrf.mxu1 }
 0x34d   : > { %v13569_v15 = vcombine.low %v10740_v26, %v10754_v18  ;;  %v9426_v34 = vrot.slane %v9424_v47, 5  ;;  %v10772_v2 = vrot.slane %v10770_v3, 4  ;;  %v10773_v53 = vshll.u32 %v10669_v22, 16  ;;  %v10673_v22 = vld [vmem:[#allocation2 + $0x38] sm:$0xf]  ;;  %v18363_v26 = vpop.f32.mrf.mxu0 }
 0x34e   : > { %v9422_v46 = vrot.slane %v9421_v43, 4  ;;  %v10762_v19 = vor.u32 %v10761_v50, %v10758_v0  ;;  %v10779_v63 = vshll.u32 %v10670_v8, 16  ;;  %v9413_v35 = vsel %vm15641_vm3, %v9408_v6, %v9412_v5  ;;  %v18373_v0 = vld [vmem:[#allocation2 + $0x3c] sm:$0x1] }
 0x34f   : > { %14769 = vmatprep.mubr.msk.bf16.mxu0 %vm7530_vm14, %v13569_v15  ;;  %v9429_v13 = vshrl.u32 %v9004_v31, 16  ;;  %v9432_v33 = vshll.u32 %v9004_v31, 16  ;;  %v9443_v45 = vshrl.u32 %v9006_v16, 16  ;;  %v10767_v32 = vrot.slane %v10765_v61, 5  ;;  %v18371_v61 = vpop.f32.mrf.mxu0 }
 0x350   : > { %v9427_v52 = vsel %vm15641_vm3, %v9422_v46, %v9426_v34  ;;  %v10775_v60 = vrot.slane %v10773_v53, 5  ;;  %v9438_v28 = vshll.u32 %v18289_v9, 16  ;;  %v10763_v62 = vrot.slane %v10762_v19, 4  ;;  %v10675_v34 = vld [vmem:[#allocation2 + $0x40] sm:$0xf] }
 0x351   : > { %v13437_v21 = vcombine.low %v9413_v35, %v9427_v52  ;;  %v9431_v49 = vrot.slane %v9429_v13, 4  ;;  %v9434_v17 = vrot.slane %v9432_v33, 5  ;;  %v10781_v29 = vrot.slane %v10779_v63, 5  ;;  %v10677_v53 = vld [vmem:[#allocation2 + $0x48] sm:$0xf]  ;;  %v18380_v63 = vpop.f32.mrf.mxu1  ;;  %v18382_v35 = vpop.f32.mrf.mxu0 }
 0x352   : > { %v10776_v41 = vor.u32 %v10775_v60, %v10772_v2  ;;  %v9445_v47 = vrot.slane %v9443_v45, 4  ;;  %v9446_v24 = vshll.u32 %v9006_v16, 16  ;;  %v9452_v9 = vshll.u32 %v18299_v30, 16 }
 0x353   : > { %14689 = vmatprep.mubr.msk.bf16.mxu1 %vm7530_vm14, %v13437_v21  ;;  %v9435_v59 = vor.u32 %v9434_v17, %v9431_v49  ;;  %v10784_v6 = vshrl.u32 %v10671_v12, 16  ;;  %v10787_v8 = vshll.u32 %v10671_v12, 16  ;;  %v9440_v18 = vrot.slane %v9438_v28, 5  ;;  %v18385_v28 = vld [vmem:[#allocation2 + $0x44] sm:$0x1] }
 0x354   : > { %v10777_v3 = vrot.slane %v10776_v41, 4  ;;  %v9448_v43 = vrot.slane %v9446_v24, 5  ;;  %v10798_v50 = vshrl.u32 %v10673_v22, 16  ;;  %v10768_v31 = vsel %vm15641_vm3, %v10763_v62, %v10767_v32 }
 0x355   : > { %v10786_v16 = vrot.slane %v10784_v6, 4  ;;  %v10789_v15 = vrot.slane %v10787_v8, 5  ;;  %v10793_v5 = vshll.u32 %v18365_v4, 16  ;;  %v9436_v2 = vrot.slane %v9435_v59, 4  ;;  %v18395_v8 = vpop.f32.mrf.mxu0 }
 0x356   : > { %v10782_v30 = vsel %vm15641_vm3, %v10777_v3, %v10781_v29  ;;  %v9449_v46 = vor.u32 %v9448_v43, %v9445_v47  ;;  %v9454_v19 = vrot.slane %v9452_v9, 5  ;;  %v10800_v45 = vrot.slane %v10798_v50, 4  ;;  %v10679_v9 = vld [vmem:[#allocation2 + $0x60] sm:$0xf]  ;;  %19758 = vst [vmem:[#allocation11_spill] sm:$0xff] %v18395_v8 }
 0x357   : > { %v13570_v13 = vcombine.low %v10768_v31, %v10782_v30  ;;  %v10790_v33 = vor.u32 %v10789_v15, %v10786_v16  ;;  %v10801_v52 = vshll.u32 %v10673_v22, 16  ;;  %v10807_v60 = vshll.u32 %v18373_v0, 16  ;;  %v15071_v22 = vld [vmem:[#allocation2 + $0x10] ss:$8 sps:$4 sm:$0xff]   ;;  %v18393_v6 = vpop.f32.mrf.mxu1  ;;  %v18397_v31 = vld [vmem:[#allocation2 + $0x4c] sm:$0x1] }
 0x358   : > { %v9450_v32 = vrot.slane %v9449_v46, 4  ;;  %v10812_v12 = vshrl.u32 %v10675_v34, 16  ;;  %v10815_v21 = vshll.u32 %v10675_v34, 16  ;;  %v10795_v49 = vrot.slane %v10793_v5, 5  ;;  %v18400_v16 = vld [vmem:[#allocation2 + $0x64] sm:$0x1] }
 0x359   : > { %14770 = vmatmul.mubr.msk.bf16.vlgmr.msra.gmra.mxu0 %vm7530_vm14, %v13570_v13  ;;  %v10791_v62 = vrot.slane %v10790_v33, 4  ;;  %v10803_v17 = vrot.slane %v10801_v52, 5  ;;  %v10826_v41 = vshrl.u32 %v10677_v53, 16  ;;  %v9441_v29 = vsel %vm15641_vm3, %v9436_v2, %v9440_v18  ;;  %v10681_v2 = vld [vmem:[#allocation2 + $0x68] sm:$0xf] }
 0x35a   : > { %v9455_v47 = vsel %vm15641_vm3, %v9450_v32, %v9454_v19  ;;  %v10814_v24 = vrot.slane %v10812_v12, 4  ;;  %v10817_v59 = vrot.slane %v10815_v21, 5  ;;  %14838 = vmatpush3.bf16.msra.mxu0 %v18077_v1  ;;  %v10809_v50 = vrot.slane %v10807_v60, 5  ;;  %v18408_v32 = vpop.f32.mrf.mxu1  ;;  %v18414_v12 = vld [vmem:[#allocation2 + $0x6c] sm:$0x1] }
 0x35b   : > { %v13438_v3 = vcombine.low %v9441_v29, %v9455_v47  ;;  %v10804_v43 = vor.u32 %v10803_v17, %v10800_v45  ;;  %v10821_v18 = vshll.u32 %v18385_v28, 16  ;;  %v10828_v5 = vrot.slane %v10826_v41, 4 }
 0x35c   : > { %v10818_v15 = vor.u32 %v10817_v59, %v10814_v24  ;;  %v10829_v34 = vshll.u32 %v10677_v53, 16  ;;  %v10835_v30 = vshll.u32 %v18397_v31, 16  ;;  %v10796_v1 = vsel %vm15641_vm3, %v10791_v62, %v10795_v49 }
 0x35d   : > { %14690 = vmatmul.mubr.msk.bf16.gmra.mxu1 %vm7530_vm14, %v13438_v3  ;;  %v10805_v46 = vrot.slane %v10804_v43, 4  ;;  %v10840_v19 = vshrl.u32 %v10679_v9, 16  ;;  %v10843_v13 = vshll.u32 %v10679_v9, 16  ;;  %v10849_v52 = vshll.u32 %v18400_v16, 16  ;;  %v10685_v3 = vld [vmem:[#allocation2 + $0x78] sm:$0xf] }
 0x35e   : > { %14733 = vmatprep.mubr.msk.bf16.mxu1 %vm7530_vm14, %v15071_v22  ;;  %v10819_v33 = vrot.slane %v10818_v15, 4  ;;  %v10831_v45 = vrot.slane %v10829_v34, 5  ;;  %v18410_v53 = vpop.f32.mrf.mxu0  ;;  %v10854_v49 = vshrl.u32 %v10681_v2, 16  ;;  %v10823_v41 = vrot.slane %v10821_v18, 5  ;;  %v10683_v22 = vld [vmem:[#allocation2 + $0x70] sm:$0xf] }
 0x35f   : > { %v10810_v60 = vsel %vm15641_vm3, %v10805_v46, %v10809_v50  ;;  %v10842_v21 = vrot.slane %v10840_v19, 4  ;;  %v10845_v62 = vrot.slane %v10843_v13, 5  ;;  %v10837_v47 = vrot.slane %v10835_v30, 5  ;;  %v15073_v18 = vld [vmem:[#allocation2 + $0x20] ss:$8 sps:$4 sm:$0xff]  }
 0x360   : > { %v13571_v17 = vcombine.low %v10796_v1, %v10810_v60  ;;  %v10832_v29 = vor.u32 %v10831_v45, %v10828_v5  ;;  %v10856_v59 = vrot.slane %v10854_v49, 4  ;;  %v10857_v9 = vshll.u32 %v10681_v2, 16  ;;  %v18416_v43 = vpop.f32.mrf.mxu0  ;;  %v15074_v30 = vld [vmem:[#allocation2 + $0x30] ss:$8 sps:$4 sm:$0xff]   ;;  %v18426_v1 = vpop.f32.mrf.mxu1  ;;  %v15082_v45 = vld [vmem:[%s19626_s3 + $0x80] sm:$0xff]  }
 0x361   : > { %v10846_v24 = vor.u32 %v10845_v62, %v10842_v21  ;;  %v10824_v50 = vsel %vm15641_vm3, %v10819_v33, %v10823_v41  ;;  %v18423_v34 = vadd.f32 %v18193_v56, %v18308_v48  ;;  %v10863_v5 = vshll.u32 %v18414_v12, 16  ;;  %v18437_v48 = vld [vmem:[#allocation2 + $0x74] sm:$0x1]  ;;  %v10687_v62 = vld [vmem:[#allocation2 + $0x80] sm:$0xf] }
 0x362   : > { %14773 = vmatprep.mubr.msk.bf16.mxu0 %vm7530_vm14, %v13571_v17  ;;  %v10833_v15 = vrot.slane %v10832_v29, 4  ;;  %v10851_v46 = vrot.slane %v10849_v52, 5  ;;  %v10859_v19 = vrot.slane %v10857_v9, 5  ;;  %v10868_v13 = vshrl.u32 %v10683_v22, 16  ;;  %19759 = vst [vmem:[#allocation12_spill] sm:$0xff] %v18437_v48 }
 0x363   : > { %v10847_v2 = vrot.slane %v10846_v24, 4  ;;  %v18435_v56 = vadd.f32 %v18222_v27, %v18322_v54  ;;  %v10871_v60 = vshll.u32 %v10683_v22, 16  ;;  %v10882_v21 = vshrl.u32 %v10685_v3, 16  ;;  %v18444_v41 = vld [vmem:[#allocation2 + $0x7c] sm:$0x1]  ;;  %v18446_v24 = vpop.f32.mrf.mxu0 }
 0x364   : > { %v10838_v33 = vsel %vm15641_vm3, %v10833_v15, %v10837_v47  ;;  %v10860_v52 = vor.u32 %v10859_v19, %v10856_v59  ;;  %v18442_v17 = vadd.f32 %v18235_v40, %v18331_v38  ;;  %19760 = vst [vmem:[#allocation14_spill] sm:$0xff] %v18444_v41  ;;  %v10870_v29 = vrot.slane %v10868_v13, 4  ;;  %v10689_v47 = vld [vmem:[#allocation2 + $0x88] sm:$0xf]  ;;  %v18452_v59 = vpop.f32.mrf.mxu1  ;;  %v18459_v19 = vld [vmem:[#allocation2 + $0x8c] sm:$0x1] }
 0x365   : > { %v13572_v49 = vcombine.low %v10824_v50, %v10838_v33  ;;  %14734 = vmatmul.mubr.msk.bf16.vlgmr.msra.gmra.mxu1 %vm7530_vm14, %v15073_v18  ;;  %v10865_v27 = vrot.slane %v10863_v5, 5  ;;  %v10873_v54 = vrot.slane %v10871_v60, 5  ;;  %v10884_v22 = vrot.slane %v10882_v21, 4  ;;  %v18450_v50 = vld [vmem:[#allocation2 + $0x84] sm:$0x1]  ;;  %19762 = vst [vmem:[#allocation16_spill] sm:$0xff] %v18452_v59 }
 0x366   : > { %14802 = vmatpush3.bf16.msra.mxu1 %v18158_v58  ;;  %14737 = vmatprep.mubr.msk.bf16.mxu1 %vm7530_vm14, %v15074_v30  ;;  %v10885_v9 = vshll.u32 %v10685_v3, 16  ;;  %19761 = vst [vmem:[#allocation13_spill] sm:$0xff] %v18450_v50  ;;  %v10852_v40 = vsel %vm15641_vm3, %v10847_v2, %v10851_v46  ;;  %v10861_v38 = vrot.slane %v10860_v52, 4  ;;  %v10877_v15 = vshll.u32 %v18437_v48, 16  ;;  %19763 = vst [vmem:[#allocation18_spill] sm:$0xff] %v18459_v19  ;;  %v18464_v2 = vpop.f32.mrf.mxu0 }
 0x367   : > { %14774 = vmatmul.mubr.msk.bf16.gmra.mxu0 %vm7530_vm14, %v13572_v49  ;;  %v10896_v18 = vshrl.u32 %v10687_v62, 16  ;;  %14803 = vmatprep.subr.bf16.mxu1 %v15082_v45  ;;  %v10874_v58 = vor.u32 %v10873_v54, %v10870_v29  ;;  %v10891_v30 = vshll.u32 %v18444_v41, 16  ;;  %v10899_v3 = vshll.u32 %v10687_v62, 16  ;;  %v15077_v54 = vld [vmem:[#allocation2 + $0x60] ss:$8 sps:$4 sm:$0xff]  }
 0x368   : > { %v10887_v5 = vrot.slane %v10885_v9, 5  ;;  %v10866_v13 = vsel %vm15641_vm3, %v10861_v38, %v10865_v27  ;;  %v10905_v60 = vshll.u32 %v18450_v50, 16  ;;  %v10910_v21 = vshrl.u32 %v10689_v47, 16  ;;  %v10691_v38 = vld [vmem:[#allocation2 + $0x90] sm:$0xf] }
 0x369   : > { %v10898_v33 = vrot.slane %v10896_v18, 4  ;;  %v13573_v46 = vcombine.low %v10852_v40, %v10866_v13  ;;  %v10875_v49 = vrot.slane %v10874_v58, 4  ;;  %v10901_v29 = vrot.slane %v10899_v3, 5  ;;  %v18474_v58 = vld [vmem:[#allocation2 + $0x94] sm:$0x1] }
 0x36a   : > { %v10888_v52 = vor.u32 %v10887_v5, %v10884_v22  ;;  %v18466_v9 = vpop.f32.mrf.mxu1  ;;  %14804 = vmatpush3.bf16.msra.mxu1 %v15082_v45  ;;  %v10879_v39 = vrot.slane %v10877_v15, 5  ;;  %v10912_v62 = vrot.slane %v10910_v21, 4  ;;  %v10913_v8 = vshll.u32 %v10689_v47, 16  ;;  %19764 = vst [vmem:[#allocation19_spill] sm:$0xff] %v18474_v58  ;;  %v10693_v5 = vld [vmem:[#allocation2 + $0x98] sm:$0xf] }
 0x36b   : > { %v10919_v27 = vshll.u32 %v18459_v19, 16  ;;  %14777 = vmatprep.mubr.msk.bf16.mxu0 %vm7530_vm14, %v13573_v46  ;;  %v10893_v50 = vrot.slane %v10891_v30, 5  ;;  %v18472_v40 = vadd.f32 %v18271_v20, %v18349_v42  ;;  %v10902_v22 = vor.u32 %v10901_v29, %v10898_v33 }
 0x36c   : > { %v10889_v18 = vrot.slane %v10888_v52, 4  ;;  %v18476_v3 = vpop.f32.mrf.mxu1  ;;  %v10880_v45 = vsel %vm15641_vm3, %v10875_v49, %v10879_v39  ;;  %v10907_v47 = vrot.slane %v10905_v60, 5  ;;  %v10915_v15 = vrot.slane %v10913_v8, 5  ;;  %v18481_v21 = vpop.f32.mrf.mxu0  ;;  %v18488_v39 = vld [vmem:[#allocation2 + $0x9c] sm:$0x1] }
 0x36d   : > { %14738 = vmatmul.mubr.msk.bf16.gmra.mxu1 %vm7530_vm14, %v15076_v11  ;;  %v10921_v13 = vrot.slane %v10919_v27, 5  ;;  %v10903_v42 = vrot.slane %v10902_v22, 4  ;;  %v10924_v30 = vshrl.u32 %v10691_v38, 16  ;;  %v10927_v33 = vshll.u32 %v10691_v38, 16  ;;  %19765 = vst [vmem:[#allocation21_spill] sm:$0xff] %v18488_v39 }
 0x36e   : > { %v10894_v20 = vsel %vm15641_vm3, %v10889_v18, %v10893_v50  ;;  %14741 = vmatprep.mubr.msk.bf16.mxu1 %vm7530_vm14, %v15077_v54  ;;  %v18486_v46 = vpop.f32.mrf.mxu1  ;;  %v10916_v29 = vor.u32 %v10915_v15, %v10912_v62  ;;  %v10933_v11 = vshll.u32 %v18474_v58, 16  ;;  %v10938_v8 = vshrl.u32 %v10693_v5, 16  ;;  %v10695_v60 = vld [vmem:[#allocation2 + $0xb0] sm:$0xf]  ;;  %v18491_v49 = vpop.f32.mrf.mxu0  ;;  %v18495_v22 = vld [vmem:[#allocation2 + $0xb4] sm:$0x1] }
 0x36f   : > { %v13574_v52 = vcombine.low %v10880_v45, %v10894_v20  ;;  %v10908_v50 = vsel %vm15641_vm3, %v10903_v42, %v10907_v47  ;;  %v10926_v27 = vrot.slane %v10924_v30, 4  ;;  %v10929_v18 = vrot.slane %v10927_v33, 5  ;;  %19766 = vst [vmem:[#allocation22_spill] sm:$0xff] %v18495_v22  ;;  %v10697_v42 = vld [vmem:[#allocation2 + $0xb8] sm:$0xf] }
 0x370   : > { %v10941_v54 = vshll.u32 %v10693_v5, 16  ;;  %v18497_v38 = vpop.f32.mrf.mxu1  ;;  %v10917_v62 = vrot.slane %v10916_v29, 4  ;;  %v10935_v45 = vrot.slane %v10933_v11, 5  ;;  %v10940_v15 = vrot.slane %v10938_v8, 4  ;;  %v18501_v58 = vpop.f32.mrf.mxu0  ;;  %v15078_v5 = vld [vmem:[#allocation2 + $0x70] ss:$8 sps:$4 sm:$0xff]  }
 0x371   : > { %19767 = vst [vmem:[#allocation23_spill] sm:$0xff] %v18497_v38  ;;  %14778 = vmatmul.mubr.msk.bf16.gmra.mxu0 %vm7530_vm14, %v13574_v52  ;;  %v10947_v20 = vshll.u32 %v18488_v39, 16  ;;  %v10930_v19 = vor.u32 %v10929_v18, %v10926_v27  ;;  %v18505_v47 = vadd.f32 %v18328_v14, %v18393_v6  ;;  %v10952_v30 = vshrl.u32 %v10695_v60, 16  ;;  %v18509_v29 = vld [vmem:[#allocation2 + $0xbc] sm:$0x1] }
 0x372   : > { %v10943_v41 = vrot.slane %v10941_v54, 5  ;;  %v10922_v33 = vsel %vm15641_vm3, %v10917_v62, %v10921_v13  ;;  %19769 = vst [vmem:[#allocation24_spill] sm:$0xff] %v18509_v29  ;;  %v10955_v11 = vshll.u32 %v10695_v60, 16  ;;  %v10961_v8 = vshll.u32 %v18495_v22, 16  ;;  %v18512_v39 = vpop.f32.mrf.mxu0  ;;  %v15079_v14 = vld [vmem:[#allocation2 + $0x80] ss:$8 sps:$4 sm:$0xff]  }
 0x373   : > { %19768 = vst [vmem:[#allocation25_spill] sm:$0xff] %v18505_v47  ;;  %v10949_v52 = vrot.slane %v10947_v20, 5  ;;  %v13575_v27 = vcombine.low %v10908_v50, %v10922_v33  ;;  %v10931_v18 = vrot.slane %v10930_v19, 4  ;;  %v10954_v38 = vrot.slane %v10952_v30, 4  ;;  %v10699_v20 = vld [vmem:[#allocation2 + $0xc0] sm:$0xf] }
 0x374   : > { %v10944_v54 = vor.u32 %v10943_v41, %v10940_v15  ;;  %v18514_v6 = vpop.f32.mrf.mxu1  ;;  %v18518_v48 = vadd.f32 %v18287_v37, %v18355_v55  ;;  %v10957_v13 = vrot.slane %v10955_v11, 5  ;;  %v10966_v62 = vshrl.u32 %v10697_v42, 16  ;;  %v18536_v33 = vld [vmem:[#allocation2 + $0xc4] sm:$0x1] }
 0x375   : > { %14742 = vmatmul.mubr.msk.bf16.gmra.mxu1 %vm7530_vm14, %v15078_v5  ;;  %v10969_v60 = vshll.u32 %v10697_v42, 16  ;;  %14781 = vmatprep.mubr.msk.bf16.mxu0 %vm7530_vm14, %v13575_v27  ;;  %v10936_v19 = vsel %vm15641_vm3, %v10931_v18, %v10935_v45  ;;  %v10975_v50 = vshll.u32 %v18509_v29, 16  ;;  %v18528_v37 = vadd.f32 %v18334_v44, %v18408_v32  ;;  %19772 = vst [vmem:[#allocation27_spill] sm:$0xff] %v18536_v33  ;;  %v10701_v45 = vld [vmem:[#allocation2 + $0xc8] sm:$0xf] }
 0x376   : > { %v10945_v41 = vrot.slane %v10944_v54, 4  ;;  %14745 = vmatprep.mubr.msk.bf16.mxu1 %vm7530_vm14, %v15079_v14  ;;  %v18530_v55 = vpop.f32.mrf.mxu1  ;;  %v10958_v15 = vor.u32 %v10957_v13, %v10954_v38  ;;  %v10968_v5 = vrot.slane %v10966_v62, 4  ;;  %v18534_v30 = vadd.f32 %v18346_v7, %v18426_v1  ;;  %v18548_v1 = vld [vmem:[#allocation2 + $0xcc] sm:$0x1]  ;;  %v15080_v62 = vld [vmem:[#allocation2 + $0x90] ss:$8 sps:$4 sm:$0xff]  }
 0x377   : > { %19770 = vst [vmem:[#allocation7_spill] sm:$0xff] %v18528_v37  ;;  %v10971_v42 = vrot.slane %v10969_v60, 5  ;;  %v18538_v11 = vpop.f32.mrf.mxu0  ;;  %v18542_v27 = vadd.f32 %v18304_v25, %v18367_v57  ;;  %v10963_v32 = vrot.slane %v10961_v8, 5  ;;  %v10980_v38 = vshrl.u32 %v10699_v20, 16  ;;  %19774 = vst [vmem:[#allocation29_spill] sm:$0xff] %v18548_v1 }
 0x378   : > { %19771 = vst [vmem:[#allocation26_spill] sm:$0xff] %v18534_v30  ;;  %v10950_v44 = vsel %vm15641_vm3, %v10945_v41, %v10949_v52  ;;  %v18546_v18 = vpop.f32.mrf.mxu1  ;;  %v10959_v14 = vrot.slane %v10958_v15, 4  ;;  %v10983_v13 = vshll.u32 %v10699_v20, 16  ;;  %v10989_v25 = vshll.u32 %v18536_v33, 16  ;;  %v10703_v30 = vld [vmem:[#allocation2 + $0xd0] sm:$0xf] }
 0x379   : > { %19773 = vst [vmem:[#allocation28_spill] sm:$0xff] %v18542_v27  ;;  %v13576_v54 = vcombine.low %v10936_v19, %v10950_v44  ;;  %v10972_v7 = vor.u32 %v10971_v42, %v10968_v5  ;;  %v18550_v60 = vpop.f32.mrf.mxu0  ;;  %v10982_v29 = vrot.slane %v10980_v38, 4  ;;  %v10994_v57 = vshrl.u32 %v10701_v45, 16  ;;  %v10705_v52 = vld [vmem:[#allocation2 + $0xd8] sm:$0xf] }
 0x37a   : > { %v10997_v22 = vshll.u32 %v10701_v45, 16  ;;  %v18553_v8 = vpop.f32.mrf.mxu1  ;;  %v10964_v19 = vsel %vm15641_vm3, %v10959_v14, %v10963_v32  ;;  %v10977_v15 = vrot.slane %v10975_v50, 5  ;;  %v10985_v20 = vrot.slane %v10983_v13, 5  ;;  %v18558_v5 = vld [vmem:[#allocation2 + $0xd4] sm:$0x1] }
 0x37b   : > { %14782 = vmatmul.mubr.msk.bf16.gmra.mxu0 %vm7530_vm14, %v13576_v54  ;;  %v10973_v41 = vrot.slane %v10972_v7, 4  ;;  %19775 = vst [vmem:[#allocation31_spill] sm:$0xff] %v18558_v5  ;;  %v18560_v42 = vpop.f32.mrf.mxu0  ;;  %v10996_v44 = vrot.slane %v10994_v57, 4  ;;  %v11003_v45 = vshll.u32 %v18548_v1, 16  ;;  %v18565_v33 = vadd.f32 %v18363_v26, %v18466_v9  ;;  %v15081_v37 = vld [vmem:[#allocation2 + $0xb0] ss:$8 sps:$4 sm:$0xff]  }
 0x37c   : > { %v10999_v38 = vrot.slane %v10997_v22, 5  ;;  %v10986_v32 = vor.u32 %v10985_v20, %v10982_v29  ;;  %v10991_v14 = vrot.slane %v10989_v25, 5  ;;  %v18570_v50 = vld [vmem:[#allocation2 + $0xdc] sm:$0x1]  ;;  %v11008_v7 = vshrl.u32 %v10703_v30, 16 }
 0x37d   : > { %19776 = vst [vmem:[#allocation15_spill] sm:$0xff] %v18565_v33  ;;  %v10978_v54 = vsel %vm15641_vm3, %v10973_v41, %v10977_v15  ;;  %14746 = vmatmul.mubr.msk.bf16.gmra.mxu1 %vm7530_vm14, %v15080_v62  ;;  %19777 = vst [vmem:[#allocation30_spill] sm:$0xff] %v18570_v50  ;;  %v18572_v13 = vpop.f32.mrf.mxu0  ;;  %v11011_v1 = vshll.u32 %v10703_v30, 16  ;;  %v11017_v36 = vshll.u32 %v18558_v5, 16  ;;  %v11022_v29 = vshrl.u32 %v10705_v52, 16 }
 0x37e   : > { %v13577_v22 = vcombine.low %v10964_v19, %v10978_v54  ;;  %v11000_v57 = vor.u32 %v10999_v38, %v10996_v44  ;;  %14749 = vmatprep.mubr.msk.bf16.mxu1 %vm7530_vm14, %v15081_v37  ;;  %v18576_v26 = vpop.f32.mrf.mxu1  ;;  %v10987_v9 = vrot.slane %v10986_v32, 4  ;;  %v11010_v41 = vrot.slane %v11008_v7, 4  ;;  %v10707_v15 = vld [vmem:[#allocation2 + $0xe0] sm:$0xf]  ;;  %v18580_v44 = vld [vmem:[#allocation2 + $0xe4] sm:$0x1] }
 0x37f   : > { %v11025_v25 = vshll.u32 %v10705_v52, 16  ;;  %v11005_v20 = vrot.slane %v11003_v45, 5  ;;  %v11013_v33 = vrot.slane %v11011_v1, 5  ;;  %v11031_v19 = vshll.u32 %v18570_v50, 16  ;;  %19778 = vst [vmem:[#allocation32_spill] sm:$0xff] %v18580_v44 }
 0x380   : > { %14785 = vmatprep.mubr.msk.bf16.mxu0 %vm7530_vm14, %v13577_v22  ;;  %v11001_v62 = vrot.slane %v11000_v57, 4  ;;  %v18582_v30 = vpop.f32.mrf.mxu1  ;;  %v11019_v38 = vrot.slane %v11017_v36, 5  ;;  %v11024_v37 = vrot.slane %v11022_v29, 4  ;;  %v18586_v32 = vadd.f32 %v18371_v61, %v18476_v3  ;;  %v10709_v52 = vld [vmem:[#allocation2 + $0xe8] sm:$0xf] }
 0x381   : > { %v11027_v54 = vrot.slane %v11025_v25, 5  ;;  %v18588_v7 = vpop.f32.mrf.mxu0  ;;  %v10992_v45 = vsel %vm15641_vm3, %v10987_v9, %v10991_v14  ;;  %v11014_v22 = vor.u32 %v11013_v33, %v11010_v41  ;;  %v18596_v57 = vadd.f32 %v18382_v35, %v18486_v46  ;;  %v15083_v36 = vld [vmem:[#allocation2 + $0xc0] ss:$8 sps:$4 sm:$0xff]   ;;  %v18600_v50 = vld [vmem:[#allocation2 + $0xec] sm:$0x1] }
 0x382   : > { %19779 = vst [vmem:[#allocation33_spill] sm:$0xff] %v18586_v32  ;;  %v11006_v1 = vsel %vm15641_vm3, %v11001_v62, %v11005_v20  ;;  %v18598_v29 = vpop.f32.mrf.mxu1  ;;  %v11033_v3 = vrot.slane %v11031_v19, 5  ;;  %19781 = vst [vmem:[#allocation35_spill] sm:$0xff] %v18600_v50  ;;  %v11036_v5 = vshrl.u32 %v10707_v15, 16  ;;  %v15084_v32 = vld [vmem:[#allocation2 + $0xd0] ss:$8 sps:$4 sm:$0xff]  }
 0x383   : > { %19780 = vst [vmem:[#allocation34_spill] sm:$0xff] %v18596_v57  ;;  %v13578_v25 = vcombine.low %v10992_v45, %v11006_v1  ;;  %v11028_v61 = vor.u32 %v11027_v54, %v11024_v37  ;;  %v18602_v59 = vpop.f32.mrf.mxu0  ;;  %v11015_v14 = vrot.slane %v11014_v22, 4  ;;  %v11039_v9 = vshll.u32 %v10707_v15, 16  ;;  %v10713_v62 = vld [vmem:[#allocation2 + $0x108] sm:$0xf] }
 0x384   : > { %v11045_v33 = vshll.u32 %v18580_v44, 16  ;;  %v11050_v41 = vshrl.u32 %v10709_v52, 16  ;;  %v18605_v35 = vpop.f32.mrf.mxu1  ;;  %v11038_v20 = vrot.slane %v11036_v5, 4  ;;  %v11053_v37 = vshll.u32 %v10709_v52, 16  ;;  %v10711_v54 = vld [vmem:[#allocation2 + $0x100] sm:$0xf] }
 0x385   : > { %14786 = vmatmul.mubr.msk.bf16.gmra.mxu0 %vm7530_vm14, %v13578_v25  ;;  %v11029_v46 = vrot.slane %v11028_v61, 4  ;;  %v11059_v19 = vshll.u32 %v18600_v50, 16  ;;  %14750 = vmatmul.mubr.msk.bf16.gmra.mxu1 %vm7530_vm14, %v15083_v36  ;;  %v18610_v45 = vpop.f32.mrf.mxu0  ;;  %v11020_v15 = vsel %vm15641_vm3, %v11015_v14, %v11019_v38  ;;  %v11041_v1 = vrot.slane %v11039_v9, 5  ;;  %v18614_v57 = vld [vmem:[#allocation2 + $0x104] sm:$0x1] }
 0x386   : > { %v11047_v22 = vrot.slane %v11045_v33, 5  ;;  %v11052_v44 = vrot.slane %v11050_v41, 4  ;;  %19782 = vst [vmem:[#allocation20_spill] sm:$0xff] %v18614_v57  ;;  %14753 = vmatprep.mubr.msk.bf16.mxu1 %vm7530_vm14, %v15084_v32  ;;  %v11055_v52 = vrot.slane %v11053_v37, 5  ;;  %v18621_v36 = vadd.f32 %v18410_v53, %v18514_v6  ;;  %v18623_v61 = vld [vmem:[#allocation2 + $0x10c] sm:$0x1] }
 0x387   : > { %v11034_v5 = vsel %vm15641_vm3, %v11029_v46, %v11033_v3  ;;  %v11061_v25 = vrot.slane %v11059_v19, 5  ;;  %19784 = vst [vmem:[#allocation37_spill] sm:$0xff] %v18623_v61  ;;  %v18625_v50 = vpop.f32.mrf.mxu0  ;;  %v11042_v14 = vor.u32 %v11041_v1, %v11038_v20  ;;  %v11064_v9 = vshrl.u32 %v10711_v54, 16  ;;  %v15085_v37 = vld [vmem:[#allocation2 + $0xe0] ss:$8 sps:$4 sm:$0xff]  }
 0x388   : > { %19783 = vst [vmem:[#allocation36_spill] sm:$0xff] %v18621_v36  ;;  %v13579_v38 = vcombine.low %v11020_v15, %v11034_v5  ;;  %v11067_v33 = vshll.u32 %v10711_v54, 16  ;;  %v18627_v41 = vpop.f32.mrf.mxu1  ;;  %v11056_v32 = vor.u32 %v11055_v52, %v11052_v44  ;;  %v11073_v47 = vshll.u32 %v18614_v57, 16  ;;  %v10715_v20 = vld [vmem:[#allocation2 + $0x110] sm:$0xf] }
 0x389   : > { %v11078_v3 = vshrl.u32 %v10713_v62, 16  ;;  %v11081_v46 = vshll.u32 %v10713_v62, 16  ;;  %v18630_v19 = vpop.f32.mrf.mxu0  ;;  %v11043_v53 = vrot.slane %v11042_v14, 4  ;;  %v11066_v6 = vrot.slane %v11064_v9, 4  ;;  %v18636_v57 = vld [vmem:[#allocation2 + $0x114] sm:$0x1] }
 0x38a   : > { %19785 = vst [vmem:[#allocation41_spill] sm:$0xff] %v18630_v19  ;;  %14789 = vmatprep.mubr.msk.bf16.mxu0 %vm7530_vm14, %v13579_v38  ;;  %v11069_v36 = vrot.slane %v11067_v33, 5  ;;  %v11087_v15 = vshll.u32 %v18623_v61, 16  ;;  %v18634_v1 = vpop.f32.mrf.mxu1  ;;  %v11057_v54 = vrot.slane %v11056_v32, 4  ;;  %v11075_v5 = vrot.slane %v11073_v47, 5 }
 0x38b   : > { %v11080_v44 = vrot.slane %v11078_v3, 4  ;;  %v11083_v52 = vrot.slane %v11081_v46, 5  ;;  %v18638_v62 = vpop.f32.mrf.mxu0  ;;  %v11048_v19 = vsel %vm15641_vm3, %v11043_v53, %v11047_v22  ;;  %v18644_v9 = vadd.f32 %v18416_v43, %v18530_v55  ;;  %v10717_v33 = vld [vmem:[#allocation2 + $0x118] sm:$0xf]  ;;  %v15086_v61 = vld [vmem:[#allocation2 + $0x100] ss:$8 sps:$4 sm:$0xff]  }
 0x38c   : > { %19786 = vst [vmem:[#allocation38_spill] sm:$0xff] %v18638_v62  ;;  %v11070_v38 = vor.u32 %v11069_v36, %v11066_v6  ;;  %v11089_v14 = vrot.slane %v11087_v15, 5  ;;  %v18646_v27 = vpop.f32.mrf.mxu1  ;;  %v11062_v47 = vsel %vm15641_vm3, %v11057_v54, %v11061_v25  ;;  %v18652_v3 = vadd.f32 %v18446_v24, %v18546_v18  ;;  %v18658_v36 = vld [vmem:[#allocation2 + $0x11c] sm:$0x1]  ;;  %v10721_v54 = vld [vmem:[#allocation2 + $0x128] sm:$0xf] }
 0x38d   : > { %v11084_v32 = vor.u32 %v11083_v52, %v11080_v44  ;;  %v18656_v22 = vadd.f32 %v18464_v2, %v18553_v8  ;;  %19789 = vst [vmem:[#allocation42_spill] sm:$0xff] %v18658_v36  ;;  %14754 = vmatmul.mubr.msk.bf16.gmra.mxu1 %vm7530_vm14, %v15085_v37  ;;  %v18661_v43 = vpop.f32.mrf.mxu0  ;;  %v13580_v55 = vcombine.low %v11048_v19, %v11062_v47  ;;  %v11092_v53 = vshrl.u32 %v10715_v20, 16  ;;  %v10719_v8 = vld [vmem:[#allocation2 + $0x120] sm:$0xf]  ;;  %v18673_v52 = vld [vmem:[#allocation2 + $0x124] sm:$0x1] }
 0x38e   : > { %19787 = vst [vmem:[#allocation39_spill] sm:$0xff] %v18652_v3  ;;  %19790 = vst [vmem:[#allocation43_spill] sm:$0xff] %v18661_v43  ;;  %v11071_v46 = vrot.slane %v11070_v38, 4  ;;  %v11095_v6 = vshll.u32 %v10715_v20, 16  ;;  %14757 = vmatprep.mubr.msk.bf16.mxu1 %vm7530_vm14, %v15086_v61  ;;  %v18664_v25 = vpop.f32.mrf.mxu1  ;;  %v11101_v18 = vshll.u32 %v18636_v57, 16  ;;  %v11106_v15 = vshrl.u32 %v10717_v33, 16 }
 0x38f   : > { %19788 = vst [vmem:[#allocation40_spill] sm:$0xff] %v18656_v22  ;;  %v11085_v24 = vrot.slane %v11084_v32, 4  ;;  %v11109_v2 = vshll.u32 %v10717_v33, 16  ;;  %v18667_v44 = vpop.f32.mrf.mxu0  ;;  %14790 = vmatmul.mubr.msk.bf16.gmra.mxu0 %vm7530_vm14, %v13580_v55  ;;  %v11094_v19 = vrot.slane %v11092_v53, 4  ;;  %v11115_v61 = vshll.u32 %v18658_v36, 16  ;;  %19792 = vst [vmem:[#allocation44_spill] sm:$0xff] %v18673_v52 }
 0x390   : > { %19791 = vst [vmem:[#allocation8_spill] sm:$0xff] %v18667_v44  ;;  %v11076_v37 = vsel %vm15641_vm3, %v11071_v46, %v11075_v5  ;;  %v11097_v20 = vrot.slane %v11095_v6, 5  ;;  %v18675_v38 = vpop.f32.mrf.mxu1  ;;  %v11103_v47 = vrot.slane %v11101_v18, 5  ;;  %v11108_v32 = vrot.slane %v11106_v15, 4  ;;  %v18679_v44 = vld [vmem:[#allocation2 + $0x12c] sm:$0x1] }
 0x391   : > { %v11090_v33 = vsel %vm15641_vm3, %v11085_v24, %v11089_v14  ;;  %v11111_v43 = vrot.slane %v11109_v2, 5  ;;  %19793 = vst [vmem:[#allocation45_spill] sm:$0xff] %v18679_v44  ;;  %v18681_v55 = vpop.f32.mrf.mxu0  ;;  %v11117_v46 = vrot.slane %v11115_v61, 5  ;;  %v18685_v53 = vadd.f32 %v18481_v21, %v18576_v26  ;;  %v10723_v24 = vld [vmem:[#allocation2 + $0x130] sm:$0xf] }
 0x392   : > { %19794 = vst [vmem:[#allocation46_spill] sm:$0xff] %v18681_v55  ;;  %v13581_v62 = vcombine.low %v11076_v37, %v11090_v33  ;;  %v11098_v5 = vor.u32 %v11097_v20, %v11094_v19  ;;  %v18687_v6 = vpop.f32.mrf.mxu1  ;;  %v11120_v3 = vshrl.u32 %v10719_v8, 16  ;;  %v11123_v36 = vshll.u32 %v10719_v8, 16  ;;  %v15087_v18 = vld [vmem:[#allocation2 + $0x110] ss:$8 sps:$4 sm:$0xff]  }
 0x393   : > { %v11112_v22 = vor.u32 %v11111_v43, %v11108_v32  ;;  %v11129_v14 = vshll.u32 %v18673_v52, 16  ;;  %v18690_v15 = vpop.f32.mrf.mxu0  ;;  %v11134_v37 = vshrl.u32 %v10721_v54, 16  ;;  %v11137_v19 = vshll.u32 %v10721_v54, 16  ;;  %v15088_v21 = vld [vmem:[#allocation2 + $0x120] ss:$8 sps:$4 sm:$0xff]  }
 0x394   : > { %19795 = vst [vmem:[#allocation47_spill] sm:$0xff] %v18690_v15  ;;  %14793 = vmatprep.mubr.msk.bf16.mxu0 %vm7530_vm14, %v13581_v62  ;;  %v11099_v2 = vrot.slane %v11098_v5, 4  ;;  %v11143_v20 = vshll.u32 %v18679_v44, 16  ;;  %v18694_v26 = vpop.f32.mrf.mxu1  ;;  %v11122_v43 = vrot.slane %v11120_v3, 4  ;;  %v11125_v33 = vrot.slane %v11123_v36, 5 }
 0x395   : > { %v11113_v61 = vrot.slane %v11112_v22, 4  ;;  %v11131_v8 = vrot.slane %v11129_v14, 5  ;;  %v18696_v32 = vld [vmem:[#allocation2 + $0x134] sm:$0x1]  ;;  %14758 = vmatmul.mubr.msk.bf16.gmra.mxu1 %vm7530_vm14, %v15087_v18  ;;  %v18699_v52 = vpop.f32.mrf.mxu0  ;;  %v11136_v5 = vrot.slane %v11134_v37, 4  ;;  %v11139_v54 = vrot.slane %v11137_v19, 5 }
 0x396   : > { %19796 = vst [vmem:[#allocation48_spill] sm:$0xff] %v18696_v32  ;;  %v11104_v62 = vsel %vm15641_vm3, %v11099_v2, %v11103_v47  ;;  %v11145_v15 = vrot.slane %v11143_v20, 5  ;;  %v10725_v44 = vld [vmem:[#allocation2 + $0x138] sm:$0xf]  ;;  %14761 = vmatprep.mubr.msk.bf16.mxu1 %vm7530_vm14, %v15088_v21  ;;  %v7728_v55 = vpop.f32.mrf.mxu1  ;;  %v11126_v22 = vor.u32 %v11125_v33, %v11122_v43  ;;  %v18708_v36 = vadd.f32 %v18491_v49, %v18582_v30  ;;  %v18720_v21 = vld [vmem:[#allocation2 + $0x13c] sm:$0x1] }
 0x397   : > { %v11118_v3 = vsel %vm15641_vm3, %v11113_v61, %v11117_v46  ;;  %v18712_v14 = vadd.f32 %v18501_v58, %v18598_v29  ;;  %v18714_v47 = vpop.f32.mrf.mxu0  ;;  %v11140_v2 = vor.u32 %v11139_v54, %v11136_v5  ;;  %v18718_v37 = vadd.f32 %v18512_v39, %v18605_v35  ;;  %19799 = vst [vmem:[#allocation51_spill] sm:$0xff] %v18720_v21 }
 0x398   : > { %v13582_v18 = vcombine.low %v11104_v62, %v11118_v3  ;;  %v11148_v19 = vshrl.u32 %v10723_v24, 16  ;;  %v14591_v20 = vpop.f32.mrf.mxu1  ;;  %v11127_v46 = vrot.slane %v11126_v22, 4  ;;  %v11151_v61 = vshll.u32 %v10723_v24, 16  ;;  %v11481_v62 = vld [vmem:[#allocation2 + $0x10] sm:$0xe] }
 0x399   : > { %19797 = vst [vmem:[#allocation49_spill] sm:$0xff] %v18712_v14  ;;  %19798 = vst [vmem:[#allocation50_spill] sm:$0xff] %v18718_v37  ;;  %v11157_v49 = vshll.u32 %v18696_v32, 16  ;;  %v11162_v30 = vshrl.u32 %v10725_v44, 16  ;;  %v11141_v58 = vrot.slane %v11140_v2, 4  ;;  %v11165_v43 = vshll.u32 %v10725_v44, 16 }
 0x39a   : > { %14794 = vmatmul.mubr.msk.bf16.gmra.mxu0 %vm7530_vm14, %v13582_v18  ;;  %v11150_v29 = vrot.slane %v11148_v19, 4  ;;  %v11171_v33 = vshll.u32 %v18720_v21, 16  ;;  %v18725_v5 = vpop.f32.mrf.mxu1  ;;  %v18727_v39 = vpop.f32.mrf.mxu0  ;;  %v11132_v35 = vsel %vm15641_vm3, %v11127_v46, %v11131_v8  ;;  %v11153_v54 = vrot.slane %v11151_v61, 5  ;;  %v15089_v22 = vld [vmem:[#allocation2 + $0x130] ss:$8 sps:$4 sm:$0xff]  }
 0x39b   : > { %19800 = vst [vmem:[#allocation52_spill] sm:$0xff] %v18727_v39  ;;  %v11159_v24 = vrot.slane %v11157_v49, 5  ;;  %v11164_v3 = vrot.slane %v11162_v30, 4  ;;  %v11146_v18 = vsel %vm15641_vm3, %v11141_v58, %v11145_v15  ;;  %v11167_v2 = vrot.slane %v11165_v43, 5  ;;  %v11482_v21 = vld [vmem:[#allocation2 + $0x18] sm:$0xe] }
 0x39c   : > { %v11173_v19 = vrot.slane %v11171_v33, 5  ;;  %v18735_v44 = vadd.f32 %v18538_v11, %v18627_v41  ;;  %v14592_v32 = vpop.f32.mrf.mxu1  ;;  %v18737_v37 = vpop.f32.mrf.mxu0  ;;  %v13583_v14 = vcombine.low %v11132_v35, %v11146_v18  ;;  %v11154_v39 = vor.u32 %v11153_v54, %v11150_v29  ;;  %v15120_v58 = vld [vmem:[#allocation2 + $0x1c] sm:$0x1]  ;;  %v11483_v43 = vld [vmem:[#allocation2 + $0x20] sm:$0xe] }
 0x39d   : > { %v18741_v8 = vadd.f32 %v18550_v60, %v18634_v1  ;;  %v18745_v46 = vadd.f32 %v18560_v42, %v18646_v27  ;;  %14762 = vmatmul.mubr.msk.bf16.gmra.mxu1 %vm7530_vm14, %v15089_v22  ;;  %v11168_v15 = vor.u32 %v11167_v2, %v11164_v3  ;;  %v18750_v11 = vadd.f32 %v18572_v13, %v18664_v25  ;;  %v15119_v42 = vld [vmem:[#allocation2 + $0x14] sm:$0x1]  ;;  %v11485_v33 = vld [vmem:[#allocation2 + $0x30] sm:$0xe]  ;;  %v15121_v3 = vld [vmem:[#allocation2 + $0x24] sm:$0x1] }
 0x39e   : > { %19801 = vst [vmem:[#allocation53_spill] sm:$0xff] %v18735_v44  ;;  %v18754_v41 = vadd.f32 %v18588_v7, %v18675_v38  ;;  %v13603_v61 = vrot.slane %v11481_v62, 9  ;;  %v18756_v49 = vpop.f32.mrf.mxu1  ;;  %v18758_v60 = vpop.f32.mrf.mxu0  ;;  %14797 = vmatprep.mubr.msk.bf16.mxu0 %vm7530_vm14, %v13583_v14  ;;  %v11155_v27 = vrot.slane %v11154_v39, 4  ;;  %v11579_v1 = vrot.slane %v15119_v42, 5  ;;  %v11484_v14 = vld [vmem:[#allocation2 + $0x28] sm:$0xe] }
 0x39f   : > { %19802 = vst [vmem:[#allocation54_spill] sm:$0xff] %v18741_v8  ;;  %19803 = vst [vmem:[#allocation55_spill] sm:$0xff] %v18745_v46  ;;  %v13604_v30 = vrot.slane %v11482_v21, 9  ;;  %v11583_v29 = vrot.slane %v15120_v58, 5  ;;  %v11169_v13 = vrot.slane %v11168_v15, 4  ;;  %v18763_v7 = vadd.f32 %v18602_v59, %v18687_v6  ;;  %v19839_v44 = vld [vmem:[#allocation17_spill] sm:$0xff] }
 0x3a0   : > { %19804 = vst [vmem:[#allocation56_spill] sm:$0xff] %v18750_v11  ;;  %19805 = vst [vmem:[#allocation57_spill] sm:$0xff] %v18754_v41  ;;  %v18767_v25 = vadd.f32 %v18610_v45, %v18694_v26  ;;  %v18770_v38 = vadd.f32 %v18625_v50, %v7728_v55  ;;  %v14595_v62 = vpop.f32.mrf.mxu1  ;;  %v18772_v21 = vpop.f32.mrf.mxu0  ;;  %v11160_v39 = vsel %vm15641_vm3, %v11155_v27, %v11159_v24  ;;  %v11486_v6 = vld [vmem:[#allocation2 + $0x38] sm:$0xe]  ;;  %v15090_v26 = vld [vmem:[%s15590_s14 + $0x360] ss:$8 sps:$4 sm:$0xff]  }
 0x3a1   : > { %19806 = vst [vmem:[#allocation58_spill] sm:$0xff] %v18763_v7  ;;  %v11580_v35 = vsel %vm16996_vm13, %v13603_v61, %v11579_v1  ;;  %v11584_v59 = vsel %vm16996_vm13, %v13604_v30, %v11583_v29  ;;  %v18781_v45 = vadd.f32 %v14591_v20, %v18423_v34  ;;  %v11174_v50 = vsel %vm15641_vm3, %v11169_v13, %v11173_v19  ;;  %v15122_v61 = vld [vmem:[#allocation2 + $0x2c] sm:$0x1]  ;;  %v11487_v1 = vld [vmem:[#allocation2 + $0x40] sm:$0xe] }
 0x3a2   : > { %19807 = vst [vmem:[#allocation59_spill] sm:$0xff] %v18767_v25  ;;  %19808 = vst [vmem:[#allocation60_spill] sm:$0xff] %v18770_v38  ;;  %v13639_v55 = vcombine.low %v11580_v35, %v11584_v59  ;;  %v13605_v54 = vrot.slane %v11483_v43, 9  ;;  %v11587_v22 = vrot.slane %v15121_v3, 5  ;;  %v8431_v18 = vpop.f32.mrf.mxu1  ;;  %v18786_v24 = vpop.f32.mrf.mxu0  ;;  %v13584_v2 = vcombine.low %v11160_v39, %v11174_v50  ;;  %v11488_v30 = vld [vmem:[#allocation2 + $0x48] sm:$0xe] }
 0x3a3   : > { %v13606_v15 = vrot.slane %v11484_v14, 9  ;;  %v11591_v27 = vrot.slane %v15122_v61, 5  ;;  %v13607_v42 = vrot.slane %v11485_v33, 9  ;;  %v7934_v34 = vadd.f32 %v18317_v10, %v18380_v63  ;;  %v11490_v13 = vld [vmem:[#allocation2 + $0x68] sm:$0xe] }
 0x3a4   : > { %14805 = vmatprep.mubr.msk.bf16.mxu1 %vm7530_vm14, %v13639_v55  ;;  %v11595_v51 = vrot.slane %v18365_v4, 5  ;;  %v13608_v20 = vrot.slane %v11486_v6, 9  ;;  %v11599_v19 = vrot.slane %v18373_v0, 5  ;;  %v14596_v58 = vpop.f32.mrf.mxu1  ;;  %v18793_v29 = vpop.f32.mrf.mxu0  ;;  %14798 = vmatmul.mubr.msk.bf16.gmra.mxu0 %vm7530_vm14, %v13584_v2  ;;  %v11588_v43 = vsel %vm16996_vm13, %v13605_v54, %v11587_v22  ;;  %v11489_v0 = vld [vmem:[#allocation2 + $0x60] sm:$0xe]  ;;  %v19809_v61 = vld [vmem:[#allocation28_spill] sm:$0xff] }
 0x3a5   : > { %v11592_v10 = vsel %vm16996_vm13, %v13606_v15, %v11591_v27  ;;  %v18802_v63 = vadd.f32 %v18725_v5, %v18435_v56  ;;  %v18805_v4 = vadd.f32 %v14592_v32, %v18442_v17  ;;  %14839 = vmatprep.mubr.msk.bf16.mxu0 %vm1629_vm0, %v15090_v26  ;;  %v18813_v35 = vadd.f32 %v14595_v62, %v18472_v40  ;;  %v15091_v5 = vld [vmem:[%s15590_s14 + $0x370] ss:$8 sps:$4 sm:$0xff]   ;;  %v11503_v41 = vld [vmem:[#allocation2 + $0xe0] sm:$0xe] }
 0x3a6   : > { %v13640_v14 = vcombine.low %v11588_v43, %v11592_v10  ;;  %v11596_v33 = vsel %vm16996_vm13, %v13607_v42, %v11595_v51  ;;  %v11600_v39 = vsel %vm16996_vm13, %v13608_v20, %v11599_v19  ;;  %v8434_v59 = vpop.f32.mrf.mxu1  ;;  %v18815_v56 = vpop.f32.mrf.mxu0  ;;  %v13609_v32 = vrot.slane %v11487_v1, 9  ;;  %v11491_v62 = vld [vmem:[#allocation2 + $0x70] sm:$0xe]  ;;  %v11492_v27 = vld [vmem:[#allocation2 + $0x78] sm:$0xe] }
 0x3a7   : > { %v13641_v17 = vcombine.low %v11596_v33, %v11600_v39  ;;  %v11603_v6 = vrot.slane %v18385_v28, 5  ;;  %v13610_v50 = vrot.slane %v11488_v30, 9  ;;  %v11607_v55 = vrot.slane %v18397_v31, 5  ;;  %v15092_v42 = vld [vmem:[%s15590_s14 + $0x380] ss:$8 sps:$4 sm:$0xff]   ;;  %v19810_v20 = vld [vmem:[#allocation25_spill] sm:$0xff] }
 0x3a8   : > { %14806 = vmatmul.mubr.msk.bf16.vlgmr.msra.gmra.mxu1 %vm7530_vm14, %v13640_v14  ;;  %v13611_v26 = vrot.slane %v11489_v0, 9  ;;  %v11611_v54 = vrot.slane %v18400_v16, 5  ;;  %v13612_v3 = vrot.slane %v11490_v13, 9  ;;  %v14599_v40 = vpop.f32.mrf.mxu1  ;;  %v18822_v22 = vpop.f32.mrf.mxu0  ;;  %v11615_v28 = vrot.slane %v18414_v12, 5  ;;  %v11493_v16 = vld [vmem:[#allocation2 + $0x80] sm:$0xe] }
 0x3a9   : > { %14809 = vmatprep.mubr.msk.bf16.mxu1 %vm7530_vm14, %v13641_v17  ;;  %v11604_v2 = vsel %vm16996_vm13, %v13609_v32, %v11603_v6  ;;  %v18829_v15 = vadd.f32 %v8431_v18, %v18518_v48  ;;  %v18832_v31 = vadd.f32 %v14596_v58, %v19809_v61  ;;  %v11608_v1 = vsel %vm16996_vm13, %v13610_v50, %v11607_v55  ;;  %v11494_v30 = vld [vmem:[#allocation2 + $0x88] sm:$0xe]  ;;  %v19812_v18 = vld [vmem:[#allocation10_spill] sm:$0xff]  ;;  %v19815_v55 = vld [vmem:[#allocation13_spill] sm:$0xff] }
 0x3aa   : > { %v18837_v51 = vadd.f32 %v8434_v59, %v7934_v34  ;;  %v18840_v19 = vadd.f32 %v14599_v40, %v19810_v20  ;;  %v8447_v43 = vpop.f32.mrf.mxu1  ;;  %v18842_v12 = vpop.f32.mrf.mxu0  ;;  %v19811_v48 = vld [vmem:[#allocation16_spill] sm:$0xff]  ;;  %v11612_v58 = vsel %vm16996_vm13, %v13611_v26, %v11611_v54  ;;  %v13613_v0 = vrot.slane %v11491_v62, 9  ;;  %v19814_v34 = vld [vmem:[#allocation14_spill] sm:$0xff]  ;;  %v18857_v62 = vld [vmem:[#allocation2 + $0x90] sm:$0xe] }
 0x3ab   : > { %v7950_v10 = vadd.f32 %v19812_v18, %v19811_v48  ;;  %v19813_v13 = vld [vmem:[#allocation12_spill] sm:$0xff]  ;;  %v13642_v33 = vcombine.low %v11604_v2, %v11608_v1  ;;  %v13614_v39 = vrot.slane %v11492_v27, 9  ;;  %v11623_v59 = vrot.slane %v19814_v34, 5  ;;  %v19816_v26 = vld [vmem:[#allocation18_spill] sm:$0xff]  ;;  %v11497_v20 = vld [vmem:[#allocation2 + $0xb0] sm:$0xe] }
 0x3ac   : > { %v11619_v14 = vrot.slane %v19813_v13, 5  ;;  %v13615_v17 = vrot.slane %v11493_v16, 9  ;;  %v14600_v32 = vpop.f32.mrf.mxu1  ;;  %v18850_v6 = vpop.f32.mrf.mxu0  ;;  %14840 = vmatmul.mubr.msk.bf16.vlgmr.msra.gmra.mxu0 %vm1629_vm0, %v15091_v5  ;;  %v11616_v50 = vsel %vm16996_vm13, %v13612_v3, %v11615_v28  ;;  %v11627_v40 = vrot.slane %v19815_v55, 5  ;;  %v19817_v16 = vld [vmem:[#allocation7_spill] sm:$0xff]  ;;  %v19818_v1 = vld [vmem:[#allocation26_spill] sm:$0xff] }
 0x3ad   : > { %v13616_v61 = vrot.slane %v11494_v30, 9  ;;  %v11631_v54 = vrot.slane %v19816_v26, 5  ;;  %14843 = vmatprep.mubr.msk.bf16.mxu0 %vm1629_vm0, %v15092_v42  ;;  %v13643_v2 = vcombine.low %v11612_v58, %v11616_v50  ;;  %v18862_v27 = vsel %vm16996_vm13, %v13614_v39, %v11623_v59  ;;  %v11498_v30 = vld [vmem:[#allocation2 + $0xb8] sm:$0xe]  ;;  %v11499_v39 = vld [vmem:[#allocation2 + $0xc0] sm:$0xe] }
 0x3ae   : > { %v18865_v5 = vadd.f32 %v8447_v43, %v19817_v16  ;;  %v18868_v3 = vadd.f32 %v14600_v32, %v19818_v1  ;;  %v8450_v28 = vpop.f32.mrf.mxu1  ;;  %v18870_v48 = vpop.f32.mrf.mxu0  ;;  %v11620_v42 = vsel %vm16996_vm13, %v13613_v0, %v11619_v14  ;;  %v18876_v18 = vsel %vm16996_vm13, %v13615_v17, %v11627_v40  ;;  %v18884_v13 = vld [vmem:[#allocation2 + $0x98] sm:$0xe]  ;;  %v19819_v34 = vld [vmem:[#allocation23_spill] sm:$0xff]  ;;  %v11500_v40 = vld [vmem:[#allocation2 + $0xc8] sm:$0xe] }
 0x3af   : > { %v18880_v58 = vsel %vm16996_vm13, %v13616_v61, %v11631_v54  ;;  %v18882_v43 = vadd.f32 %v8450_v28, %v7950_v10  ;;  %v19820_v59 = vld [vmem:[#allocation11_spill] sm:$0xff]  ;;  %v15093_v50 = vld [vmem:[%s15590_s14 + $0x390] ss:$8 sps:$4 sm:$0xff]   ;;  %v13644_v0 = vcombine.low %v11620_v42, %v18862_v27  ;;  %v13617_v55 = vrot.slane %v18857_v62, 9 }
 0x3b0   : > { %v7966_v32 = vadd.f32 %v19820_v59, %v19819_v34  ;;  %14810 = vmatmul.mubr.msk.bf16.gmra.mxu1 %vm7530_vm14, %v13642_v33  ;;  %v13645_v14 = vcombine.low %v18876_v18, %v18880_v58  ;;  %v14603_v17 = vpop.f32.mrf.mxu1  ;;  %v18894_v10 = vpop.f32.mrf.mxu0  ;;  %v19821_v61 = vld [vmem:[#allocation15_spill] sm:$0xff]  ;;  %v13619_v54 = vrot.slane %v11497_v20, 9  ;;  %v19822_v16 = vld [vmem:[#allocation22_spill] sm:$0xff]  ;;  %v13620_v33 = vrot.slane %v11498_v30, 9  ;;  %v11501_v28 = vld [vmem:[#allocation2 + $0xd0] sm:$0xe] }
 0x3b1   : > { %14813 = vmatprep.mubr.msk.bf16.mxu1 %vm7530_vm14, %v13643_v2  ;;  %v18898_v26 = vadd.f32 %v14603_v17, %v19821_v61  ;;  %v11643_v1 = vrot.slane %v19822_v16, 5  ;;  %v15094_v27 = vld [vmem:[%s15590_s14 + $0x3a8] ss:$8 sps:$4 sm:$0xff]   ;;  %v19823_v42 = vld [vmem:[#allocation19_spill] sm:$0xff]  ;;  %v13618_v18 = vrot.slane %v18884_v13, 9  ;;  %v13621_v25 = vrot.slane %v11499_v39, 9 }
 0x3b2   : > { %v11635_v34 = vrot.slane %v19823_v42, 5  ;;  %v19824_v58 = vld [vmem:[#allocation24_spill] sm:$0xff]  ;;  %v8463_v59 = vpop.f32.mrf.mxu1  ;;  %v18905_v38 = vpop.f32.mrf.mxu0  ;;  %v19825_v2 = vld [vmem:[#allocation21_spill] sm:$0xff]  ;;  %v19827_v61 = vld [vmem:[#allocation27_spill] sm:$0xff]  ;;  %v13622_v11 = vrot.slane %v11500_v40, 9  ;;  %v13623_v8 = vrot.slane %v11501_v28, 9 }
 0x3b3   : > { %v11647_v62 = vrot.slane %v19824_v58, 5  ;;  %v11639_v7 = vrot.slane %v19825_v2, 5  ;;  %v18910_v20 = vsel %vm16996_vm13, %v13619_v54, %v11643_v1  ;;  %v19826_v17 = vld [vmem:[#allocation33_spill] sm:$0xff]  ;;  %v11651_v16 = vrot.slane %v19827_v61, 5  ;;  %v11502_v42 = vld [vmem:[#allocation2 + $0xd8] sm:$0xe] }
 0x3b4   : > { %v18913_v30 = vadd.f32 %v8463_v59, %v19826_v17  ;;  %v14604_v58 = vpop.f32.mrf.mxu1  ;;  %v19828_v39 = vld [vmem:[#allocation29_spill] sm:$0xff]  ;;  %v18921_v2 = vpop.f32.mrf.mxu0  ;;  %14844 = vmatmul.mubr.msk.bf16.gmra.mxu0 %vm1629_vm0, %v15093_v50  ;;  %v19829_v1 = vld [vmem:[#allocation34_spill] sm:$0xff]  ;;  %v11504_v40 = vld [vmem:[#allocation2 + $0xe8] sm:$0xe]  ;;  %v13624_v50 = vrot.slane %v11502_v42, 9 }
 0x3b5   : > { %v18918_v13 = vsel %vm16996_vm13, %v13620_v33, %v11647_v62  ;;  %v11655_v46 = vrot.slane %v19828_v39, 5  ;;  %v18927_v59 = vadd.f32 %v14604_v58, %v19829_v1  ;;  %v18931_v17 = vsel %vm16996_vm13, %v13621_v25, %v11651_v16  ;;  %v19830_v33 = vld [vmem:[#allocation31_spill] sm:$0xff]  ;;  %14847 = vmatprep.mubr.msk.bf16.mxu0 %vm1629_vm0, %v15094_v27  ;;  %v19833_v16 = vld [vmem:[#allocation32_spill] sm:$0xff] }
 0x3b6   : > { %v13647_v54 = vcombine.low %v18910_v20, %v18918_v13  ;;  %v11659_v62 = vrot.slane %v19830_v33, 5  ;;  %v8466_v61 = vpop.f32.mrf.mxu1  ;;  %v19831_v20 = vld [vmem:[#allocation30_spill] sm:$0xff]  ;;  %v18940_v58 = vpop.f32.mrf.mxu0  ;;  %v13625_v39 = vrot.slane %v11503_v41, 9 }
 0x3b7   : > { %v18937_v28 = vsel %vm16996_vm13, %v13622_v11, %v11655_v46  ;;  %v11663_v13 = vrot.slane %v19831_v20, 5  ;;  %v18942_v1 = vadd.f32 %v8466_v61, %v7966_v32  ;;  %v11667_v46 = vrot.slane %v19833_v16, 5  ;;  %v11507_v11 = vld [vmem:[#allocation2 + $0x110] sm:$0xe]  ;;  %v19836_v61 = vld [vmem:[#allocation35_spill] sm:$0xff] }
 0x3b8   : > { %v18948_v27 = vsel %vm16996_vm13, %v13623_v8, %v11659_v62  ;;  %14814 = vmatmul.mubr.msk.bf16.gmra.mxu1 %vm7530_vm14, %v13644_v0  ;;  %v14607_v42 = vpop.f32.mrf.mxu1  ;;  %v18956_v41 = vpop.f32.mrf.mxu0  ;;  %v13626_v32 = vrot.slane %v11504_v40, 9  ;;  %v11671_v20 = vrot.slane %v19836_v61, 5  ;;  %v15095_v25 = vld [vmem:[%s15590_s14 + $0x3b8] ss:$8 sps:$4 sm:$0xff]   ;;  %v19837_v8 = vld [vmem:[#allocation36_spill] sm:$0xff]  ;;  %v11636_v40 = vsel %vm16996_vm13, %v13617_v55, %v11635_v34  ;;  %v19840_v55 = vld [vmem:[#allocation9_spill] sm:$0xff] }
 0x3b9   : > { %19832 = vst [vmem:[#allocation28_spill] sm:$0xff] %v18948_v27  ;;  %v18954_v33 = vsel %vm16996_vm13, %v13624_v50, %v11663_v13  ;;  %19835 = vst [vmem:[#allocation16_spill] sm:$0xff] %v18956_v41  ;;  %14817 = vmatprep.mubr.msk.bf16.mxu1 %vm7530_vm14, %v13645_v14  ;;  %v18962_v62 = vadd.f32 %v14607_v42, %v19837_v8  ;;  %v18968_v0 = vsel %vm16996_vm13, %v13625_v39, %v11667_v46  ;;  %v11508_v50 = vld [vmem:[#allocation2 + $0x118] sm:$0xe]  ;;  %v15096_v13 = vld [vmem:[%s15590_s14 + $0x3c8] ss:$8 sps:$4 sm:$0xff]  }
 0x3ba   : > { %19834 = vst [vmem:[#allocation25_spill] sm:$0xff] %v18954_v33  ;;  %v8479_v41 = vpop.f32.mrf.mxu1  ;;  %v18973_v61 = vpop.f32.mrf.mxu0  ;;  %v18977_v14 = vsel %vm16996_vm13, %v13626_v32, %v11671_v20  ;;  %v13629_v42 = vrot.slane %v11507_v11, 9  ;;  %v11640_v8 = vsel %vm16996_vm13, %v13618_v18, %v11639_v7  ;;  %v11683_v46 = vrot.slane %v18636_v57, 5  ;;  %v19841_v32 = vld [vmem:[#allocation42_spill] sm:$0xff]  ;;  %v19842_v7 = vld [vmem:[#allocation39_spill] sm:$0xff] }
 0x3bb   : > { %19838 = vst [vmem:[#allocation10_spill] sm:$0xff] %v18973_v61  ;;  %v8558_v16 = vadd.f32 %v8479_v41, %v18644_v9  ;;  %v13650_v39 = vcombine.low %v18968_v0, %v18977_v14  ;;  %v7918_v34 = vadd.f32 %v19840_v55, %v19839_v44  ;;  %v13630_v27 = vrot.slane %v11508_v50, 9 }
 0x3bc   : > { %v14608_v33 = vpop.f32.mrf.mxu1  ;;  %v18987_v61 = vpop.f32.mrf.mxu0  ;;  %v11687_v20 = vrot.slane %v19841_v32, 5  ;;  %14848 = vmatmul.mubr.msk.bf16.gmra.mxu0 %vm1629_vm0, %v15095_v25  ;;  %v13646_v57 = vcombine.low %v11636_v40, %v11640_v8  ;;  %v18998_v44 = vsel %vm16996_vm13, %v13629_v42, %v11683_v46  ;;  %v19843_v25 = vld [vmem:[#allocation40_spill] sm:$0xff]  ;;  %v19844_v40 = vld [vmem:[#allocation41_spill] sm:$0xff]  ;;  %v15097_v42 = vld [vmem:[%s15590_s14 + $0x3d8] ss:$8 sps:$4 sm:$0xff]  }
 0x3bd   : > { %v8561_v18 = vadd.f32 %v14608_v33, %v19842_v7  ;;  %v8543_v9 = vadd.f32 %v18756_v49, %v7918_v34  ;;  %14851 = vmatprep.mubr.msk.bf16.mxu0 %vm1629_vm0, %v15096_v13  ;;  %v19012_v8 = vadd.f32 %v19844_v40, %v18781_v45  ;;  %v19845_v46 = vld [vmem:[#allocation38_spill] sm:$0xff] }
 0x3be   : > { %v8482_v11 = vpop.f32.mrf.mxu1  ;;  %v18994_v41 = vpop.f32.mrf.mxu0  ;;  %v19002_v50 = vsel %vm16996_vm13, %v13630_v27, %v11687_v20  ;;  %v19019_v34 = vadd.f32 %v19845_v46, %v18802_v63  ;;  %v15098_v32 = vld [vmem:[%s15590_s14 + $0x3f0] ss:$8 sps:$4 sm:$0xff]   ;;  %v19849_v63 = vld [vmem:[#allocation47_spill] sm:$0xff]  ;;  %v19042_v46 = vadd.f32 %v18699_v52, %v18832_v31 }
 0x3bf   : > { %v8559_v55 = vadd.f32 %v8482_v11, %v19843_v25  ;;  %v19847_v25 = vld [vmem:[#allocation8_spill] sm:$0xff]  ;;  %v19848_v40 = vld [vmem:[#allocation46_spill] sm:$0xff]  ;;  %v11505_v52 = vld [vmem:[#allocation2 + $0x100] sm:$0xe] }
 0x3c0   : > { %14818 = vmatmul.mubr.msk.bf16.gmra.mxu1 %vm7530_vm14, %v13646_v57  ;;  %v14611_v33 = vpop.f32.mrf.mxu1  ;;  %v19008_v13 = vpop.f32.mrf.mxu0  ;;  %v19846_v57 = vld [vmem:[#allocation43_spill] sm:$0xff]  ;;  %v19029_v45 = vadd.f32 %v19847_v25, %v8543_v9  ;;  %v19048_v9 = vadd.f32 %v18714_v47, %v18837_v51  ;;  %v19851_v31 = vld [vmem:[#allocation49_spill] sm:$0xff]  ;;  %v19066_v47 = vadd.f32 %v18772_v21, %v18882_v43  ;;  %v19070_v51 = vadd.f32 %v18786_v24, %v18898_v26  ;;  %v19852_v43 = vld [vmem:[#allocation50_spill] sm:$0xff] }
 0x3c1   : > { %14821 = vmatprep.mubr.msk.bf16.mxu1 %vm7530_vm14, %v13647_v54  ;;  %v8564_v27 = vadd.f32 %v14611_v33, %v18685_v53  ;;  %v19026_v11 = vadd.f32 %v19846_v57, %v18805_v4  ;;  %v19033_v54 = vadd.f32 %v19848_v40, %v18813_v35  ;;  %v19038_v33 = vadd.f32 %v19849_v63, %v18829_v15  ;;  %v19850_v35 = vld [vmem:[#allocation52_spill] sm:$0xff]  ;;  %v19860_v40 = vld [vmem:[#allocation37_spill] sm:$0xff] }
 0x3c2   : > { %v8495_v20 = vpop.f32.mrf.mxu1  ;;  %v19022_v7 = vpop.f32.mrf.mxu0  ;;  %v19052_v57 = vadd.f32 %v19850_v35, %v18840_v19  ;;  %v19060_v15 = vadd.f32 %v18758_v60, %v18868_v3  ;;  %v19085_v21 = vadd.f32 %v18822_v22, %v18942_v1  ;;  %v19089_v24 = vadd.f32 %v18842_v12, %v18962_v62  ;;  %v11506_v3 = vld [vmem:[#allocation2 + $0x108] sm:$0xe] }
 0x3c3   : > { %v8562_v53 = vadd.f32 %v8495_v20, %v18708_v36  ;;  %v19056_v36 = vadd.f32 %v18737_v37, %v18865_v5  ;;  %v19074_v37 = vadd.f32 %v18793_v29, %v18913_v30  ;;  %v19081_v5 = vadd.f32 %v18815_v56, %v18927_v59  ;;  %v19854_v59 = vld [vmem:[#allocation20_spill] sm:$0xff] }
 0x3c4   : > { %v14612_v49 = vpop.f32.mrf.mxu1  ;;  %v19044_v4 = vpop.f32.mrf.mxu0  ;;  %14852 = vmatmul.mubr.msk.bf16.gmra.mxu0 %vm1629_vm0, %v15097_v42  ;;  %v19092_v29 = vadd.f32 %v18850_v6, %v8558_v16  ;;  %v19096_v30 = vadd.f32 %v18870_v48, %v8561_v18  ;;  %v19099_v56 = vadd.f32 %v18894_v10, %v8559_v55  ;;  %v19102_v22 = vadd.f32 %v18905_v38, %v8564_v27  ;;  %v15099_v18 = vld [vmem:[%s15590_s14 + $0x400] ss:$8 sps:$4 sm:$0xff]   ;;  %v19856_v55 = vld [vmem:[#allocation25_spill] sm:$0xff] }
 0x3c5   : > { %v8565_v20 = vadd.f32 %v14612_v49, %v19851_v31  ;;  %14855 = vmatprep.mubr.msk.bf16.mxu0 %vm1629_vm0, %v15098_v32  ;;  %v19853_v12 = vcombine.low %v18931_v17, %v18937_v28  ;;  %v13627_v6 = vrot.slane %v11505_v52, 9  ;;  %v11675_v1 = vrot.slane %v19854_v59, 5  ;;  %v19855_v38 = vld [vmem:[#allocation28_spill] sm:$0xff]  ;;  %v19858_v17 = vld [vmem:[#allocation53_spill] sm:$0xff]  ;;  %v19862_v52 = vld [vmem:[#allocation10_spill] sm:$0xff] }
 0x3c6   : > { %v8498_v60 = vpop.f32.mrf.mxu1  ;;  %v19077_v19 = vpop.f32.mrf.mxu0  ;;  %v19112_v48 = vadd.f32 %v18921_v2, %v8562_v53  ;;  %v19857_v49 = vcombine.low %v19855_v38, %v19856_v55  ;;  %v19859_v42 = vld [vmem:[#allocation16_spill] sm:$0xff]  ;;  %v15100_v32 = vld [vmem:[%s15590_s14 + $0x410] ss:$8 sps:$4 sm:$0xff]   ;;  %v13628_v25 = vrot.slane %v11506_v3, 9  ;;  %v11679_v63 = vrot.slane %v19860_v40, 5  ;;  %v19863_v3 = vld [vmem:[#allocation55_spill] sm:$0xff] }
 0x3c7   : > { %v8563_v26 = vadd.f32 %v8498_v60, %v19852_v43  ;;  %v19115_v10 = vadd.f32 %v18940_v58, %v8565_v20  ;;  %v19861_v58 = vld [vmem:[#allocation54_spill] sm:$0xff]  ;;  %v11676_v20 = vsel %vm16996_vm13, %v13627_v6, %v11675_v1  ;;  %v11510_v55 = vld [vmem:[#allocation2 + $0x128] sm:$0xe] }
 0x3c8   : > { %14822 = vmatmul.mubr.msk.bf16.gmra.mxu1 %vm7530_vm14, %v19853_v12  ;;  %v19109_v16 = vpop.f32.mrf.mxu0  ;;  %v15101_v40 = vld [vmem:[%s15590_s14 + $0x420] ss:$8 sps:$4 sm:$0xff]  }
 0x3c9   : > { %v14615_v62 = vpop.f32.mrf.mxu1  ;;  %14825 = vmatprep.mubr.msk.bf16.mxu1 %vm7530_vm14, %v19857_v49  ;;  %v19124_v27 = vadd.f32 %v19859_v42, %v8563_v26  ;;  %v11509_v26 = vld [vmem:[#allocation2 + $0x120] sm:$0xe]  ;;  %v19864_v49 = vld [vmem:[#allocation56_spill] sm:$0xff] }
 0x3ca   : > { %v8568_v28 = vadd.f32 %v14615_v62, %v19858_v17  ;;  %v11680_v62 = vsel %vm16996_vm13, %v13628_v25, %v11679_v63  ;;  %v19866_v63 = vld [vmem:[#allocation57_spill] sm:$0xff] }
 0x3cb   : > { %v8511_v2 = vpop.f32.mrf.mxu1  ;;  %v19128_v53 = vpop.f32.mrf.mxu0  ;;  %v13651_v1 = vcombine.low %v11676_v20, %v11680_v62 }
 0x3cc   : > { %v8566_v35 = vadd.f32 %v8511_v2, %v19861_v58  ;;  %v19132_v31 = vadd.f32 %v19862_v52, %v8568_v28  ;;  %14856 = vmatmul.mubr.msk.bf16.gmra.mxu0 %vm1629_vm0, %v15099_v18  ;;  %v19865_v28 = vld [vmem:[#allocation44_spill] sm:$0xff]  ;;  %v19867_v52 = vld [vmem:[#allocation45_spill] sm:$0xff] }
 0x3cd   : > { %v14616_v60 = vpop.f32.mrf.mxu1  ;;  %v19136_v43 = vpop.f32.mrf.mxu0  ;;  %14859 = vmatprep.mubr.msk.bf16.mxu0 %vm1629_vm0, %v15100_v32  ;;  %v11691_v42 = vrot.slane %v19865_v28, 5  ;;  %v11695_v20 = vrot.slane %v19867_v52, 5  ;;  %v19870_v28 = vld [vmem:[#allocation48_spill] sm:$0xff] }
 0x3ce   : > { %v8569_v12 = vadd.f32 %v14616_v60, %v19863_v3  ;;  %v19141_v59 = vadd.f32 %v18987_v61, %v8566_v35  ;;  %v13631_v61 = vrot.slane %v11509_v26, 9  ;;  %v13632_v35 = vrot.slane %v11510_v55, 9  ;;  %v11512_v60 = vld [vmem:[#allocation2 + $0x138] sm:$0xe] }
 0x3cf   : > { %v8514_v38 = vpop.f32.mrf.mxu1  ;;  %v19146_v6 = vpop.f32.mrf.mxu0  ;;  %v19868_v26 = vld [vmem:[#allocation58_spill] sm:$0xff] }
 0x3d0   : > { %v8567_v18 = vadd.f32 %v8514_v38, %v19864_v49  ;;  %v19150_v17 = vadd.f32 %v18994_v41, %v8569_v12  ;;  %14826 = vmatmul.mubr.msk.bf16.gmra.mxu1 %vm7530_vm14, %v13650_v39  ;;  %v15102_v41 = vld [vmem:[%s15590_s14 + $0x438] ss:$8 sps:$4 sm:$0xff]   ;;  %v11511_v39 = vld [vmem:[#allocation2 + $0x130] sm:$0xe]  ;;  %v11692_v62 = vsel %vm16996_vm13, %v13631_v61, %v11691_v42  ;;  %v13634_v61 = vrot.slane %v11512_v60, 9 }
 0x3d1   : > { %v14619_v32 = vpop.f32.mrf.mxu1  ;;  %v10136_v25 = vpop.f32.mrf.mxu0  ;;  %14829 = vmatprep.mubr.msk.bf16.mxu1 %vm7530_vm14, %v13651_v1 }
 0x3d2   : > { %v8572_v2 = vadd.f32 %v14619_v32, %v19866_v63  ;;  %v19161_v58 = vadd.f32 %v19008_v13, %v8567_v18  ;;  %v19869_v13 = vld [vmem:[#allocation59_spill] sm:$0xff]  ;;  %v11696_v18 = vsel %vm16996_vm13, %v13632_v35, %v11695_v20  ;;  %v11699_v32 = vrot.slane %v19870_v28, 5 }
 0x3d3   : > { %v8527_v0 = vpop.f32.mrf.mxu1  ;;  %v14703_v14 = vpop.f32.mrf.mxu0 }
 0x3d4   : > { %v8570_v3 = vadd.f32 %v8527_v0, %v19868_v26  ;;  %v19167_v12 = vadd.f32 %v19022_v7, %v8572_v2  ;;  %14860 = vmatmul.mubr.msk.bf16.gmra.mxu0 %vm1629_vm0, %v15101_v40  ;;  %v13633_v7 = vrot.slane %v11511_v39, 9  ;;  %v13653_v2 = vcombine.low %v11692_v62, %v11696_v18  ;;  %v19871_v40 = vld [vmem:[#allocation51_spill] sm:$0xff]  ;;  %v19872_v0 = vld [vmem:[#allocation60_spill] sm:$0xff] }
 0x3d5   : > { %v14620_v38 = vpop.f32.mrf.mxu1  ;;  %v10149_v1 = vpop.f32.mrf.mxu0  ;;  %14863 = vmatprep.mubr.msk.bf16.mxu0 %vm1629_vm0, %v15102_v41  ;;  %v11703_v52 = vrot.slane %v19871_v40, 5  ;;  %v19873_v41 = vcombine.low %v18998_v44, %v19002_v50  ;;  %v15103_v39 = vld [vmem:[%s15590_s14 + $0x448] ss:$8 sps:$4 sm:$0xff]   ;;  %v15104_v62 = vld [vmem:[%s15590_s14 + $0x458] ss:$8 sps:$4 sm:$0xff]  }
 0x3d6   : > { %v8573_v55 = vadd.f32 %v14620_v38, %v19869_v13  ;;  %v19174_v49 = vadd.f32 %v19044_v4, %v8570_v3 }
 0x3d7   : > { %v8530_v42 = vpop.f32.mrf.mxu1  ;;  %v14704_v63 = vpop.f32.mrf.mxu0  ;;  %v11704_v44 = vsel %vm16996_vm13, %v13634_v61, %v11703_v52 }
 0x3d8   : > { %v8571_v26 = vadd.f32 %v8530_v42, %v19872_v0  ;;  %v19183_v4 = vadd.f32 %v19077_v19, %v8573_v55  ;;  %14830 = vmatmul.mubr.msk.bf16.gmra.mxu1 %vm7530_vm14, %v19873_v41  ;;  %v11700_v19 = vsel %vm16996_vm13, %v13633_v7, %v11699_v32 }
 0x3d9   : > { %v14663_v35 = vpop.f32.mrf.mxu1  ;;  %v10152_v20 = vpop.f32.mrf.mxu0  ;;  %14833 = vmatprep.mubr.msk.bf16.mxu1 %vm7530_vm14, %v13653_v2  ;;  %v13654_v7 = vcombine.low %v11700_v19, %v11704_v44  ;;  %v15105_v2 = vld [vmem:[%s15590_s14 + $0x468] ss:$8 sps:$4 sm:$0xff]   ;;  %s15127_s14 = sshll.u32 %s15186_s28, 4  ;;  %s15128_s14 = int_to_ptr.vmem [resolvable:$false] %s15127_s14 }
 0x3da   : > { %v9732_v60 = vadd.f32 %v14663_v35, %v19012_v8  ;;  %v19193_v3 = vadd.f32 %v19109_v16, %v8571_v26  ;;  %s15129_s17 = scalar_lea.vmem %s15128_s14, 4096  ;;  %p15130_p2 = scmp.lt.s32.totalorder %s19578_s29, %s15128_s14 }
 0x3db   : > { %v9603_v38 = vpop.f32.mrf.mxu1  ;;  %v14707_v13 = vpop.f32.mrf.mxu0  ;;  %p15131_p3 = scmp.lt.s32.totalorder %s15129_s17, %s15123_s16 }
 0x3dc   : > { %v9730_v50 = vadd.f32 %v9603_v38, %v19019_v34  ;;  %v19202_v55 = vadd.f32 %v19128_v53, %v9732_v60  ;;  %14864 = vmatmul.mubr.msk.bf16.gmra.mxu0 %vm1629_vm0, %v15103_v39 }
 0x3dd   : > { %v14664_v18 = vpop.f32.mrf.mxu1  ;;  %v10165_v8 = vpop.f32.mrf.mxu0  ;;  %14867 = vmatprep.mubr.msk.bf16.mxu0 %vm1629_vm0, %v15104_v62  ;;  %p15132_p4 = por %p15131_p3, %p15130_p2 }
 0x3de   : > { %v9733_v16 = vadd.f32 %v14664_v18, %v19026_v11  ;;  %v19207_v28 = vadd.f32 %v19136_v43, %v9730_v50 }
 0x3df   : > { %v9606_v23 = vpop.f32.mrf.mxu1  ;;  %v14708_v32 = vpop.f32.mrf.mxu0  ;;  %p15133_p5 = pnand %p15132_p4, %p15126_p1 }
 0x3e0   : > { %v9731_v34 = vadd.f32 %v9606_v23, %v19029_v45  ;;  %v19212_v61 = vadd.f32 %v19146_v6, %v9733_v16  ;;  %14834 = vmatmul.mubr.msk.bf16.gmra.mxu1 %vm7530_vm14, %v13654_v7 }
 0x3e1   : > { %v14667_v53 = vpop.f32.mrf.mxu1  ;;  %v10168_v42 = vpop.f32.mrf.mxu0 }
 0x3e2   : > { %v9736_v11 = vadd.f32 %v14667_v53, %v19033_v54  ;;  %v19217_v40 = vadd.f32 %v10136_v25, %v9731_v34 }
 0x3e3   : > { %v9619_v43 = vpop.f32.mrf.mxu1  ;;  %v14711_v52 = vpop.f32.mrf.mxu0 }
 0x3e4   : > { %v9734_v0 = vadd.f32 %v9619_v43, %v19038_v33  ;;  %v19220_v26 = vadd.f32 %v14703_v14, %v9736_v11  ;;  %14868 = vmatmul.mubr.msk.bf16.gmra.mxu0 %vm1629_vm0, %v15105_v2 }
 0x3e5   : > { %v14668_v41 = vpop.f32.mrf.mxu1  ;;  %v10181_v45 = vpop.f32.mrf.mxu0 }
 0x3e6   : > { %v9737_v6 = vadd.f32 %v14668_v41, %v19042_v46  ;;  %v19224_v35 = vadd.f32 %v10149_v1, %v9734_v0 }
 0x3e7   : > { %v9622_v39 = vpop.f32.mrf.mxu1  ;;  %v14712_v60 = vpop.f32.mrf.mxu0 }
 0x3e8   : > { %v9735_v54 = vadd.f32 %v9622_v39, %v19048_v9  ;;  %v19227_v25 = vadd.f32 %v14704_v63, %v9737_v6 }
 0x3e9   : > { %v14671_v62 = vpop.f32.mrf.mxu1  ;;  %v10184_v38 = vpop.f32.mrf.mxu0 }
 0x3ea   : > { %v9740_v33 = vadd.f32 %v14671_v62, %v19052_v57  ;;  %v19230_v14 = vadd.f32 %v10152_v20, %v9735_v54 }
 0x3eb   : > { %v9635_v19 = vpop.f32.mrf.mxu1  ;;  %v14715_v44 = vpop.f32.mrf.mxu0 }
 0x3ec   : > { %v9738_v50 = vadd.f32 %v9635_v19, %v19056_v36  ;;  %v19233_v18 = vadd.f32 %v14707_v13, %v9740_v33 }
 0x3ed   : > { %v14672_v46 = vpop.f32.mrf.mxu1  ;;  %v10197_v1 = vpop.f32.mrf.mxu0 }
 0x3ee   : > { %v9741_v16 = vadd.f32 %v14672_v46, %v19060_v15  ;;  %v19236_v7 = vadd.f32 %v10165_v8, %v9738_v50 }
 0x3ef   : > { %v9638_v9 = vpop.f32.mrf.mxu1  ;;  %v14716_v63 = vpop.f32.mrf.mxu0 }
 0x3f0   : > { %v9739_v23 = vadd.f32 %v9638_v9, %v19066_v47  ;;  %v19239_v34 = vadd.f32 %v14708_v32, %v9741_v16 }
 0x3f1   : > { %v14675_v57 = vpop.f32.mrf.mxu1  ;;  %v10200_v20 = vpop.f32.mrf.mxu0 }
 0x3f2   : > { %v9744_v53 = vadd.f32 %v14675_v57, %v19070_v51  ;;  %v19242_v2 = vadd.f32 %v10168_v42, %v9739_v23 }
 0x3f3   : > { %v9651_v36 = vpop.f32.mrf.mxu1  ;;  %v14719_v13 = vpop.f32.mrf.mxu0 }
 0x3f4   : > { %v9742_v11 = vadd.f32 %v9651_v36, %v19074_v37  ;;  %v19245_v43 = vadd.f32 %v14711_v52, %v9744_v53 }
 0x3f5   : > { %v14676_v15 = vpop.f32.mrf.mxu1  ;;  %v10213_v8 = vpop.f32.mrf.mxu0 }
 0x3f6   : > { %v9745_v0 = vadd.f32 %v14676_v15, %v19081_v5  ;;  %v19248_v41 = vadd.f32 %v10181_v45, %v9742_v11 }
 0x3f7   : > { %v9654_v47 = vpop.f32.mrf.mxu1  ;;  %v14720_v32 = vpop.f32.mrf.mxu0 }
 0x3f8   : > { %v9743_v6 = vadd.f32 %v9654_v47, %v19085_v21  ;;  %v19251_v39 = vadd.f32 %v14712_v60, %v9745_v0 }
 0x3f9   : > { %v14679_v51 = vpop.f32.mrf.mxu1  ;;  %v10216_v42 = vpop.f32.mrf.mxu0 }
 0x3fa   : > { %v9748_v54 = vadd.f32 %v14679_v51, %v19089_v24  ;;  %v19254_v62 = vadd.f32 %v10184_v38, %v9743_v6 }
 0x3fb   : > { %v9667_v37 = vpop.f32.mrf.mxu1  ;;  %v14723_v52 = vpop.f32.mrf.mxu0 }
 0x3fc   : > { %v9746_v33 = vadd.f32 %v9667_v37, %v19092_v29  ;;  %v19257_v19 = vadd.f32 %v14715_v44, %v9748_v54 }
 0x3fd   : > { %v14680_v5 = vpop.f32.mrf.mxu1  ;;  %v10229_v50 = vpop.f32.mrf.mxu0 }
 0x3fe   : > { %v9749_v45 = vadd.f32 %v14680_v5, %v19096_v30  ;;  %v19260_v46 = vadd.f32 %v10197_v1, %v9746_v33 }
 0x3ff   : > { %v9670_v21 = vpop.f32.mrf.mxu1  ;;  %v14724_v9 = vpop.f32.mrf.mxu0 }
 0x400   : > { %v9747_v60 = vadd.f32 %v9670_v21, %v19099_v56  ;;  %v19263_v16 = vadd.f32 %v14716_v63, %v9749_v45 }
 0x401   : > { %v14683_v24 = vpop.f32.mrf.mxu1  ;;  %v10232_v53 = vpop.f32.mrf.mxu0 }
 0x402   : > { %v9752_v38 = vadd.f32 %v14683_v24, %v19102_v22  ;;  %v19266_v23 = vadd.f32 %v10200_v20, %v9747_v60 }
 0x403   : > { %v9683_v29 = vpop.f32.mrf.mxu1  ;;  %v14727_v22 = vpop.f32.mrf.mxu0 }
 0x404   : > { %v9750_v44 = vadd.f32 %v9683_v29, %v19112_v48  ;;  %v19269_v57 = vadd.f32 %v14719_v13, %v9752_v38 }
 0x405   : > { %v14684_v30 = vpop.f32.mrf.mxu1  ;;  %v10245_v13 = vpop.f32.mrf.mxu0 }
 0x406   : > { %v9753_v1 = vadd.f32 %v14684_v30, %v19115_v10  ;;  %v19272_v36 = vadd.f32 %v10213_v8, %v9750_v44 }
 0x407   : > { %v9686_v56 = vpop.f32.mrf.mxu1 }
 0x408   : > { %v9751_v63 = vadd.f32 %v9686_v56, %v19124_v27  ;;  %v19275_v11 = vadd.f32 %v14720_v32, %v9753_v1  ;;  %v14728_v32 = vpop.f32.mrf.mxu0 }
 0x40a   : > { %v19277_v15 = vadd.f32 %v10216_v42, %v9751_v63  ;;  %v14687_v20 = vpop.f32.mrf.mxu1 }
 0x40b   : > { %v9756_v0 = vadd.f32 %v14687_v20, %v19132_v31  ;;  %v10248_v31 = vpop.f32.mrf.mxu0 }
 0x40c   : > { %v9699_v48 = vpop.f32.mrf.mxu1 }
 0x40d   : > { %v9754_v47 = vadd.f32 %v9699_v48, %v19141_v59  ;;  %v19281_v6 = vadd.f32 %v14723_v52, %v9756_v0 }
 0x40e   : > { %v14688_v10 = vpop.f32.mrf.mxu1 }
 0x40f   : > { %v9757_v8 = vadd.f32 %v14688_v10, %v19150_v17  ;;  %v19284_v51 = vadd.f32 %v10229_v50, %v9754_v47 }
 0x410   : > { %v9702_v27 = vpop.f32.mrf.mxu1 }
 0x411   : > { %v9755_v54 = vadd.f32 %v9702_v27, %v19161_v58  ;;  %v19287_v42 = vadd.f32 %v14724_v9, %v9757_v8 }
 0x413   : > { %19874 = vst [vmem:[#allocation12_spill] sm:$0xff] %v19287_v42  ;;  %v19289_v37 = vadd.f32 %v10232_v53, %v9755_v54 }
 0x415   : > { %19875 = vst [vmem:[#allocation14_spill] sm:$0xff] %v19289_v37 }
 0x419   : > { %v14771_v33 = vpop.f32.mrf.mxu0 }
 0x41b   : > { %v11322_v5 = vpop.f32.mrf.mxu0 }
 0x41d   : > { %v14691_v45 = vpop.f32.mrf.mxu1  ;;  %v19292_v21 = vpop.f32.mrf.mxu0 }
 0x41e   : > { %v9760_v59 = vadd.f32 %v14691_v45, %v19167_v12 }
 0x41f   : > { %v9715_v52 = vpop.f32.mrf.mxu1  ;;  %v19300_v38 = vpop.f32.mrf.mxu0 }
 0x420   : > { %v9758_v17 = vadd.f32 %v9715_v52, %v19174_v49  ;;  %v19295_v50 = vadd.f32 %v14727_v22, %v9760_v59 }
 0x421   : > { %v14692_v60 = vpop.f32.mrf.mxu1 }
 0x422   : > { %v9761_v58 = vadd.f32 %v14692_v60, %v19183_v4  ;;  %v19298_v24 = vadd.f32 %v10245_v13, %v9758_v17 }
 0x423   : > { %v9718_v9 = vpop.f32.mrf.mxu1 }
 0x424   : > { %v9759_v29 = vadd.f32 %v9718_v9, %v19193_v3  ;;  %v19303_v44 = vadd.f32 %v14728_v32, %v9761_v58 }
 0x425   : > { %v14735_v12 = vpop.f32.mrf.mxu1 }
 0x426   : > { %19876 = vst [vmem:[#allocation13_spill] sm:$0xff] %v19303_v44  ;;  %v10633_v30 = vadd.f32 %v14735_v12, %v19202_v55  ;;  %v19306_v1 = vadd.f32 %v10248_v31, %v9759_v29 }
 0x427   : > { %v14775_v49 = vpop.f32.mrf.mxu0  ;;  %v10504_v53 = vpop.f32.mrf.mxu1 }
 0x428   : > { %19877 = vst [vmem:[#allocation18_spill] sm:$0xff] %v19306_v1  ;;  %v10631_v56 = vadd.f32 %v10504_v53, %v19207_v28  ;;  %v19309_v63 = vadd.f32 %v14771_v33, %v10633_v30 }
 0x429   : > { %v11338_v4 = vpop.f32.mrf.mxu0  ;;  %v19311_v22 = vpop.f32.mrf.mxu1 }
 0x42a   : > { %v19313_v20 = vadd.f32 %v11322_v5, %v10631_v56 }
 0x42b   : > { %v19315_v0 = vpop.f32.mrf.mxu0  ;;  %v19317_v3 = vpop.f32.mrf.mxu1 }
 0x42d   : > { %v19319_v48 = vpop.f32.mrf.mxu0  ;;  %v14739_v55 = vpop.f32.mrf.mxu1 }
 0x42e   : > { %v10637_v13 = vadd.f32 %v14739_v55, %v19220_v26 }
 0x42f   : > { %v10520_v47 = vpop.f32.mrf.mxu1 }
 0x430   : > { %v10635_v10 = vadd.f32 %v10520_v47, %v19224_v35  ;;  %v19323_v28 = vadd.f32 %v14775_v49, %v10637_v13 }
 0x431   : > { %v14779_v8 = vpop.f32.mrf.mxu0  ;;  %v19325_v27 = vpop.f32.mrf.mxu1 }
 0x432   : > { %v19327_v32 = vadd.f32 %v11338_v4, %v10635_v10 }
 0x433   : > { %v11354_v54 = vpop.f32.mrf.mxu0  ;;  %v19329_v31 = vpop.f32.mrf.mxu1 }
 0x435   : > { %v19331_v33 = vpop.f32.mrf.mxu0  ;;  %v14743_v5 = vpop.f32.mrf.mxu1 }
 0x436   : > { %v10641_v45 = vadd.f32 %v14743_v5, %v19233_v18 }
 0x437   : > { %v19334_v59 = vpop.f32.mrf.mxu0  ;;  %v10536_v26 = vpop.f32.mrf.mxu1 }
 0x438   : > { %v10639_v35 = vadd.f32 %v10536_v26, %v19236_v7  ;;  %v19337_v52 = vadd.f32 %v14779_v8, %v10641_v45 }
 0x439   : > { %v19339_v17 = vpop.f32.mrf.mxu1 }
 0x43a   : > { %v19341_v60 = vadd.f32 %v11354_v54, %v10639_v35 }
 0x43b   : > { %v14783_v58 = vpop.f32.mrf.mxu0  ;;  %v19343_v9 = vpop.f32.mrf.mxu1 }
 0x43d   : > { %v11370_v29 = vpop.f32.mrf.mxu0  ;;  %v14747_v12 = vpop.f32.mrf.mxu1 }
 0x43e   : > { %v10645_v30 = vadd.f32 %v14747_v12, %v19245_v43 }
 0x43f   : > { %v19346_v49 = vpop.f32.mrf.mxu0  ;;  %v10552_v18 = vpop.f32.mrf.mxu1 }
 0x440   : > { %v10643_v53 = vadd.f32 %v10552_v18, %v19248_v41  ;;  %v19349_v56 = vadd.f32 %v14783_v58, %v10645_v30 }
 0x441   : > { %v19351_v7 = vpop.f32.mrf.mxu0  ;;  %v19353_v4 = vpop.f32.mrf.mxu1 }
 0x442   : > { %v19355_v55 = vadd.f32 %v11370_v29, %v10643_v53 }
 0x443   : > { %v19357_v13 = vpop.f32.mrf.mxu1 }
 0x445   : > { %v14787_v47 = vpop.f32.mrf.mxu0  ;;  %v14751_v10 = vpop.f32.mrf.mxu1 }
 0x446   : > { %v10649_v8 = vadd.f32 %v14751_v10, %v19257_v19 }
 0x447   : > { %v11386_v43 = vpop.f32.mrf.mxu0  ;;  %v10568_v54 = vpop.f32.mrf.mxu1 }
 0x448   : > { %v10647_v5 = vadd.f32 %v10568_v54, %v19260_v46  ;;  %v19361_v45 = vadd.f32 %v14787_v47, %v10649_v8 }
 0x449   : > { %v19363_v41 = vpop.f32.mrf.mxu0  ;;  %v19365_v26 = vpop.f32.mrf.mxu1 }
 0x44a   : > { %v19367_v35 = vadd.f32 %v11386_v43, %v10647_v5 }
 0x44b   : > { %v19369_v58 = vpop.f32.mrf.mxu1  ;;  %v19371_v29 = vpop.f32.mrf.mxu0 }
 0x44d   : > { %v14755_v12 = vpop.f32.mrf.mxu1 }
 0x44e   : > { %v10653_v30 = vadd.f32 %v14755_v12, %v19269_v57 }
 0x44f   : > { %v10584_v19 = vpop.f32.mrf.mxu1  ;;  %v14791_v18 = vpop.f32.mrf.mxu0 }
 0x450   : > { %v10651_v53 = vadd.f32 %v10584_v19, %v19272_v36  ;;  %v19377_v47 = vadd.f32 %v14791_v18, %v10653_v30 }
 0x451   : > { %v19375_v46 = vpop.f32.mrf.mxu1  ;;  %v11402_v10 = vpop.f32.mrf.mxu0 }
 0x452   : > { %v19381_v43 = vadd.f32 %v11402_v10, %v10651_v53 }
 0x453   : > { %v19379_v8 = vpop.f32.mrf.mxu1  ;;  %v19383_v54 = vpop.f32.mrf.mxu0 }
 0x454   : > { %19878 = vst [vmem:[#allocation7_spill] sm:$0xff] %v19381_v43 }
 0x455   : > { %v14759_v5 = vpop.f32.mrf.mxu1  ;;  %v19385_v1 = vpop.f32.mrf.mxu0 }
 0x456   : > { %19879 = vst [vmem:[#allocation26_spill] sm:$0xff] %v19385_v1  ;;  %v10657_v57 = vadd.f32 %v14759_v5, %v19281_v6 }
 0x457   : > { %v10600_v12 = vpop.f32.mrf.mxu1 }
 0x458   : > { %v10655_v44 = vadd.f32 %v10600_v12, %v19284_v51 }
 0x459   : > { %v19389_v36 = vpop.f32.mrf.mxu1 }
 0x45a   : > { %v14795_v19 = vpop.f32.mrf.mxu0 }
 0x45b   : > { %v19391_v30 = vpop.f32.mrf.mxu1  ;;  %v19393_v18 = vadd.f32 %v14795_v19, %v10657_v57 }
 0x45c   : > { %19880 = vst [vmem:[#allocation23_spill] sm:$0xff] %v19391_v30  ;;  %v11418_v37 = vpop.f32.mrf.mxu0 }
 0x45d   : > { %v14763_v53 = vpop.f32.mrf.mxu1  ;;  %v19395_v10 = vadd.f32 %v11418_v37, %v10655_v44  ;;  %v10634_v37 = vadd.f32 %v19311_v22, %v19212_v61  ;;  %v19428_v61 = vld [vmem:[%s19629_s6] ss:$0 sm:$0xff] }
 0x45e   : > { %v19397_v42 = vpop.f32.mrf.mxu0  ;;  %v10661_v1 = vadd.f32 %v14763_v53, %v19295_v50  ;;  %v10632_v50 = vadd.f32 %v19317_v3, %v19217_v40  ;;  %v19421_v53 = vld [vmem:[%s19627_s4] ss:$0 sm:$0xff] }
 0x45f   : > { %19881 = vst [vmem:[#allocation11_spill] sm:$0xff] %v19397_v42  ;;  %v10616_v43 = vpop.f32.mrf.mxu1  ;;  %v11452_v40 = vadd.f32 %v19292_v21, %v10634_v37 }
 0x460   : > { %v10659_v6 = vadd.f32 %v10616_v43, %v19298_v24  ;;  %v19401_v5 = vpop.f32.mrf.mxu0 }
 0x461   : > { %v19403_v51 = vpop.f32.mrf.mxu1 }
 0x463   : > { %v19405_v12 = vpop.f32.mrf.mxu1 }
 0x464   : > { %19882 = vst [vmem:[#allocation15_spill] sm:$0xff] %v19405_v12  ;;  %v14799_v30 = vpop.f32.mrf.mxu0 }
 0x465   : > { %v19407_v57 = vadd.f32 %v14799_v30, %v10661_v1 }
 0x466   : > { %v11434_v44 = vpop.f32.mrf.mxu0 }
 0x467   : > { %19883 = vst [vmem:[#allocation22_spill] sm:$0xff] %v19407_v57  ;;  %v19411_v42 = vadd.f32 %v11434_v44, %v10659_v6 }
 0x468   : > { %v14807_v19 = vpop.f32.mrf.mxu1  ;;  %v19415_v24 = vpop.f32.mrf.mxu0 }
 0x469   : > { %19884 = vst [vmem:[#allocation19_spill] sm:$0xff] %v19411_v42  ;;  %19885 = vst [vmem:[#allocation24_spill] sm:$0xff] %v19415_v24  ;;  %v11981_v43 = vadd.f32 %v14807_v19, %v19309_v63  ;;  %v11450_v19 = vadd.f32 %v19300_v38, %v10632_v50 }
 0x46a   : > { %v11852_v1 = vpop.f32.mrf.mxu1  ;;  %v19423_v30 = vpop.f32.mrf.mxu0 }
 0x46b   : > { %19886 = vst [vmem:[#allocation21_spill] sm:$0xff] %v19423_v30  ;;  %v11979_v22 = vadd.f32 %v11852_v1, %v19313_v20  ;;  %v12020_v63 = vadd.f32 %v19421_v53, %v11981_v43  ;;  %v10638_v30 = vadd.f32 %v19325_v27, %v19227_v25  ;;  %v10636_v43 = vadd.f32 %v19329_v31, %v19230_v14 }
 0x46c   : > { %v14808_v3 = vpop.f32.mrf.mxu1  ;;  %v14841_v6 = vpop.f32.mrf.mxu0 }
 0x46d   : > { %v11982_v44 = vadd.f32 %v14808_v3, %v11452_v40  ;;  %v12268_v42 = vadd.f32 %v14841_v6, %v19428_v61  ;;  %v12018_v12 = vadd.f32 %v19421_v53, %v11979_v22 }
 0x46e   : > { %v11855_v24 = vpop.f32.mrf.mxu1  ;;  %v12259_v57 = vpop.f32.mrf.mxu0 }
 0x46f   : > { %v11980_v20 = vadd.f32 %v11855_v24, %v11450_v19  ;;  %v12021_v21 = vadd.f32 %v19421_v53, %v11982_v44  ;;  %v12260_v1 = vadd.f32 %v19428_v61, %v12259_v57  ;;  %v12388_v38 = vadd.f32 %v12268_v42, %v12020_v63 }
 0x470   : > { %v14811_v37 = vpop.f32.mrf.mxu1  ;;  %v14842_v50 = vpop.f32.mrf.mxu0  ;;  %v11456_v24 = vadd.f32 %v19315_v0, %v10638_v30  ;;  %v10642_v0 = vadd.f32 %v19339_v17, %v19239_v34 }
 0x471   : > { %v12271_v40 = vadd.f32 %v14842_v50, %v19428_v61  ;;  %v12019_v3 = vadd.f32 %v19421_v53, %v11980_v20  ;;  %v11985_v25 = vadd.f32 %v14811_v37, %v19323_v28  ;;  %v12386_v22 = vadd.f32 %v12260_v1, %v12018_v12 }
 0x472   : > { %v11868_v27 = vpop.f32.mrf.mxu1  ;;  %v12262_v6 = vpop.f32.mrf.mxu0  ;;  %v12420_v42 = vmax.f32 %v12388_v38, 0.0  ;;  %v11454_v50 = vadd.f32 %v19319_v48, %v10636_v43  ;;  %v10640_v43 = vadd.f32 %v19343_v9, %v19242_v2  ;;  %v11460_v9 = vadd.f32 %v19331_v33, %v10642_v0 }
 0x473   : > { %v12263_v44 = vadd.f32 %v19428_v61, %v12262_v6  ;;  %v12389_v19 = vadd.f32 %v12271_v40, %v12021_v21  ;;  %v11983_v14 = vadd.f32 %v11868_v27, %v19327_v32  ;;  %v12024_v12 = vadd.f32 %v19421_v53, %v11985_v25 }
 0x474   : > { %v14812_v31 = vpop.f32.mrf.mxu1  ;;  %v14845_v57 = vpop.f32.mrf.mxu0  ;;  %v12418_v30 = vmax.f32 %v12386_v22, 0.0  ;;  %v10646_v33 = vadd.f32 %v19353_v4, %v19251_v39 }
 0x475   : > { %v11986_v63 = vadd.f32 %v14812_v31, %v11456_v24  ;;  %v12421_v20 = vmax.f32 %v12389_v19, 0.0  ;;  %v12284_v28 = vadd.f32 %v14845_v57, %v19428_v61  ;;  %v12387_v37 = vadd.f32 %v12263_v44, %v12019_v3 }
 0x476   : > { %v11871_v1 = vpop.f32.mrf.mxu1  ;;  %v12275_v21 = vpop.f32.mrf.mxu0  ;;  %v12022_v38 = vadd.f32 %v19421_v53, %v11983_v14 }
 0x477   : > { %v11984_v40 = vadd.f32 %v11871_v1, %v11454_v50  ;;  %v13788_v32 = vpack.c.bf16 %v12421_v20, %v12420_v42  ;;  %v12419_v27 = vmax.f32 %v12387_v37, 0.0  ;;  %v12025_v6 = vadd.f32 %v19421_v53, %v11986_v63 }
 0x478   : > { %v14815_v48 = vpop.f32.mrf.mxu1  ;;  %v12276_v3 = vadd.f32 %v19428_v61, %v12275_v21  ;;  %v14846_v25 = vpop.f32.mrf.mxu0  ;;  %v12392_v17 = vadd.f32 %v12284_v28, %v12024_v12  ;;  %v11458_v28 = vadd.f32 %v19334_v59, %v10640_v43 }
 0x479   : > { %v11989_v24 = vadd.f32 %v14815_v48, %v19337_v52  ;;  %13860 = vst [vmem:[%s19460_s21 + $0x8] sm:$0xff] %v13788_v32   ;;  %v13783_v34 = vpack.c.bf16 %v12419_v27, %v12418_v30  ;;  %v12287_v22 = vadd.f32 %v14846_v25, %v19428_v61  ;;  %v12023_v44 = vadd.f32 %v19421_v53, %v11984_v40 }
 0x47a   : > { %v11884_v19 = vpop.f32.mrf.mxu1  ;;  %v12278_v14 = vpop.f32.mrf.mxu0  ;;  %v12390_v31 = vadd.f32 %v12276_v3, %v12022_v38  ;;  %v12424_v37 = vmax.f32 %v12392_v17, 0.0  ;;  %v10644_v48 = vadd.f32 %v19357_v13, %v19254_v62 }
 0x47b   : > { %v11987_v2 = vadd.f32 %v11884_v19, %v19341_v60  ;;  %13784 = vst [vmem:[%s19460_s21] sm:$0xff] %v13783_v34   ;;  %v12279_v52 = vadd.f32 %v19428_v61, %v12278_v14  ;;  %v12393_v42 = vadd.f32 %v12287_v22, %v12025_v6  ;;  %v12028_v50 = vadd.f32 %v19421_v53, %v11989_v24 }
 0x47c   : > { %v14816_v57 = vpop.f32.mrf.mxu1  ;;  %v14849_v63 = vpop.f32.mrf.mxu0  ;;  %v12422_v32 = vmax.f32 %v12390_v31, 0.0  ;;  %v11464_v19 = vadd.f32 %v19346_v49, %v10646_v33  ;;  %v10648_v33 = vadd.f32 %v19369_v58, %v19266_v23 }
 0x47d   : > { %v11990_v20 = vadd.f32 %v14816_v57, %v11460_v9  ;;  %v12425_v12 = vmax.f32 %v12393_v42, 0.0  ;;  %v12300_v1 = vadd.f32 %v14849_v63, %v19428_v61  ;;  %v12391_v60 = vadd.f32 %v12279_v52, %v12023_v44 }
 0x47e   : > { %v11887_v30 = vpop.f32.mrf.mxu1  ;;  %v12291_v0 = vpop.f32.mrf.mxu0  ;;  %v12026_v21 = vadd.f32 %v19421_v53, %v11987_v2  ;;  %v11462_v42 = vadd.f32 %v19351_v7, %v10644_v48 }
 0x47f   : > { %v11988_v40 = vadd.f32 %v11887_v30, %v11458_v28  ;;  %v13798_v27 = vpack.c.bf16 %v12425_v12, %v12424_v37  ;;  %v12423_v38 = vmax.f32 %v12391_v60, 0.0  ;;  %v12029_v59 = vadd.f32 %v19421_v53, %v11990_v20 }
 0x480   : > { %v14819_v6 = vpop.f32.mrf.mxu1  ;;  %v12292_v43 = vadd.f32 %v19428_v61, %v12291_v0  ;;  %v12396_v3 = vadd.f32 %v12300_v1, %v12028_v50  ;;  %v14850_v25 = vpop.f32.mrf.mxu0  ;;  %v10650_v20 = vadd.f32 %v19365_v26, %v19263_v16 }
 0x481   : > { %13862 = vst [vmem:[%s19460_s21 + $0x18] sm:$0xff] %v13798_v27   ;;  %v13793_v39 = vpack.c.bf16 %v12423_v38, %v12422_v32  ;;  %v12303_v4 = vadd.f32 %v14850_v25, %v19428_v61  ;;  %v12027_v24 = vadd.f32 %v19421_v53, %v11988_v40  ;;  %v11993_v34 = vadd.f32 %v14819_v6, %v19349_v56 }
 0x482   : > { %v11900_v17 = vpop.f32.mrf.mxu1  ;;  %v12394_v22 = vadd.f32 %v12292_v43, %v12026_v21  ;;  %v12294_v44 = vpop.f32.mrf.mxu0  ;;  %v12428_v9 = vmax.f32 %v12396_v3, 0.0  ;;  %v11468_v48 = vadd.f32 %v19363_v41, %v10650_v20  ;;  %v10654_v41 = vadd.f32 %v19375_v46, %v19275_v11 }
 0x483   : > { %13861 = vst [vmem:[%s19460_s21 + $0x10] sm:$0xff] %v13793_v39   ;;  %v12295_v62 = vadd.f32 %v19428_v61, %v12294_v44  ;;  %v12397_v13 = vadd.f32 %v12303_v4, %v12029_v59  ;;  %v11991_v14 = vadd.f32 %v11900_v17, %v19355_v55  ;;  %v12032_v50 = vadd.f32 %v19421_v53, %v11993_v34 }
 0x484   : > { %v14820_v2 = vpop.f32.mrf.mxu1  ;;  %v14853_v31 = vpop.f32.mrf.mxu0  ;;  %v12426_v28 = vmax.f32 %v12394_v22, 0.0  ;;  %v11466_v4 = vadd.f32 %v19371_v29, %v10648_v33 }
 0x485   : > { %v11994_v52 = vadd.f32 %v14820_v2, %v11464_v19  ;;  %v12429_v57 = vmax.f32 %v12397_v13, 0.0  ;;  %v12316_v56 = vadd.f32 %v14853_v31, %v19428_v61  ;;  %v12395_v63 = vadd.f32 %v12295_v62, %v12027_v24 }
 0x486   : > { %v11903_v49 = vpop.f32.mrf.mxu1  ;;  %v12307_v37 = vpop.f32.mrf.mxu0  ;;  %v12030_v60 = vadd.f32 %v19421_v53, %v11991_v14  ;;  %v10652_v31 = vadd.f32 %v19379_v8, %v19277_v15 }
 0x487   : > { %v11992_v55 = vadd.f32 %v11903_v49, %v11462_v42  ;;  %v13808_v12 = vpack.c.bf16 %v12429_v57, %v12428_v9  ;;  %v12427_v1 = vmax.f32 %v12395_v63, 0.0  ;;  %v12033_v7 = vadd.f32 %v19421_v53, %v11994_v52 }
 0x488   : > { %v14823_v30 = vpop.f32.mrf.mxu1  ;;  %v12308_v0 = vadd.f32 %v19428_v61, %v12307_v37  ;;  %v14854_v21 = vpop.f32.mrf.mxu0  ;;  %v12400_v26 = vadd.f32 %v12316_v56, %v12032_v50  ;;  %v19887_v37 = vld [vmem:[#allocation7_spill] sm:$0xff] }
 0x489   : > { %v11997_v40 = vadd.f32 %v14823_v30, %v19361_v45  ;;  %13864 = vst [vmem:[%s19460_s21 + $0x28] sm:$0xff] %v13808_v12   ;;  %v13803_v16 = vpack.c.bf16 %v12427_v1, %v12426_v28  ;;  %v12319_v32 = vadd.f32 %v14854_v21, %v19428_v61  ;;  %v12031_v27 = vadd.f32 %v19421_v53, %v11992_v55  ;;  %v19888_v30 = vld [vmem:[#allocation26_spill] sm:$0xff] }
 0x48a   : > { %v11916_v38 = vpop.f32.mrf.mxu1  ;;  %v12310_v59 = vpop.f32.mrf.mxu0  ;;  %v12398_v23 = vadd.f32 %v12308_v0, %v12030_v60  ;;  %v12432_v24 = vmax.f32 %v12400_v26, 0.0  ;;  %v11472_v28 = vadd.f32 %v19383_v54, %v10654_v41  ;;  %v11470_v33 = vadd.f32 %v19888_v30, %v10652_v31 }
 0x48b   : > { %v11995_v6 = vadd.f32 %v11916_v38, %v19367_v35  ;;  %13863 = vst [vmem:[%s19460_s21 + $0x20] sm:$0xff] %v13803_v16   ;;  %v12311_v58 = vadd.f32 %v19428_v61, %v12310_v59  ;;  %v12401_v43 = vadd.f32 %v12319_v32, %v12033_v7  ;;  %v12036_v25 = vadd.f32 %v19421_v53, %v11997_v40  ;;  %v19889_v16 = vld [vmem:[#allocation12_spill] sm:$0xff] }
 0x48c   : > { %v14824_v3 = vpop.f32.mrf.mxu1  ;;  %v14857_v45 = vpop.f32.mrf.mxu0  ;;  %v12430_v13 = vmax.f32 %v12398_v23, 0.0  ;;  %v10658_v26 = vadd.f32 %v19389_v36, %v19889_v16  ;;  %v19897_v16 = vld [vmem:[#allocation24_spill] sm:$0xff] }
 0x48d   : > { %v11998_v39 = vadd.f32 %v14824_v3, %v11468_v48  ;;  %v12433_v34 = vmax.f32 %v12401_v43, 0.0  ;;  %v12332_v17 = vadd.f32 %v14857_v45, %v19428_v61  ;;  %v12399_v35 = vadd.f32 %v12311_v58, %v12031_v27  ;;  %v19890_v43 = vld [vmem:[#allocation14_spill] sm:$0xff]  ;;  %v19891_v3 = vld [vmem:[#allocation23_spill] sm:$0xff] }
 0x48e   : > { %v11919_v22 = vpop.f32.mrf.mxu1  ;;  %v12323_v44 = vpop.f32.mrf.mxu0  ;;  %v12034_v19 = vadd.f32 %v19421_v53, %v11995_v6  ;;  %v10656_v45 = vadd.f32 %v19891_v3, %v19890_v43  ;;  %v19899_v43 = vld [vmem:[#allocation21_spill] sm:$0xff] }
 0x48f   : > { %v11996_v62 = vadd.f32 %v11919_v22, %v11466_v4  ;;  %v13818_v14 = vpack.c.bf16 %v12433_v34, %v12432_v24  ;;  %v12431_v2 = vmax.f32 %v12399_v35, 0.0  ;;  %v12037_v29 = vadd.f32 %v19421_v53, %v11998_v39 }
 0x490   : > { %v14827_v9 = vpop.f32.mrf.mxu1  ;;  %v12324_v52 = vadd.f32 %v19428_v61, %v12323_v44  ;;  %v12404_v42 = vadd.f32 %v12332_v17, %v12036_v25  ;;  %v14858_v57 = vpop.f32.mrf.mxu0  ;;  %v19892_v44 = vld [vmem:[#allocation11_spill] sm:$0xff]  ;;  %v11474_v31 = vadd.f32 %v19401_v5, %v10656_v45 }
 0x491   : > { %13866 = vst [vmem:[%s19460_s21 + $0x38] sm:$0xff] %v13818_v14   ;;  %v13813_v11 = vpack.c.bf16 %v12431_v2, %v12430_v13  ;;  %v12335_v46 = vadd.f32 %v14858_v57, %v19428_v61  ;;  %v12035_v56 = vadd.f32 %v19421_v53, %v11996_v62  ;;  %v12001_v63 = vadd.f32 %v14827_v9, %v19377_v47 }
 0x492   : > { %v11932_v50 = vpop.f32.mrf.mxu1  ;;  %v12402_v49 = vadd.f32 %v12324_v52, %v12034_v19  ;;  %v12326_v20 = vpop.f32.mrf.mxu0  ;;  %v12436_v1 = vmax.f32 %v12404_v42, 0.0  ;;  %v11476_v19 = vadd.f32 %v19892_v44, %v10658_v26 }
 0x493   : > { %13865 = vst [vmem:[%s19460_s21 + $0x30] sm:$0xff] %v13813_v11   ;;  %v12327_v15 = vadd.f32 %v19428_v61, %v12326_v20  ;;  %v12405_v8 = vadd.f32 %v12335_v46, %v12037_v29  ;;  %v11999_v55 = vadd.f32 %v11932_v50, %v19887_v37  ;;  %v12040_v40 = vadd.f32 %v19421_v53, %v12001_v63  ;;  %v19893_v46 = vld [vmem:[#allocation13_spill] sm:$0xff]  ;;  %v19894_v37 = vld [vmem:[#allocation18_spill] sm:$0xff] }
 0x494   : > { %v14828_v12 = vpop.f32.mrf.mxu1  ;;  %v14861_v60 = vpop.f32.mrf.mxu0  ;;  %v12434_v32 = vmax.f32 %v12402_v49, 0.0 }
 0x495   : > { %v12002_v7 = vadd.f32 %v14828_v12, %v11472_v28  ;;  %v12437_v0 = vmax.f32 %v12405_v8, 0.0  ;;  %v12348_v47 = vadd.f32 %v14861_v60, %v19428_v61  ;;  %v12403_v21 = vadd.f32 %v12327_v15, %v12035_v56 }
 0x496   : > { %v11935_v54 = vpop.f32.mrf.mxu1  ;;  %v12339_v27 = vpop.f32.mrf.mxu0  ;;  %v12038_v48 = vadd.f32 %v19421_v53, %v11999_v55  ;;  %v10662_v56 = vadd.f32 %v19403_v51, %v19893_v46  ;;  %v19895_v55 = vld [vmem:[#allocation15_spill] sm:$0xff] }
 0x497   : > { %v12000_v38 = vadd.f32 %v11935_v54, %v11470_v33  ;;  %v13828_v59 = vpack.c.bf16 %v12437_v0, %v12436_v1  ;;  %v12435_v6 = vmax.f32 %v12403_v21, 0.0  ;;  %v12041_v23 = vadd.f32 %v19421_v53, %v12002_v7  ;;  %v19896_v0 = vld [vmem:[#allocation22_spill] sm:$0xff] }
 0x498   : > { %v14831_v58 = vpop.f32.mrf.mxu1  ;;  %v12340_v25 = vadd.f32 %v19428_v61, %v12339_v27  ;;  %v14862_v39 = vpop.f32.mrf.mxu0  ;;  %v12408_v24 = vadd.f32 %v12348_v47, %v12040_v40  ;;  %v10660_v12 = vadd.f32 %v19895_v55, %v19894_v37  ;;  %v11480_v26 = vadd.f32 %v19897_v16, %v10662_v56 }
 0x499   : > { %v12005_v4 = vadd.f32 %v14831_v58, %v19393_v18  ;;  %13868 = vst [vmem:[%s19460_s21 + $0x48] sm:$0xff] %v13828_v59   ;;  %v13823_v36 = vpack.c.bf16 %v12435_v6, %v12434_v32  ;;  %v12351_v34 = vadd.f32 %v14862_v39, %v19428_v61  ;;  %v12039_v17 = vadd.f32 %v19421_v53, %v12000_v38  ;;  %v19898_v38 = vld [vmem:[#allocation19_spill] sm:$0xff] }
 0x49a   : > { %v11948_v35 = vpop.f32.mrf.mxu1  ;;  %v12342_v22 = vpop.f32.mrf.mxu0  ;;  %v12406_v62 = vadd.f32 %v12340_v25, %v12038_v48  ;;  %v12440_v52 = vmax.f32 %v12408_v24, 0.0  ;;  %v11478_v3 = vadd.f32 %v19899_v43, %v10660_v12 }
 0x49b   : > { %v12003_v41 = vadd.f32 %v11948_v35, %v19395_v10  ;;  %13867 = vst [vmem:[%s19460_s21 + $0x40] sm:$0xff] %v13823_v36   ;;  %v12343_v13 = vadd.f32 %v19428_v61, %v12342_v22  ;;  %v12409_v14 = vadd.f32 %v12351_v34, %v12041_v23  ;;  %v12044_v29 = vadd.f32 %v19421_v53, %v12005_v4 }
 0x49c   : > { %v14832_v2 = vpop.f32.mrf.mxu1  ;;  %v14865_v18 = vpop.f32.mrf.mxu0  ;;  %v12438_v20 = vmax.f32 %v12406_v62, 0.0 }
 0x49d   : > { %v12006_v9 = vadd.f32 %v14832_v2, %v11476_v19  ;;  %v12441_v42 = vmax.f32 %v12409_v14, 0.0  ;;  %v12364_v57 = vadd.f32 %v14865_v18, %v19428_v61  ;;  %v12407_v10 = vadd.f32 %v12343_v13, %v12039_v17 }
 0x49e   : > { %v11951_v11 = vpop.f32.mrf.mxu1  ;;  %v12355_v63 = vpop.f32.mrf.mxu0  ;;  %v12042_v50 = vadd.f32 %v19421_v53, %v12003_v41 }
 0x49f   : > { %v12004_v49 = vadd.f32 %v11951_v11, %v11474_v31  ;;  %v13838_v28 = vpack.c.bf16 %v12441_v42, %v12440_v52  ;;  %v12439_v15 = vmax.f32 %v12407_v10, 0.0  ;;  %v12045_v5 = vadd.f32 %v19421_v53, %v12006_v9 }
 0x4a0   : > { %v14835_v8 = vpop.f32.mrf.mxu1  ;;  %v12356_v1 = vadd.f32 %v19428_v61, %v12355_v63  ;;  %v12412_v60 = vadd.f32 %v12364_v57, %v12044_v29  ;;  %v14866_v7 = vpop.f32.mrf.mxu0 }
 0x4a1   : > { %13870 = vst [vmem:[%s19460_s21 + $0x58] sm:$0xff] %v13838_v28   ;;  %v13833_v51 = vpack.c.bf16 %v12439_v15, %v12438_v20  ;;  %v12367_v30 = vadd.f32 %v14866_v7, %v19428_v61  ;;  %v12043_v33 = vadd.f32 %v19421_v53, %v12004_v49  ;;  %v12009_v47 = vadd.f32 %v14835_v8, %v19896_v0 }
 0x4a2   : > { %v11964_v21 = vpop.f32.mrf.mxu1  ;;  %v12410_v40 = vadd.f32 %v12356_v1, %v12042_v50  ;;  %v12358_v54 = vpop.f32.mrf.mxu0  ;;  %v12444_v48 = vmax.f32 %v12412_v60, 0.0 }
 0x4a3   : > { %13869 = vst [vmem:[%s19460_s21 + $0x50] sm:$0xff] %v13833_v51   ;;  %v12359_v32 = vadd.f32 %v19428_v61, %v12358_v54  ;;  %v12413_v27 = vadd.f32 %v12367_v30, %v12045_v5  ;;  %v12007_v59 = vadd.f32 %v11964_v21, %v19898_v38  ;;  %v12048_v4 = vadd.f32 %v19421_v53, %v12009_v47 }
 0x4a4   : > { %v14836_v6 = vpop.f32.mrf.mxu1  ;;  %v14869_v23 = vpop.f32.mrf.mxu0  ;;  %v12442_v24 = vmax.f32 %v12410_v40, 0.0 }
 0x4a5   : > { %v12010_v58 = vadd.f32 %v14836_v6, %v11480_v26  ;;  %v12445_v45 = vmax.f32 %v12413_v27, 0.0  ;;  %v12380_v25 = vadd.f32 %v14869_v23, %v19428_v61  ;;  %v12411_v39 = vadd.f32 %v12359_v32, %v12043_v33 }
 0x4a6   : > { %v11967_v36 = vpop.f32.mrf.mxu1  ;;  %v12371_v34 = vpop.f32.mrf.mxu0  ;;  %v12046_v41 = vadd.f32 %v19421_v53, %v12007_v59 }
 0x4a7   : > { %v12008_v17 = vadd.f32 %v11967_v36, %v11478_v3  ;;  %v13848_v35 = vpack.c.bf16 %v12445_v45, %v12444_v48  ;;  %v12443_v22 = vmax.f32 %v12411_v39, 0.0  ;;  %v12049_v44 = vadd.f32 %v19421_v53, %v12010_v58 }
 0x4a8   : > { %v12372_v19 = vadd.f32 %v19428_v61, %v12371_v34  ;;  %v14870_v62 = vpop.f32.mrf.mxu0  ;;  %v12416_v14 = vadd.f32 %v12380_v25, %v12048_v4 }
 0x4a9   : > { %13872 = vst [vmem:[%s19460_s21 + $0x68] sm:$0xff] %v13848_v35   ;;  %v13843_v13 = vpack.c.bf16 %v12443_v22, %v12442_v24  ;;  %v12383_v2 = vadd.f32 %v14870_v62, %v19428_v61  ;;  %v12047_v18 = vadd.f32 %v19421_v53, %v12008_v17 }
 0x4aa   : > { %v12374_v29 = vpop.f32.mrf.mxu0  ;;  %v12414_v9 = vadd.f32 %v12372_v19, %v12046_v41  ;;  %v12448_v42 = vmax.f32 %v12416_v14, 0.0 }
 0x4ab   : > { %13871 = vst [vmem:[%s19460_s21 + $0x60] sm:$0xff] %v13843_v13   ;;  %v12375_v31 = vadd.f32 %v19428_v61, %v12374_v29  ;;  %v12417_v52 = vadd.f32 %v12383_v2, %v12049_v44 }
 0x4ac   : > { %v12446_v11 = vmax.f32 %v12414_v9, 0.0 }
 0x4ad   : > { %v12449_v57 = vmax.f32 %v12417_v52, 0.0  ;;  %v12415_v10 = vadd.f32 %v12375_v31, %v12047_v18 }
 0x4af   : > { %v13858_v46 = vpack.c.bf16 %v12449_v57, %v12448_v42  ;;  %v12447_v56 = vmax.f32 %v12415_v10, 0.0 }
 0x4b1   : > { %13874 = vst [vmem:[%s19460_s21 + $0x78] sm:$0xff] %v13858_v46   ;;  %v13853_v53 = vpack.c.bf16 %v12447_v56, %v12446_v11 }
 0x4b3   : > { %13873 = vst [vmem:[%s19460_s21 + $0x70] sm:$0xff] %v13853_v53  }
 0x4b4   : > { %15136 = shalt.err (!%p15133_p5)
}
 0x4b5   : > { %s15137_s18 = scalar_lea.hbm %s19576_s13, 2048  ;;  %s15141_s21 = scalar_lea.hbm %s19630_s7, 4096 }
 0x4b6   : > { %p15138_p7 = scmp.ne.s32.totalorder %s19576_s13, %s15137_s18  ;;  %p15142_p12 = scmp.lt.s32.totalorder %s19576_s13, %s19630_s7 }
 0x4b7   : > { %p15143_p13 = scmp.lt.s32.totalorder %s15141_s21, %s15137_s18 }
 0x4b8   : > { %p15139_p10 = pnand %p15138_p7, %p15267_p6 }
 0x4b9   : > { %p15144_p0 = por %p15143_p13, %p15142_p12 }
 0x4ba   : > { %p15140_p11 = pneg %p15139_p10 }
 0x4bc   : > { %p15145_p1 = pnand %p15144_p0, %p15140_p11 }
 0x4be   : > { %15148 = shalt.err (!%p15145_p1)
}
 0x4bf   : > { %s15187_s9 = smov 64   ;;  %s15188_s16 = smov 4  }
 0x4c0   : > { %14876 = dma.vmem_to_hbm [thread:$0]  (%p15267_p6), %s19578_s29, 2048, %s19576_s13, %s12515_s15, %s15187_s9, %s15187_s9, %s15188_s16  }
 0x4c1 PF: > { %s12544_s28 = sand.u32 1, %s15171_s24   ;;  %p14879_p2 = pnand %p12599_p9, %p15271_p8 }
 0x4c2   : > { %s12545_s14 = scalar_lea.sflag [#allocation5], %s12544_s28 }
 0x4c3   : > { %p14880_p3 = pneg %p14879_p2 }
 0x4c5   : > { %15166 = dma.done.wait (%p14880_p3), %s12545_s14, 2048  }
 0x4c6   : > { %15168 = vsyncadd (%p14880_p3), %s12545_s14, 4294965248  ;;  %p17_p4 = scmp.ge.s32.totalorder %s15252_s30, 4   ;;  %s19900_s24 = smov %s15175_s25 }
 0x4c7   : > { %s19901_s25 = smov %s15179_s26  ;;  %s19902_s26 = smov %s15265_s10 }
 0x4c8   : > { %s19903_s27 = smov %s15252_s30  ;;  %19 = sbr.rel (!%p17_p4) target bundleno = 3 (0x3), region = 153 }
 0x4cd   :  { %12550 = vsyncpa [#allocation5], 1 }
 0x4ce   :  { %12552 = vsyncpa [#allocation5 + $0x1], 1 }

</bundles_post_ra>
